<compile_context>
chip_gen: v7x
topology: tpu7x:2x2x1
jax: 0.10.0
libtpu: 0.0.40
codegen_flags: <defaults>
</compile_context>

<pallas_src>
import functools

import jax
import jax.numpy as jnp
from jax.experimental import pallas as pl
from jax.experimental.pallas import tpu as pltpu

# ---------------------------------------------------------------------------
# Geometry: 28x28 -> conv1/pool -> 14x14 -> conv2/pool -> 7x7, channels padded
# to 128 lanes. Padded row stride Wp is a multiple of 8 so all stores are
# full-tile.
# ---------------------------------------------------------------------------
LANES = 128
H1, W1, WP1 = 28, 28, 32          # conv1 spatial, padded row stride
R1 = H1 * WP1                     # 896 output rows (incl. garbage cols)
L1 = R1 + 2 * WP1 + 8             # 968 flattened padded-input rows
H2, W2, WP2 = 14, 14, 16          # conv2
R2 = H2 * WP2                     # 224
L2 = R2 + 2 * WP2 + 8             # 264


# ---------------------------------------------------------------------------
# Pallas kernels
# ---------------------------------------------------------------------------
def _conv3x3_relu_kernel(x_ref, w_ref, b_ref, o_ref, *, Wp, R, Cin, Cout):
    """3x3 'same' conv on a row-flattened zero-padded image, + bias + ReLU.

    x_ref : (1, L, Cin)   row r = padded pixel (r // Wp, r % Wp)
    w_ref : (9, Cin, Cout) tap-major weights (Cout zero-padded to 128 lanes)
    b_ref : (1, Cout)
    o_ref : (1, R, Cout)  row r = output pixel (r // Wp, r % Wp);
                          columns >= W are garbage and cropped by the caller.
    Output pixel (h, w): acc[h*Wp + w] = sum_k x[h*Wp + w + kh*Wp + kw] @ w[k].
    """
    x = x_ref[0].astype(jnp.float32)                       # (L, Cin)
    if Cin == 1:
        # conv1: K=1 contraction -> VPU broadcast-MACs; hoist the lane
        # broadcast out of the 9-tap loop (broadcasts are not CSE'd).
        x = jnp.broadcast_to(x, (x.shape[0], Cout))        # (L, Cout)

    acc = jnp.zeros((R, Cout), jnp.float32)
    for kh in range(3):
        for kw in range(3):
            k = kh * 3 + kw
            start = kh * Wp + kw
            tap = x[start:start + R, :]                    # static row-shifted slice
            if Cin == 1:
                acc = acc + tap * w_ref[k]                 # (R,Cout) * (1,Cout)
            else:
                acc = acc + jnp.dot(tap, w_ref[k],
                                    preferred_element_type=jnp.float32)

    acc = jnp.maximum(acc + b_ref[...], 0.0)
    o_ref[0] = acc.astype(o_ref.dtype)                     # lane-dense (R, 128) store


def _fc_head_kernel(x_ref, w1_ref, b1_ref, w2_ref, b2_ref, o_ref, *, B):
    """fc1 + ReLU + fc2 + L2 distance + sigmoid, both branches batched.

    x_ref rows [0, B)  -> features of img1
    x_ref rows [B, 2B) -> features of img2
    """
    h = jnp.dot(x_ref[...], w1_ref[...], preferred_element_type=jnp.float32)
    h = jnp.maximum(h + b1_ref[...], 0.0)                  # (2B, 128) f32
    f = jnp.dot(h.astype(jnp.bfloat16), w2_ref[...],
                preferred_element_type=jnp.float32) + b2_ref[...]
    d = f[:B, :] - f[B:, :]                                # (B, 128)
    dist = jnp.sqrt(jnp.sum(d * d, axis=1, keepdims=True))  # (B, 1)
    o_ref[...] = 1.0 / (1.0 + jnp.exp(dist - 1.0))         # sigmoid(1 - dist)


# ---------------------------------------------------------------------------
# pallas_call wrappers
# ---------------------------------------------------------------------------
def _conv3x3_relu(x_flat, w, b, *, Wp, R, Cin):
    N, L, _ = x_flat.shape
    Cout = w.shape[-1]
    kernel = functools.partial(_conv3x3_relu_kernel, Wp=Wp, R=R, Cin=Cin, Cout=Cout)
    bytes_acc = int(x_flat.size * x_flat.dtype.itemsize + w.size * 4
                    + b.size * 4 + N * R * Cout * 2)
    return pl.pallas_call(
        kernel,
        out_shape=jax.ShapeDtypeStruct((N, R, Cout), jnp.bfloat16),
        grid=(N,),
        in_specs=[
            pl.BlockSpec((1, L, Cin), lambda i: (i, 0, 0)),
            pl.BlockSpec((9, Cin, Cout), lambda i: (0, 0, 0)),
            pl.BlockSpec((1, Cout), lambda i: (0, 0)),
        ],
        out_specs=pl.BlockSpec((1, R, Cout), lambda i: (i, 0, 0)),
        compiler_params=pltpu.CompilerParams(
            dimension_semantics=("parallel",)),
        cost_estimate=pl.CostEstimate(
            flops=2 * N * R * 9 * Cin * Cout,
            transcendentals=0,
            bytes_accessed=bytes_acc),
    )(x_flat, w, b)


def _fc_head(x, w1, b1, w2, b2, *, B):
    N, K1 = x.shape
    kernel = functools.partial(_fc_head_kernel, B=B)
    return pl.pallas_call(
        kernel,
        out_shape=jax.ShapeDtypeStruct((B, 1), jnp.float32),
        grid=(1,),
        in_specs=[
            pl.BlockSpec((N, K1), lambda i: (0, 0)),
            pl.BlockSpec(w1.shape, lambda i: (0, 0)),
            pl.BlockSpec(b1.shape, lambda i: (0, 0)),
            pl.BlockSpec(w2.shape, lambda i: (0, 0)),
            pl.BlockSpec(b2.shape, lambda i: (0, 0)),
        ],
        out_specs=pl.BlockSpec((B, 1), lambda i: (0, 0)),
        compiler_params=pltpu.CompilerParams(
            dimension_semantics=("arbitrary",)),
        cost_estimate=pl.CostEstimate(
            flops=2 * N * (K1 * 128 + 128 * 128),
            transcendentals=B,
            bytes_accessed=int(x.size * 2 + w1.size * 2 + w2.size * 2 + 1024)),
    )(x, w1, b1, w2, b2)


# ---------------------------------------------------------------------------
# Parameters
# ---------------------------------------------------------------------------
def init_params(key):
    ks = jax.random.split(key, 8)
    s = 0.05
    return dict(
        conv1_w=s * jax.random.normal(ks[0], (32, 1, 3, 3), jnp.float32),
        conv1_b=s * jax.random.normal(ks[1], (32,), jnp.float32),
        conv2_w=s * jax.random.normal(ks[2], (64, 32, 3, 3), jnp.float32),
        conv2_b=s * jax.random.normal(ks[3], (64,), jnp.float32),
        fc1_w=s * jax.random.normal(ks[4], (128, 64 * 7 * 7), jnp.float32),
        fc1_b=s * jax.random.normal(ks[5], (128,), jnp.float32),
        fc2_w=s * jax.random.normal(ks[6], (128, 128), jnp.float32),
        fc2_b=s * jax.random.normal(ks[7], (128,), jnp.float32),
    )


def prepare_params(params):
    """One-time weight layout prep (done outside the jitted hot path):
    tap-major conv weights with Cin/Cout zero-padded to 128 lanes, FC weights
    pre-transposed to (K, N) in bf16, and fc1's K axis permuted from PyTorch's
    NCHW-flatten order to the NHWC(+pad)-flatten order of the pooled output."""
    f32, bf16 = jnp.float32, jnp.bfloat16
    # conv1: (32,1,3,3) -> (9, 1, 128)
    c1w = jnp.transpose(params["conv1_w"], (2, 3, 1, 0)).reshape(9, 1, 32)
    c1w = jnp.pad(c1w, ((0, 0), (0, 0), (0, LANES - 32))).astype(f32)
    c1b = jnp.pad(params["conv1_b"], (0, LANES - 32)).reshape(1, LANES).astype(f32)
    # conv2: (64,32,3,3) -> (9, 128, 128)
    c2w = jnp.transpose(params["conv2_w"], (2, 3, 1, 0)).reshape(9, 32, 64)
    c2w = jnp.pad(c2w, ((0, 0), (0, LANES - 32), (0, LANES - 64))).astype(f32)
    c2b = jnp.pad(params["conv2_b"], (0, LANES - 64)).reshape(1, LANES).astype(f32)
    # fc1: (128, 64*7*7) with K in (c, h, w) order -> (7*7*128, 128) in (h, w, c_pad)
    f1w = params["fc1_w"].reshape(128, 64, 7, 7)
    f1w = jnp.transpose(f1w, (2, 3, 1, 0))                  # (7, 7, 64, 128)
    f1w = jnp.pad(f1w, ((0, 0), (0, 0), (0, LANES - 64), (0, 0)))
    f1w = f1w.reshape(7 * 7 * LANES, 128).astype(bf16)
    f1b = params["fc1_b"].reshape(1, 128).astype(f32)
    f2w = params["fc2_w"].T.astype(bf16)                    # (K=128, N=128)
    f2b = params["fc2_b"].reshape(1, 128).astype(f32)
    return dict(conv1_w=c1w, conv1_b=c1b, conv2_w=c2w, conv2_b=c2b,
                fc1_w=f1w, fc1_b=f1b, fc2_w=f2w, fc2_b=f2b)


# ---------------------------------------------------------------------------
# Forward pass (both Siamese branches batched together)
# ---------------------------------------------------------------------------
def siamese_forward(prep, img1, img2):
    B = img1.shape[0]
    N = 2 * B
    x = jnp.concatenate([img1, img2], axis=0)               # (2B, 1, 28, 28)
    x = x.reshape(N, H1, W1, 1)                              # NCHW (C=1) -> NHWC

    # ---- conv1 + ReLU (Pallas); 2x2 maxpool + crop (XLA glue) ----
    xp = jnp.pad(x, ((0, 0), (1, 1), (1, WP1 - W1 - 1), (0, 0)))      # (N,30,32,1)
    xf = xp.reshape(N, (H1 + 2) * WP1, 1)
    xf = jnp.pad(xf, ((0, 0), (0, L1 - (H1 + 2) * WP1), (0, 0)))       # (N,968,1)
    y1 = _conv3x3_relu(xf, prep["conv1_w"], prep["conv1_b"],
                       Wp=WP1, R=R1, Cin=1)                            # (N,896,128)
    y1 = y1.reshape(N, H1, WP1, LANES)[:, :, :W1, :]
    p1 = y1.reshape(N, H1 // 2, 2, W1 // 2, 2, LANES).max(axis=(2, 4))  # (N,14,14,128)

    # ---- conv2 + ReLU (Pallas); 2x2 maxpool + crop (XLA glue) ----
    x2 = jnp.pad(p1, ((0, 0), (1, 1), (1, 1), (0, 0)))                 # (N,16,16,128)
    x2 = x2.reshape(N, (H2 + 2) * WP2, LANES)
    x2 = jnp.pad(x2, ((0, 0), (0, L2 - (H2 + 2) * WP2), (0, 0)))       # (N,264,128)
    y2 = _conv3x3_relu(x2, prep["conv2_w"], prep["conv2_b"],
                       Wp=WP2, R=R2, Cin=LANES)                        # (N,224,128)
    y2 = y2.reshape(N, H2, WP2, LANES)[:, :, :W2, :]
    p2 = y2.reshape(N, H2 // 2, 2, W2 // 2, 2, LANES).max(axis=(2, 4))  # (N,7,7,128)

    # ---- fc1 + ReLU + fc2 + L2 distance + sigmoid (single Pallas kernel) ----
    feats = p2.reshape(N, 7 * 7 * LANES)                               # (N,6272) bf16
    return _fc_head(feats, prep["fc1_w"], prep["fc1_b"],
                    prep["fc2_w"], prep["fc2_b"], B=B)                 # (B,1)


# ---------------------------------------------------------------------------
# Pure-JAX f32 reference (same math as the PyTorch module)
# ---------------------------------------------------------------------------
def _ref_conv3x3_relu(x_nhwc, w_oihw, b):
    n, h, w, c = x_nhwc.shape
    cout = w_oihw.shape[0]
    xp = jnp.pad(x_nhwc, ((0, 0), (1, 1), (1, 1), (0, 0)))
    taps = [xp[:, kh:kh + h, kw:kw + w, :] for kh in range(3) for kw in range(3)]
    patches = jnp.stack(taps, axis=-1).reshape(n * h * w, c * 9)
    wmat = w_oihw.reshape(cout, c * 9).T
    y = jnp.maximum(patches @ wmat + b, 0.0)
    return y.reshape(n, h, w, cout)


def _ref_pool2x2(x):
    n, h, w, c = x.shape
    return x.reshape(n, h // 2, 2, w // 2, 2, c).max(axis=(2, 4))


def reference_forward(params, img1, img2):
    def feat(x_nchw):
        x = jnp.transpose(x_nchw, (0, 2, 3, 1))
        x = _ref_pool2x2(_ref_conv3x3_relu(x, params["conv1_w"], params["conv1_b"]))
        x = _ref_pool2x2(_ref_conv3x3_relu(x, params["conv2_w"], params["conv2_b"]))
        n = x.shape[0]
        x = jnp.transpose(x, (0, 3, 1, 2)).reshape(n, 64 * 7 * 7)
        x = jnp.maximum(x @ params["fc1_w"].T + params["fc1_b"], 0.0)
        return x @ params["fc2_w"].T + params["fc2_b"]
    f1, f2 = feat(img1), feat(img2)
    dist = jnp.sqrt(jnp.sum((f1 - f2) ** 2, axis=1, keepdims=True))
    return 1.0 / (1.0 + jnp.exp(dist - 1.0))


# ---------------------------------------------------------------------------
if __name__ == "__main__":
    key = jax.random.PRNGKey(0)
    k1, k2 = jax.random.split(key)

    B = 2
    # 28x28 single-channel inputs are required by fc1 (64*7*7 after two pools).
    img1 = jax.random.normal(k1, (B, 1, 28, 28), jnp.float32)
    img2 = jax.random.normal(k2, (B, 1, 28, 28), jnp.float32)

    params = init_params(jax.random.PRNGKey(42))
    prep = prepare_params(params)          # one-time weight layout prep

    out = jax.jit(siamese_forward)(prep, img1, img2)
    out = jax.block_until_ready(out)

    ref = jax.block_until_ready(jax.jit(reference_forward)(params, img1, img2))

    assert out.shape == (B, 1)
    assert bool(jnp.all(jnp.isfinite(out)))
    assert float(jnp.max(jnp.abs(out - ref))) < 5e-2
    print("KERNEL_OK")
</pallas_src>

<mosaic_0001>
module attributes {stable_mosaic.version = 11 : i64} {
  func.func @_conv3x3_relu_kernel(%arg0: i32, %arg1: memref<1x968x1xf32, #tpu.memory_space<vmem>>, %arg2: memref<9x1x128xf32, #tpu.memory_space<vmem>>, %arg3: memref<1x128xf32, #tpu.memory_space<vmem>>, %arg4: memref<1x896x128xbf16, #tpu.memory_space<vmem>>) attributes {dimension_semantics = [#tpu.dimension_semantics<parallel>], iteration_bounds = array<i64: 4>, scalar_prefetch = 0 : i64, scratch_operands = 0 : i64, tpu.core_type = #tpu.core_type<tc>, window_params = [{transform_indices = @transform_0, window_bounds = array<i64: 1, 968, 1>}, {pipeline_mode = #tpu.pipeline_mode<synchronous>, transform_indices = @transform_1, window_bounds = array<i64: 9, 1, 128>}, {pipeline_mode = #tpu.pipeline_mode<synchronous>, transform_indices = @transform_2, window_bounds = array<i64: 1, 128>}, {transform_indices = @transform_3, window_bounds = array<i64: 1, 896, 128>}]} {
    %c0 = arith.constant 0 : index
    %c0_0 = arith.constant 0 : index
    %c0_1 = arith.constant 0 : index
    %0 = vector.load %arg1[%c0, %c0_0, %c0_1] : memref<1x968x1xf32, #tpu.memory_space<vmem>>, vector<1x968x1xf32>
    %1 = vector.shape_cast %0 : vector<1x968x1xf32> to vector<968x1xf32>
    %2 = vector.shape_cast %1 : vector<968x1xf32> to vector<968x1xf32>
    %3 = vector.broadcast %2 : vector<968x1xf32> to vector<968x128xf32>
    %cst = arith.constant 0.000000e+00 : f32
    %4 = vector.broadcast %cst : f32 to vector<896x128xf32>
    %5 = vector.extract_strided_slice %3 {offsets = [0, 0], sizes = [896, 128], strides = [1, 1]} : vector<968x128xf32> to vector<896x128xf32>
    %c0_2 = arith.constant 0 : index
    %c0_3 = arith.constant 0 : index
    %c0_4 = arith.constant 0 : index
    %6 = vector.load %arg2[%c0_2, %c0_3, %c0_4] : memref<9x1x128xf32, #tpu.memory_space<vmem>>, vector<1x1x128xf32>
    %7 = vector.shape_cast %6 : vector<1x1x128xf32> to vector<1x128xf32>
    %8 = vector.broadcast %7 : vector<1x128xf32> to vector<896x128xf32>
    %9 = arith.mulf %5, %8 : vector<896x128xf32>
    %10 = arith.addf %4, %9 : vector<896x128xf32>
    %11 = vector.extract_strided_slice %3 {offsets = [1, 0], sizes = [896, 128], strides = [1, 1]} : vector<968x128xf32> to vector<896x128xf32>
    %c1 = arith.constant 1 : index
    %c0_5 = arith.constant 0 : index
    %c0_6 = arith.constant 0 : index
    %12 = vector.load %arg2[%c1, %c0_5, %c0_6] : memref<9x1x128xf32, #tpu.memory_space<vmem>>, vector<1x1x128xf32>
    %13 = vector.shape_cast %12 : vector<1x1x128xf32> to vector<1x128xf32>
    %14 = vector.broadcast %13 : vector<1x128xf32> to vector<896x128xf32>
    %15 = arith.mulf %11, %14 : vector<896x128xf32>
    %16 = arith.addf %10, %15 : vector<896x128xf32>
    %17 = vector.extract_strided_slice %3 {offsets = [2, 0], sizes = [896, 128], strides = [1, 1]} : vector<968x128xf32> to vector<896x128xf32>
    %c2 = arith.constant 2 : index
    %c0_7 = arith.constant 0 : index
    %c0_8 = arith.constant 0 : index
    %18 = vector.load %arg2[%c2, %c0_7, %c0_8] : memref<9x1x128xf32, #tpu.memory_space<vmem>>, vector<1x1x128xf32>
    %19 = vector.shape_cast %18 : vector<1x1x128xf32> to vector<1x128xf32>
    %20 = vector.broadcast %19 : vector<1x128xf32> to vector<896x128xf32>
    %21 = arith.mulf %17, %20 : vector<896x128xf32>
    %22 = arith.addf %16, %21 : vector<896x128xf32>
    %23 = vector.extract_strided_slice %3 {offsets = [32, 0], sizes = [896, 128], strides = [1, 1]} : vector<968x128xf32> to vector<896x128xf32>
    %c3 = arith.constant 3 : index
    %c0_9 = arith.constant 0 : index
    %c0_10 = arith.constant 0 : index
    %24 = vector.load %arg2[%c3, %c0_9, %c0_10] : memref<9x1x128xf32, #tpu.memory_space<vmem>>, vector<1x1x128xf32>
    %25 = vector.shape_cast %24 : vector<1x1x128xf32> to vector<1x128xf32>
    %26 = vector.broadcast %25 : vector<1x128xf32> to vector<896x128xf32>
    %27 = arith.mulf %23, %26 : vector<896x128xf32>
    %28 = arith.addf %22, %27 : vector<896x128xf32>
    %29 = vector.extract_strided_slice %3 {offsets = [33, 0], sizes = [896, 128], strides = [1, 1]} : vector<968x128xf32> to vector<896x128xf32>
    %c4 = arith.constant 4 : index
    %c0_11 = arith.constant 0 : index
    %c0_12 = arith.constant 0 : index
    %30 = vector.load %arg2[%c4, %c0_11, %c0_12] : memref<9x1x128xf32, #tpu.memory_space<vmem>>, vector<1x1x128xf32>
    %31 = vector.shape_cast %30 : vector<1x1x128xf32> to vector<1x128xf32>
    %32 = vector.broadcast %31 : vector<1x128xf32> to vector<896x128xf32>
    %33 = arith.mulf %29, %32 : vector<896x128xf32>
    %34 = arith.addf %28, %33 : vector<896x128xf32>
    %35 = vector.extract_strided_slice %3 {offsets = [34, 0], sizes = [896, 128], strides = [1, 1]} : vector<968x128xf32> to vector<896x128xf32>
    %c5 = arith.constant 5 : index
    %c0_13 = arith.constant 0 : index
    %c0_14 = arith.constant 0 : index
    %36 = vector.load %arg2[%c5, %c0_13, %c0_14] : memref<9x1x128xf32, #tpu.memory_space<vmem>>, vector<1x1x128xf32>
    %37 = vector.shape_cast %36 : vector<1x1x128xf32> to vector<1x128xf32>
    %38 = vector.broadcast %37 : vector<1x128xf32> to vector<896x128xf32>
    %39 = arith.mulf %35, %38 : vector<896x128xf32>
    %40 = arith.addf %34, %39 : vector<896x128xf32>
    %41 = vector.extract_strided_slice %3 {offsets = [64, 0], sizes = [896, 128], strides = [1, 1]} : vector<968x128xf32> to vector<896x128xf32>
    %c6 = arith.constant 6 : index
    %c0_15 = arith.constant 0 : index
    %c0_16 = arith.constant 0 : index
    %42 = vector.load %arg2[%c6, %c0_15, %c0_16] : memref<9x1x128xf32, #tpu.memory_space<vmem>>, vector<1x1x128xf32>
    %43 = vector.shape_cast %42 : vector<1x1x128xf32> to vector<1x128xf32>
    %44 = vector.broadcast %43 : vector<1x128xf32> to vector<896x128xf32>
    %45 = arith.mulf %41, %44 : vector<896x128xf32>
    %46 = arith.addf %40, %45 : vector<896x128xf32>
    %47 = vector.extract_strided_slice %3 {offsets = [65, 0], sizes = [896, 128], strides = [1, 1]} : vector<968x128xf32> to vector<896x128xf32>
    %c7 = arith.constant 7 : index
    %c0_17 = arith.constant 0 : index
    %c0_18 = arith.constant 0 : index
    %48 = vector.load %arg2[%c7, %c0_17, %c0_18] : memref<9x1x128xf32, #tpu.memory_space<vmem>>, vector<1x1x128xf32>
    %49 = vector.shape_cast %48 : vector<1x1x128xf32> to vector<1x128xf32>
    %50 = vector.broadcast %49 : vector<1x128xf32> to vector<896x128xf32>
    %51 = arith.mulf %47, %50 : vector<896x128xf32>
    %52 = arith.addf %46, %51 : vector<896x128xf32>
    %53 = vector.extract_strided_slice %3 {offsets = [66, 0], sizes = [896, 128], strides = [1, 1]} : vector<968x128xf32> to vector<896x128xf32>
    %c8 = arith.constant 8 : index
    %c0_19 = arith.constant 0 : index
    %c0_20 = arith.constant 0 : index
    %54 = vector.load %arg2[%c8, %c0_19, %c0_20] : memref<9x1x128xf32, #tpu.memory_space<vmem>>, vector<1x1x128xf32>
    %55 = vector.shape_cast %54 : vector<1x1x128xf32> to vector<1x128xf32>
    %56 = vector.broadcast %55 : vector<1x128xf32> to vector<896x128xf32>
    %57 = arith.mulf %53, %56 : vector<896x128xf32>
    %58 = arith.addf %52, %57 : vector<896x128xf32>
    %c0_21 = arith.constant 0 : index
    %c0_22 = arith.constant 0 : index
    %59 = vector.load %arg3[%c0_21, %c0_22] : memref<1x128xf32, #tpu.memory_space<vmem>>, vector<1x128xf32>
    %60 = vector.broadcast %59 : vector<1x128xf32> to vector<896x128xf32>
    %61 = arith.addf %58, %60 : vector<896x128xf32>
    %cst_23 = arith.constant 0.000000e+00 : f32
    %62 = vector.broadcast %cst_23 : f32 to vector<896x128xf32>
    %63 = arith.maximumf %61, %62 : vector<896x128xf32>
    %64 = arith.truncf %63 : vector<896x128xf32> to vector<896x128xbf16>
    %c0_24 = arith.constant 0 : index
    %c0_25 = arith.constant 0 : index
    %c0_26 = arith.constant 0 : index
    %65 = vector.load %arg4[%c0_24, %c0_25, %c0_26] : memref<1x896x128xbf16, #tpu.memory_space<vmem>>, vector<1x896x128xbf16>
    %66 = vector.shape_cast %65 : vector<1x896x128xbf16> to vector<896x128xbf16>
    %67 = vector.shape_cast %64 : vector<896x128xbf16> to vector<1x896x128xbf16>
    tpu.vector_store %arg4[%c0_24, %c0_25, %c0_26], %67 {strides = array<i32>} : memref<1x896x128xbf16, #tpu.memory_space<vmem>>, vector<1x896x128xbf16>,
    return
  }
  func.func @transform_0(%arg0: i32) -> (i32, i32, i32) {
    %c0_i32 = arith.constant 0 : i32
    %c0_i32_0 = arith.constant 0 : i32
    %c0_i32_1 = arith.constant 0 : i32
    return %arg0, %c0_i32, %c0_i32_0 : i32, i32, i32
  }
  func.func @transform_1(%arg0: i32) -> (i32, i32, i32) {
    %c0_i32 = arith.constant 0 : i32
    %c0_i32_0 = arith.constant 0 : i32
    %c0_i32_1 = arith.constant 0 : i32
    %c0_i32_2 = arith.constant 0 : i32
    return %c0_i32, %c0_i32_0, %c0_i32_1 : i32, i32, i32
  }
  func.func @transform_2(%arg0: i32) -> (i32, i32) {
    %c0_i32 = arith.constant 0 : i32
    %c0_i32_0 = arith.constant 0 : i32
    %c0_i32_1 = arith.constant 0 : i32
    return %c0_i32, %c0_i32_0 : i32, i32
  }
  func.func @transform_3(%arg0: i32) -> (i32, i32, i32) {
    %c0_i32 = arith.constant 0 : i32
    %c0_i32_0 = arith.constant 0 : i32
    %c0_i32_1 = arith.constant 0 : i32
    return %arg0, %c0_i32, %c0_i32_0 : i32, i32, i32
  }
}

module attributes {stable_mosaic.version = 11 : i64} {
  func.func @_conv3x3_relu_kernel(%arg0: i32, %arg1: memref<1x264x128xbf16, #tpu.memory_space<vmem>>, %arg2: memref<9x128x128xf32, #tpu.memory_space<vmem>>, %arg3: memref<1x128xf32, #tpu.memory_space<vmem>>, %arg4: memref<1x224x128xbf16, #tpu.memory_space<vmem>>) attributes {dimension_semantics = [#tpu.dimension_semantics<parallel>], iteration_bounds = array<i64: 4>, scalar_prefetch = 0 : i64, scratch_operands = 0 : i64, tpu.core_type = #tpu.core_type<tc>, window_params = [{transform_indices = @transform_0, window_bounds = array<i64: 1, 264, 128>}, {pipeline_mode = #tpu.pipeline_mode<synchronous>, transform_indices = @transform_1, window_bounds = array<i64: 9, 128, 128>}, {pipeline_mode = #tpu.pipeline_mode<synchronous>, transform_indices = @transform_2, window_bounds = array<i64: 1, 128>}, {transform_indices = @transform_3, window_bounds = array<i64: 1, 224, 128>}]} {
    %c0 = arith.constant 0 : index
    %c0_0 = arith.constant 0 : index
    %c0_1 = arith.constant 0 : index
    %0 = vector.load %arg1[%c0, %c0_0, %c0_1] : memref<1x264x128xbf16, #tpu.memory_space<vmem>>, vector<1x264x128xbf16>
    %1 = vector.shape_cast %0 : vector<1x264x128xbf16> to vector<264x128xbf16>
    %2 = arith.extf %1 : vector<264x128xbf16> to vector<264x128xf32>
    %cst = arith.constant 0.000000e+00 : f32
    %3 = vector.broadcast %cst : f32 to vector<224x128xf32>
    %4 = vector.extract_strided_slice %2 {offsets = [0, 0], sizes = [224, 128], strides = [1, 1]} : vector<264x128xf32> to vector<224x128xf32>
    %c0_2 = arith.constant 0 : index
    %c0_3 = arith.constant 0 : index
    %c0_4 = arith.constant 0 : index
    %5 = vector.load %arg2[%c0_2, %c0_3, %c0_4] : memref<9x128x128xf32, #tpu.memory_space<vmem>>, vector<1x128x128xf32>
    %6 = vector.shape_cast %5 : vector<1x128x128xf32> to vector<128x128xf32>
    %cst_5 = arith.constant dense<0.000000e+00> : vector<224x128xf32>
    %7 = tpu.matmul %4, %6, %cst_5 {dimension_numbers = #tpu.dot_dimension_numbers<[1], [0], [0], [1], [0, 0, 1, 1], [], []>} : vector<224x128xf32>, vector<128x128xf32>, vector<224x128xf32> -> vector<224x128xf32>
    %8 = arith.addf %3, %7 : vector<224x128xf32>
    %9 = vector.extract_strided_slice %2 {offsets = [1, 0], sizes = [224, 128], strides = [1, 1]} : vector<264x128xf32> to vector<224x128xf32>
    %c1 = arith.constant 1 : index
    %c0_6 = arith.constant 0 : index
    %c0_7 = arith.constant 0 : index
    %10 = vector.load %arg2[%c1, %c0_6, %c0_7] : memref<9x128x128xf32, #tpu.memory_space<vmem>>, vector<1x128x128xf32>
    %11 = vector.shape_cast %10 : vector<1x128x128xf32> to vector<128x128xf32>
    %cst_8 = arith.constant dense<0.000000e+00> : vector<224x128xf32>
    %12 = tpu.matmul %9, %11, %cst_8 {dimension_numbers = #tpu.dot_dimension_numbers<[1], [0], [0], [1], [0, 0, 1, 1], [], []>} : vector<224x128xf32>, vector<128x128xf32>, vector<224x128xf32> -> vector<224x128xf32>
    %13 = arith.addf %8, %12 : vector<224x128xf32>
    %14 = vector.extract_strided_slice %2 {offsets = [2, 0], sizes = [224, 128], strides = [1, 1]} : vector<264x128xf32> to vector<224x128xf32>
    %c2 = arith.constant 2 : index
    %c0_9 = arith.constant 0 : index
    %c0_10 = arith.constant 0 : index
    %15 = vector.load %arg2[%c2, %c0_9, %c0_10] : memref<9x128x128xf32, #tpu.memory_space<vmem>>, vector<1x128x128xf32>
    %16 = vector.shape_cast %15 : vector<1x128x128xf32> to vector<128x128xf32>
    %cst_11 = arith.constant dense<0.000000e+00> : vector<224x128xf32>
    %17 = tpu.matmul %14, %16, %cst_11 {dimension_numbers = #tpu.dot_dimension_numbers<[1], [0], [0], [1], [0, 0, 1, 1], [], []>} : vector<224x128xf32>, vector<128x128xf32>, vector<224x128xf32> -> vector<224x128xf32>
    %18 = arith.addf %13, %17 : vector<224x128xf32>
    %19 = vector.extract_strided_slice %2 {offsets = [16, 0], sizes = [224, 128], strides = [1, 1]} : vector<264x128xf32> to vector<224x128xf32>
    %c3 = arith.constant 3 : index
    %c0_12 = arith.constant 0 : index
    %c0_13 = arith.constant 0 : index
    %20 = vector.load %arg2[%c3, %c0_12, %c0_13] : memref<9x128x128xf32, #tpu.memory_space<vmem>>, vector<1x128x128xf32>
    %21 = vector.shape_cast %20 : vector<1x128x128xf32> to vector<128x128xf32>
    %cst_14 = arith.constant dense<0.000000e+00> : vector<224x128xf32>
    %22 = tpu.matmul %19, %21, %cst_14 {dimension_numbers = #tpu.dot_dimension_numbers<[1], [0], [0], [1], [0, 0, 1, 1], [], []>} : vector<224x128xf32>, vector<128x128xf32>, vector<224x128xf32> -> vector<224x128xf32>
    %23 = arith.addf %18, %22 : vector<224x128xf32>
    %24 = vector.extract_strided_slice %2 {offsets = [17, 0], sizes = [224, 128], strides = [1, 1]} : vector<264x128xf32> to vector<224x128xf32>
    %c4 = arith.constant 4 : index
    %c0_15 = arith.constant 0 : index
    %c0_16 = arith.constant 0 : index
    %25 = vector.load %arg2[%c4, %c0_15, %c0_16] : memref<9x128x128xf32, #tpu.memory_space<vmem>>, vector<1x128x128xf32>
    %26 = vector.shape_cast %25 : vector<1x128x128xf32> to vector<128x128xf32>
    %cst_17 = arith.constant dense<0.000000e+00> : vector<224x128xf32>
    %27 = tpu.matmul %24, %26, %cst_17 {dimension_numbers = #tpu.dot_dimension_numbers<[1], [0], [0], [1], [0, 0, 1, 1], [], []>} : vector<224x128xf32>, vector<128x128xf32>, vector<224x128xf32> -> vector<224x128xf32>
    %28 = arith.addf %23, %27 : vector<224x128xf32>
    %29 = vector.extract_strided_slice %2 {offsets = [18, 0], sizes = [224, 128], strides = [1, 1]} : vector<264x128xf32> to vector<224x128xf32>
    %c5 = arith.constant 5 : index
    %c0_18 = arith.constant 0 : index
    %c0_19 = arith.constant 0 : index
    %30 = vector.load %arg2[%c5, %c0_18, %c0_19] : memref<9x128x128xf32, #tpu.memory_space<vmem>>, vector<1x128x128xf32>
    %31 = vector.shape_cast %30 : vector<1x128x128xf32> to vector<128x128xf32>
    %cst_20 = arith.constant dense<0.000000e+00> : vector<224x128xf32>
    %32 = tpu.matmul %29, %31, %cst_20 {dimension_numbers = #tpu.dot_dimension_numbers<[1], [0], [0], [1], [0, 0, 1, 1], [], []>} : vector<224x128xf32>, vector<128x128xf32>, vector<224x128xf32> -> vector<224x128xf32>
    %33 = arith.addf %28, %32 : vector<224x128xf32>
    %34 = vector.extract_strided_slice %2 {offsets = [32, 0], sizes = [224, 128], strides = [1, 1]} : vector<264x128xf32> to vector<224x128xf32>
    %c6 = arith.constant 6 : index
    %c0_21 = arith.constant 0 : index
    %c0_22 = arith.constant 0 : index
    %35 = vector.load %arg2[%c6, %c0_21, %c0_22] : memref<9x128x128xf32, #tpu.memory_space<vmem>>, vector<1x128x128xf32>
    %36 = vector.shape_cast %35 : vector<1x128x128xf32> to vector<128x128xf32>
    %cst_23 = arith.constant dense<0.000000e+00> : vector<224x128xf32>
    %37 = tpu.matmul %34, %36, %cst_23 {dimension_numbers = #tpu.dot_dimension_numbers<[1], [0], [0], [1], [0, 0, 1, 1], [], []>} : vector<224x128xf32>, vector<128x128xf32>, vector<224x128xf32> -> vector<224x128xf32>
    %38 = arith.addf %33, %37 : vector<224x128xf32>
    %39 = vector.extract_strided_slice %2 {offsets = [33, 0], sizes = [224, 128], strides = [1, 1]} : vector<264x128xf32> to vector<224x128xf32>
    %c7 = arith.constant 7 : index
    %c0_24 = arith.constant 0 : index
    %c0_25 = arith.constant 0 : index
    %40 = vector.load %arg2[%c7, %c0_24, %c0_25] : memref<9x128x128xf32, #tpu.memory_space<vmem>>, vector<1x128x128xf32>
    %41 = vector.shape_cast %40 : vector<1x128x128xf32> to vector<128x128xf32>
    %cst_26 = arith.constant dense<0.000000e+00> : vector<224x128xf32>
    %42 = tpu.matmul %39, %41, %cst_26 {dimension_numbers = #tpu.dot_dimension_numbers<[1], [0], [0], [1], [0, 0, 1, 1], [], []>} : vector<224x128xf32>, vector<128x128xf32>, vector<224x128xf32> -> vector<224x128xf32>
    %43 = arith.addf %38, %42 : vector<224x128xf32>
    %44 = vector.extract_strided_slice %2 {offsets = [34, 0], sizes = [224, 128], strides = [1, 1]} : vector<264x128xf32> to vector<224x128xf32>
    %c8 = arith.constant 8 : index
    %c0_27 = arith.constant 0 : index
    %c0_28 = arith.constant 0 : index
    %45 = vector.load %arg2[%c8, %c0_27, %c0_28] : memref<9x128x128xf32, #tpu.memory_space<vmem>>, vector<1x128x128xf32>
    %46 = vector.shape_cast %45 : vector<1x128x128xf32> to vector<128x128xf32>
    %cst_29 = arith.constant dense<0.000000e+00> : vector<224x128xf32>
    %47 = tpu.matmul %44, %46, %cst_29 {dimension_numbers = #tpu.dot_dimension_numbers<[1], [0], [0], [1], [0, 0, 1, 1], [], []>} : vector<224x128xf32>, vector<128x128xf32>, vector<224x128xf32> -> vector<224x128xf32>
    %48 = arith.addf %43, %47 : vector<224x128xf32>
    %c0_30 = arith.constant 0 : index
    %c0_31 = arith.constant 0 : index
    %49 = vector.load %arg3[%c0_30, %c0_31] : memref<1x128xf32, #tpu.memory_space<vmem>>, vector<1x128xf32>
    %50 = vector.broadcast %49 : vector<1x128xf32> to vector<224x128xf32>
    %51 = arith.addf %48, %50 : vector<224x128xf32>
    %cst_32 = arith.constant 0.000000e+00 : f32
    %52 = vector.broadcast %cst_32 : f32 to vector<224x128xf32>
    %53 = arith.maximumf %51, %52 : vector<224x128xf32>
    %54 = arith.truncf %53 : vector<224x128xf32> to vector<224x128xbf16>
    %c0_33 = arith.constant 0 : index
    %c0_34 = arith.constant 0 : index
    %c0_35 = arith.constant 0 : index
    %55 = vector.load %arg4[%c0_33, %c0_34, %c0_35] : memref<1x224x128xbf16, #tpu.memory_space<vmem>>, vector<1x224x128xbf16>
    %56 = vector.shape_cast %55 : vector<1x224x128xbf16> to vector<224x128xbf16>
    %57 = vector.shape_cast %54 : vector<224x128xbf16> to vector<1x224x128xbf16>
    tpu.vector_store %arg4[%c0_33, %c0_34, %c0_35], %57 {strides = array<i32>} : memref<1x224x128xbf16, #tpu.memory_space<vmem>>, vector<1x224x128xbf16>,
    return
  }
  func.func @transform_0(%arg0: i32) -> (i32, i32, i32) {
    %c0_i32 = arith.constant 0 : i32
    %c0_i32_0 = arith.constant 0 : i32
    %c0_i32_1 = arith.constant 0 : i32
    return %arg0, %c0_i32, %c0_i32_0 : i32, i32, i32
  }
  func.func @transform_1(%arg0: i32) -> (i32, i32, i32) {
    %c0_i32 = arith.constant 0 : i32
    %c0_i32_0 = arith.constant 0 : i32
    %c0_i32_1 = arith.constant 0 : i32
    %c0_i32_2 = arith.constant 0 : i32
    return %c0_i32, %c0_i32_0, %c0_i32_1 : i32, i32, i32
  }
  func.func @transform_2(%arg0: i32) -> (i32, i32) {
    %c0_i32 = arith.constant 0 : i32
    %c0_i32_0 = arith.constant 0 : i32
    %c0_i32_1 = arith.constant 0 : i32
    return %c0_i32, %c0_i32_0 : i32, i32
  }
  func.func @transform_3(%arg0: i32) -> (i32, i32, i32) {
    %c0_i32 = arith.constant 0 : i32
    %c0_i32_0 = arith.constant 0 : i32
    %c0_i32_1 = arith.constant 0 : i32
    return %arg0, %c0_i32, %c0_i32_0 : i32, i32, i32
  }
}

module attributes {stable_mosaic.version = 11 : i64} {
  func.func @_fc_head_kernel(%arg0: i32, %arg1: memref<4x6272xbf16, #tpu.memory_space<vmem>>, %arg2: memref<6272x128xbf16, #tpu.memory_space<vmem>>, %arg3: memref<1x128xf32, #tpu.memory_space<vmem>>, %arg4: memref<128x128xbf16, #tpu.memory_space<vmem>>, %arg5: memref<1x128xf32, #tpu.memory_space<vmem>>, %arg6: memref<2x1xf32, #tpu.memory_space<vmem>>) attributes {dimension_semantics = [#tpu.dimension_semantics<arbitrary>], iteration_bounds = array<i64: 1>, scalar_prefetch = 0 : i64, scratch_operands = 0 : i64, tpu.core_type = #tpu.core_type<tc>, window_params = [{pipeline_mode = #tpu.pipeline_mode<synchronous>, transform_indices = @transform_0, window_bounds = array<i64: 4, 6272>}, {pipeline_mode = #tpu.pipeline_mode<synchronous>, transform_indices = @transform_1, window_bounds = array<i64: 6272, 128>}, {pipeline_mode = #tpu.pipeline_mode<synchronous>, transform_indices = @transform_2, window_bounds = array<i64: 1, 128>}, {pipeline_mode = #tpu.pipeline_mode<synchronous>, transform_indices = @transform_3, window_bounds = array<i64: 128, 128>}, {pipeline_mode = #tpu.pipeline_mode<synchronous>, transform_indices = @transform_4, window_bounds = array<i64: 1, 128>}, {pipeline_mode = #tpu.pipeline_mode<synchronous>, transform_indices = @transform_5, window_bounds = array<i64: 2, 1>}]} {
    %c0 = arith.constant 0 : index
    %c0_0 = arith.constant 0 : index
    %0 = vector.load %arg1[%c0, %c0_0] : memref<4x6272xbf16, #tpu.memory_space<vmem>>, vector<4x6272xbf16>
    %c0_1 = arith.constant 0 : index
    %c0_2 = arith.constant 0 : index
    %1 = vector.load %arg2[%c0_1, %c0_2] : memref<6272x128xbf16, #tpu.memory_space<vmem>>, vector<6272x128xbf16>
    %cst = arith.constant dense<0.000000e+00> : vector<4x128xf32>
    %2 = tpu.matmul %0, %1, %cst {dimension_numbers = #tpu.dot_dimension_numbers<[1], [0], [0], [1], [0, 0, 1, 1], [], []>} : vector<4x6272xbf16>, vector<6272x128xbf16>, vector<4x128xf32> -> vector<4x128xf32>
    %c0_3 = arith.constant 0 : index
    %c0_4 = arith.constant 0 : index
    %3 = vector.load %arg3[%c0_3, %c0_4] : memref<1x128xf32, #tpu.memory_space<vmem>>, vector<1x128xf32>
    %4 = vector.broadcast %3 : vector<1x128xf32> to vector<4x128xf32>
    %5 = arith.addf %2, %4 : vector<4x128xf32>
    %cst_5 = arith.constant 0.000000e+00 : f32
    %6 = vector.broadcast %cst_5 : f32 to vector<4x128xf32>
    %7 = arith.maximumf %5, %6 : vector<4x128xf32>
    %8 = arith.truncf %7 : vector<4x128xf32> to vector<4x128xbf16>
    %c0_6 = arith.constant 0 : index
    %c0_7 = arith.constant 0 : index
    %9 = vector.load %arg4[%c0_6, %c0_7] : memref<128x128xbf16, #tpu.memory_space<vmem>>, vector<128x128xbf16>
    %cst_8 = arith.constant dense<0.000000e+00> : vector<4x128xf32>
    %10 = tpu.matmul %8, %9, %cst_8 {dimension_numbers = #tpu.dot_dimension_numbers<[1], [0], [0], [1], [0, 0, 1, 1], [], []>} : vector<4x128xbf16>, vector<128x128xbf16>, vector<4x128xf32> -> vector<4x128xf32>
    %c0_9 = arith.constant 0 : index
    %c0_10 = arith.constant 0 : index
    %11 = vector.load %arg5[%c0_9, %c0_10] : memref<1x128xf32, #tpu.memory_space<vmem>>, vector<1x128xf32>
    %12 = vector.broadcast %11 : vector<1x128xf32> to vector<4x128xf32>
    %13 = arith.addf %10, %12 : vector<4x128xf32>
    %14 = vector.extract_strided_slice %13 {offsets = [0, 0], sizes = [2, 128], strides = [1, 1]} : vector<4x128xf32> to vector<2x128xf32>
    %15 = vector.extract_strided_slice %13 {offsets = [2, 0], sizes = [2, 128], strides = [1, 1]} : vector<4x128xf32> to vector<2x128xf32>
    %16 = arith.subf %14, %15 : vector<2x128xf32>
    %17 = arith.mulf %16, %16 : vector<2x128xf32>
    %cst_11 = arith.constant dense<0.000000e+00> : vector<2xf32>
    %18 = vector.multi_reduction <add>, %17, %cst_11 [1] : vector<2x128xf32> to vector<2xf32>
    %19 = vector.shape_cast %18 : vector<2xf32> to vector<2x1xf32>
    %20 = math.sqrt %19 : vector<2x1xf32>
    %cst_12 = arith.constant 1.000000e+00 : f32
    %21 = vector.broadcast %cst_12 : f32 to vector<2x1xf32>
    %22 = arith.subf %20, %21 : vector<2x1xf32>
    %23 = math.exp %22 : vector<2x1xf32>
    %cst_13 = arith.constant 1.000000e+00 : f32
    %24 = vector.broadcast %cst_13 : f32 to vector<2x1xf32>
    %25 = arith.addf %24, %23 : vector<2x1xf32>
    %cst_14 = arith.constant 1.000000e+00 : f32
    %26 = vector.broadcast %cst_14 : f32 to vector<2x1xf32>
    %27 = arith.divf %26, %25 : vector<2x1xf32>
    %c0_15 = arith.constant 0 : index
    %c0_16 = arith.constant 0 : index
    %28 = vector.load %arg6[%c0_15, %c0_16] : memref<2x1xf32, #tpu.memory_space<vmem>>, vector<2x1xf32>
    tpu.vector_store %arg6[%c0_15, %c0_16], %27 {strides = array<i32>} : memref<2x1xf32, #tpu.memory_space<vmem>>, vector<2x1xf32>,
    return
  }
  func.func @transform_0(%arg0: i32) -> (i32, i32) {
    %c0_i32 = arith.constant 0 : i32
    %c0_i32_0 = arith.constant 0 : i32
    %c0_i32_1 = arith.constant 0 : i32
    return %c0_i32, %c0_i32_0 : i32, i32
  }
  func.func @transform_1(%arg0: i32) -> (i32, i32) {
    %c0_i32 = arith.constant 0 : i32
    %c0_i32_0 = arith.constant 0 : i32
    %c0_i32_1 = arith.constant 0 : i32
    return %c0_i32, %c0_i32_0 : i32, i32
  }
  func.func @transform_2(%arg0: i32) -> (i32, i32) {
    %c0_i32 = arith.constant 0 : i32
    %c0_i32_0 = arith.constant 0 : i32
    %c0_i32_1 = arith.constant 0 : i32
    return %c0_i32, %c0_i32_0 : i32, i32
  }
  func.func @transform_3(%arg0: i32) -> (i32, i32) {
    %c0_i32 = arith.constant 0 : i32
    %c0_i32_0 = arith.constant 0 : i32
    %c0_i32_1 = arith.constant 0 : i32
    return %c0_i32, %c0_i32_0 : i32, i32
  }
  func.func @transform_4(%arg0: i32) -> (i32, i32) {
    %c0_i32 = arith.constant 0 : i32
    %c0_i32_0 = arith.constant 0 : i32
    %c0_i32_1 = arith.constant 0 : i32
    return %c0_i32, %c0_i32_0 : i32, i32
  }
  func.func @transform_5(%arg0: i32) -> (i32, i32) {
    %c0_i32 = arith.constant 0 : i32
    %c0_i32_0 = arith.constant 0 : i32
    %c0_i32_1 = arith.constant 0 : i32
    return %c0_i32, %c0_i32_0 : i32, i32
  }
}

</mosaic_0001>

<bundles_post_ra>
// kernel: siamese_forward.3
= control target key start
LH: loop header
LB: loop body
LE: loop exit
PB: predicated region body
PF: predicated region fallthrough
CT: control target
= control target key end

     0   :  { %s7232_s12 = smov 0   ;;  %s13631_s0 = inlined_call_operand.vmem [shape: f32[4,968,1], index: 0, kind: input, shape index: {}]   ;;  %s13632_s1 = inlined_call_operand.vmem [shape: f32[9,1,128], index: 1, kind: input, shape index: {}]   ;;  %s13633_s2 = inlined_call_operand.vmem [shape: f32[1,128], index: 2, kind: input, shape index: {}]   ;;  %s13634_s3 = inlined_call_operand.vmem [shape: bf16[4,896,128], index: 3, kind: output, shape index: {}]  }
   0x1 LB: > { %s6538_s13 = sadd.s32 4294967295, %s7209_s12   ;;  %p6542_p0 = scmp.ge.s32.totalorder %s7209_s12, 1  ;;  %s7209_s12 = sphi %s7232_s12, %s13_s12  }
   0x2   : > { %p137_p1 = scmp.lt.s32.totalorder %s7209_s12, 5 }
   0x4   : > { %p138_p2 = pnand %p6542_p0, %p137_p1 }
   0x5   : > { %p161_p3 = scmp.lt.s32.totalorder (!%p138_p2), %s6538_s13, 3  ;;  %v7211_v0 = vmov (!%p138_p2), 0   ;;  %vm1322_vm0 = vcmask (!%p138_p2), 1046528   ;;  %vm2006_vm1 = vcmask (!%p138_p2), 1045504  }
   0x6   : > { %141 = sbr.rel (%p138_p2) target bundleno = 1080 (0x438), region = 32  ;;  %7136 = vset.pattern.permute.xlu1 (!%p138_p2), %v7211_v0  ;;  %7135 = vset.pattern.permute.xlu0 (!%p138_p2), %v7211_v0 }
   0xd   : > { %s13927_s13 = smov (!%p161_p3, %s6538_s13), 3 }
   0xe   : > { %s7124_s14 = smul.u32 968, %s13927_s13 }
   0xf   : > { %s7125_s11 = smul.u32 448, %s13927_s13 }
  0x10   : > { %s7246_s17 = scalar_lea.vmem %s13631_s0, %s7124_s14 }
  0x11   : > { %v173_v1 = vld [vmem:[%s7246_s17 + $0x10] sm:$0xff]  ;;  %v171_v2 = vld [vmem:[%s7246_s17] sm:$0xff]  ;;  %v174_v3 = vld [vmem:[%s7246_s17 + $0x18] sm:$0xff]  ;;  %s7696_s15 = scalar_lea.vmem %s13634_s3, %s7125_s11 }
  0x12   : > { %304 = vperm.xlu1 %7136, %v173_v1   ;;  %294 = vperm.xlu0 %7135, %v171_v2   ;;  %v172_v4 = vld [vmem:[%s7246_s17 + $0x8] sm:$0xff]  ;;  %v175_v6 = vld [vmem:[%s7246_s17 + $0x20] sm:$0xff]  ;;  %v178_v7 = vld [vmem:[%s7246_s17 + $0x38] sm:$0xff] }
  0x13   : > { %v176_v5 = vld [vmem:[%s7246_s17 + $0x28] sm:$0xff]  ;;  %v177_v8 = vld [vmem:[%s7246_s17 + $0x30] sm:$0xff]  ;;  %v179_v10 = vld [vmem:[%s7246_s17 + $0x40] sm:$0xff] }
  0x14   : > { %v180_v9 = vld [vmem:[%s7246_s17 + $0x48] sm:$0xff]  ;;  %v182_v11 = vld [vmem:[%s7246_s17 + $0x58] sm:$0xff]  ;;  %v181_v12 = vld [vmem:[%s7246_s17 + $0x50] sm:$0xff] }
  0x15   : > { %v184_v13 = vld [vmem:[%s7246_s17 + $0x68] sm:$0xff]  ;;  %v183_v14 = vld [vmem:[%s7246_s17 + $0x60] sm:$0xff]  ;;  %v186_v15 = vld [vmem:[%s7246_s17 + $0x78] sm:$0xff] }
  0x16   : > { %309 = vperm.xlu1 %7136, %v174_v3   ;;  %299 = vperm.xlu0 %7135, %v172_v4   ;;  %v185_v16 = vld [vmem:[%s7246_s17 + $0x70] sm:$0xff]  ;;  %v188_v17 = vld [vmem:[%s7246_s17 + $0x88] sm:$0xff]  ;;  %v187_v18 = vld [vmem:[%s7246_s17 + $0x80] sm:$0xff] }
  0x17   : > { %v190_v19 = vld [vmem:[%s7246_s17 + $0x98] sm:$0xff]  ;;  %v189_v20 = vld [vmem:[%s7246_s17 + $0x90] sm:$0xff]  ;;  %v192_v21 = vld [vmem:[%s7246_s17 + $0xa8] sm:$0xff] }
  0x18   : > { %v191_v22 = vld [vmem:[%s7246_s17 + $0xa0] sm:$0xff]  ;;  %v194_v23 = vld [vmem:[%s7246_s17 + $0xb8] sm:$0xff]  ;;  %v193_v24 = vld [vmem:[%s7246_s17 + $0xb0] sm:$0xff] }
  0x19   : > { %v196_v25 = vld [vmem:[%s7246_s17 + $0xc8] sm:$0xff]  ;;  %v195_v26 = vld [vmem:[%s7246_s17 + $0xc0] sm:$0xff]  ;;  %v198_v27 = vld [vmem:[%s7246_s17 + $0xd8] sm:$0xff] }
  0x1a   : > { %319 = vperm.xlu1 %7136, %v176_v5   ;;  %314 = vperm.xlu0 %7135, %v175_v6   ;;  %v197_v28 = vld [vmem:[%s7246_s17 + $0xd0] sm:$0xff]  ;;  %v200_v29 = vld [vmem:[%s7246_s17 + $0xe8] sm:$0xff]  ;;  %v199_v30 = vld [vmem:[%s7246_s17 + $0xe0] sm:$0xff] }
  0x1b   : > { %v202_v31 = vld [vmem:[%s7246_s17 + $0xf8] sm:$0xff]  ;;  %v201_v32 = vld [vmem:[%s7246_s17 + $0xf0] sm:$0xff]  ;;  %v204_v33 = vld [vmem:[%s7246_s17 + $0x108] sm:$0xff] }
  0x1c   : > { %v203_v34 = vld [vmem:[%s7246_s17 + $0x100] sm:$0xff]  ;;  %v206_v35 = vld [vmem:[%s7246_s17 + $0x118] sm:$0xff]  ;;  %v205_v36 = vld [vmem:[%s7246_s17 + $0x110] sm:$0xff] }
  0x1d   : > { %v208_v37 = vld [vmem:[%s7246_s17 + $0x128] sm:$0xff]  ;;  %v207_v38 = vld [vmem:[%s7246_s17 + $0x120] sm:$0xff]  ;;  %v210_v39 = vld [vmem:[%s7246_s17 + $0x138] sm:$0xff] }
  0x1e   : > { %329 = vperm.xlu1 %7136, %v178_v7   ;;  %324 = vperm.xlu0 %7135, %v177_v8   ;;  %v209_v40 = vld [vmem:[%s7246_s17 + $0x130] sm:$0xff]  ;;  %v212_v41 = vld [vmem:[%s7246_s17 + $0x148] sm:$0xff]  ;;  %v211_v42 = vld [vmem:[%s7246_s17 + $0x140] sm:$0xff] }
  0x1f   : > { %v214_v43 = vld [vmem:[%s7246_s17 + $0x158] sm:$0xff]  ;;  %v213_v44 = vld [vmem:[%s7246_s17 + $0x150] sm:$0xff]  ;;  %v216_v45 = vld [vmem:[%s7246_s17 + $0x168] sm:$0xff] }
  0x20   : > { %v215_v46 = vld [vmem:[%s7246_s17 + $0x160] sm:$0xff]  ;;  %v218_v47 = vld [vmem:[%s7246_s17 + $0x178] sm:$0xff]  ;;  %v217_v48 = vld [vmem:[%s7246_s17 + $0x170] sm:$0xff] }
  0x21   : > { %v220_v49 = vld [vmem:[%s7246_s17 + $0x188] sm:$0xff]  ;;  %v219_v50 = vld [vmem:[%s7246_s17 + $0x180] sm:$0xff]  ;;  %v222_v51 = vld [vmem:[%s7246_s17 + $0x198] sm:$0xff] }
  0x22   : > { %339 = vperm.xlu1 %7136, %v180_v9   ;;  %334 = vperm.xlu0 %7135, %v179_v10   ;;  %v221_v52 = vld [vmem:[%s7246_s17 + $0x190] sm:$0xff]  ;;  %v224_v53 = vld [vmem:[%s7246_s17 + $0x1a8] sm:$0xff]  ;;  %v223_v54 = vld [vmem:[%s7246_s17 + $0x1a0] sm:$0xff] }
  0x23   : > { %v226_v55 = vld [vmem:[%s7246_s17 + $0x1b8] sm:$0xff]  ;;  %v225_v56 = vld [vmem:[%s7246_s17 + $0x1b0] sm:$0xff]  ;;  %v228_v57 = vld [vmem:[%s7246_s17 + $0x1c8] sm:$0xff] }
  0x24   : > { %v227_v58 = vld [vmem:[%s7246_s17 + $0x1c0] sm:$0xff]  ;;  %v230_v59 = vld [vmem:[%s7246_s17 + $0x1d8] sm:$0xff]  ;;  %v229_v60 = vld [vmem:[%s7246_s17 + $0x1d0] sm:$0xff] }
  0x25   : > { %v232_v61 = vld [vmem:[%s7246_s17 + $0x1e8] sm:$0xff]  ;;  %v231_v62 = vld [vmem:[%s7246_s17 + $0x1e0] sm:$0xff]  ;;  %v234_v63 = vld [vmem:[%s7246_s17 + $0x1f8] sm:$0xff] }
  0x26   : > { %349 = vperm.xlu1 %7136, %v182_v11   ;;  %344 = vperm.xlu0 %7135, %v181_v12   ;;  %v233_v0 = vld [vmem:[%s7246_s17 + $0x1f0] sm:$0xff]  ;;  %v236_v1 = vld [vmem:[%s7246_s17 + $0x208] sm:$0xff]  ;;  %v235_v2 = vld [vmem:[%s7246_s17 + $0x200] sm:$0xff] }
  0x27   : > { %v7317_v5 = vld [vmem:[%s13632_s1 + $0x1] ss:$0 sm:$0xff]  ;;  %v238_v7 = vld [vmem:[%s7246_s17 + $0x218] sm:$0xff]  ;;  %v237_v8 = vld [vmem:[%s7246_s17 + $0x210] sm:$0xff] }
  0x28   : > { %v7325_v9 = vld [vmem:[%s13632_s1 + $0x2] ss:$0 sm:$0xff] }
  0x2a   : > { %359 = vperm.xlu1 %7136, %v184_v13   ;;  %354 = vperm.xlu0 %7135, %v183_v14  }
  0x2e   : > { %369 = vperm.xlu1 %7136, %v186_v15   ;;  %364 = vperm.xlu0 %7135, %v185_v16  }
  0x32   : > { %379 = vperm.xlu1 %7136, %v188_v17   ;;  %374 = vperm.xlu0 %7135, %v187_v18  }
  0x36   : > { %389 = vperm.xlu1 %7136, %v190_v19   ;;  %384 = vperm.xlu0 %7135, %v189_v20   ;;  %v240_v19 = vld [vmem:[%s7246_s17 + $0x228] sm:$0xff]  ;;  %v7341_v20 = vld [vmem:[%s13632_s1] ss:$0 sm:$0xff] }
  0x3a   : > { %399 = vperm.xlu1 %7136, %v192_v21   ;;  %394 = vperm.xlu0 %7135, %v191_v22   ;;  %v239_v22 = vld [vmem:[%s7246_s17 + $0x220] sm:$0xff] }
  0x3e   : > { %409 = vperm.xlu1 %7136, %v194_v23   ;;  %404 = vperm.xlu0 %7135, %v193_v24  }
  0x42   : > { %419 = vperm.xlu1 %7136, %v196_v25   ;;  %414 = vperm.xlu0 %7135, %v195_v26  }
  0x46   : > { %429 = vperm.xlu1 %7136, %v198_v27   ;;  %424 = vperm.xlu0 %7135, %v197_v28  }
  0x4a   : > { %439 = vperm.xlu1 %7136, %v200_v29   ;;  %434 = vperm.xlu0 %7135, %v199_v30  }
  0x4e   : > { %449 = vperm.xlu1 %7136, %v202_v31   ;;  %444 = vperm.xlu0 %7135, %v201_v32  }
  0x52   : > { %459 = vperm.xlu1 %7136, %v204_v33   ;;  %454 = vperm.xlu0 %7135, %v203_v34   ;;  %v7354_v34 = vld [vmem:[%s13632_s1 + $0x4] ss:$0 sm:$0xff] }
  0x56   : > { %469 = vperm.xlu1 %7136, %v206_v35   ;;  %464 = vperm.xlu0 %7135, %v205_v36   ;;  %v242_v35 = vld [vmem:[%s7246_s17 + $0x238] sm:$0xff] }
  0x5a   : > { %479 = vperm.xlu1 %7136, %v208_v37   ;;  %474 = vperm.xlu0 %7135, %v207_v38  }
  0x5e   : > { %489 = vperm.xlu1 %7136, %v210_v39   ;;  %484 = vperm.xlu0 %7135, %v209_v40   ;;  %v241_v40 = vld [vmem:[%s7246_s17 + $0x230] sm:$0xff] }
  0x62   : > { %499 = vperm.xlu1 %7136, %v212_v41   ;;  %494 = vperm.xlu0 %7135, %v211_v42  }
  0x66   : > { %509 = vperm.xlu1 %7136, %v214_v43   ;;  %504 = vperm.xlu0 %7135, %v213_v44  }
  0x6a   : > { %519 = vperm.xlu1 %7136, %v216_v45   ;;  %514 = vperm.xlu0 %7135, %v215_v46   ;;  %v7370_v46 = vld [vmem:[%s13632_s1 + $0x3] ss:$0 sm:$0xff] }
  0x6e   : > { %529 = vperm.xlu1 %7136, %v218_v47   ;;  %524 = vperm.xlu0 %7135, %v217_v48   ;;  %v7375_v47 = vld [vmem:[%s13632_s1 + $0x5] ss:$0 sm:$0xff] }
  0x72   : > { %539 = vperm.xlu1 %7136, %v220_v49   ;;  %534 = vperm.xlu0 %7135, %v219_v50  }
  0x76   : > { %549 = vperm.xlu1 %7136, %v222_v51   ;;  %544 = vperm.xlu0 %7135, %v221_v52  }
  0x7a   : > { %559 = vperm.xlu1 %7136, %v224_v53   ;;  %554 = vperm.xlu0 %7135, %v223_v54  }
  0x7e   : > { %569 = vperm.xlu1 %7136, %v226_v55   ;;  %564 = vperm.xlu0 %7135, %v225_v56   ;;  %v244_v55 = vld [vmem:[%s7246_s17 + $0x248] sm:$0xff] }
  0x82   : > { %579 = vperm.xlu1 %7136, %v228_v57   ;;  %574 = vperm.xlu0 %7135, %v227_v58  }
  0x86   : > { %589 = vperm.xlu1 %7136, %v230_v59   ;;  %584 = vperm.xlu0 %7135, %v229_v60  }
  0x8a   : > { %599 = vperm.xlu1 %7136, %v232_v61   ;;  %594 = vperm.xlu0 %7135, %v231_v62   ;;  %v243_v61 = vld [vmem:[%s7246_s17 + $0x240] sm:$0xff] }
  0x8e   : > { %609 = vperm.xlu1 %7136, %v234_v63   ;;  %604 = vperm.xlu0 %7135, %v233_v0  }
  0x91   : > { %v305_v3 = vpop.permute.xlu1 %304  ;;  %v295_v4 = vpop.permute.xlu0 %294 }
  0x92   : > { %619 = vperm.xlu1 %7136, %v236_v1   ;;  %v1098_v6 = vmul.f32 %v7317_v5, %v305_v3  ;;  %614 = vperm.xlu0 %7135, %v235_v2   ;;  %v1096_v10 = vmul.f32 %v7317_v5, %v295_v4  ;;  %v1782_v13 = vmul.f32 %v7325_v9, %v305_v3 }
  0x93   : > { %v1780_v24 = vmul.f32 %v7325_v9, %v295_v4  ;;  %v859_v30 = vmul.f32 %v7341_v20, %v295_v4  ;;  %v861_v41 = vmul.f32 %v7341_v20, %v305_v3 }
  0x94   : > { %v1326_v16 = vrot.slane %v1098_v6, 1  ;;  %v1323_v23 = vrot.slane %v1096_v10, 1  ;;  %v2010_v27 = vrot.slane %v1782_v13, 2 }
  0x95   : > { %v310_v11 = vpop.permute.xlu1 %309  ;;  %v300_v12 = vpop.permute.xlu0 %299  ;;  %v2007_v42 = vrot.slane %v1780_v24, 2 }
  0x96   : > { %v7330_v14 = vmul.f32 %v7317_v5, %v310_v11  ;;  %v7333_v15 = vmul.f32 %v7325_v9, %v310_v11  ;;  %629 = vperm.xlu1 %7136, %v238_v7   ;;  %v1097_v17 = vmul.f32 %v7317_v5, %v300_v12  ;;  %v1781_v18 = vmul.f32 %v7325_v9, %v300_v12 }
  0x97   : > { %624 = vperm.xlu0 %7135, %v237_v8   ;;  %v860_v29 = vmul.f32 %v7341_v20, %v300_v12  ;;  %v862_v43 = vmul.f32 %v7341_v20, %v310_v11  ;;  %v246_v12 = vld [vmem:[%s7246_s17 + $0x258] sm:$0xff] }
  0x98   : > { %v1328_v21 = vrot.slane %v7330_v14, 1  ;;  %v1324_v25 = vrot.slane %v1097_v17, 1  ;;  %v2012_v28 = vrot.slane %v7333_v15, 2  ;;  %v2008_v33 = vrot.slane %v1781_v18, 2 }
  0x99   : > { %v320_v26 = vpop.permute.xlu1 %319  ;;  %v315_v39 = vpop.permute.xlu0 %314 }
  0x9a   : > { %639 = vperm.xlu1 %7136, %v240_v19   ;;  %v1325_v31 = vsel %vm1322_vm0, %v1323_v23, %v1324_v25  ;;  %v1327_v32 = vsel %vm1322_vm0, %v1324_v25, %v1326_v16  ;;  %v1329_v36 = vsel %vm1322_vm0, %v1326_v16, %v1328_v21  ;;  %v7359_v38 = vmul.f32 %v7317_v5, %v320_v26  ;;  %v245_v19 = vld [vmem:[%s7246_s17 + $0x250] sm:$0xff] }
  0x9b   : > { %634 = vperm.xlu0 %7135, %v239_v22   ;;  %v1661_v37 = vadd.f32 %v1327_v32, %v860_v29  ;;  %v1660_v44 = vadd.f32 %v1325_v31, %v859_v30  ;;  %v2013_v45 = vsel %vm2006_vm1, %v2010_v27, %v2012_v28  ;;  %v7378_v48 = vmul.f32 %v7341_v20, %v320_v26 }
  0x9c   : > { %v7381_v49 = vmul.f32 %v7325_v9, %v320_v26  ;;  %v7384_v50 = vmul.f32 %v7354_v34, %v320_v26  ;;  %v1662_v51 = vadd.f32 %v1329_v36, %v861_v41  ;;  %v2011_v52 = vsel %vm2006_vm1, %v2008_v33, %v2010_v27 }
  0x9d   : > { %v1100_v53 = vmul.f32 %v7317_v5, %v315_v39  ;;  %v1784_v54 = vmul.f32 %v7325_v9, %v315_v39  ;;  %v2009_v56 = vsel %vm2006_vm1, %v2007_v42, %v2008_v33  ;;  %v2345_v57 = vadd.f32 %v2011_v52, %v1661_v37  ;;  %v330_v60 = vpop.permute.xlu1 %329  ;;  %v325_v18 = vpop.permute.xlu0 %324 }
  0x9e   : > { %649 = vperm.xlu1 %7136, %v242_v35   ;;  %v1332_v58 = vrot.slane %v7359_v38, 1  ;;  %v2716_v59 = vmul.f32 %v7354_v34, %v315_v39  ;;  %v2344_v62 = vadd.f32 %v2009_v56, %v1660_v44  ;;  %v2480_v63 = vmul.f32 %v7370_v46, %v320_v26  ;;  %v248_v35 = vld [vmem:[%s7246_s17 + $0x268] sm:$0xff]  ;;  %v250_v56 = vld [vmem:[%s7246_s17 + $0x278] sm:$0xff] }
  0x9f   : > { %644 = vperm.xlu0 %7135, %v241_v40   ;;  %v7396_v0 = vmul.f32 %v7375_v47, %v320_v26  ;;  %v1330_v1 = vrot.slane %v1100_v53, 1  ;;  %v2016_v2 = vrot.slane %v7381_v49, 2  ;;  %v2943_v3 = vrot.slane %v7384_v50, 1  ;;  %v247_v40 = vld [vmem:[%s7246_s17 + $0x260] sm:$0xff] }
  0xa0   : > { %v2014_v4 = vrot.slane %v1784_v54, 2  ;;  %v3399_v6 = vmul.f32 %v7375_v47, %v315_v39  ;;  %v2479_v8 = vmul.f32 %v7370_v46, %v315_v39  ;;  %v2942_v10 = vrot.slane %v2716_v59, 1  ;;  %v7487_v49 = vld [vmem:[%s13632_s1 + $0x6] ss:$0 sm:$0xff] }
  0xa1   : > { %v1331_v7 = vsel %vm1322_vm0, %v1328_v21, %v1330_v1  ;;  %v7404_v11 = vmul.f32 %v7317_v5, %v330_v60  ;;  %v2346_v13 = vadd.f32 %v2013_v45, %v1662_v51  ;;  %v2592_v14 = vadd.f32 %v2480_v63, %v2345_v57  ;;  %v249_v63 = vld [vmem:[%s7246_s17 + $0x270] sm:$0xff] }
  0xa2   : > { %659 = vperm.xlu1 %7136, %v244_v55   ;;  %v863_v16 = vmul.f32 %v7341_v20, %v315_v39  ;;  %v1333_v17 = vsel %vm1322_vm0, %v1330_v1, %v1332_v58  ;;  %v3626_v22 = vrot.slane %v7396_v0, 2  ;;  %v2591_v21 = vadd.f32 %v2479_v8, %v2344_v62  ;;  %v340_v55 = vpop.permute.xlu1 %339  ;;  %v7460_v8 = vld [vmem:[%s13632_s1 + $0x7] ss:$0 sm:$0xff] }
  0xa3   : > { %654 = vperm.xlu0 %7135, %v243_v61   ;;  %v7412_v23 = vmul.f32 %v7341_v20, %v330_v60  ;;  %v7415_v24 = vmul.f32 %v7325_v9, %v330_v60  ;;  %v2017_v25 = vsel %vm2006_vm1, %v2014_v4, %v2016_v2  ;;  %v3625_v26 = vrot.slane %v3399_v6, 2 }
  0xa4   : > { %v1663_v27 = vadd.f32 %v1331_v7, %v862_v43  ;;  %v7421_v29 = vmul.f32 %v7354_v34, %v330_v60  ;;  %v1664_v30 = vadd.f32 %v1333_v17, %v863_v16  ;;  %v2944_v31 = vsel %vm1322_vm0, %v2942_v10, %v2943_v3  ;;  %v252_v16 = vld [vmem:[%s7246_s17 + $0x288] sm:$0xff] }
  0xa5   : > { %v1336_v32 = vrot.slane %v7404_v11, 1  ;;  %v1102_v33 = vmul.f32 %v7317_v5, %v325_v18  ;;  %v2015_v36 = vsel %vm2006_vm1, %v2012_v28, %v2014_v4  ;;  %v7431_v37 = vmul.f32 %v7375_v47, %v330_v60 }
  0xa6   : > { %669 = vperm.xlu1 %7136, %v246_v12   ;;  %v1786_v38 = vmul.f32 %v7325_v9, %v325_v18  ;;  %v2481_v39 = vmul.f32 %v7370_v46, %v325_v18  ;;  %v2947_v41 = vrot.slane %v7421_v29, 1  ;;  %v2718_v43 = vmul.f32 %v7354_v34, %v325_v18  ;;  %v7584_v29 = vld [vmem:[%s13633_s2] ss:$0 sm:$0xff] }
  0xa7   : > { %664 = vperm.xlu0 %7135, %v245_v19   ;;  %v1334_v42 = vrot.slane %v1102_v33, 1  ;;  %v3401_v44 = vmul.f32 %v7375_v47, %v325_v18  ;;  %v3279_v45 = vadd.f32 %v2944_v31, %v2591_v21  ;;  %v2020_v15 = vrot.slane %v7415_v24, 2  ;;  %v335_v21 = vpop.permute.xlu0 %334 }
  0xa8   : > { %v2347_v28 = vadd.f32 %v2015_v36, %v1663_v27  ;;  %v865_v50 = vmul.f32 %v7341_v20, %v325_v18  ;;  %v2593_v53 = vadd.f32 %v2481_v39, %v2346_v13  ;;  %v2945_v54 = vrot.slane %v2718_v43, 1  ;;  %v254_v43 = vld [vmem:[%s7246_s17 + $0x298] sm:$0xff] }
  0xa9   : > { %v1335_v51 = vsel %vm1322_vm0, %v1332_v58, %v1334_v42  ;;  %v1337_v52 = vsel %vm1322_vm0, %v1334_v42, %v1336_v32  ;;  %v2482_v57 = vmul.f32 %v7370_v46, %v330_v60  ;;  %v3630_v59 = vrot.slane %v7431_v37, 2 }
  0xaa   : > { %679 = vperm.xlu1 %7136, %v248_v35   ;;  %v2018_v61 = vrot.slane %v1786_v38, 2  ;;  %v3628_v62 = vrot.slane %v3401_v44, 2  ;;  %v1665_v0 = vadd.f32 %v1335_v51, %v7378_v48  ;;  %v1666_v58 = vadd.f32 %v1337_v52, %v865_v50  ;;  %v253_v51 = vld [vmem:[%s7246_s17 + $0x290] sm:$0xff] }
  0xab   : > { %674 = vperm.xlu0 %7135, %v247_v40   ;;  %v2946_v1 = vsel %vm1322_vm0, %v2943_v3, %v2945_v54  ;;  %v2948_v4 = vsel %vm1322_vm0, %v2945_v54, %v2947_v41  ;;  %v7454_v6 = vadd.f32 %v2017_v25, %v1664_v30  ;;  %v3627_v7 = vsel %vm2006_vm1, %v3625_v26, %v3626_v22  ;;  %v251_v25 = vld [vmem:[%s7246_s17 + $0x280] sm:$0xff] }
  0xac   : > { %v3280_v60 = vadd.f32 %v2946_v1, %v2592_v14  ;;  %v7463_v48 = vmul.f32 %v7317_v5, %v340_v55  ;;  %v3962_v3 = vadd.f32 %v3627_v7, %v3279_v45  ;;  %v7465_v10 = vadd.f32 %v2482_v57, %v2347_v28  ;;  %v256_v7 = vld [vmem:[%s7246_s17 + $0x2a8] sm:$0xff] }
  0xad   : > { %v3281_v12 = vadd.f32 %v2948_v4, %v2593_v53  ;;  %v7468_v13 = vmul.f32 %v7341_v20, %v340_v55  ;;  %v2019_v14 = vsel %vm2006_vm1, %v2016_v2, %v2018_v61  ;;  %v2021_v17 = vsel %vm2006_vm1, %v2018_v61, %v2020_v15  ;;  %v7492_v2 = vld [vmem:[%s13632_s1 + $0x8] ss:$0 sm:$0xff]  ;;  %v350_v4 = vpop.permute.xlu1 %349 }
  0xae   : > { %689 = vperm.xlu1 %7136, %v250_v56   ;;  %v3629_v18 = vsel %vm2006_vm1, %v3626_v22, %v3628_v62  ;;  %v3631_v19 = vsel %vm2006_vm1, %v3628_v62, %v3630_v59  ;;  %v2349_v26 = vadd.f32 %v2019_v14, %v1665_v0  ;;  %v7482_v27 = vadd.f32 %v2021_v17, %v1666_v58  ;;  %v255_v14 = vld [vmem:[%s7246_s17 + $0x2a0] sm:$0xff] }
  0xaf   : > { %684 = vperm.xlu0 %7135, %v249_v63   ;;  %v7495_v22 = vmul.f32 %v7354_v34, %v340_v55  ;;  %v7498_v30 = vmul.f32 %v7460_v8, %v340_v55  ;;  %v3963_v31 = vadd.f32 %v3629_v18, %v3280_v60  ;;  %v1340_v33 = vrot.slane %v7463_v48, 1 }
  0xb0   : > { %v7502_v35 = vmul.f32 %v7325_v9, %v340_v55  ;;  %v2484_v36 = vmul.f32 %v7370_v46, %v340_v55  ;;  %v7505_v38 = vadd.f32 %v3631_v19, %v3281_v12  ;;  %v7508_v39 = vmul.f32 %v7375_v47, %v340_v55 }
  0xb1   : > { %v1104_v40 = vmul.f32 %v7317_v5, %v335_v21  ;;  %v7512_v42 = vmul.f32 %v7325_v9, %v335_v21  ;;  %v4098_v44 = vmul.f32 %v7487_v49, %v340_v55  ;;  %v7517_v45 = vmul.f32 %v7492_v2, %v340_v55 }
  0xb2   : > { %699 = vperm.xlu1 %7136, %v252_v16   ;;  %v2720_v28 = vmul.f32 %v7354_v34, %v335_v21  ;;  %v4097_v50 = vmul.f32 %v7487_v49, %v335_v21  ;;  %v2951_v52 = vrot.slane %v7495_v22, 1  ;;  %v4561_v53 = vrot.slane %v7498_v30, 1 }
  0xb3   : > { %694 = vperm.xlu0 %7135, %v251_v25   ;;  %v1338_v54 = vrot.slane %v1104_v40, 1  ;;  %v4334_v56 = vmul.f32 %v7460_v8, %v335_v21  ;;  %v2483_v57 = vmul.f32 %v7370_v46, %v335_v21  ;;  %v7527_v61 = vmul.f32 %v7375_v47, %v335_v21 }
  0xb4   : > { %v4209_v55 = vadd.f32 %v4097_v50, %v3962_v3  ;;  %v5017_v62 = vmul.f32 %v7492_v2, %v335_v21  ;;  %v13635_v0 = vrot.slane %v7512_v42, 2  ;;  %v2949_v58 = vrot.slane %v2720_v28, 1 }
  0xb5   : > { %v1339_v63 = vsel %vm1322_vm0, %v1336_v32, %v1338_v54  ;;  %v4560_v1 = vrot.slane %v4334_v56, 1  ;;  %v2024_v60 = vrot.slane %v7502_v35, 2  ;;  %v7536_v12 = vadd.f32 %v2484_v36, %v2349_v26  ;;  %v345_v56 = vpop.permute.xlu0 %344 }
  0xb6   : > { %709 = vperm.xlu1 %7136, %v254_v43   ;;  %v5244_v3 = vrot.slane %v7517_v45, 2  ;;  %v5243_v16 = vrot.slane %v5017_v62, 2  ;;  %v867_v32 = vmul.f32 %v7341_v20, %v335_v21  ;;  %v1667_v18 = vadd.f32 %v1339_v63, %v7412_v23  ;;  %v258_v43 = vld [vmem:[%s7246_s17 + $0x2b8] sm:$0xff] }
  0xb7   : > { %704 = vperm.xlu0 %7135, %v253_v51   ;;  %v4562_v17 = vsel %vm1322_vm0, %v4560_v1, %v4561_v53  ;;  %v1341_v19 = vsel %vm1322_vm0, %v1338_v54, %v1340_v33  ;;  %v2595_v25 = vadd.f32 %v2483_v57, %v7454_v6  ;;  %v7551_v36 = vmul.f32 %v7317_v5, %v350_v4  ;;  %v257_v57 = vld [vmem:[%s7246_s17 + $0x2b0] sm:$0xff] }
  0xb8   : > { %v4897_v26 = vadd.f32 %v4562_v17, %v4209_v55  ;;  %v2952_v21 = vsel %vm1322_vm0, %v2949_v58, %v2951_v52  ;;  %v13636_v40 = vrot.slane %v7527_v61, 2  ;;  %v7558_v23 = vmul.f32 %v7325_v9, %v350_v4 }
  0xb9   : > { %v2023_v6 = vsel %vm2006_vm1, %v2020_v15, %v13635_v0  ;;  %v2950_v28 = vsel %vm1322_vm0, %v2947_v41, %v2949_v58  ;;  %v5245_v50 = vsel %vm2006_vm1, %v5243_v16, %v5244_v3  ;;  %v7573_v54 = vmul.f32 %v7354_v34, %v350_v4 }
  0xba   : > { %719 = vperm.xlu1 %7136, %v256_v7   ;;  %v2351_v51 = vadd.f32 %v2023_v6, %v1667_v18  ;;  %v4210_v24 = vadd.f32 %v4098_v44, %v3963_v31  ;;  %v7576_v55 = vadd.f32 %v1341_v19, %v867_v32  ;;  %v5580_v15 = vadd.f32 %v5245_v50, %v4897_v26 }
  0xbb   : > { %714 = vperm.xlu0 %7135, %v255_v14   ;;  %v7579_v62 = vmul.f32 %v7341_v20, %v350_v4  ;;  %v7586_v41 = vadd.f32 %v2952_v21, %v2595_v25  ;;  %v1344_v63 = vrot.slane %v7551_v36, 1  ;;  %v2486_v58 = vmul.f32 %v7370_v46, %v350_v4  ;;  %v260_v14 = vld [vmem:[%s7246_s17 + $0x2c8] sm:$0xff] }
  0xbc   : > { %v7591_v31 = vmul.f32 %v7460_v8, %v350_v4  ;;  %v3282_v1 = vadd.f32 %v2950_v28, %v7465_v10  ;;  %v7596_v7 = vmul.f32 %v7375_v47, %v350_v4  ;;  %v1106_v16 = vmul.f32 %v7317_v5, %v345_v56  ;;  %v259_v10 = vld [vmem:[%s7246_s17 + $0x2c0] sm:$0xff] }
  0xbd   : > { %v7600_v32 = vadd.f32 %v2486_v58, %v2351_v51  ;;  %v2955_v17 = vrot.slane %v7573_v54, 1  ;;  %v3633_v18 = vsel %vm2006_vm1, %v3630_v59, %v13636_v40  ;;  %v4100_v19 = vmul.f32 %v7487_v49, %v350_v4  ;;  %v261_v40 = vld [vmem:[%s7246_s17 + $0x2d0] sm:$0xff] }
  0xbe   : > { %729 = vperm.xlu1 %7136, %v258_v43   ;;  %v7611_v25 = vadd.f32 %v7584_v29, %v5580_v15  ;;  %v7614_v26 = vmul.f32 %v7492_v2, %v350_v4  ;;  %v1342_v21 = vrot.slane %v1106_v16, 1  ;;  %v2722_v6 = vmul.f32 %v7354_v34, %v345_v56  ;;  %v262_v15 = vld [vmem:[%s7246_s17 + $0x2d8] sm:$0xff] }
  0xbf   : > { %724 = vperm.xlu0 %7135, %v257_v57   ;;  %v4565_v43 = vrot.slane %v7591_v31, 1  ;;  %v7619_v37 = vmul.f32 %v7325_v9, %v345_v56  ;;  %v4099_v59 = vmul.f32 %v7487_v49, %v345_v56  ;;  %v4336_v28 = vmul.f32 %v7460_v8, %v345_v56 }
  0xc0   : > { %v3965_v51 = vadd.f32 %v3633_v18, %v3282_v1  ;;  %v2485_v4 = vmul.f32 %v7370_v46, %v345_v56  ;;  %v5019_v57 = vmul.f32 %v7492_v2, %v345_v56  ;;  %v869_v58 = vmul.f32 %v7341_v20, %v345_v56 }
  0xc1   : > { %v2953_v16 = vrot.slane %v2722_v6, 1  ;;  %v4211_v44 = vadd.f32 %v4099_v59, %v7505_v38  ;;  %v4563_v0 = vrot.slane %v4336_v28, 1  ;;  %v5811_v11 = vmax.f32 %v7611_v25, 0.0  ;;  %v360_v6 = vpop.permute.xlu1 %359 }
  0xc2   : > { %739 = vperm.xlu1 %7136, %v260_v14   ;;  %v5248_v14 = vrot.slane %v7614_v26, 2  ;;  %v1343_v1 = vsel %vm1322_vm0, %v1340_v33, %v1342_v21  ;;  %v5246_v18 = vrot.slane %v5019_v57, 2  ;;  %v13637_v50 = vrot.slane %v7619_v37, 2 }
  0xc3   : > { %734 = vperm.xlu0 %7135, %v259_v10   ;;  %v7637_v10 = vmul.f32 %v7375_v47, %v345_v56  ;;  %v4564_v38 = vsel %vm1322_vm0, %v4561_v53, %v4563_v0  ;;  %v4566_v25 = vsel %vm1322_vm0, %v4563_v0, %v4565_v43  ;;  %v1345_v48 = vsel %vm1322_vm0, %v1342_v21, %v1344_v63 }
  0xc4   : > { %v2597_v33 = vadd.f32 %v2485_v4, %v7482_v27  ;;  %v4898_v59 = vadd.f32 %v4564_v38, %v4210_v24  ;;  %v4899_v56 = vadd.f32 %v4566_v25, %v4211_v44  ;;  %v2954_v30 = vsel %vm1322_vm0, %v2951_v52, %v2953_v16 }
  0xc5   : > { %v2956_v53 = vsel %vm1322_vm0, %v2953_v16, %v2955_v17  ;;  %v5247_v0 = vsel %vm2006_vm1, %v5244_v3, %v5246_v18  ;;  %v1669_v28 = vadd.f32 %v1343_v1, %v7468_v13  ;;  %v5249_v27 = vsel %vm2006_vm1, %v5246_v18, %v5248_v14 }
  0xc6   : > { %749 = vperm.xlu1 %7136, %v262_v15   ;;  %v5581_v24 = vadd.f32 %v5247_v0, %v4898_v59  ;;  %v7666_v22 = vmul.f32 %v7325_v9, %v360_v6  ;;  %v3636_v52 = vrot.slane %v7637_v10, 2  ;;  %v5582_v44 = vadd.f32 %v5249_v27, %v4899_v56  ;;  %v355_v59 = vpop.permute.xlu0 %354 }
  0xc7   : > { %744 = vperm.xlu0 %7135, %v261_v40   ;;  %v7663_v40 = vmul.f32 %v7317_v5, %v360_v6  ;;  %v2027_v13 = vsel %vm2006_vm1, %v2024_v60, %v13637_v50  ;;  %v7676_v45 = vmul.f32 %v7354_v34, %v360_v6  ;;  %v4212_v3 = vadd.f32 %v4100_v19, %v3965_v51  ;;  %v264_v19 = vld [vmem:[%s7246_s17 + $0x2e8] sm:$0xff] }
  0xc8   : > { %v5700_v21 = vadd.f32 %v7584_v29, %v5581_v24  ;;  %v2353_v4 = vadd.f32 %v2027_v13, %v1669_v28  ;;  %v7680_v57 = vmul.f32 %v7375_v47, %v360_v6  ;;  %v7682_v15 = vadd.f32 %v1345_v48, %v869_v58 }
  0xc9   : > { %v7684_v16 = vadd.f32 %v2956_v53, %v2597_v33  ;;  %v7687_v1 = vmul.f32 %v7341_v20, %v360_v6  ;;  %v3284_v18 = vadd.f32 %v2954_v30, %v7536_v12  ;;  %v1348_v25 = vrot.slane %v7663_v40, 1 }
  0xca   : > { %v5812_v38 = vmax.f32 %v5700_v21, 0.0  ;;  %v2488_v51 = vmul.f32 %v7370_v46, %v360_v6  ;;  %v7699_v58 = vadd.f32 %v7584_v29, %v5582_v44  ;;  %v2959_v12 = vrot.slane %v7676_v45, 1  ;;  %759 = vperm.xlu1 %7136, %v264_v19  }
  0xcb   : > { %v13700_v48 = vrot.slane %v7508_v39, 2  ;;  %v7708_v56 = vmul.f32 %v7460_v8, %v360_v6  ;;  %v13702_v27 = vrot.slane %v7527_v61, 2  ;;  %v7719_v13 = vmul.f32 %v7492_v2, %v360_v6 }
  0xcc   : > { %v6792_v30 = vpack.c.bf16 %v5812_v38, %v5811_v11  ;;  %v7710_v53 = vadd.f32 %v2488_v51, %v2353_v4  ;;  %v263_v11 = vld [vmem:[%s7246_s17 + $0x2e0] sm:$0xff]  ;;  %v7727_v4 = vmul.f32 %v7325_v9, %v355_v59  ;;  %v2724_v39 = vmul.f32 %v7354_v34, %v355_v59 }
  0xcd   : > { %v3637_v33 = vsel %vm2006_vm1, %v13700_v48, %v3636_v52  ;;  %v13701_v28 = vmov %v13700_v48  ;;  %v1108_v48 = vmul.f32 %v7317_v5, %v355_v59  ;;  %v4101_v61 = vmul.f32 %v7487_v49, %v355_v59  ;;  %754 = vperm.xlu0 %7135, %v263_v11  }
  0xce   : > { %v3635_v24 = vsel %vm2006_vm1, %v13702_v27, %v13701_v28  ;;  %v3967_v44 = vadd.f32 %v3637_v33, %v3284_v18  ;;  %6793 = vst [vmem:[%s7696_s15] sm:$0xff] %v6792_v30   ;;  %v4338_v38 = vmul.f32 %v7460_v8, %v355_v59  ;;  %v4102_v18 = vmul.f32 %v7487_v49, %v360_v6 }
  0xcf   : > { %v3966_v21 = vadd.f32 %v3635_v24, %v7586_v41  ;;  %v4569_v51 = vrot.slane %v7708_v56, 1  ;;  %v1346_v41 = vrot.slane %v1108_v48, 1  ;;  %v5021_v33 = vmul.f32 %v7492_v2, %v355_v59 }
  0xd0   : > { %v5813_v30 = vmax.f32 %v7699_v58, 0.0  ;;  %v13703_v28 = vrot.slane %v7512_v42, 2  ;;  %v4567_v0 = vrot.slane %v4338_v38, 1  ;;  %v2487_v48 = vmul.f32 %v7370_v46, %v355_v59 }
  0xd1   : > { %v4213_v24 = vadd.f32 %v4101_v61, %v3966_v21  ;;  %v1347_v6 = vsel %vm1322_vm0, %v1344_v63, %v1346_v41  ;;  %v5250_v50 = vrot.slane %v5021_v33, 2  ;;  %v5252_v11 = vrot.slane %v7719_v13, 2 }
  0xd2   : > { %v2025_v27 = vsel %vm2006_vm1, %v13703_v28, %v2024_v60  ;;  %v13638_v58 = vrot.slane %v7727_v4, 2  ;;  %v2957_v35 = vrot.slane %v2724_v39, 1  ;;  %v4568_v42 = vsel %vm1322_vm0, %v4565_v43, %v4567_v0  ;;  %v7751_v60 = vpop.permute.xlu1 %369 }
  0xd3   : > { %v2352_v19 = vadd.f32 %v2025_v27, %v7576_v55  ;;  %v7753_v21 = vadd.f32 %v4102_v18, %v3967_v44  ;;  %v871_v36 = vmul.f32 %v7341_v20, %v355_v59  ;;  %v4570_v55 = vsel %vm1322_vm0, %v4567_v0, %v4569_v51 }
  0xd4   : > { %v4900_v63 = vadd.f32 %v4568_v42, %v4212_v3  ;;  %v7760_v61 = vmul.f32 %v7375_v47, %v355_v59  ;;  %v4901_v38 = vadd.f32 %v4570_v55, %v4213_v24  ;;  %v5251_v31 = vsel %vm2006_vm1, %v5248_v14, %v5250_v50 }
  0xd5   : > { %v1671_v43 = vadd.f32 %v1347_v6, %v7579_v62  ;;  %v1349_v44 = vsel %vm1322_vm0, %v1346_v41, %v1348_v25  ;;  %v2599_v39 = vadd.f32 %v2487_v48, %v2352_v19  ;;  %v7771_v0 = vmul.f32 %v7317_v5, %v7751_v60 }
  0xd6   : > { %v5583_v18 = vadd.f32 %v5251_v31, %v4900_v63  ;;  %v2960_v3 = vsel %vm1322_vm0, %v2957_v35, %v2959_v12  ;;  %v5253_v26 = vsel %vm2006_vm1, %v5250_v50, %v5252_v11  ;;  %v7781_v62 = vmul.f32 %v7325_v9, %v7751_v60 }
  0xd7   : > { %v13704_v14 = vrot.slane %v7558_v23, 2  ;;  %v2958_v41 = vsel %vm1322_vm0, %v2955_v17, %v2957_v35  ;;  %v5584_v33 = vadd.f32 %v5253_v26, %v4901_v38  ;;  %v7792_v24 = vadd.f32 %v1349_v44, %v871_v36  ;;  %v365_v38 = vpop.permute.xlu0 %364 }
  0xd8   : > { %v5702_v28 = vadd.f32 %v7584_v29, %v5583_v18  ;;  %v13639_v50 = vrot.slane %v7760_v61, 2  ;;  %v7797_v19 = vmul.f32 %v7341_v20, %v7751_v60  ;;  %v7801_v6 = vmul.f32 %v7354_v34, %v7751_v60 }
  0xd9   : > { %v2031_v59 = vsel %vm2006_vm1, %v13704_v14, %v13638_v58  ;;  %v7803_v48 = vadd.f32 %v2960_v3, %v2599_v39  ;;  %v1352_v17 = vrot.slane %v7771_v0, 1  ;;  %v2490_v35 = vmul.f32 %v7370_v46, %v7751_v60 }
  0xda   : > { %v2355_v27 = vadd.f32 %v2031_v59, %v1671_v43  ;;  %v5814_v54 = vmax.f32 %v5702_v28, 0.0  ;;  %v3286_v36 = vadd.f32 %v2958_v41, %v7600_v32  ;;  %v7812_v55 = vmul.f32 %v7375_v47, %v7751_v60  ;;  %v266_v59 = vld [vmem:[%s7246_s17 + $0x2f8] sm:$0xff]  ;;  %v265_v41 = vld [vmem:[%s7246_s17 + $0x2f0] sm:$0xff] }
  0xdb   : > { %v7816_v63 = vmul.f32 %v7460_v8, %v7751_v60  ;;  %v7819_v31 = vadd.f32 %v7584_v29, %v5584_v33  ;;  %v13705_v39 = vrot.slane %v7596_v7, 2  ;;  %v2963_v18 = vrot.slane %v7801_v6, 1  ;;  %769 = vperm.xlu1 %7136, %v266_v59   ;;  %764 = vperm.xlu0 %7135, %v265_v41  }
  0xdc   : > { %v6797_v43 = vpack.c.bf16 %v5814_v54, %v5813_v30  ;;  %v7821_v44 = vadd.f32 %v2490_v35, %v2355_v27  ;;  %v7836_v14 = vmul.f32 %v7492_v2, %v7751_v60  ;;  %v13708_v33 = vrot.slane %v7619_v37, 2 }
  0xdd   : > { %v3639_v32 = vsel %vm2006_vm1, %v3636_v52, %v13705_v39  ;;  %v13706_v3 = vmov %v13705_v39  ;;  %v4573_v10 = vrot.slane %v7816_v63, 1  ;;  %v13707_v52 = vrot.slane %v7558_v23, 2 }
  0xde   : > { %v3641_v26 = vsel %vm2006_vm1, %v13706_v3, %v13639_v50  ;;  %v3968_v30 = vadd.f32 %v3639_v32, %v7684_v16  ;;  %7069 = vst [vmem:[%s7696_s15 + $0x8] sm:$0xff] %v6797_v43   ;;  %v1110_v7 = vmul.f32 %v7317_v5, %v365_v38  ;;  %v2726_v27 = vmul.f32 %v7354_v34, %v365_v38 }
  0xdf   : > { %v2029_v28 = vsel %vm2006_vm1, %v13708_v33, %v13707_v52  ;;  %v7851_v54 = vmul.f32 %v7325_v9, %v365_v38  ;;  %v4103_v16 = vmul.f32 %v7487_v49, %v365_v38  ;;  %v4340_v35 = vmul.f32 %v7460_v8, %v365_v38 }
  0xe0   : > { %v5023_v43 = vmul.f32 %v7492_v2, %v365_v38  ;;  %v2354_v37 = vadd.f32 %v2029_v28, %v7682_v15  ;;  %v1350_v39 = vrot.slane %v1110_v7, 1  ;;  %v2489_v32 = vmul.f32 %v7370_v46, %v365_v38 }
  0xe1   : > { %v2961_v3 = vrot.slane %v2726_v27, 1  ;;  %v4215_v52 = vadd.f32 %v4103_v16, %v3968_v30  ;;  %v4571_v59 = vrot.slane %v4340_v35, 1  ;;  %v3969_v42 = vadd.f32 %v3641_v26, %v3286_v36 }
  0xe2   : > { %v5254_v33 = vrot.slane %v5023_v43, 2  ;;  %v4104_v58 = vmul.f32 %v7487_v49, %v7751_v60  ;;  %v5256_v50 = vrot.slane %v7836_v14, 2  ;;  %v1351_v41 = vsel %vm1322_vm0, %v1348_v25, %v1350_v39  ;;  %v380_v60 = vpop.permute.xlu1 %379 }
  0xe3   : > { %v13640_v23 = vrot.slane %v7851_v54, 2  ;;  %v7867_v15 = vmul.f32 %v7375_v47, %v365_v38  ;;  %v4572_v30 = vsel %vm1322_vm0, %v4569_v51, %v4571_v59  ;;  %v4574_v36 = vsel %vm1322_vm0, %v4571_v59, %v4573_v10 }
  0xe4   : > { %v1353_v40 = vsel %vm1322_vm0, %v1350_v39, %v1352_v17  ;;  %v2601_v26 = vadd.f32 %v2489_v32, %v2354_v37  ;;  %v4902_v25 = vadd.f32 %v4572_v30, %v7753_v21  ;;  %v4903_v28 = vadd.f32 %v4574_v36, %v4215_v52  ;;  %v375_v30 = vpop.permute.xlu0 %374 }
  0xe5   : > { %v2962_v7 = vsel %vm1322_vm0, %v2959_v12, %v2961_v3  ;;  %v2964_v56 = vsel %vm1322_vm0, %v2961_v3, %v2963_v18  ;;  %v5255_v51 = vsel %vm2006_vm1, %v5252_v11, %v5254_v33  ;;  %v1673_v27 = vadd.f32 %v1351_v41, %v7687_v1 }
  0xe6   : > { %v5257_v16 = vsel %vm2006_vm1, %v5254_v33, %v5256_v50  ;;  %v5585_v21 = vadd.f32 %v5255_v51, %v4902_v25  ;;  %v7893_v35 = vmul.f32 %v7317_v5, %v380_v60  ;;  %v7896_v45 = vmul.f32 %v7325_v9, %v380_v60 }
  0xe7   : > { %v5815_v12 = vmax.f32 %v7819_v31, 0.0  ;;  %v873_v43 = vmul.f32 %v7341_v20, %v365_v38  ;;  %v5586_v13 = vadd.f32 %v5257_v16, %v4903_v28  ;;  %v13709_v1 = vrot.slane %v7666_v22, 2 }
  0xe8   : > { %v4216_v37 = vadd.f32 %v4104_v58, %v3969_v42  ;;  %v3644_v39 = vrot.slane %v7867_v15, 2  ;;  %v5704_v32 = vadd.f32 %v7584_v29, %v5585_v21  ;;  %v7909_v59 = vadd.f32 %v2964_v56, %v2601_v26 }
  0xe9   : > { %v2035_v11 = vsel %vm2006_vm1, %v13709_v1, %v13640_v23  ;;  %v7907_v52 = vadd.f32 %v1353_v40, %v873_v43  ;;  %v7912_v31 = vmul.f32 %v7341_v20, %v380_v60  ;;  %v3288_v38 = vadd.f32 %v2962_v7, %v7710_v53  ;;  %v268_v1 = vld [vmem:[%s7246_s17 + $0x308] sm:$0xff] }
  0xea   : > { %v2357_v3 = vadd.f32 %v2035_v11, %v1673_v27  ;;  %v5816_v33 = vmax.f32 %v5704_v32, 0.0  ;;  %v1356_v41 = vrot.slane %v7893_v35, 1  ;;  %v2492_v42 = vmul.f32 %v7370_v46, %v380_v60  ;;  %v267_v11 = vld [vmem:[%s7246_s17 + $0x300] sm:$0xff]  ;;  %779 = vperm.xlu1 %7136, %v268_v1  }
  0xeb   : > { %v7919_v36 = vadd.f32 %v7584_v29, %v5586_v13  ;;  %v7922_v40 = vmul.f32 %v7354_v34, %v380_v60  ;;  %v7925_v26 = vmul.f32 %v7375_v47, %v380_v60  ;;  %v7928_v53 = vmul.f32 %v7460_v8, %v380_v60  ;;  %774 = vperm.xlu0 %7135, %v267_v11  }
  0xec   : > { %v6802_v25 = vpack.c.bf16 %v5816_v33, %v5815_v12  ;;  %v7930_v28 = vadd.f32 %v2492_v42, %v2357_v3  ;;  %v13710_v7 = vrot.slane %v7680_v57, 2  ;;  %v13712_v27 = vrot.slane %v7760_v61, 2 }
  0xed   : > { %v7943_v43 = vmul.f32 %v7492_v2, %v380_v60  ;;  %v1112_v13 = vmul.f32 %v7317_v5, %v375_v30  ;;  %v4577_v32 = vrot.slane %v7928_v53, 1  ;;  %v13713_v3 = vrot.slane %v7666_v22, 2 }
  0xee   : > { %v3645_v56 = vsel %vm2006_vm1, %v13710_v7, %v3644_v39  ;;  %v13711_v51 = vmov %v13710_v7  ;;  %7070 = vst [vmem:[%s7696_s15 + $0x10] sm:$0xff] %v6802_v25   ;;  %v13714_v57 = vrot.slane %v7727_v4, 2  ;;  %v2728_v33 = vmul.f32 %v7354_v34, %v375_v30 }
  0xef   : > { %v3643_v16 = vsel %vm2006_vm1, %v13712_v27, %v13711_v51  ;;  %v3971_v21 = vadd.f32 %v3645_v56, %v3288_v38  ;;  %v7957_v38 = vmul.f32 %v7325_v9, %v375_v30  ;;  %v4105_v42 = vmul.f32 %v7487_v49, %v375_v30 }
  0xf0   : > { %v3970_v12 = vadd.f32 %v3643_v16, %v7803_v48  ;;  %v2033_v61 = vsel %vm2006_vm1, %v13714_v57, %v13713_v3  ;;  %v1354_v48 = vrot.slane %v1112_v13, 1  ;;  %v4342_v7 = vmul.f32 %v7460_v8, %v375_v30 }
  0xf1   : > { %v5025_v25 = vmul.f32 %v7492_v2, %v375_v30  ;;  %v2967_v22 = vrot.slane %v7922_v40, 1  ;;  %v4106_v4 = vmul.f32 %v7487_v49, %v380_v60  ;;  %v2356_v56 = vadd.f32 %v2033_v61, %v7792_v24 }
  0xf2   : > { %v2491_v51 = vmul.f32 %v7370_v46, %v375_v30  ;;  %v5817_v27 = vmax.f32 %v7919_v36, 0.0  ;;  %v2965_v16 = vrot.slane %v2728_v33, 1  ;;  %v4217_v1 = vadd.f32 %v4105_v42, %v3970_v12  ;;  %v390_v12 = vpop.permute.xlu1 %389 }
  0xf3   : > { %v4575_v13 = vrot.slane %v4342_v7, 1  ;;  %v3650_v3 = vrot.slane %v7925_v26, 2  ;;  %v5260_v57 = vrot.slane %v7943_v43, 2  ;;  %v1355_v11 = vsel %vm1322_vm0, %v1352_v17, %v1354_v48 }
  0xf4   : > { %v5258_v58 = vrot.slane %v5025_v25, 2  ;;  %v7973_v23 = vadd.f32 %v4106_v4, %v3971_v21  ;;  %v13641_v24 = vrot.slane %v7957_v38, 2  ;;  %v2603_v61 = vadd.f32 %v2491_v51, %v2356_v56 }
  0xf5   : > { %v4576_v60 = vsel %vm1322_vm0, %v4573_v10, %v4575_v13  ;;  %v4578_v36 = vsel %vm1322_vm0, %v4575_v13, %v4577_v32  ;;  %v7983_v33 = vmul.f32 %v7375_v47, %v375_v30  ;;  %v1357_v21 = vsel %vm1322_vm0, %v1354_v48, %v1356_v41 }
  0xf6   : > { %v4904_v0 = vadd.f32 %v4576_v60, %v4216_v37  ;;  %v4905_v17 = vadd.f32 %v4578_v36, %v4217_v1  ;;  %v2968_v63 = vsel %vm1322_vm0, %v2965_v16, %v2967_v22  ;;  %v5259_v10 = vsel %vm2006_vm1, %v5256_v50, %v5258_v58  ;;  %v385_v36 = vpop.permute.xlu0 %384  ;;  %v400_v35 = vpop.permute.xlu1 %399 }
  0xf7   : > { %v1675_v42 = vadd.f32 %v1355_v11, %v7797_v19  ;;  %v5261_v7 = vsel %vm2006_vm1, %v5258_v58, %v5260_v57  ;;  %v7999_v25 = vmul.f32 %v7317_v5, %v390_v12  ;;  %v8002_v48 = vmul.f32 %v7325_v9, %v390_v12 }
  0xf8   : > { %v5587_v37 = vadd.f32 %v5259_v10, %v4904_v0  ;;  %v875_v4 = vmul.f32 %v7341_v20, %v375_v30  ;;  %v5588_v56 = vadd.f32 %v5261_v7, %v4905_v17  ;;  %v13715_v50 = vrot.slane %v7781_v62, 2 }
  0xf9   : > { %v8011_v14 = vmul.f32 %v7354_v34, %v390_v12  ;;  %v2966_v5 = vsel %vm1322_vm0, %v2963_v18, %v2965_v16  ;;  %v3648_v58 = vrot.slane %v7983_v33, 2  ;;  %v8020_v1 = vadd.f32 %v2968_v63, %v2603_v61 }
  0xfa   : > { %v2039_v19 = vsel %vm2006_vm1, %v13715_v50, %v13641_v24  ;;  %v5706_v9 = vadd.f32 %v7584_v29, %v5587_v37  ;;  %v8018_v30 = vadd.f32 %v1357_v21, %v875_v4  ;;  %v8023_v13 = vmul.f32 %v7341_v20, %v390_v12  ;;  %v269_v50 = vld [vmem:[%s7246_s17 + $0x310] sm:$0xff] }
  0xfb   : > { %v2359_v51 = vadd.f32 %v2039_v19, %v1675_v42  ;;  %v8026_v11 = vmul.f32 %v7460_v8, %v390_v12  ;;  %v1360_v6 = vrot.slane %v7999_v25, 1  ;;  %v2494_v16 = vmul.f32 %v7370_v46, %v390_v12  ;;  %784 = vperm.xlu0 %7135, %v269_v50  }
  0xfc   : > { %v5818_v60 = vmax.f32 %v5706_v9, 0.0  ;;  %v8032_v61 = vadd.f32 %v7584_v29, %v5588_v56  ;;  %v2971_v20 = vrot.slane %v8011_v14, 1  ;;  %v3290_v0 = vadd.f32 %v2966_v5, %v7821_v44  ;;  %v270_v56 = vld [vmem:[%s7246_s17 + $0x318] sm:$0xff] }
  0xfd   : > { %v13716_v17 = vrot.slane %v7812_v55, 2  ;;  %v8041_v10 = vadd.f32 %v2494_v16, %v2359_v51  ;;  %v8044_v42 = vmul.f32 %v7375_v47, %v390_v12  ;;  %v4108_v4 = vmul.f32 %v7487_v49, %v390_v12  ;;  %789 = vperm.xlu1 %7136, %v270_v56   ;;  %v8076_v16 = vld [vmem:[%s13632_s1 + $0x2] ss:$0 sm:$0xff] }
  0xfe   : > { %v6807_v63 = vpack.c.bf16 %v5818_v60, %v5817_v27  ;;  %v4581_v15 = vrot.slane %v8026_v11, 1  ;;  %v13718_v55 = vrot.slane %v7781_v62, 2  ;;  %v13719_v19 = vrot.slane %v7851_v54, 2 }
  0xff   : > { %v3647_v21 = vsel %vm2006_vm1, %v3644_v39, %v13716_v17  ;;  %v13717_v37 = vmov %v13716_v17  ;;  %v8057_v39 = vld [vmem:[%s13632_s1 + $0x1] ss:$0 sm:$0xff]  ;;  %v2730_v9 = vmul.f32 %v7354_v34, %v385_v36  ;;  %v4107_v51 = vmul.f32 %v7487_v49, %v385_v36 }
 0x100   : > { %v3972_v7 = vadd.f32 %v3647_v21, %v7909_v59  ;;  %v3649_v44 = vsel %vm2006_vm1, %v13717_v37, %v3648_v58  ;;  %v1114_v27 = vmul.f32 %v8057_v39, %v385_v36  ;;  %7071 = vst [vmem:[%s7696_s15 + $0x18] sm:$0xff] %v6807_v63   ;;  %v8064_v59 = vmul.f32 %v7492_v2, %v390_v12 }
 0x101   : > { %v2037_v5 = vsel %vm2006_vm1, %v13719_v19, %v13718_v55  ;;  %v8079_v12 = vmul.f32 %v8076_v16, %v385_v36  ;;  %v4344_v62 = vmul.f32 %v7460_v8, %v385_v36  ;;  %v5027_v54 = vmul.f32 %v7492_v2, %v385_v36 }
 0x102   : > { %v1358_v60 = vrot.slane %v1114_v27, 1  ;;  %v2358_v17 = vadd.f32 %v2037_v5, %v7907_v52  ;;  %v2493_v34 = vmul.f32 %v7370_v46, %v385_v36  ;;  %v8086_v21 = vmul.f32 %v7375_v47, %v385_v36  ;;  %v8097_v46 = vld [vmem:[%s13632_s1] ss:$0 sm:$0xff] }
 0x103   : > { %v4219_v63 = vadd.f32 %v4107_v51, %v3972_v7  ;;  %v5819_v37 = vmax.f32 %v8032_v61, 0.0  ;;  %v2969_v27 = vrot.slane %v2730_v9, 1  ;;  %v4579_v56 = vrot.slane %v4344_v62, 1 }
 0x104   : > { %v5262_v55 = vrot.slane %v5027_v54, 2  ;;  %v3654_v19 = vrot.slane %v8044_v42, 2  ;;  %v3973_v18 = vadd.f32 %v3649_v44, %v3290_v0  ;;  %v5264_v24 = vrot.slane %v8064_v59, 2 }
 0x105   : > { %v1359_v52 = vsel %vm1322_vm0, %v1356_v41, %v1358_v60  ;;  %v877_v47 = vmul.f32 %v8097_v46, %v385_v36  ;;  %v13642_v61 = vrot.slane %v8079_v12, 2  ;;  %v4580_v7 = vsel %vm1322_vm0, %v4577_v32, %v4579_v56 }
 0x106   : > { %v4582_v0 = vsel %vm1322_vm0, %v4579_v56, %v4581_v15  ;;  %v2605_v44 = vadd.f32 %v2493_v34, %v2358_v17  ;;  %v3652_v41 = vrot.slane %v8086_v21, 2  ;;  %v4906_v50 = vadd.f32 %v4580_v7, %v7973_v23 }
 0x107   : > { %v4907_v5 = vadd.f32 %v4582_v0, %v4219_v63  ;;  %v1361_v36 = vsel %vm1322_vm0, %v1358_v60, %v1360_v6  ;;  %v2970_v53 = vsel %vm1322_vm0, %v2967_v22, %v2969_v27  ;;  %v5263_v32 = vsel %vm2006_vm1, %v5260_v57, %v5262_v55  ;;  %v8139_v57 = vld [vmem:[%s13632_s1 + $0x4] ss:$0 sm:$0xff] }
 0x108   : > { %v1677_v9 = vadd.f32 %v1359_v52, %v7912_v31  ;;  %v2972_v51 = vsel %vm1322_vm0, %v2969_v27, %v2971_v20  ;;  %v5265_v23 = vsel %vm2006_vm1, %v5262_v55, %v5264_v24  ;;  %v5589_v62 = vadd.f32 %v5263_v32, %v4906_v50  ;;  %v8148_v27 = vld [vmem:[%s13632_s1 + $0x5] ss:$0 sm:$0xff] }
 0x109   : > { %v8126_v60 = vmul.f32 %v8057_v39, %v400_v35  ;;  %v5590_v40 = vadd.f32 %v5265_v23, %v4907_v5  ;;  %v8129_v22 = vmul.f32 %v8076_v16, %v400_v35  ;;  %v13720_v31 = vrot.slane %v7896_v45, 2 }
 0x10a   : > { %v8142_v54 = vmul.f32 %v8139_v57, %v400_v35  ;;  %v4220_v17 = vadd.f32 %v4108_v4, %v3973_v18  ;;  %v5708_v34 = vadd.f32 %v7584_v29, %v5589_v62  ;;  %v8151_v56 = vmul.f32 %v8148_v27, %v400_v35  ;;  %v8163_v18 = vld [vmem:[%s13632_s1 + $0x3] ss:$0 sm:$0xff] }
 0x10b   : > { %v2043_v43 = vsel %vm2006_vm1, %v13720_v31, %v13642_v61  ;;  %v8153_v55 = vadd.f32 %v1361_v36, %v877_v47  ;;  %v8155_v52 = vadd.f32 %v2972_v51, %v2605_v44  ;;  %v8158_v7 = vmul.f32 %v8097_v46, %v400_v35  ;;  %v395_v44 = vpop.permute.xlu0 %394  ;;  %v410_v61 = vpop.permute.xlu1 %409 }
 0x10c   : > { %v2361_v63 = vadd.f32 %v2043_v43, %v1677_v9  ;;  %v2496_v4 = vmul.f32 %v8163_v18, %v400_v35  ;;  %v5820_v0 = vmax.f32 %v5708_v34, 0.0  ;;  %v3292_v5 = vadd.f32 %v2970_v53, %v7930_v28  ;;  %v272_v34 = vld [vmem:[%s7246_s17 + $0x328] sm:$0xff] }
 0x10d   : > { %v8169_v47 = vmul.f32 %v7460_v8, %v400_v35  ;;  %v8172_v36 = vadd.f32 %v7584_v29, %v5590_v40  ;;  %v3653_v51 = vsel %vm2006_vm1, %v3650_v3, %v3652_v41  ;;  %v3651_v62 = vsel %vm2006_vm1, %v3648_v58, %v3650_v3  ;;  %799 = vperm.xlu1 %7136, %v272_v34  }
 0x10e   : > { %v6812_v28 = vpack.c.bf16 %v5820_v0, %v5819_v37  ;;  %v8181_v53 = vadd.f32 %v2496_v4, %v2361_v63  ;;  %v8190_v40 = vmul.f32 %v7492_v2, %v400_v35  ;;  %v3974_v31 = vadd.f32 %v3651_v62, %v8020_v1  ;;  %v271_v63 = vld [vmem:[%s7246_s17 + $0x320] sm:$0xff] }
 0x10f   : > { %v8194_v43 = vmul.f32 %v8057_v39, %v395_v44  ;;  %v8197_v37 = vmul.f32 %v8076_v16, %v395_v44  ;;  %v3975_v4 = vadd.f32 %v3653_v51, %v3292_v5  ;;  %v4585_v26 = vrot.slane %v8169_v47, 1  ;;  %794 = vperm.xlu0 %7135, %v271_v63  }
 0x110   : > { %7072 = vst [vmem:[%s7696_s15 + $0x20] sm:$0xff] %v6812_v28   ;;  %v4109_v33 = vmul.f32 %v7487_v49, %v395_v44  ;;  %v4346_v3 = vmul.f32 %v7460_v8, %v395_v44  ;;  %v4110_v58 = vmul.f32 %v7487_v49, %v400_v35  ;;  %v8208_v0 = vmul.f32 %v8139_v57, %v395_v44 }
 0x111   : > { %v1362_v1 = vrot.slane %v8194_v43, 1  ;;  %v5029_v62 = vmul.f32 %v7492_v2, %v395_v44  ;;  %v13721_v28 = vrot.slane %v7896_v45, 2  ;;  %v13722_v5 = vrot.slane %v7957_v38, 2 }
 0x112   : > { %v8217_v23 = vmul.f32 %v8148_v27, %v395_v44  ;;  %v4221_v34 = vadd.f32 %v4109_v33, %v3974_v31  ;;  %v4583_v9 = vrot.slane %v4346_v3, 1  ;;  %v5268_v35 = vrot.slane %v8190_v40, 2 }
 0x113   : > { %v2041_v51 = vsel %vm2006_vm1, %v13722_v5, %v13721_v28  ;;  %v13643_v32 = vrot.slane %v8197_v37, 2  ;;  %v5266_v50 = vrot.slane %v5029_v62, 2  ;;  %v1363_v2 = vsel %vm1322_vm0, %v1360_v6, %v1362_v1 }
 0x114   : > { %v2360_v45 = vadd.f32 %v2041_v51, %v8018_v30  ;;  %v4584_v38 = vsel %vm1322_vm0, %v4581_v15, %v4583_v9  ;;  %v4586_v31 = vsel %vm1322_vm0, %v4583_v9, %v4585_v26  ;;  %v1679_v63 = vadd.f32 %v1363_v2, %v8023_v13 }
 0x115   : > { %v2495_v33 = vmul.f32 %v8163_v18, %v395_v44  ;;  %v2973_v3 = vrot.slane %v8208_v0, 1  ;;  %v4908_v62 = vadd.f32 %v4584_v38, %v4220_v17  ;;  %v4909_v25 = vadd.f32 %v4586_v31, %v4221_v34  ;;  %v405_v31 = vpop.permute.xlu0 %404 }
 0x116   : > { %v5821_v6 = vmax.f32 %v8172_v36, 0.0  ;;  %v3656_v30 = vrot.slane %v8217_v23, 2  ;;  %v5267_v11 = vsel %vm2006_vm1, %v5264_v24, %v5266_v50  ;;  %v8242_v15 = vmul.f32 %v8057_v39, %v410_v61 }
 0x117   : > { %v5269_v13 = vsel %vm2006_vm1, %v5266_v50, %v5268_v35  ;;  %v5591_v9 = vadd.f32 %v5267_v11, %v4908_v62  ;;  %v8248_v28 = vmul.f32 %v8076_v16, %v410_v61  ;;  %v13723_v17 = vrot.slane %v8002_v48, 2 }
 0x118   : > { %v4222_v59 = vadd.f32 %v4110_v58, %v3975_v4  ;;  %v8256_v24 = vmul.f32 %v8097_v46, %v395_v44  ;;  %v5592_v5 = vadd.f32 %v5269_v13, %v4909_v25  ;;  %v8258_v34 = vadd.f32 %v2495_v33, %v2360_v45 }
 0x119   : > { %v2047_v36 = vsel %vm2006_vm1, %v13723_v17, %v13643_v32  ;;  %v5710_v50 = vadd.f32 %v7584_v29, %v5591_v9  ;;  %v8262_v2 = vmul.f32 %v8139_v57, %v410_v61  ;;  %v2974_v38 = vsel %vm1322_vm0, %v2971_v20, %v2973_v3  ;;  %v420_v32 = vpop.permute.xlu1 %419 }
 0x11a   : > { %v2363_v51 = vadd.f32 %v2047_v36, %v1679_v63  ;;  %v8270_v4 = vmul.f32 %v8097_v46, %v410_v61  ;;  %v2498_v58 = vmul.f32 %v8163_v18, %v410_v61  ;;  %v8275_v45 = vmul.f32 %v8148_v27, %v410_v61 }
 0x11b   : > { %v5822_v63 = vmax.f32 %v5710_v50, 0.0  ;;  %v3657_v14 = vsel %vm2006_vm1, %v3654_v19, %v3656_v30  ;;  %v8284_v20 = vmul.f32 %v7460_v8, %v410_v61  ;;  %v8287_v62 = vadd.f32 %v7584_v29, %v5592_v5  ;;  %v274_v50 = vld [vmem:[%s7246_s17 + $0x338] sm:$0xff] }
 0x11c   : > { %v8289_v25 = vadd.f32 %v2498_v58, %v2363_v51  ;;  %v3294_v11 = vadd.f32 %v2974_v38, %v8041_v10  ;;  %v4112_v13 = vmul.f32 %v7487_v49, %v410_v61  ;;  %v3655_v36 = vsel %vm2006_vm1, %v3652_v41, %v3654_v19  ;;  %v273_v38 = vld [vmem:[%s7246_s17 + $0x330] sm:$0xff]  ;;  %v8319_v41 = vld [vmem:[%s13632_s1 + $0x7] ss:$0 sm:$0xff]  ;;  %809 = vperm.xlu1 %7136, %v274_v50  }
 0x11d   : > { %v6817_v9 = vpack.c.bf16 %v5822_v63, %v5821_v6  ;;  %v8300_v8 = vmul.f32 %v8057_v39, %v405_v31  ;;  %v3976_v51 = vadd.f32 %v3655_v36, %v8155_v52  ;;  %v8305_v10 = vmul.f32 %v8076_v16, %v405_v31  ;;  %804 = vperm.xlu0 %7135, %v273_v38   ;;  %v8325_v63 = vld [vmem:[%s13632_s1 + $0x8] ss:$0 sm:$0xff] }
 0x11e   : > { %v8308_v6 = vmul.f32 %v8139_v57, %v405_v31  ;;  %v13645_v42 = vrot.slane %v8284_v20, 1  ;;  %v4111_v19 = vmul.f32 %v7487_v49, %v405_v31  ;;  %v4348_v52 = vmul.f32 %v8319_v41, %v405_v31 }
 0x11f   : > { %7073 = vst [vmem:[%s7696_s15 + $0x28] sm:$0xff] %v6817_v9   ;;  %v13644_v21 = vrot.slane %v8300_v8, 1  ;;  %v3977_v58 = vadd.f32 %v3657_v14, %v3294_v11  ;;  %v8328_v9 = vmul.f32 %v8325_v63, %v410_v61  ;;  %v13724_v49 = vmov %v13723_v17 }
 0x120   : > { %v13725_v36 = vrot.slane %v8079_v12, 2  ;;  %v5031_v17 = vmul.f32 %v8325_v63, %v405_v31  ;;  %v13646_v14 = vrot.slane %v8305_v10, 2  ;;  %v2497_v11 = vmul.f32 %v8163_v18, %v405_v31 }
 0x121   : > { %v4587_v38 = vrot.slane %v4348_v52, 1  ;;  %v13648_v33 = vrot.slane %v8308_v6, 1  ;;  %v4223_v44 = vadd.f32 %v4111_v19, %v3976_v51  ;;  %v13726_v48 = vrot.slane %v8126_v60, 1 }
 0x122   : > { %v2045_v5 = vsel %vm2006_vm1, %v13725_v36, %v13724_v49  ;;  %v5270_v61 = vrot.slane %v5031_v17, 2  ;;  %v8346_v49 = vmul.f32 %v8148_v27, %v405_v31  ;;  %v5823_v51 = vmax.f32 %v8287_v62, 0.0 }
 0x123   : > { %v2362_v50 = vadd.f32 %v2045_v5, %v8153_v55  ;;  %v1367_v12 = vsel %vm1322_vm0, %v13726_v48, %v13644_v21  ;;  %v4588_v55 = vsel %vm1322_vm0, %v4585_v26, %v4587_v38  ;;  %v4590_v5 = vsel %vm1322_vm0, %v4587_v38, %v13645_v42 }
 0x124   : > { %v1681_v17 = vadd.f32 %v1367_v12, %v8158_v7  ;;  %v13649_v19 = vrot.slane %v8328_v9, 2  ;;  %v8358_v52 = vmul.f32 %v8097_v46, %v405_v31  ;;  %v4910_v36 = vadd.f32 %v4588_v55, %v4222_v59 }
 0x125   : > { %v5271_v47 = vsel %vm2006_vm1, %v5268_v35, %v5270_v61  ;;  %v8364_v26 = vmul.f32 %v8057_v39, %v420_v32  ;;  %v8367_v48 = vmul.f32 %v8076_v16, %v420_v32  ;;  %v13727_v7 = vrot.slane %v8129_v22, 2 }
 0x126   : > { %v4911_v38 = vadd.f32 %v4590_v5, %v4223_v44  ;;  %v5593_v31 = vadd.f32 %v5271_v47, %v4910_v36  ;;  %v13728_v40 = vrot.slane %v8142_v54, 1  ;;  %v8379_v59 = vadd.f32 %v4112_v13, %v3977_v58 }
 0x127   : > { %v2051_v62 = vsel %vm2006_vm1, %v13727_v7, %v13646_v14  ;;  %v8381_v55 = vadd.f32 %v2497_v11, %v2362_v50  ;;  %v13647_v21 = vrot.slane %v8346_v49, 2  ;;  %v8385_v42 = vmul.f32 %v8139_v57, %v420_v32 }
 0x128   : > { %v2365_v12 = vadd.f32 %v2051_v62, %v1681_v17  ;;  %v2978_v35 = vsel %vm1322_vm0, %v13728_v40, %v13648_v33  ;;  %v5273_v44 = vsel %vm2006_vm1, %v5270_v61, %v13649_v19  ;;  %v5712_v5 = vadd.f32 %v7584_v29, %v5593_v31  ;;  %v415_v31 = vpop.permute.xlu0 %414 }
 0x129   : > { %v8392_v17 = vmul.f32 %v8097_v46, %v420_v32  ;;  %v2500_v36 = vmul.f32 %v8163_v18, %v420_v32  ;;  %v1372_v13 = vrot.slane %v8364_v26, 1  ;;  %v3296_v50 = vadd.f32 %v2978_v35, %v8181_v53 }
 0x12a   : > { %v13729_v11 = vrot.slane %v8126_v60, 1  ;;  %v5594_v61 = vadd.f32 %v5273_v44, %v4911_v38  ;;  %v5824_v7 = vmax.f32 %v5712_v5, 0.0  ;;  %v8406_v62 = vmul.f32 %v8319_v41, %v420_v32 }
 0x12b   : > { %v8403_v29 = vadd.f32 %v2500_v36, %v2365_v12  ;;  %v2983_v40 = vrot.slane %v8385_v42, 1  ;;  %v8410_v58 = vmul.f32 %v8148_v27, %v420_v32  ;;  %v13730_v60 = vrot.slane %v8151_v56, 2  ;;  %v8425_v12 = vld [vmem:[%s13632_s1 + $0x6] ss:$0 sm:$0xff] }
 0x12c   : > { %v1365_v47 = vsel %vm1322_vm0, %v1362_v1, %v13729_v11  ;;  %v13731_v43 = vrot.slane %v8142_v54, 1  ;;  %v6822_v38 = vpack.c.bf16 %v5824_v7, %v5823_v51  ;;  %v4114_v35 = vmul.f32 %v8425_v12, %v420_v32 }
 0x12d   : > { %v3661_v53 = vsel %vm2006_vm1, %v13730_v60, %v13647_v21  ;;  %v1680_v44 = vadd.f32 %v1365_v47, %v8256_v24  ;;  %v8431_v54 = vmul.f32 %v8325_v63, %v420_v32  ;;  %v13732_v0 = vmov %v13730_v60  ;;  %v275_v32 = vld [vmem:[%s7246_s17 + $0x340] sm:$0xff]  ;;  %v430_v21 = vpop.permute.xlu1 %429 }
 0x12e   : > { %v2976_v1 = vsel %vm1322_vm0, %v2973_v3, %v13731_v43  ;;  %v3979_v36 = vadd.f32 %v3661_v53, %v3296_v50  ;;  %v3659_v3 = vsel %vm2006_vm1, %v3656_v30, %v13732_v0  ;;  %v1120_v51 = vmul.f32 %v8057_v39, %v415_v31  ;;  %7074 = vst [vmem:[%s7696_s15 + $0x30] sm:$0xff] %v6822_v38   ;;  %v276_v50 = vld [vmem:[%s7246_s17 + $0x348] sm:$0xff]  ;;  %v8455_v30 = vld [vmem:[%s13633_s2] ss:$0 sm:$0xff] }
 0x12f   : > { %v3295_v5 = vadd.f32 %v2976_v1, %v8258_v34  ;;  %v4593_v11 = vrot.slane %v8406_v62, 1  ;;  %v8442_v24 = vmul.f32 %v8076_v16, %v415_v31  ;;  %v2736_v34 = vmul.f32 %v8139_v57, %v415_v31  ;;  %819 = vperm.xlu1 %7136, %v276_v50   ;;  %814 = vperm.xlu0 %7135, %v275_v32  }
 0x130   : > { %v13733_v47 = vrot.slane %v8129_v22, 2  ;;  %v13734_v56 = vrot.slane %v8197_v37, 2  ;;  %v5713_v60 = vadd.f32 %v8455_v30, %v5594_v61  ;;  %v1370_v53 = vrot.slane %v1120_v51, 1 }
 0x131   : > { %v3978_v7 = vadd.f32 %v3659_v3, %v3295_v5  ;;  %v4113_v43 = vmul.f32 %v8425_v12, %v415_v31  ;;  %v2499_v38 = vmul.f32 %v8163_v18, %v415_v31  ;;  %v4350_v22 = vmul.f32 %v8319_v41, %v415_v31 }
 0x132   : > { %v2049_v23 = vsel %vm2006_vm1, %v13734_v56, %v13733_v47  ;;  %v5033_v37 = vmul.f32 %v8325_v63, %v415_v31  ;;  %v13735_v0 = vrot.slane %v8242_v15, 1  ;;  %v2981_v47 = vrot.slane %v2736_v34, 1 }
 0x133   : > { %v2364_v1 = vadd.f32 %v2049_v23, %v1680_v44  ;;  %v4225_v61 = vadd.f32 %v4113_v43, %v3978_v7  ;;  %v8466_v51 = vadd.f32 %v4114_v35, %v3979_v36  ;;  %v5276_v50 = vrot.slane %v8431_v54, 2 }
 0x134   : > { %v1371_v3 = vsel %vm1322_vm0, %v13735_v0, %v1370_v53  ;;  %v13650_v44 = vrot.slane %v8442_v24, 2  ;;  %v4591_v32 = vrot.slane %v4350_v22, 1  ;;  %v5825_v56 = vmax.f32 %v5713_v60, 0.0 }
 0x135   : > { %v883_v23 = vmul.f32 %v8097_v46, %v415_v31  ;;  %v5274_v14 = vrot.slane %v5033_v37, 2  ;;  %v1683_v5 = vadd.f32 %v1371_v3, %v8270_v4  ;;  %v2611_v33 = vadd.f32 %v2499_v38, %v2364_v1 }
 0x136   : > { %v8473_v19 = vmul.f32 %v8148_v27, %v415_v31  ;;  %v13736_v7 = vrot.slane %v8284_v20, 1  ;;  %v4594_v36 = vsel %vm1322_vm0, %v4591_v32, %v4593_v11  ;;  %v1373_v34 = vsel %vm1322_vm0, %v1370_v53, %v1372_v13 }
 0x137   : > { %v2984_v4 = vsel %vm1322_vm0, %v2981_v47, %v2983_v40  ;;  %v4913_v31 = vadd.f32 %v4594_v36, %v4225_v61  ;;  %v13737_v43 = vrot.slane %v8328_v9, 2  ;;  %v8492_v1 = vmul.f32 %v8057_v39, %v430_v21 }
 0x138   : > { %v4592_v35 = vsel %vm1322_vm0, %v13736_v7, %v4591_v32  ;;  %v8495_v38 = vmul.f32 %v8076_v16, %v430_v21  ;;  %v13738_v53 = vrot.slane %v8248_v28, 2  ;;  %v13739_v37 = vrot.slane %v8262_v2, 1 }
 0x139   : > { %v4912_v60 = vadd.f32 %v4592_v35, %v8379_v59  ;;  %v5275_v20 = vsel %vm2006_vm1, %v13737_v43, %v5274_v14  ;;  %v5277_v9 = vsel %vm2006_vm1, %v5274_v14, %v5276_v50  ;;  %v8508_v61 = vadd.f32 %v1373_v34, %v883_v23 }
 0x13a   : > { %v2055_v22 = vsel %vm2006_vm1, %v13738_v53, %v13650_v44  ;;  %v2982_v59 = vsel %vm1322_vm0, %v13739_v37, %v2981_v47  ;;  %v3664_v32 = vrot.slane %v8473_v19, 2  ;;  %v5596_v7 = vadd.f32 %v5277_v9, %v4913_v31  ;;  %v425_v37 = vpop.permute.xlu0 %424 }
 0x13b   : > { %v5595_v0 = vadd.f32 %v5275_v20, %v4912_v60  ;;  %v2367_v3 = vadd.f32 %v2055_v22, %v1683_v5  ;;  %v8512_v35 = vmul.f32 %v8097_v46, %v430_v21  ;;  %v8514_v36 = vadd.f32 %v2984_v4, %v2611_v33 }
 0x13c   : > { %v2502_v47 = vmul.f32 %v8163_v18, %v430_v21  ;;  %v8519_v53 = vmul.f32 %v8139_v57, %v430_v21  ;;  %v1376_v14 = vrot.slane %v8492_v1, 1  ;;  %v3298_v23 = vadd.f32 %v2982_v59, %v8289_v25 }
 0x13d   : > { %v5714_v43 = vadd.f32 %v8455_v30, %v5595_v0  ;;  %v13740_v34 = vrot.slane %v8242_v15, 1  ;;  %v13741_v60 = vrot.slane %v8300_v8, 1  ;;  %v8532_v20 = vmul.f32 %v8148_v27, %v430_v21 }
 0x13e   : > { %v8529_v31 = vadd.f32 %v2502_v47, %v2367_v3  ;;  %v8535_v22 = vmul.f32 %v8319_v41, %v430_v21  ;;  %v8538_v25 = vadd.f32 %v8455_v30, %v5596_v7  ;;  %v13742_v15 = vrot.slane %v8275_v45, 2 }
 0x13f   : > { %v1369_v33 = vsel %vm1322_vm0, %v13741_v60, %v13740_v34  ;;  %v5826_v4 = vmax.f32 %v5714_v43, 0.0  ;;  %v4116_v59 = vmul.f32 %v8425_v12, %v430_v21  ;;  %v13743_v9 = vrot.slane %v8262_v2, 1 }
 0x140   : > { %v3665_v8 = vsel %vm2006_vm1, %v13742_v15, %v3664_v32  ;;  %v13744_v0 = vrot.slane %v8308_v6, 1  ;;  %v2987_v47 = vrot.slane %v8519_v53, 1  ;;  %v1682_v7 = vadd.f32 %v1369_v33, %v8358_v52 }
 0x141   : > { %v6827_v43 = vpack.c.bf16 %v5826_v4, %v5825_v56  ;;  %v3981_v60 = vadd.f32 %v3665_v8, %v3298_v23  ;;  %v8555_v5 = vmul.f32 %v8325_v63, %v430_v21  ;;  %v13745_v44 = vrot.slane %v8346_v49, 2  ;;  %v277_v56 = vld [vmem:[%s7246_s17 + $0x350] sm:$0xff] }
 0x142   : > { %v2980_v3 = vsel %vm1322_vm0, %v13744_v0, %v13743_v9  ;;  %v1122_v6 = vmul.f32 %v8057_v39, %v425_v37  ;;  %v278_v9 = vld [vmem:[%s7246_s17 + $0x358] sm:$0xff]  ;;  %v4597_v4 = vrot.slane %v8535_v22, 1  ;;  %v4115_v23 = vmul.f32 %v8425_v12, %v425_v37  ;;  %824 = vperm.xlu0 %7135, %v277_v56  }
 0x143   : > { %v3297_v34 = vadd.f32 %v2980_v3, %v8381_v55  ;;  %v3663_v2 = vsel %vm2006_vm1, %v13745_v44, %v13742_v15  ;;  %7075 = vst [vmem:[%s7696_s15 + $0x38] sm:$0xff] %v6827_v43   ;;  %v2738_v55 = vmul.f32 %v8139_v57, %v425_v37  ;;  %829 = vperm.xlu1 %7136, %v278_v9   ;;  %v13746_v21 = vrot.slane %v8248_v28, 2 }
 0x144   : > { %v13747_v45 = vrot.slane %v8305_v10, 2  ;;  %v1374_v44 = vrot.slane %v1122_v6, 1  ;;  %v8575_v33 = vmul.f32 %v8076_v16, %v425_v37  ;;  %v4352_v8 = vmul.f32 %v8319_v41, %v425_v37 }
 0x145   : > { %v3980_v52 = vadd.f32 %v3663_v2, %v3297_v34  ;;  %v2501_v3 = vmul.f32 %v8163_v18, %v425_v37  ;;  %v5035_v34 = vmul.f32 %v8325_v63, %v425_v37  ;;  %v5827_v15 = vmax.f32 %v8538_v25, 0.0 }
 0x146   : > { %v2053_v49 = vsel %vm2006_vm1, %v13747_v45, %v13746_v21  ;;  %v3670_v28 = vrot.slane %v8532_v20, 2  ;;  %v2985_v10 = vrot.slane %v2738_v55, 1  ;;  %v4595_v2 = vrot.slane %v4352_v8, 1 }
 0x147   : > { %v2366_v0 = vadd.f32 %v2053_v49, %v1682_v7  ;;  %v4227_v43 = vadd.f32 %v4115_v23, %v3980_v52  ;;  %v5280_v6 = vrot.slane %v8555_v5, 2  ;;  %v885_v9 = vmul.f32 %v8097_v46, %v425_v37  ;;  %v440_v23 = vpop.permute.xlu1 %439 }
 0x148   : > { %v1375_v56 = vsel %vm1322_vm0, %v1372_v13, %v1374_v44  ;;  %v5278_v7 = vrot.slane %v5035_v34, 2  ;;  %v13651_v21 = vrot.slane %v8575_v33, 2  ;;  %v8589_v52 = vmul.f32 %v8148_v27, %v425_v37 }
 0x149   : > { %v4596_v25 = vsel %vm1322_vm0, %v4593_v11, %v4595_v2  ;;  %v4598_v55 = vsel %vm1322_vm0, %v4595_v2, %v4597_v4  ;;  %v1377_v26 = vsel %vm1322_vm0, %v1374_v44, %v1376_v14  ;;  %v2613_v13 = vadd.f32 %v2501_v3, %v2366_v0 }
 0x14a   : > { %v4914_v45 = vadd.f32 %v4596_v25, %v8466_v51  ;;  %v4915_v49 = vadd.f32 %v4598_v55, %v4227_v43  ;;  %v2986_v37 = vsel %vm1322_vm0, %v2983_v40, %v2985_v10  ;;  %v2988_v62 = vsel %vm1322_vm0, %v2985_v10, %v2987_v47 }
 0x14b   : > { %v5279_v11 = vsel %vm2006_vm1, %v5276_v50, %v5278_v7  ;;  %v1685_v8 = vadd.f32 %v1375_v56, %v8392_v17  ;;  %v5281_v44 = vsel %vm2006_vm1, %v5278_v7, %v5280_v6  ;;  %v8615_v0 = vmul.f32 %v8057_v39, %v440_v23 }
 0x14c   : > { %v5597_v51 = vadd.f32 %v5279_v11, %v4914_v45  ;;  %v8618_v42 = vmul.f32 %v8076_v16, %v440_v23  ;;  %v13652_v40 = vrot.slane %v8589_v52, 2  ;;  %v5598_v3 = vadd.f32 %v5281_v44, %v4915_v49  ;;  %v435_v11 = vpop.permute.xlu0 %434 }
 0x14d   : > { %v13748_v54 = vrot.slane %v8367_v48, 2  ;;  %v8627_v50 = vmul.f32 %v8139_v57, %v440_v23  ;;  %v4228_v43 = vadd.f32 %v4116_v59, %v3981_v60  ;;  %v8631_v2 = vmul.f32 %v8148_v27, %v440_v23  ;;  %v280_v59 = vld [vmem:[%s7246_s17 + $0x368] sm:$0xff] }
 0x14e   : > { %v5716_v34 = vadd.f32 %v8455_v30, %v5597_v51  ;;  %v8633_v56 = vadd.f32 %v1377_v26, %v885_v9  ;;  %v8635_v7 = vadd.f32 %v2988_v62, %v2613_v13  ;;  %v8638_v25 = vmul.f32 %v8097_v46, %v440_v23  ;;  %839 = vperm.xlu1 %7136, %v280_v59  }
 0x14f   : > { %v2059_v17 = vsel %vm2006_vm1, %v13748_v54, %v13651_v21  ;;  %v3300_v55 = vadd.f32 %v2986_v37, %v8403_v29  ;;  %v1380_v49 = vrot.slane %v8615_v0, 1  ;;  %v2504_v60 = vmul.f32 %v8163_v18, %v440_v23 }
 0x150   : > { %v2369_v10 = vadd.f32 %v2059_v17, %v1685_v8  ;;  %v5828_v45 = vmax.f32 %v5716_v34, 0.0  ;;  %v8645_v9 = vadd.f32 %v8455_v30, %v5598_v3  ;;  %v2991_v26 = vrot.slane %v8627_v50, 1 }
 0x151   : > { %v13749_v29 = vrot.slane %v8410_v58, 2  ;;  %v8654_v37 = vmul.f32 %v8319_v41, %v440_v23  ;;  %v8665_v17 = vmul.f32 %v8325_v63, %v440_v23  ;;  %v2740_v58 = vmul.f32 %v8139_v57, %v435_v11 }
 0x152   : > { %v6832_v62 = vpack.c.bf16 %v5828_v45, %v5827_v15  ;;  %v8656_v8 = vadd.f32 %v2504_v60, %v2369_v10  ;;  %v279_v15 = vld [vmem:[%s7246_s17 + $0x360] sm:$0xff]  ;;  %v8673_v10 = vmul.f32 %v8076_v16, %v435_v11  ;;  %v4117_v19 = vmul.f32 %v8425_v12, %v435_v11 }
 0x153   : > { %v3669_v13 = vsel %vm2006_vm1, %v13749_v29, %v13652_v40  ;;  %v13750_v51 = vmov %v13749_v29  ;;  %v1124_v29 = vmul.f32 %v8057_v39, %v435_v11  ;;  %v4601_v45 = vrot.slane %v8654_v37, 1  ;;  %834 = vperm.xlu0 %7135, %v279_v15  }
 0x154   : > { %v3667_v3 = vsel %vm2006_vm1, %v3664_v32, %v13750_v51  ;;  %v3983_v54 = vadd.f32 %v3669_v13, %v3300_v55  ;;  %7076 = vst [vmem:[%s7696_s15 + $0x40] sm:$0xff] %v6832_v62   ;;  %v4354_v32 = vmul.f32 %v8319_v41, %v435_v11  ;;  %v4118_v55 = vmul.f32 %v8425_v12, %v440_v23 }
 0x155   : > { %v3982_v34 = vadd.f32 %v3667_v3, %v8514_v36  ;;  %v1378_v36 = vrot.slane %v1124_v29, 1  ;;  %v5037_v60 = vmul.f32 %v8325_v63, %v435_v11  ;;  %v5829_v13 = vmax.f32 %v8645_v9, 0.0 }
 0x156   : > { %v13751_v62 = vrot.slane %v8367_v48, 2  ;;  %v13752_v51 = vrot.slane %v8442_v24, 2  ;;  %v4599_v21 = vrot.slane %v4354_v32, 1  ;;  %v2503_v29 = vmul.f32 %v8163_v18, %v435_v11 }
 0x157   : > { %v4229_v44 = vadd.f32 %v4117_v19, %v3982_v34  ;;  %v1379_v23 = vsel %vm1322_vm0, %v1376_v14, %v1378_v36  ;;  %v5282_v40 = vrot.slane %v5037_v60, 2  ;;  %v5284_v15 = vrot.slane %v8665_v17, 2  ;;  %v8697_v34 = vpop.permute.xlu1 %449 }
 0x158   : > { %v2057_v3 = vsel %vm2006_vm1, %v13752_v51, %v13751_v62  ;;  %v13653_v9 = vrot.slane %v8673_v10, 2  ;;  %v2989_v48 = vrot.slane %v2740_v58, 1  ;;  %v4600_v24 = vsel %vm1322_vm0, %v4597_v4, %v4599_v21 }
 0x159   : > { %v2368_v59 = vadd.f32 %v2057_v3, %v8508_v61  ;;  %v8699_v19 = vadd.f32 %v4118_v55, %v3983_v54  ;;  %v887_v1 = vmul.f32 %v8097_v46, %v435_v11  ;;  %v4602_v61 = vsel %vm1322_vm0, %v4599_v21, %v4601_v45 }
 0x15a   : > { %v4916_v14 = vadd.f32 %v4600_v24, %v4228_v43  ;;  %v8706_v32 = vmul.f32 %v8148_v27, %v435_v11  ;;  %v4917_v60 = vadd.f32 %v4602_v61, %v4229_v44  ;;  %v5283_v22 = vsel %vm2006_vm1, %v5280_v6, %v5282_v40 }
 0x15b   : > { %v1687_v4 = vadd.f32 %v1379_v23, %v8512_v35  ;;  %v1381_v54 = vsel %vm1322_vm0, %v1378_v36, %v1380_v49  ;;  %v2615_v58 = vadd.f32 %v2503_v29, %v2368_v59  ;;  %v8717_v21 = vmul.f32 %v8057_v39, %v8697_v34 }
 0x15c   : > { %v5599_v55 = vadd.f32 %v5283_v22, %v4916_v14  ;;  %v2992_v43 = vsel %vm1322_vm0, %v2989_v48, %v2991_v26  ;;  %v5285_v5 = vsel %vm2006_vm1, %v5282_v40, %v5284_v15  ;;  %v8727_v35 = vmul.f32 %v8076_v16, %v8697_v34 }
 0x15d   : > { %v13753_v6 = vrot.slane %v8495_v38, 2  ;;  %v2990_v44 = vsel %vm1322_vm0, %v2987_v47, %v2989_v48  ;;  %v5600_v36 = vadd.f32 %v5285_v5, %v4917_v60  ;;  %v8738_v3 = vadd.f32 %v1381_v54, %v887_v1  ;;  %v445_v60 = vpop.permute.xlu0 %444 }
 0x15e   : > { %v5718_v62 = vadd.f32 %v8455_v30, %v5599_v55  ;;  %v13654_v40 = vrot.slane %v8706_v32, 2  ;;  %v8743_v59 = vmul.f32 %v8097_v46, %v8697_v34  ;;  %v8747_v23 = vmul.f32 %v8139_v57, %v8697_v34 }
 0x15f   : > { %v2063_v11 = vsel %vm2006_vm1, %v13753_v6, %v13653_v9  ;;  %v8749_v29 = vadd.f32 %v2992_v43, %v2615_v58  ;;  %v1384_v47 = vrot.slane %v8717_v21, 1  ;;  %v2506_v48 = vmul.f32 %v8163_v18, %v8697_v34  ;;  %v282_v6 = vld [vmem:[%s7246_s17 + $0x378] sm:$0xff] }
 0x160   : > { %v2371_v51 = vadd.f32 %v2063_v11, %v1687_v4  ;;  %v5830_v53 = vmax.f32 %v5718_v62, 0.0  ;;  %v3302_v1 = vadd.f32 %v2990_v44, %v8529_v31  ;;  %v8758_v61 = vmul.f32 %v8148_v27, %v8697_v34  ;;  %v281_v11 = vld [vmem:[%s7246_s17 + $0x370] sm:$0xff]  ;;  %849 = vperm.xlu1 %7136, %v282_v6  }
 0x161   : > { %v8762_v14 = vmul.f32 %v8319_v41, %v8697_v34  ;;  %v8765_v22 = vadd.f32 %v8455_v30, %v5600_v36  ;;  %v13754_v58 = vrot.slane %v8589_v52, 2  ;;  %v2995_v55 = vrot.slane %v8747_v23, 1  ;;  %844 = vperm.xlu0 %7135, %v281_v11  }
 0x162   : > { %v6837_v4 = vpack.c.bf16 %v5830_v53, %v5829_v13  ;;  %v8767_v54 = vadd.f32 %v2506_v48, %v2371_v51  ;;  %v3673_v43 = vsel %vm2006_vm1, %v3670_v28, %v13654_v40  ;;  %v8782_v5 = vmul.f32 %v8325_v63, %v8697_v34 }
 0x163   : > { %v3671_v31 = vsel %vm2006_vm1, %v13754_v58, %v3670_v28  ;;  %v4605_v52 = vrot.slane %v8762_v14, 1  ;;  %v13755_v44 = vrot.slane %v8495_v38, 2  ;;  %v13756_v36 = vrot.slane %v8575_v33, 2 }
 0x164   : > { %v3984_v13 = vadd.f32 %v3671_v31, %v8635_v7  ;;  %7077 = vst [vmem:[%s7696_s15 + $0x48] sm:$0xff] %v6837_v4   ;;  %v1126_v20 = vmul.f32 %v8057_v39, %v445_v60  ;;  %v2742_v28 = vmul.f32 %v8139_v57, %v445_v60  ;;  %v8797_v51 = vmul.f32 %v8076_v16, %v445_v60 }
 0x165   : > { %v2061_v62 = vsel %vm2006_vm1, %v13756_v36, %v13755_v44  ;;  %v4119_v7 = vmul.f32 %v8425_v12, %v445_v60  ;;  %v4356_v53 = vmul.f32 %v8319_v41, %v445_v60  ;;  %v5039_v48 = vmul.f32 %v8325_v63, %v445_v60 }
 0x166   : > { %v2370_v33 = vadd.f32 %v2061_v62, %v8633_v56  ;;  %v1382_v4 = vrot.slane %v1126_v20, 1  ;;  %v2505_v58 = vmul.f32 %v8163_v18, %v445_v60  ;;  %v2993_v31 = vrot.slane %v2742_v28, 1 }
 0x167   : > { %v4231_v44 = vadd.f32 %v4119_v7, %v3984_v13  ;;  %v4603_v6 = vrot.slane %v4356_v53, 1  ;;  %v5286_v36 = vrot.slane %v5039_v48, 2  ;;  %v3985_v24 = vadd.f32 %v3673_v43, %v3302_v1 }
 0x168   : > { %v4120_v9 = vmul.f32 %v8425_v12, %v8697_v34  ;;  %v5288_v40 = vrot.slane %v8782_v5, 2  ;;  %v1383_v11 = vsel %vm1322_vm0, %v1380_v49, %v1382_v4  ;;  %v2066_v38 = vrot.slane %v8797_v51, 2  ;;  %v460_v34 = vpop.permute.xlu1 %459  ;;  %v8955_v5 = vld [vmem:[%s13632_s1 + $0x2] ss:$0 sm:$0xff] }
 0x169   : > { %v8813_v56 = vmul.f32 %v8148_v27, %v445_v60  ;;  %v4604_v13 = vsel %vm1322_vm0, %v4601_v45, %v4603_v6  ;;  %v4606_v1 = vsel %vm1322_vm0, %v4603_v6, %v4605_v52  ;;  %v1385_v0 = vsel %vm1322_vm0, %v1382_v4, %v1384_v47 }
 0x16a   : > { %v2617_v43 = vadd.f32 %v2505_v58, %v2370_v33  ;;  %v4918_v49 = vadd.f32 %v4604_v13, %v8699_v19  ;;  %v4919_v62 = vadd.f32 %v4606_v1, %v4231_v44  ;;  %v2994_v20 = vsel %vm1322_vm0, %v2991_v26, %v2993_v31  ;;  %v455_v13 = vpop.permute.xlu0 %454 }
 0x16b   : > { %v2996_v37 = vsel %vm1322_vm0, %v2993_v31, %v2995_v55  ;;  %v5287_v45 = vsel %vm2006_vm1, %v5284_v15, %v5286_v36  ;;  %v1689_v28 = vadd.f32 %v1383_v11, %v8638_v25  ;;  %v5289_v7 = vsel %vm2006_vm1, %v5286_v36, %v5288_v40 }
 0x16c   : > { %v5601_v19 = vadd.f32 %v5287_v45, %v4918_v49  ;;  %v8839_v53 = vmul.f32 %v8057_v39, %v460_v34  ;;  %v8842_v50 = vmul.f32 %v8076_v16, %v460_v34  ;;  %v5831_v26 = vmax.f32 %v8765_v22, 0.0 }
 0x16d   : > { %v889_v48 = vmul.f32 %v8097_v46, %v445_v60  ;;  %v5602_v17 = vadd.f32 %v5289_v7, %v4919_v62  ;;  %v13757_v25 = vrot.slane %v8618_v42, 2  ;;  %v4232_v33 = vadd.f32 %v4120_v9, %v3985_v24 }
 0x16e   : > { %v3676_v4 = vrot.slane %v8813_v56, 2  ;;  %v5720_v58 = vadd.f32 %v8455_v30, %v5601_v19  ;;  %v8855_v6 = vadd.f32 %v2996_v37, %v2617_v43  ;;  %v8858_v22 = vmul.f32 %v8097_v46, %v460_v34 }
 0x16f   : > { %v2067_v15 = vsel %vm2006_vm1, %v13757_v25, %v2066_v38  ;;  %v8853_v44 = vadd.f32 %v1385_v0, %v889_v48  ;;  %v3304_v60 = vadd.f32 %v2994_v20, %v8656_v8  ;;  %v1388_v11 = vrot.slane %v8839_v53, 1  ;;  %v284_v25 = vld [vmem:[%s7246_s17 + $0x388] sm:$0xff] }
 0x170   : > { %v2373_v31 = vadd.f32 %v2067_v15, %v1689_v28  ;;  %v5832_v36 = vmax.f32 %v5720_v58, 0.0  ;;  %v2072_v9 = vrot.slane %v8842_v50, 2  ;;  %v2508_v24 = vmul.f32 %v8163_v18, %v460_v34  ;;  %v283_v15 = vld [vmem:[%s7246_s17 + $0x380] sm:$0xff]  ;;  %2458 = vperm.xlu1 %7136, %v284_v25  }
 0x171   : > { %v8865_v1 = vadd.f32 %v8455_v30, %v5602_v17  ;;  %v8868_v0 = vmul.f32 %v8139_v57, %v460_v34  ;;  %v8871_v43 = vmul.f32 %v8148_v27, %v460_v34  ;;  %v8874_v8 = vmul.f32 %v8319_v41, %v460_v34  ;;  %1085 = vperm.xlu0 %7135, %v283_v15  }
 0x172   : > { %v6842_v49 = vpack.c.bf16 %v5832_v36, %v5831_v26  ;;  %v8876_v62 = vadd.f32 %v2508_v24, %v2373_v31  ;;  %v13758_v20 = vrot.slane %v8631_v2, 2  ;;  %v13760_v28 = vrot.slane %v8706_v32, 2 }
 0x173   : > { %v8889_v48 = vmul.f32 %v8325_v63, %v460_v34  ;;  %v1128_v17 = vmul.f32 %v8057_v39, %v455_v13  ;;  %v4609_v58 = vrot.slane %v8874_v8, 1  ;;  %v13761_v31 = vrot.slane %v8618_v42, 2 }
 0x174   : > { %v3677_v37 = vsel %vm2006_vm1, %v13758_v20, %v3676_v4  ;;  %v13759_v45 = vmov %v13758_v20  ;;  %7078 = vst [vmem:[%s7696_s15 + $0x50] sm:$0xff] %v6842_v49   ;;  %v13762_v2 = vrot.slane %v8673_v10, 2  ;;  %v2744_v36 = vmul.f32 %v8139_v57, %v455_v13 }
 0x175   : > { %v3675_v7 = vsel %vm2006_vm1, %v13760_v28, %v13759_v45  ;;  %v3987_v19 = vadd.f32 %v3677_v37, %v3304_v60  ;;  %v8903_v60 = vmul.f32 %v8076_v16, %v455_v13  ;;  %v4121_v39 = vmul.f32 %v8425_v12, %v455_v13 }
 0x176   : > { %v3986_v26 = vadd.f32 %v3675_v7, %v8749_v29  ;;  %v2065_v32 = vsel %vm2006_vm1, %v13762_v2, %v13761_v31  ;;  %v1386_v29 = vrot.slane %v1128_v17, 1  ;;  %v4358_v24 = vmul.f32 %v8319_v41, %v455_v13 }
 0x177   : > { %v5041_v49 = vmul.f32 %v8325_v63, %v455_v13  ;;  %v2999_v42 = vrot.slane %v8868_v0, 1  ;;  %v4122_v10 = vmul.f32 %v8425_v12, %v460_v34  ;;  %v2372_v20 = vadd.f32 %v2065_v32, %v8738_v3 }
 0x178   : > { %v2507_v16 = vmul.f32 %v8163_v18, %v455_v13  ;;  %v5833_v37 = vmax.f32 %v8865_v1, 0.0  ;;  %v2997_v45 = vrot.slane %v2744_v36, 1  ;;  %v4233_v28 = vadd.f32 %v4121_v39, %v3986_v26  ;;  %v470_v26 = vpop.permute.xlu1 %469 }
 0x179   : > { %v4607_v7 = vrot.slane %v4358_v24, 1  ;;  %v3682_v17 = vrot.slane %v8871_v43, 2  ;;  %v5292_v25 = vrot.slane %v8889_v48, 2  ;;  %v1387_v15 = vsel %vm1322_vm0, %v1384_v47, %v1386_v29 }
 0x17a   : > { %v5290_v31 = vrot.slane %v5041_v49, 2  ;;  %v8919_v2 = vadd.f32 %v4122_v10, %v3987_v19  ;;  %v13655_v3 = vrot.slane %v8903_v60, 2  ;;  %v2619_v32 = vadd.f32 %v2507_v16, %v2372_v20  ;;  %v8947_v49 = vld [vmem:[%s13632_s1 + $0x1] ss:$0 sm:$0xff] }
 0x17b   : > { %v4608_v34 = vsel %vm1322_vm0, %v4605_v52, %v4607_v7  ;;  %v4610_v1 = vsel %vm1322_vm0, %v4607_v7, %v4609_v58  ;;  %v8929_v36 = vmul.f32 %v8148_v27, %v455_v13  ;;  %v1389_v19 = vsel %vm1322_vm0, %v1386_v29, %v1388_v11 }
 0x17c   : > { %v4920_v21 = vadd.f32 %v4608_v34, %v4232_v33  ;;  %v4921_v47 = vadd.f32 %v4610_v1, %v4233_v28  ;;  %v3000_v14 = vsel %vm1322_vm0, %v2997_v45, %v2999_v42  ;;  %v5291_v52 = vsel %vm2006_vm1, %v5288_v40, %v5290_v31  ;;  %v8981_v1 = vld [vmem:[%s13632_s1] ss:$0 sm:$0xff] }
 0x17d   : > { %v1691_v39 = vadd.f32 %v1387_v15, %v8743_v59  ;;  %v5293_v24 = vsel %vm2006_vm1, %v5290_v31, %v5292_v25  ;;  %v8950_v29 = vmul.f32 %v8947_v49, %v470_v26  ;;  %v8958_v40 = vmul.f32 %v8955_v5, %v470_v26 }
 0x17e   : > { %v5603_v33 = vadd.f32 %v5291_v52, %v4920_v21  ;;  %v891_v59 = vmul.f32 %v8097_v46, %v455_v13  ;;  %v5604_v10 = vadd.f32 %v5293_v24, %v4921_v47  ;;  %v13763_v20 = vrot.slane %v8727_v35, 2  ;;  %v465_v47 = vpop.permute.xlu0 %464 }
 0x17f   : > { %v8967_v28 = vmul.f32 %v8139_v57, %v470_v26  ;;  %v2998_v7 = vsel %vm1322_vm0, %v2995_v55, %v2997_v45  ;;  %v3680_v15 = vrot.slane %v8929_v36, 2  ;;  %v8976_v13 = vadd.f32 %v3000_v14, %v2619_v32 }
 0x180   : > { %v2071_v16 = vsel %vm2006_vm1, %v13763_v20, %v13655_v3  ;;  %v5722_v31 = vadd.f32 %v8455_v30, %v5603_v33  ;;  %v8974_v46 = vadd.f32 %v1389_v19, %v891_v59  ;;  %v8984_v57 = vmul.f32 %v8981_v1, %v470_v26 }
 0x181   : > { %v2375_v34 = vadd.f32 %v2071_v16, %v1691_v39  ;;  %v8987_v23 = vmul.f32 %v8319_v41, %v470_v26  ;;  %v1392_v45 = vrot.slane %v8950_v29, 1  ;;  %v2510_v32 = vmul.f32 %v8163_v18, %v470_v26 }
 0x182   : > { %v5834_v55 = vmax.f32 %v5722_v31, 0.0  ;;  %v8993_v19 = vadd.f32 %v8455_v30, %v5604_v10  ;;  %v3003_v14 = vrot.slane %v8967_v28, 1  ;;  %v3306_v52 = vadd.f32 %v2998_v7, %v8767_v54  ;;  %v285_v7 = vld [vmem:[%s7246_s17 + $0x390] sm:$0xff]  ;;  %v9030_v31 = vld [vmem:[%s13632_s1 + $0x4] ss:$0 sm:$0xff] }
 0x183   : > { %v13764_v39 = vrot.slane %v8758_v61, 2  ;;  %v9002_v59 = vadd.f32 %v2510_v32, %v2375_v34  ;;  %v9005_v18 = vmul.f32 %v8148_v27, %v470_v26  ;;  %v4124_v16 = vmul.f32 %v8425_v12, %v470_v26  ;;  %2463 = vperm.xlu0 %7135, %v285_v7  }
 0x184   : > { %v6847_v33 = vpack.c.bf16 %v5834_v55, %v5833_v37  ;;  %v4613_v56 = vrot.slane %v8987_v23, 1  ;;  %v286_v37 = vld [vmem:[%s7246_s17 + $0x398] sm:$0xff]  ;;  %v9020_v27 = vmul.f32 %v8325_v63, %v470_v26  ;;  %v2746_v34 = vmul.f32 %v9030_v31, %v465_v47 }
 0x185   : > { %v3679_v24 = vsel %vm2006_vm1, %v3676_v4, %v13764_v39  ;;  %v13765_v10 = vmov %v13764_v39  ;;  %v1130_v4 = vmul.f32 %v8947_v49, %v465_v47  ;;  %v4123_v55 = vmul.f32 %v8425_v12, %v465_v47  ;;  %2468 = vperm.xlu1 %7136, %v286_v37  }
 0x186   : > { %v3988_v20 = vadd.f32 %v3679_v24, %v8855_v6  ;;  %v3681_v54 = vsel %vm2006_vm1, %v13765_v10, %v3680_v15  ;;  %7079 = vst [vmem:[%s7696_s15 + $0x58] sm:$0xff] %v6847_v33   ;;  %v13766_v6 = vrot.slane %v8727_v35, 2  ;;  %v9035_v26 = vmul.f32 %v8955_v5, %v465_v47  ;;  %v9044_v24 = vld [vmem:[%s13632_s1 + $0x3] ss:$0 sm:$0xff] }
 0x187   : > { %v1390_v32 = vrot.slane %v1130_v4, 1  ;;  %v4360_v35 = vmul.f32 %v8319_v41, %v465_v47  ;;  %v5043_v51 = vmul.f32 %v8325_v63, %v465_v47  ;;  %v2509_v33 = vmul.f32 %v9044_v24, %v465_v47 }
 0x188   : > { %v2069_v61 = vsel %vm2006_vm1, %v2066_v38, %v13766_v6  ;;  %v5835_v38 = vmax.f32 %v8993_v19, 0.0  ;;  %v4235_v10 = vadd.f32 %v4123_v55, %v3988_v20  ;;  %v3686_v4 = vrot.slane %v9005_v18, 2  ;;  %v9057_v20 = vld [vmem:[%s13632_s1 + $0x5] ss:$0 sm:$0xff] }
 0x189   : > { %v2374_v39 = vadd.f32 %v2069_v61, %v8853_v44  ;;  %v3001_v37 = vrot.slane %v2746_v34, 1  ;;  %v4611_v6 = vrot.slane %v4360_v35, 1  ;;  %v5294_v21 = vrot.slane %v5043_v51, 2 }
 0x18a   : > { %v3989_v3 = vadd.f32 %v3681_v54, %v3306_v52  ;;  %v5296_v7 = vrot.slane %v9020_v27, 2  ;;  %v893_v19 = vmul.f32 %v8981_v1, %v465_v47  ;;  %v1391_v44 = vsel %vm1322_vm0, %v1388_v11, %v1390_v32  ;;  %v480_v54 = vpop.permute.xlu1 %479 }
 0x18b   : > { %v13656_v61 = vrot.slane %v9035_v26, 2  ;;  %v9060_v34 = vmul.f32 %v9057_v20, %v465_v47  ;;  %v4612_v52 = vsel %vm1322_vm0, %v4609_v58, %v4611_v6  ;;  %v4614_v53 = vsel %vm1322_vm0, %v4611_v6, %v4613_v56 }
 0x18c   : > { %v1393_v11 = vsel %vm1322_vm0, %v1390_v32, %v1392_v45  ;;  %v2621_v55 = vadd.f32 %v2509_v33, %v2374_v39  ;;  %v4922_v35 = vadd.f32 %v4612_v52, %v8919_v2  ;;  %v4923_v51 = vadd.f32 %v4614_v53, %v4235_v10 }
 0x18d   : > { %v3002_v47 = vsel %vm1322_vm0, %v2999_v42, %v3001_v37  ;;  %v3004_v8 = vsel %vm1322_vm0, %v3001_v37, %v3003_v14  ;;  %v5295_v58 = vsel %vm2006_vm1, %v5292_v25, %v5294_v21  ;;  %v1693_v6 = vadd.f32 %v1391_v44, %v8858_v22 }
 0x18e   : > { %v5297_v32 = vsel %vm2006_vm1, %v5294_v21, %v5296_v7  ;;  %v5605_v2 = vadd.f32 %v5295_v58, %v4922_v35  ;;  %v9086_v39 = vmul.f32 %v8947_v49, %v480_v54  ;;  %v9089_v0 = vmul.f32 %v8955_v5, %v480_v54 }
 0x18f   : > { %v3684_v42 = vrot.slane %v9060_v34, 2  ;;  %v5606_v33 = vadd.f32 %v5297_v32, %v4923_v51  ;;  %v2075_v22 = vsel %vm2006_vm1, %v2072_v9, %v13656_v61  ;;  %v9098_v48 = vmul.f32 %v9030_v31, %v480_v54  ;;  %v288_v61 = vld [vmem:[%s7246_s17 + $0x3a8] sm:$0xff] }
 0x190   : > { %v4236_v25 = vadd.f32 %v4124_v16, %v3989_v3  ;;  %v5724_v21 = vadd.f32 %v8455_v30, %v5605_v2  ;;  %v2377_v10 = vadd.f32 %v2075_v22, %v1693_v6  ;;  %v9102_v37 = vmul.f32 %v9057_v20, %v480_v54  ;;  %v475_v6 = vpop.permute.xlu0 %474  ;;  %4076 = vperm.xlu1 %7136, %v288_v61  }
 0x191   : > { %v9104_v44 = vadd.f32 %v1393_v11, %v893_v19  ;;  %v9106_v52 = vadd.f32 %v3004_v8, %v2621_v55  ;;  %v9109_v53 = vmul.f32 %v8981_v1, %v480_v54  ;;  %v3308_v35 = vadd.f32 %v3002_v47, %v8876_v62 }
 0x192   : > { %v5836_v51 = vmax.f32 %v5724_v21, 0.0  ;;  %v1396_v58 = vrot.slane %v9086_v39, 1  ;;  %v2512_v16 = vmul.f32 %v9044_v24, %v480_v54  ;;  %v9116_v19 = vadd.f32 %v8455_v30, %v5606_v33 }
 0x193   : > { %v3007_v11 = vrot.slane %v9098_v48, 1  ;;  %v3685_v62 = vsel %vm2006_vm1, %v3682_v17, %v3684_v42  ;;  %v9125_v55 = vmul.f32 %v8319_v41, %v480_v54  ;;  %v3683_v2 = vsel %vm2006_vm1, %v3680_v15, %v3682_v17 }
 0x194   : > { %v6852_v47 = vpack.c.bf16 %v5836_v51, %v5835_v38  ;;  %v9127_v8 = vadd.f32 %v2512_v16, %v2377_v10  ;;  %v3991_v33 = vadd.f32 %v3685_v62, %v3308_v35  ;;  %v9136_v22 = vmul.f32 %v8325_v63, %v480_v54  ;;  %v287_v38 = vld [vmem:[%s7246_s17 + $0x3a0] sm:$0xff] }
 0x195   : > { %v3990_v21 = vadd.f32 %v3683_v2, %v8976_v13  ;;  %v1132_v3 = vmul.f32 %v8947_v49, %v475_v6  ;;  %v9144_v10 = vmul.f32 %v8955_v5, %v475_v6  ;;  %v2748_v43 = vmul.f32 %v9030_v31, %v475_v6  ;;  %2705 = vperm.xlu0 %7135, %v287_v38  }
 0x196   : > { %7080 = vst [vmem:[%s7696_s15 + $0x60] sm:$0xff] %v6852_v47   ;;  %v4125_v36 = vmul.f32 %v8425_v12, %v475_v6  ;;  %v4362_v17 = vmul.f32 %v8319_v41, %v475_v6  ;;  %v4126_v15 = vmul.f32 %v8425_v12, %v480_v54  ;;  %v4617_v35 = vrot.slane %v9125_v55, 1 }
 0x197   : > { %v1394_v13 = vrot.slane %v1132_v3, 1  ;;  %v5045_v51 = vmul.f32 %v8325_v63, %v475_v6  ;;  %v5837_v16 = vmax.f32 %v9116_v19, 0.0  ;;  %v13767_v62 = vrot.slane %v8903_v60, 2  ;;  %v9168_v60 = vpop.permute.xlu1 %489 }
 0x198   : > { %v4237_v2 = vadd.f32 %v4125_v36, %v3990_v21  ;;  %v4615_v32 = vrot.slane %v4362_v17, 1  ;;  %v2511_v54 = vmul.f32 %v9044_v24, %v475_v6  ;;  %v5300_v3 = vrot.slane %v9136_v22, 2 }
 0x199   : > { %v2073_v47 = vsel %vm2006_vm1, %v13767_v62, %v2072_v9  ;;  %v1395_v61 = vsel %vm1322_vm0, %v1392_v45, %v1394_v13  ;;  %v5298_v63 = vrot.slane %v5045_v51, 2  ;;  %v2078_v19 = vrot.slane %v9144_v10, 2 }
 0x19a   : > { %v2376_v41 = vadd.f32 %v2073_v47, %v8974_v46  ;;  %v3005_v50 = vrot.slane %v2748_v43, 1  ;;  %v4616_v9 = vsel %vm1322_vm0, %v4613_v56, %v4615_v32  ;;  %v9170_v21 = vadd.f32 %v4126_v15, %v3991_v33 }
 0x19b   : > { %v895_v29 = vmul.f32 %v8981_v1, %v475_v6  ;;  %v4618_v46 = vsel %vm1322_vm0, %v4615_v32, %v4617_v35  ;;  %v4924_v45 = vadd.f32 %v4616_v9, %v4236_v25  ;;  %v9177_v38 = vmul.f32 %v9057_v20, %v475_v6 }
 0x19c   : > { %v4925_v36 = vadd.f32 %v4618_v46, %v4237_v2  ;;  %v5299_v23 = vsel %vm2006_vm1, %v5296_v7, %v5298_v63  ;;  %v1695_v56 = vadd.f32 %v1395_v61, %v8984_v57  ;;  %v1397_v33 = vsel %vm1322_vm0, %v1394_v13, %v1396_v58  ;;  %v9234_v46 = vld [vmem:[%s13632_s1 + $0x7] ss:$0 sm:$0xff] }
 0x19d   : > { %v2623_v43 = vadd.f32 %v2511_v54, %v2376_v41  ;;  %v5607_v17 = vadd.f32 %v5299_v23, %v4924_v45  ;;  %v9188_v32 = vmul.f32 %v8947_v49, %v9168_v60  ;;  %v3008_v25 = vsel %vm1322_vm0, %v3005_v50, %v3007_v11 }
 0x19e   : > { %v5301_v27 = vsel %vm2006_vm1, %v5298_v63, %v5300_v3  ;;  %v9198_v57 = vmul.f32 %v8955_v5, %v9168_v60  ;;  %v13768_v7 = vrot.slane %v8958_v40, 2  ;;  %v3006_v15 = vsel %vm1322_vm0, %v3003_v14, %v3005_v50 }
 0x19f   : > { %v5608_v13 = vadd.f32 %v5301_v27, %v4925_v36  ;;  %v5726_v51 = vadd.f32 %v8455_v30, %v5607_v17  ;;  %v9209_v47 = vadd.f32 %v1397_v33, %v895_v29  ;;  %v3688_v2 = vrot.slane %v9177_v38, 2  ;;  %v485_v36 = vpop.permute.xlu0 %484 }
 0x1a0   : > { %v2079_v6 = vsel %vm2006_vm1, %v13768_v7, %v2078_v19  ;;  %v9214_v41 = vmul.f32 %v8981_v1, %v9168_v60  ;;  %v9218_v61 = vmul.f32 %v9030_v31, %v9168_v60  ;;  %v9220_v54 = vadd.f32 %v3008_v25, %v2623_v43  ;;  %v289_v25 = vld [vmem:[%s7246_s17 + $0x3b0] sm:$0xff] }
 0x1a1   : > { %v2379_v62 = vadd.f32 %v2079_v6, %v1695_v56  ;;  %v5838_v28 = vmax.f32 %v5726_v51, 0.0  ;;  %v1400_v14 = vrot.slane %v9188_v32, 1  ;;  %v2514_v63 = vmul.f32 %v9044_v24, %v9168_v60  ;;  %4081 = vperm.xlu0 %7135, %v289_v25  }
 0x1a2   : > { %v2084_v50 = vrot.slane %v9198_v57, 2  ;;  %v3310_v9 = vadd.f32 %v3006_v15, %v9002_v59  ;;  %v9229_v29 = vmul.f32 %v9057_v20, %v9168_v60  ;;  %v9238_v45 = vmul.f32 %v9234_v46, %v9168_v60 }
 0x1a3   : > { %v9241_v23 = vadd.f32 %v8455_v30, %v5608_v13  ;;  %v6857_v56 = vpack.c.bf16 %v5838_v28, %v5837_v16  ;;  %v9243_v59 = vadd.f32 %v2514_v63, %v2379_v62  ;;  %v3687_v33 = vsel %vm2006_vm1, %v3684_v42, %v3686_v4  ;;  %v9259_v30 = vld [vmem:[%s13632_s1 + $0x8] ss:$0 sm:$0xff]  ;;  %v290_v42 = vld [vmem:[%s7246_s17 + $0x3b8] sm:$0xff] }
 0x1a4   : > { %v3011_v43 = vrot.slane %v9218_v61, 1  ;;  %v3689_v17 = vsel %vm2006_vm1, %v3686_v4, %v3688_v2  ;;  %v9263_v16 = vmul.f32 %v9259_v30, %v9168_v60  ;;  %v3992_v34 = vadd.f32 %v3687_v33, %v9106_v52  ;;  %4086 = vperm.xlu1 %7136, %v290_v42  }
 0x1a5   : > { %7081 = vst [vmem:[%s7696_s15 + $0x68] sm:$0xff] %v6857_v56   ;;  %v4621_v27 = vrot.slane %v9238_v45, 1  ;;  %v13769_v18 = vmov %v13768_v7  ;;  %v13770_v4 = vrot.slane %v9035_v26, 2  ;;  %v1134_v6 = vmul.f32 %v8947_v49, %v485_v36 }
 0x1a6   : > { %v2750_v15 = vmul.f32 %v9030_v31, %v485_v36  ;;  %v9278_v13 = vmul.f32 %v8955_v5, %v485_v36  ;;  %v4127_v52 = vmul.f32 %v8425_v12, %v485_v36  ;;  %v4364_v51 = vmul.f32 %v9234_v46, %v485_v36  ;;  %v9289_v12 = vld [vmem:[%s13632_s1 + $0x6] ss:$0 sm:$0xff] }
 0x1a7   : > { %v2077_v7 = vsel %vm2006_vm1, %v13770_v4, %v13769_v18  ;;  %v5047_v62 = vmul.f32 %v9259_v30, %v485_v36  ;;  %v1398_v28 = vrot.slane %v1134_v6, 1  ;;  %v2513_v63 = vmul.f32 %v9044_v24, %v485_v36 }
 0x1a8   : > { %v2378_v26 = vadd.f32 %v2077_v7, %v9104_v44  ;;  %v3009_v56 = vrot.slane %v2750_v15, 1  ;;  %v4239_v33 = vadd.f32 %v4127_v52, %v3992_v34  ;;  %v4619_v42 = vrot.slane %v4364_v51, 1 }
 0x1a9   : > { %v5302_v18 = vrot.slane %v5047_v62, 2  ;;  %v3993_v4 = vadd.f32 %v3689_v17, %v3310_v9  ;;  %v4128_v25 = vmul.f32 %v9289_v12, %v9168_v60  ;;  %v5304_v40 = vrot.slane %v9263_v16, 2  ;;  %v500_v60 = vpop.permute.xlu1 %499 }
 0x1aa   : > { %v1399_v44 = vsel %vm1322_vm0, %v1396_v58, %v1398_v28  ;;  %v13657_v7 = vrot.slane %v9278_v13, 2  ;;  %v9299_v34 = vmul.f32 %v9057_v20, %v485_v36  ;;  %v4620_v9 = vsel %vm1322_vm0, %v4617_v35, %v4619_v42 }
 0x1ab   : > { %v4622_v17 = vsel %vm1322_vm0, %v4619_v42, %v4621_v27  ;;  %v1401_v39 = vsel %vm1322_vm0, %v1398_v28, %v1400_v14  ;;  %v2625_v6 = vadd.f32 %v2513_v63, %v2378_v26  ;;  %v4926_v58 = vadd.f32 %v4620_v9, %v9170_v21 }
 0x1ac   : > { %v4927_v15 = vadd.f32 %v4622_v17, %v4239_v33  ;;  %v3010_v52 = vsel %vm1322_vm0, %v3007_v11, %v3009_v56  ;;  %v3012_v55 = vsel %vm1322_vm0, %v3009_v56, %v3011_v43  ;;  %v5303_v35 = vsel %vm2006_vm1, %v5300_v3, %v5302_v18  ;;  %v9341_v33 = vld [vmem:[%s13633_s2] ss:$0 sm:$0xff] }
 0x1ad   : > { %v1697_v51 = vadd.f32 %v1399_v44, %v9109_v53  ;;  %v5305_v62 = vsel %vm2006_vm1, %v5302_v18, %v5304_v40  ;;  %v5609_v21 = vadd.f32 %v5303_v35, %v4926_v58  ;;  %v9325_v26 = vmul.f32 %v8947_v49, %v500_v60 }
 0x1ae   : > { %v9328_v48 = vmul.f32 %v8955_v5, %v500_v60  ;;  %v5839_v11 = vmax.f32 %v9241_v23, 0.0  ;;  %v897_v28 = vmul.f32 %v8981_v1, %v485_v36  ;;  %v5610_v22 = vadd.f32 %v5305_v62, %v4927_v15  ;;  %v495_v15 = vpop.permute.xlu0 %494 }
 0x1af   : > { %v13771_v53 = vrot.slane %v9089_v0, 2  ;;  %v4240_v63 = vadd.f32 %v4128_v25, %v3993_v4  ;;  %v13658_v56 = vrot.slane %v9299_v34, 2  ;;  %v5728_v42 = vadd.f32 %v9341_v33, %v5609_v21 }
 0x1b0   : > { %v9344_v18 = vadd.f32 %v1401_v39, %v897_v28  ;;  %v9346_v36 = vadd.f32 %v3012_v55, %v2625_v6  ;;  %v9349_v44 = vmul.f32 %v8981_v1, %v500_v60  ;;  %v3312_v9 = vadd.f32 %v3010_v52, %v9127_v8 }
 0x1b1   : > { %v2083_v3 = vsel %vm2006_vm1, %v13771_v53, %v13657_v7  ;;  %v5840_v4 = vmax.f32 %v5728_v42, 0.0  ;;  %v1404_v25 = vrot.slane %v9325_v26, 1  ;;  %v2516_v58 = vmul.f32 %v9044_v24, %v500_v60  ;;  %v291_v42 = vld [vmem:[%s7246_s17 + $0x3c0] sm:$0xff] }
 0x1b2   : > { %v2381_v23 = vadd.f32 %v2083_v3, %v1697_v51  ;;  %v9356_v39 = vadd.f32 %v9341_v33, %v5610_v22  ;;  %v9359_v6 = vmul.f32 %v9030_v31, %v500_v60  ;;  %v9362_v55 = vmul.f32 %v9057_v20, %v500_v60  ;;  %4323 = vperm.xlu0 %7135, %v291_v42  }
 0x1b3   : > { %v9365_v8 = vmul.f32 %v9234_v46, %v500_v60  ;;  %v6862_v52 = vpack.c.bf16 %v5840_v4, %v5839_v11  ;;  %v13772_v51 = vrot.slane %v9102_v37, 2  ;;  %v9380_v53 = vmul.f32 %v9259_v30, %v500_v60 }
 0x1b4   : > { %v9367_v35 = vadd.f32 %v2516_v58, %v2381_v23  ;;  %v1136_v3 = vmul.f32 %v8947_v49, %v495_v15  ;;  %v13774_v4 = vrot.slane %v9089_v0, 2  ;;  %v9393_v38 = vmul.f32 %v8955_v5, %v495_v15 }
 0x1b5   : > { %v3693_v62 = vsel %vm2006_vm1, %v13772_v51, %v13658_v56  ;;  %v13773_v21 = vmov %v13772_v51  ;;  %7082 = vst [vmem:[%s7696_s15 + $0x70] sm:$0xff] %v6862_v52   ;;  %v4625_v23 = vrot.slane %v9365_v8, 1  ;;  %v4366_v58 = vmul.f32 %v9234_v46, %v495_v15 }
 0x1b6   : > { %v3691_v28 = vsel %vm2006_vm1, %v3688_v2, %v13773_v21  ;;  %v3995_v22 = vadd.f32 %v3693_v62, %v3312_v9  ;;  %v2081_v37 = vsel %vm2006_vm1, %v2078_v19, %v13774_v4  ;;  %v2752_v2 = vmul.f32 %v9030_v31, %v495_v15 }
 0x1b7   : > { %v3994_v11 = vadd.f32 %v3691_v28, %v9220_v54  ;;  %v1402_v9 = vrot.slane %v1136_v3, 1  ;;  %v4129_v54 = vmul.f32 %v9289_v12, %v495_v15  ;;  %v5049_v52 = vmul.f32 %v9259_v30, %v495_v15 }
 0x1b8   : > { %v3015_v51 = vrot.slane %v9359_v6, 1  ;;  %v4130_v0 = vmul.f32 %v9289_v12, %v500_v60  ;;  %v2380_v10 = vadd.f32 %v2081_v37, %v9209_v47  ;;  %v2515_v19 = vmul.f32 %v9044_v24, %v495_v15 }
 0x1b9   : > { %v5841_v62 = vmax.f32 %v9356_v39, 0.0  ;;  %v3013_v21 = vrot.slane %v2752_v2, 1  ;;  %v4241_v28 = vadd.f32 %v4129_v54, %v3994_v11  ;;  %v4623_v42 = vrot.slane %v4366_v58, 1  ;;  %v510_v11 = vpop.permute.xlu1 %509 }
 0x1ba   : > { %v5308_v4 = vrot.slane %v9380_v53, 2  ;;  %v1403_v17 = vsel %vm1322_vm0, %v1400_v14, %v1402_v9  ;;  %v5306_v7 = vrot.slane %v5049_v52, 2  ;;  %v9409_v56 = vadd.f32 %v4130_v0, %v3995_v22 }
 0x1bb   : > { %v13659_v47 = vrot.slane %v9393_v38, 2  ;;  %v4624_v60 = vsel %vm1322_vm0, %v4621_v27, %v4623_v42  ;;  %v4626_v39 = vsel %vm1322_vm0, %v4623_v42, %v4625_v23  ;;  %v2627_v37 = vadd.f32 %v2515_v19, %v2380_v10 }
 0x1bc   : > { %v9419_v2 = vmul.f32 %v9057_v20, %v495_v15  ;;  %v4928_v32 = vadd.f32 %v4624_v60, %v4240_v63  ;;  %v4929_v14 = vadd.f32 %v4626_v39, %v4241_v28  ;;  %v1405_v22 = vsel %vm1322_vm0, %v1402_v9, %v1404_v25 }
 0x1bd   : > { %v3016_v45 = vsel %vm1322_vm0, %v3013_v21, %v3015_v51  ;;  %v5307_v27 = vsel %vm2006_vm1, %v5304_v40, %v5306_v7  ;;  %v1699_v54 = vadd.f32 %v1403_v17, %v9214_v41  ;;  %v5309_v58 = vsel %vm2006_vm1, %v5306_v7, %v5308_v4 }
 0x1be   : > { %v5611_v63 = vadd.f32 %v5307_v27, %v4928_v32  ;;  %v9435_v52 = vmul.f32 %v8947_v49, %v510_v11  ;;  %v9438_v9 = vmul.f32 %v8955_v5, %v510_v11  ;;  %v899_v0 = vmul.f32 %v8981_v1, %v495_v15  ;;  %v505_v32 = vpop.permute.xlu0 %504 }
 0x1bf   : > { %v5612_v10 = vadd.f32 %v5309_v58, %v4929_v14  ;;  %v2087_v41 = vsel %vm2006_vm1, %v2084_v50, %v13659_v47  ;;  %v9447_v16 = vmul.f32 %v9030_v31, %v510_v11  ;;  %v3014_v40 = vsel %vm1322_vm0, %v3011_v43, %v3013_v21 }
 0x1c0   : > { %v13660_v7 = vrot.slane %v9419_v2, 2  ;;  %v5730_v17 = vadd.f32 %v9341_v33, %v5611_v63  ;;  %v2383_v19 = vadd.f32 %v2087_v41, %v1699_v54  ;;  %v9454_v15 = vadd.f32 %v1405_v22, %v899_v0 }
 0x1c1   : > { %v9456_v28 = vadd.f32 %v3016_v45, %v2627_v37  ;;  %v9459_v42 = vmul.f32 %v8981_v1, %v510_v11  ;;  %v9462_v60 = vmul.f32 %v9234_v46, %v510_v11  ;;  %v1408_v61 = vrot.slane %v9435_v52, 1 }
 0x1c2   : > { %v5842_v39 = vmax.f32 %v5730_v17, 0.0  ;;  %v2518_v21 = vmul.f32 %v9044_v24, %v510_v11  ;;  %v9468_v14 = vadd.f32 %v9341_v33, %v5612_v10  ;;  %v3019_v37 = vrot.slane %v9447_v16, 1 }
 0x1c3   : > { %v3314_v22 = vadd.f32 %v3014_v40, %v9243_v59  ;;  %v13775_v45 = vrot.slane %v9229_v29, 2  ;;  %v13776_v27 = vrot.slane %v9299_v34, 2  ;;  %v9480_v0 = vmul.f32 %v9057_v20, %v510_v11 }
 0x1c4   : > { %v6867_v58 = vpack.c.bf16 %v5842_v39, %v5841_v62  ;;  %v9477_v63 = vadd.f32 %v2518_v21, %v2383_v19  ;;  %v4132_v40 = vmul.f32 %v9289_v12, %v510_v11  ;;  %v4629_v34 = vrot.slane %v9462_v60, 1 }
 0x1c5   : > { %v3695_v54 = vsel %vm2006_vm1, %v13776_v27, %v13775_v45  ;;  %v13777_v10 = vmov %v13775_v45  ;;  %v1138_v17 = vmul.f32 %v8947_v49, %v505_v32  ;;  %v9493_v62 = vmul.f32 %v9259_v30, %v510_v11 }
 0x1c6   : > { %v3996_v41 = vadd.f32 %v3695_v54, %v9346_v36  ;;  %v3697_v59 = vsel %vm2006_vm1, %v13777_v10, %v13660_v7  ;;  %7083 = vst [vmem:[%s7696_s15 + $0x78] sm:$0xff] %v6867_v58   ;;  %v13778_v36 = vrot.slane %v9278_v13, 2  ;;  %v2754_v29 = vmul.f32 %v9030_v31, %v505_v32 }
 0x1c7   : > { %v4131_v39 = vmul.f32 %v9289_v12, %v505_v32  ;;  %v1406_v21 = vrot.slane %v1138_v17, 1  ;;  %v9503_v45 = vmul.f32 %v8955_v5, %v505_v32  ;;  %v4368_v27 = vmul.f32 %v9234_v46, %v505_v32 }
 0x1c8   : > { %v2085_v19 = vsel %vm2006_vm1, %v13778_v36, %v2084_v50  ;;  %v5051_v54 = vmul.f32 %v9259_v30, %v505_v32  ;;  %v5843_v11 = vmax.f32 %v9468_v14, 0.0  ;;  %v2517_v13 = vmul.f32 %v9044_v24, %v505_v32 }
 0x1c9   : > { %v2382_v57 = vadd.f32 %v2085_v19, %v9344_v18  ;;  %v4243_v58 = vadd.f32 %v4131_v39, %v3996_v41  ;;  %v3702_v50 = vrot.slane %v9480_v0, 2  ;;  %v3017_v10 = vrot.slane %v2754_v29, 1 }
 0x1ca   : > { %v4627_v36 = vrot.slane %v4368_v27, 1  ;;  %v5310_v43 = vrot.slane %v5051_v54, 2  ;;  %v3997_v17 = vadd.f32 %v3697_v59, %v3314_v22  ;;  %v5312_v47 = vrot.slane %v9493_v62, 2  ;;  %v520_v59 = vpop.permute.xlu1 %519 }
 0x1cb   : > { %v901_v7 = vmul.f32 %v8981_v1, %v505_v32  ;;  %v1407_v3 = vsel %vm1322_vm0, %v1404_v25, %v1406_v21  ;;  %v13661_v14 = vrot.slane %v9503_v45, 2  ;;  %v9518_v18 = vmul.f32 %v9057_v20, %v505_v32 }
 0x1cc   : > { %v4628_v41 = vsel %vm1322_vm0, %v4625_v23, %v4627_v36  ;;  %v4630_v22 = vsel %vm1322_vm0, %v4627_v36, %v4629_v34  ;;  %v1409_v26 = vsel %vm1322_vm0, %v1406_v21, %v1408_v61  ;;  %v2629_v19 = vadd.f32 %v2517_v13, %v2382_v57 }
 0x1cd   : > { %v4930_v25 = vadd.f32 %v4628_v41, %v9409_v56  ;;  %v4931_v29 = vadd.f32 %v4630_v22, %v4243_v58  ;;  %v3018_v32 = vsel %vm1322_vm0, %v3015_v51, %v3017_v10  ;;  %v3020_v8 = vsel %vm1322_vm0, %v3017_v10, %v3019_v37 }
 0x1ce   : > { %v5311_v23 = vsel %vm2006_vm1, %v5308_v4, %v5310_v43  ;;  %v1701_v39 = vadd.f32 %v1407_v3, %v9349_v44  ;;  %v5313_v21 = vsel %vm2006_vm1, %v5310_v43, %v5312_v47  ;;  %v9544_v27 = vmul.f32 %v8947_v49, %v520_v59 }
 0x1cf   : > { %v5613_v56 = vadd.f32 %v5311_v23, %v4930_v25  ;;  %v9547_v6 = vmul.f32 %v8955_v5, %v520_v59  ;;  %v13662_v51 = vrot.slane %v9518_v18, 2  ;;  %v5614_v54 = vadd.f32 %v5313_v21, %v4931_v29  ;;  %v515_v29 = vpop.permute.xlu0 %514 }
 0x1d0   : > { %v13779_v53 = vrot.slane %v9328_v48, 2  ;;  %v9556_v3 = vmul.f32 %v9030_v31, %v520_v59  ;;  %v4244_v4 = vadd.f32 %v4132_v40, %v3997_v17  ;;  %v9560_v13 = vmul.f32 %v9057_v20, %v520_v59 }
 0x1d1   : > { %v5732_v43 = vadd.f32 %v9341_v33, %v5613_v56  ;;  %v9562_v58 = vadd.f32 %v1409_v26, %v901_v7  ;;  %v9564_v10 = vadd.f32 %v3020_v8, %v2629_v19  ;;  %v9567_v36 = vmul.f32 %v8981_v1, %v520_v59 }
 0x1d2   : > { %v2091_v44 = vsel %vm2006_vm1, %v13779_v53, %v13661_v14  ;;  %v3316_v41 = vadd.f32 %v3018_v32, %v9367_v35  ;;  %v1412_v25 = vrot.slane %v9544_v27, 1  ;;  %v2520_v17 = vmul.f32 %v9044_v24, %v520_v59 }
 0x1d3   : > { %v2385_v57 = vadd.f32 %v2091_v44, %v1701_v39  ;;  %v5844_v22 = vmax.f32 %v5732_v43, 0.0  ;;  %v9574_v23 = vadd.f32 %v9341_v33, %v5614_v54  ;;  %v3023_v7 = vrot.slane %v9556_v3, 1 }
 0x1d4   : > { %v13780_v26 = vrot.slane %v9362_v55, 2  ;;  %v9583_v19 = vmul.f32 %v9234_v46, %v520_v59  ;;  %v13782_v56 = vrot.slane %v9419_v2, 2  ;;  %v9594_v44 = vmul.f32 %v9259_v30, %v520_v59 }
 0x1d5   : > { %v6872_v32 = vpack.c.bf16 %v5844_v22, %v5843_v11  ;;  %v9585_v8 = vadd.f32 %v2520_v17, %v2385_v57  ;;  %v9600_v11 = vmul.f32 %v8955_v5, %v515_v29  ;;  %v2756_v57 = vmul.f32 %v9030_v31, %v515_v29 }
 0x1d6   : > { %v3701_v35 = vsel %vm2006_vm1, %v13780_v26, %v13662_v51  ;;  %v13781_v21 = vmov %v13780_v26  ;;  %v1140_v26 = vmul.f32 %v8947_v49, %v515_v29  ;;  %v4133_v55 = vmul.f32 %v9289_v12, %v515_v29 }
 0x1d7   : > { %v3699_v54 = vsel %vm2006_vm1, %v13782_v56, %v13781_v21  ;;  %v3999_v53 = vadd.f32 %v3701_v35, %v3316_v41  ;;  %7084 = vst [vmem:[%s7696_s15 + $0x80] sm:$0xff] %v6872_v32   ;;  %v4370_v2 = vmul.f32 %v9234_v46, %v515_v29  ;;  %v4134_v22 = vmul.f32 %v9289_v12, %v520_v59 }
 0x1d8   : > { %v3998_v43 = vadd.f32 %v3699_v54, %v9456_v28  ;;  %v4633_v41 = vrot.slane %v9583_v19, 1  ;;  %v1410_v17 = vrot.slane %v1140_v26, 1  ;;  %v5053_v35 = vmul.f32 %v9259_v30, %v515_v29 }
 0x1d9   : > { %v5845_v28 = vmax.f32 %v9574_v23, 0.0  ;;  %v13783_v32 = vrot.slane %v9328_v48, 2  ;;  %v13784_v21 = vrot.slane %v9393_v38, 2  ;;  %v4631_v39 = vrot.slane %v4370_v2, 1 }
 0x1da   : > { %v4245_v54 = vadd.f32 %v4133_v55, %v3998_v43  ;;  %v1411_v59 = vsel %vm1322_vm0, %v1408_v61, %v1410_v17  ;;  %v2519_v26 = vmul.f32 %v9044_v24, %v515_v29  ;;  %v5314_v14 = vrot.slane %v5053_v35, 2  ;;  %v530_v43 = vpop.permute.xlu1 %529 }
 0x1db   : > { %v2089_v56 = vsel %vm2006_vm1, %v13784_v21, %v13783_v32  ;;  %v5316_v51 = vrot.slane %v9594_v44, 2  ;;  %v13663_v23 = vrot.slane %v9600_v11, 2  ;;  %v3021_v48 = vrot.slane %v2756_v57, 1 }
 0x1dc   : > { %v2384_v40 = vadd.f32 %v2089_v56, %v9454_v15  ;;  %v4632_v38 = vsel %vm1322_vm0, %v4629_v34, %v4631_v39  ;;  %v9624_v55 = vadd.f32 %v4134_v22, %v3999_v53  ;;  %v903_v15 = vmul.f32 %v8981_v1, %v515_v29 }
 0x1dd   : > { %v4634_v52 = vsel %vm1322_vm0, %v4631_v39, %v4633_v41  ;;  %v4932_v61 = vadd.f32 %v4632_v38, %v4244_v4  ;;  %v9631_v2 = vmul.f32 %v9057_v20, %v515_v29  ;;  %v5315_v60 = vsel %vm2006_vm1, %v5312_v47, %v5314_v14 }
 0x1de   : > { %v4933_v35 = vadd.f32 %v4634_v52, %v4245_v54  ;;  %v1703_v34 = vadd.f32 %v1411_v59, %v9459_v42  ;;  %v1413_v53 = vsel %vm1322_vm0, %v1410_v17, %v1412_v25  ;;  %v2631_v57 = vadd.f32 %v2519_v26, %v2384_v40 }
 0x1df   : > { %v5615_v22 = vadd.f32 %v5315_v60, %v4932_v61  ;;  %v9641_v32 = vmul.f32 %v8947_v49, %v530_v43  ;;  %v3024_v4 = vsel %vm1322_vm0, %v3021_v48, %v3023_v7  ;;  %v5317_v62 = vsel %vm2006_vm1, %v5314_v14, %v5316_v51 }
 0x1e0   : > { %v9650_v47 = vmul.f32 %v8955_v5, %v530_v43  ;;  %v13785_v42 = vrot.slane %v9438_v9, 2  ;;  %v3022_v29 = vsel %vm1322_vm0, %v3019_v37, %v3021_v48  ;;  %v5616_v39 = vadd.f32 %v5317_v62, %v4933_v35  ;;  %v525_v35 = vpop.permute.xlu0 %524 }
 0x1e1   : > { %v5734_v17 = vadd.f32 %v9341_v33, %v5615_v22  ;;  %v9661_v56 = vadd.f32 %v1413_v53, %v903_v15  ;;  %v13664_v14 = vrot.slane %v9631_v2, 2  ;;  %v9665_v54 = vmul.f32 %v8981_v1, %v530_v43 }
 0x1e2   : > { %v2095_v40 = vsel %vm2006_vm1, %v13785_v42, %v13663_v23  ;;  %v9668_v59 = vmul.f32 %v9030_v31, %v530_v43  ;;  %v9670_v26 = vadd.f32 %v3024_v4, %v2631_v57  ;;  %v1416_v16 = vrot.slane %v9641_v32, 1 }
 0x1e3   : > { %v2387_v21 = vadd.f32 %v2095_v40, %v1703_v34  ;;  %v5846_v38 = vmax.f32 %v5734_v17, 0.0  ;;  %v2522_v37 = vmul.f32 %v9044_v24, %v530_v43  ;;  %v3318_v15 = vadd.f32 %v3022_v29, %v9477_v63 }
 0x1e4   : > { %v9677_v52 = vmul.f32 %v9057_v20, %v530_v43  ;;  %v9680_v61 = vmul.f32 %v9234_v46, %v530_v43  ;;  %v9683_v60 = vadd.f32 %v9341_v33, %v5616_v39  ;;  %v13786_v57 = vrot.slane %v9518_v18, 2 }
 0x1e5   : > { %v6877_v34 = vpack.c.bf16 %v5846_v38, %v5845_v28  ;;  %v9685_v53 = vadd.f32 %v2522_v37, %v2387_v21  ;;  %v3027_v63 = vrot.slane %v9668_v59, 1  ;;  %v3705_v4 = vsel %vm2006_vm1, %v3702_v50, %v13664_v14 }
 0x1e6   : > { %v3703_v22 = vsel %vm2006_vm1, %v13786_v57, %v3702_v50  ;;  %v9699_v62 = vmul.f32 %v9259_v30, %v530_v43  ;;  %v4637_v42 = vrot.slane %v9680_v61, 1  ;;  %v13787_v18 = vrot.slane %v9438_v9, 2 }
 0x1e7   : > { %v4000_v28 = vadd.f32 %v3703_v22, %v9564_v10  ;;  %7085 = vst [vmem:[%s7696_s15 + $0x88] sm:$0xff] %v6877_v34   ;;  %v13788_v40 = vrot.slane %v9503_v45, 2  ;;  %v1142_v39 = vmul.f32 %v8947_v49, %v525_v35  ;;  %v2758_v0 = vmul.f32 %v9030_v31, %v525_v35 }
 0x1e8   : > { %v9712_v50 = vmul.f32 %v8955_v5, %v525_v35  ;;  %v4135_v17 = vmul.f32 %v9289_v12, %v525_v35  ;;  %v4372_v10 = vmul.f32 %v9234_v46, %v525_v35  ;;  %v5055_v21 = vmul.f32 %v9259_v30, %v525_v35 }
 0x1e9   : > { %v2093_v29 = vsel %vm2006_vm1, %v13788_v40, %v13787_v18  ;;  %v1414_v45 = vrot.slane %v1142_v39, 1  ;;  %v2521_v37 = vmul.f32 %v9044_v24, %v525_v35  ;;  %v3025_v34 = vrot.slane %v2758_v0, 1 }
 0x1ea   : > { %v2386_v9 = vadd.f32 %v2093_v29, %v9562_v58  ;;  %v4247_v57 = vadd.f32 %v4135_v17, %v4000_v28  ;;  %v4635_v22 = vrot.slane %v4372_v10, 1  ;;  %v5318_v18 = vrot.slane %v5055_v21, 2 }
 0x1eb   : > { %v4001_v40 = vadd.f32 %v3705_v4, %v3318_v15  ;;  %v4136_v48 = vmul.f32 %v9289_v12, %v530_v43  ;;  %v5320_v23 = vrot.slane %v9699_v62, 2  ;;  %v1415_v14 = vsel %vm1322_vm0, %v1412_v25, %v1414_v45  ;;  %v540_v43 = vpop.permute.xlu1 %539  ;;  %v9867_v62 = vld [vmem:[%s13632_s1 + $0x2] ss:$0 sm:$0xff] }
 0x1ec   : > { %v2098_v38 = vrot.slane %v9712_v50, 2  ;;  %v9727_v58 = vmul.f32 %v9057_v20, %v525_v35  ;;  %v4636_v28 = vsel %vm1322_vm0, %v4633_v41, %v4635_v22  ;;  %v4638_v15 = vsel %vm1322_vm0, %v4635_v22, %v4637_v42 }
 0x1ed   : > { %v1417_v27 = vsel %vm1322_vm0, %v1414_v45, %v1416_v16  ;;  %v2633_v4 = vadd.f32 %v2521_v37, %v2386_v9  ;;  %v4934_v25 = vadd.f32 %v4636_v28, %v9624_v55  ;;  %v4935_v29 = vadd.f32 %v4638_v15, %v4247_v57  ;;  %v535_v28 = vpop.permute.xlu0 %534 }
 0x1ee   : > { %v3026_v39 = vsel %vm1322_vm0, %v3023_v7, %v3025_v34  ;;  %v3028_v19 = vsel %vm1322_vm0, %v3025_v34, %v3027_v63  ;;  %v5319_v41 = vsel %vm2006_vm1, %v5316_v51, %v5318_v18  ;;  %v1705_v0 = vadd.f32 %v1415_v14, %v9567_v36 }
 0x1ef   : > { %v5321_v17 = vsel %vm2006_vm1, %v5318_v18, %v5320_v23  ;;  %v5617_v55 = vadd.f32 %v5319_v41, %v4934_v25  ;;  %v9753_v10 = vmul.f32 %v8947_v49, %v540_v43  ;;  %v9756_v3 = vmul.f32 %v8955_v5, %v540_v43 }
 0x1f0   : > { %v5847_v7 = vmax.f32 %v9683_v60, 0.0  ;;  %v905_v21 = vmul.f32 %v8981_v1, %v525_v35  ;;  %v5618_v44 = vadd.f32 %v5321_v17, %v4935_v29  ;;  %v13789_v51 = vrot.slane %v9547_v6, 2 }
 0x1f1   : > { %v4248_v14 = vadd.f32 %v4136_v48, %v4001_v40  ;;  %v3708_v9 = vrot.slane %v9727_v58, 2  ;;  %v5736_v45 = vadd.f32 %v9341_v33, %v5617_v55  ;;  %v9769_v57 = vadd.f32 %v3028_v19, %v2633_v4 }
 0x1f2   : > { %v2099_v36 = vsel %vm2006_vm1, %v13789_v51, %v2098_v38  ;;  %v9767_v34 = vadd.f32 %v1417_v27, %v905_v21  ;;  %v9772_v60 = vmul.f32 %v8981_v1, %v540_v43  ;;  %v3320_v35 = vadd.f32 %v3026_v39, %v9585_v8 }
 0x1f3   : > { %v2389_v37 = vadd.f32 %v2099_v36, %v1705_v0  ;;  %v5848_v22 = vmax.f32 %v5736_v45, 0.0  ;;  %v1420_v18 = vrot.slane %v9753_v10, 1  ;;  %v2104_v48 = vrot.slane %v9756_v3, 2 }
 0x1f4   : > { %v2524_v40 = vmul.f32 %v9044_v24, %v540_v43  ;;  %v9779_v15 = vadd.f32 %v9341_v33, %v5618_v44  ;;  %v9782_v27 = vmul.f32 %v9030_v31, %v540_v43  ;;  %v9785_v1 = vmul.f32 %v9057_v20, %v540_v43 }
 0x1f5   : > { %v9788_v8 = vmul.f32 %v9234_v46, %v540_v43  ;;  %v6882_v4 = vpack.c.bf16 %v5848_v22, %v5847_v7  ;;  %v13790_v29 = vrot.slane %v9560_v13, 2  ;;  %v13792_v41 = vrot.slane %v9631_v2, 2 }
 0x1f6   : > { %v9790_v25 = vadd.f32 %v2524_v40, %v2389_v37  ;;  %v9803_v55 = vmul.f32 %v9259_v30, %v540_v43  ;;  %v1144_v21 = vmul.f32 %v8947_v49, %v535_v28  ;;  %v13793_v36 = vrot.slane %v9600_v11, 2 }
 0x1f7   : > { %v3709_v39 = vsel %vm2006_vm1, %v13790_v29, %v3708_v9  ;;  %v13791_v19 = vmov %v13790_v29  ;;  %7086 = vst [vmem:[%s7696_s15 + $0x90] sm:$0xff] %v6882_v4   ;;  %v4641_v44 = vrot.slane %v9788_v8, 1  ;;  %v9815_v2 = vmul.f32 %v8955_v5, %v535_v28 }
 0x1f8   : > { %v3707_v0 = vsel %vm2006_vm1, %v13792_v41, %v13791_v19  ;;  %v4003_v17 = vadd.f32 %v3709_v39, %v3320_v35  ;;  %v2097_v13 = vsel %vm2006_vm1, %v13793_v36, %v13789_v51  ;;  %v2760_v45 = vmul.f32 %v9030_v31, %v535_v28 }
 0x1f9   : > { %v4002_v7 = vadd.f32 %v3707_v0, %v9670_v26  ;;  %v1418_v37 = vrot.slane %v1144_v21, 1  ;;  %v4137_v35 = vmul.f32 %v9289_v12, %v535_v28  ;;  %v4374_v26 = vmul.f32 %v9234_v46, %v535_v28 }
 0x1fa   : > { %v5057_v49 = vmul.f32 %v9259_v30, %v535_v28  ;;  %v3031_v22 = vrot.slane %v9782_v27, 1  ;;  %v4138_v6 = vmul.f32 %v9289_v12, %v540_v43  ;;  %v2388_v11 = vadd.f32 %v2097_v13, %v9661_v56 }
 0x1fb   : > { %v2523_v40 = vmul.f32 %v9044_v24, %v535_v28  ;;  %v5849_v5 = vmax.f32 %v9779_v15, 0.0  ;;  %v3029_v4 = vrot.slane %v2760_v45, 1  ;;  %v4249_v29 = vadd.f32 %v4137_v35, %v4002_v7  ;;  %v550_v15 = vpop.permute.xlu1 %549  ;;  %v9859_v35 = vld [vmem:[%s13632_s1 + $0x1] ss:$0 sm:$0xff] }
 0x1fc   : > { %v4639_v39 = vrot.slane %v4374_v26, 1  ;;  %v5324_v41 = vrot.slane %v9803_v55, 2  ;;  %v1419_v0 = vsel %vm1322_vm0, %v1416_v16, %v1418_v37  ;;  %v5322_v21 = vrot.slane %v5057_v49, 2 }
 0x1fd   : > { %v9831_v51 = vadd.f32 %v4138_v6, %v4003_v17  ;;  %v13665_v56 = vrot.slane %v9815_v2, 2  ;;  %v2635_v7 = vadd.f32 %v2523_v40, %v2388_v11  ;;  %v9841_v36 = vmul.f32 %v9057_v20, %v535_v28 }
 0x1fe   : > { %v4640_v24 = vsel %vm1322_vm0, %v4637_v42, %v4639_v39  ;;  %v4642_v43 = vsel %vm1322_vm0, %v4639_v39, %v4641_v44  ;;  %v1421_v17 = vsel %vm1322_vm0, %v1418_v37, %v1420_v18  ;;  %v3032_v61 = vsel %vm1322_vm0, %v3029_v4, %v3031_v22 }
 0x1ff   : > { %v4936_v32 = vadd.f32 %v4640_v24, %v4248_v14  ;;  %v4937_v16 = vadd.f32 %v4642_v43, %v4249_v29  ;;  %v5323_v42 = vsel %vm2006_vm1, %v5320_v23, %v5322_v21  ;;  %v1707_v13 = vadd.f32 %v1419_v0, %v9665_v54  ;;  %v9875_v54 = vld [vmem:[%s13632_s1] ss:$0 sm:$0xff] }
 0x200   : > { %v5325_v45 = vsel %vm2006_vm1, %v5322_v21, %v5324_v41  ;;  %v9862_v37 = vmul.f32 %v9859_v35, %v550_v15  ;;  %v9870_v23 = vmul.f32 %v9867_v62, %v550_v15  ;;  %v907_v26 = vmul.f32 %v9875_v54, %v535_v28 }
 0x201   : > { %v5619_v14 = vadd.f32 %v5323_v42, %v4936_v32  ;;  %v5620_v49 = vadd.f32 %v5325_v45, %v4937_v16  ;;  %v13794_v6 = vrot.slane %v9650_v47, 2  ;;  %v9884_v40 = vmul.f32 %v9030_v31, %v550_v15  ;;  %v545_v16 = vpop.permute.xlu0 %544 }
 0x202   : > { %v3030_v29 = vsel %vm1322_vm0, %v3027_v63, %v3029_v4  ;;  %v13666_v39 = vrot.slane %v9841_v36, 2  ;;  %v9891_v28 = vadd.f32 %v1421_v17, %v907_v26  ;;  %v9893_v24 = vadd.f32 %v3032_v61, %v2635_v7  ;;  %v9906_v4 = vld [vmem:[%s13632_s1 + $0x3] ss:$0 sm:$0xff] }
 0x203   : > { %v2103_v11 = vsel %vm2006_vm1, %v13794_v6, %v13665_v56  ;;  %v5738_v0 = vadd.f32 %v9341_v33, %v5619_v14  ;;  %v9896_v43 = vmul.f32 %v9875_v54, %v550_v15  ;;  %v9899_v32 = vmul.f32 %v9234_v46, %v550_v15 }
 0x204   : > { %v2391_v21 = vadd.f32 %v2103_v11, %v1707_v13  ;;  %v1424_v59 = vrot.slane %v9862_v37, 1  ;;  %v2526_v7 = vmul.f32 %v9906_v4, %v550_v15  ;;  %v9910_v17 = vadd.f32 %v9341_v33, %v5620_v49 }
 0x205   : > { %v5850_v31 = vmax.f32 %v5738_v0, 0.0  ;;  %v3035_v61 = vrot.slane %v9884_v40, 1  ;;  %v3322_v42 = vadd.f32 %v3030_v29, %v9685_v53  ;;  %v13795_v13 = vrot.slane %v9677_v52, 2  ;;  %v9945_v52 = vld [vmem:[%s13632_s1 + $0x4] ss:$0 sm:$0xff] }
 0x206   : > { %v9919_v26 = vadd.f32 %v2526_v7, %v2391_v21  ;;  %v9922_v6 = vmul.f32 %v9057_v20, %v550_v15  ;;  %v4140_v29 = vmul.f32 %v9289_v12, %v550_v15  ;;  %v4645_v58 = vrot.slane %v9899_v32, 1 }
 0x207   : > { %v3711_v45 = vsel %vm2006_vm1, %v3708_v9, %v13795_v13  ;;  %v6887_v14 = vpack.c.bf16 %v5850_v31, %v5849_v5  ;;  %v13796_v49 = vmov %v13795_v13  ;;  %v1146_v9 = vmul.f32 %v9859_v35, %v545_v16 }
 0x208   : > { %v4004_v11 = vadd.f32 %v3711_v45, %v9769_v57  ;;  %v3713_v53 = vsel %vm2006_vm1, %v13796_v49, %v13666_v39  ;;  %v9935_v5 = vmul.f32 %v9259_v30, %v550_v15  ;;  %v13797_v20 = vrot.slane %v9650_v47, 2 }
 0x209   : > { %7087 = vst [vmem:[%s7696_s15 + $0x98] sm:$0xff] %v6887_v14   ;;  %v2762_v0 = vmul.f32 %v9945_v52, %v545_v16  ;;  %v4139_v21 = vmul.f32 %v9289_v12, %v545_v16  ;;  %v1422_v31 = vrot.slane %v1146_v9, 1  ;;  %v9950_v7 = vmul.f32 %v9867_v62, %v545_v16 }
 0x20a   : > { %v2101_v57 = vsel %vm2006_vm1, %v2098_v38, %v13797_v20  ;;  %v4376_v15 = vmul.f32 %v9234_v46, %v545_v16  ;;  %v5059_v47 = vmul.f32 %v9259_v30, %v545_v16  ;;  %v5851_v50 = vmax.f32 %v9910_v17, 0.0 }
 0x20b   : > { %v2390_v38 = vadd.f32 %v2101_v57, %v9767_v34  ;;  %v2525_v13 = vmul.f32 %v9906_v4, %v545_v16  ;;  %v4251_v45 = vadd.f32 %v4139_v21, %v4004_v11  ;;  %v3718_v14 = vrot.slane %v9922_v6, 2  ;;  %v9967_v34 = vld [vmem:[%s13632_s1 + $0x5] ss:$0 sm:$0xff] }
 0x20c   : > { %v3033_v49 = vrot.slane %v2762_v0, 1  ;;  %v4643_v20 = vrot.slane %v4376_v15, 1  ;;  %v5326_v63 = vrot.slane %v5059_v47, 2  ;;  %v4005_v9 = vadd.f32 %v3713_v53, %v3322_v42  ;;  %v560_v53 = vpop.permute.xlu1 %559 }
 0x20d   : > { %v5328_v56 = vrot.slane %v9935_v5, 2  ;;  %v909_v39 = vmul.f32 %v9875_v54, %v545_v16  ;;  %v1423_v19 = vsel %vm1322_vm0, %v1420_v18, %v1422_v31  ;;  %v2106_v17 = vrot.slane %v9950_v7, 2 }
 0x20e   : > { %v9970_v11 = vmul.f32 %v9967_v34, %v545_v16  ;;  %v4644_v42 = vsel %vm1322_vm0, %v4641_v44, %v4643_v20  ;;  %v4646_v10 = vsel %vm1322_vm0, %v4643_v20, %v4645_v58  ;;  %v1425_v18 = vsel %vm1322_vm0, %v1422_v31, %v1424_v59 }
 0x20f   : > { %v2637_v57 = vadd.f32 %v2525_v13, %v2390_v38  ;;  %v4938_v0 = vadd.f32 %v4644_v42, %v9831_v51  ;;  %v4939_v21 = vadd.f32 %v4646_v10, %v4251_v45  ;;  %v3034_v16 = vsel %vm1322_vm0, %v3031_v22, %v3033_v49 }
 0x210   : > { %v3036_v8 = vsel %vm1322_vm0, %v3033_v49, %v3035_v61  ;;  %v5327_v44 = vsel %vm2006_vm1, %v5324_v41, %v5326_v63  ;;  %v1709_v15 = vadd.f32 %v1423_v19, %v9772_v60  ;;  %v5329_v31 = vsel %vm2006_vm1, %v5326_v63, %v5328_v56 }
 0x211   : > { %v5621_v51 = vadd.f32 %v5327_v44, %v4938_v0  ;;  %v9996_v47 = vmul.f32 %v9859_v35, %v560_v53  ;;  %v9999_v27 = vmul.f32 %v9867_v62, %v560_v53  ;;  %v3716_v22 = vrot.slane %v9970_v11, 2 }
 0x212   : > { %v5622_v38 = vadd.f32 %v5329_v31, %v4939_v21  ;;  %v2107_v60 = vsel %vm2006_vm1, %v2104_v48, %v2106_v17  ;;  %v10008_v55 = vmul.f32 %v9945_v52, %v560_v53  ;;  %v4252_v19 = vadd.f32 %v4140_v29, %v4005_v9  ;;  %v555_v21 = vpop.permute.xlu0 %554 }
 0x213   : > { %v5740_v41 = vadd.f32 %v9341_v33, %v5621_v51  ;;  %v2393_v63 = vadd.f32 %v2107_v60, %v1709_v15  ;;  %v10012_v13 = vmul.f32 %v9967_v34, %v560_v53  ;;  %v10014_v45 = vadd.f32 %v1425_v18, %v909_v39 }
 0x214   : > { %v10016_v49 = vadd.f32 %v3036_v8, %v2637_v57  ;;  %v10019_v20 = vmul.f32 %v9875_v54, %v560_v53  ;;  %v3324_v42 = vadd.f32 %v3034_v16, %v9790_v25  ;;  %v1428_v0 = vrot.slane %v9996_v47, 1 }
 0x215   : > { %v5852_v10 = vmax.f32 %v5740_v41, 0.0  ;;  %v2528_v9 = vmul.f32 %v9906_v4, %v560_v53  ;;  %v10026_v44 = vadd.f32 %v9341_v33, %v5622_v38  ;;  %v3039_v39 = vrot.slane %v10008_v55, 1 }
 0x216   : > { %v13798_v18 = vrot.slane %v9785_v1, 2  ;;  %v10035_v57 = vmul.f32 %v9234_v46, %v560_v53  ;;  %v13800_v51 = vrot.slane %v9841_v36, 2  ;;  %v10046_v41 = vmul.f32 %v9259_v30, %v560_v53 }
 0x217   : > { %v6892_v16 = vpack.c.bf16 %v5852_v10, %v5851_v50  ;;  %v10037_v8 = vadd.f32 %v2528_v9, %v2393_v63  ;;  %v1148_v29 = vmul.f32 %v9859_v35, %v555_v21  ;;  %v10052_v50 = vmul.f32 %v9867_v62, %v555_v21 }
 0x218   : > { %v3717_v25 = vsel %vm2006_vm1, %v13798_v18, %v3716_v22  ;;  %v13799_v31 = vmov %v13798_v18  ;;  %v2764_v63 = vmul.f32 %v9945_v52, %v555_v21  ;;  %v4141_v1 = vmul.f32 %v9289_v12, %v555_v21 }
 0x219   : > { %v3715_v38 = vsel %vm2006_vm1, %v13800_v51, %v13799_v31  ;;  %v4007_v60 = vadd.f32 %v3717_v25, %v3324_v42  ;;  %7088 = vst [vmem:[%s7696_s15 + $0xa0] sm:$0xff] %v6892_v16   ;;  %v4378_v36 = vmul.f32 %v9234_v46, %v555_v21  ;;  %v4142_v10 = vmul.f32 %v9289_v12, %v560_v53 }
 0x21a   : > { %v4006_v18 = vadd.f32 %v3715_v38, %v9893_v24  ;;  %v4649_v42 = vrot.slane %v10035_v57, 1  ;;  %v1426_v9 = vrot.slane %v1148_v29, 1  ;;  %v5061_v25 = vmul.f32 %v9259_v30, %v555_v21 }
 0x21b   : > { %v5853_v24 = vmax.f32 %v10026_v44, 0.0  ;;  %v13801_v16 = vrot.slane %v9815_v2, 2  ;;  %v4647_v38 = vrot.slane %v4378_v36, 1  ;;  %v2527_v12 = vmul.f32 %v9906_v4, %v555_v21  ;;  %v10076_v2 = vpop.permute.xlu1 %569 }
 0x21c   : > { %v4253_v51 = vadd.f32 %v4141_v1, %v4006_v18  ;;  %v1427_v46 = vsel %vm1322_vm0, %v1424_v59, %v1426_v9  ;;  %v5330_v53 = vrot.slane %v5061_v25, 2  ;;  %v5332_v30 = vrot.slane %v10046_v41, 2 }
 0x21d   : > { %v2105_v31 = vsel %vm2006_vm1, %v13801_v16, %v2104_v48  ;;  %v13667_v29 = vrot.slane %v10052_v50, 2  ;;  %v3037_v3 = vrot.slane %v2764_v63, 1  ;;  %v4648_v48 = vsel %vm1322_vm0, %v4645_v58, %v4647_v38 }
 0x21e   : > { %v2392_v15 = vadd.f32 %v2105_v31, %v9891_v28  ;;  %v10078_v44 = vadd.f32 %v4142_v10, %v4007_v60  ;;  %v911_v37 = vmul.f32 %v9875_v54, %v555_v21  ;;  %v4650_v28 = vsel %vm1322_vm0, %v4647_v38, %v4649_v42 }
 0x21f   : > { %v4940_v59 = vadd.f32 %v4648_v48, %v4252_v19  ;;  %v10085_v18 = vmul.f32 %v9967_v34, %v555_v21  ;;  %v4941_v1 = vadd.f32 %v4650_v28, %v4253_v51  ;;  %v5331_v32 = vsel %vm2006_vm1, %v5328_v56, %v5330_v53  ;;  %v10142_v28 = vld [vmem:[%s13632_s1 + $0x7] ss:$0 sm:$0xff] }
 0x220   : > { %v1711_v58 = vadd.f32 %v1427_v46, %v9896_v43  ;;  %v1429_v60 = vsel %vm1322_vm0, %v1426_v9, %v1428_v0  ;;  %v2639_v63 = vadd.f32 %v2527_v12, %v2392_v15  ;;  %v10096_v10 = vmul.f32 %v9859_v35, %v10076_v2 }
 0x221   : > { %v5623_v36 = vadd.f32 %v5331_v32, %v4940_v59  ;;  %v3040_v19 = vsel %vm1322_vm0, %v3037_v3, %v3039_v39  ;;  %v5333_v56 = vsel %vm2006_vm1, %v5330_v53, %v5332_v30  ;;  %v10106_v43 = vmul.f32 %v9867_v62, %v10076_v2 }
 0x222   : > { %v13802_v5 = vrot.slane %v9870_v23, 2  ;;  %v3038_v15 = vsel %vm1322_vm0, %v3035_v61, %v3037_v3  ;;  %v5624_v9 = vadd.f32 %v5333_v56, %v4941_v1  ;;  %v10117_v31 = vadd.f32 %v1429_v60, %v911_v37  ;;  %v565_v1 = vpop.permute.xlu0 %564 }
 0x223   : > { %v5742_v25 = vadd.f32 %v9341_v33, %v5623_v36  ;;  %v3720_v51 = vrot.slane %v10085_v18, 2  ;;  %v10122_v38 = vmul.f32 %v9875_v54, %v10076_v2  ;;  %v10126_v46 = vmul.f32 %v9945_v52, %v10076_v2 }
 0x224   : > { %v2111_v21 = vsel %vm2006_vm1, %v13802_v5, %v13667_v29  ;;  %v10128_v12 = vadd.f32 %v3040_v19, %v2639_v63  ;;  %v1432_v61 = vrot.slane %v10096_v10, 1  ;;  %v2530_v53 = vmul.f32 %v9906_v4, %v10076_v2 }
 0x225   : > { %v2395_v16 = vadd.f32 %v2111_v21, %v1711_v58  ;;  %v5854_v40 = vmax.f32 %v5742_v25, 0.0  ;;  %v3326_v48 = vadd.f32 %v3038_v15, %v9919_v26  ;;  %v10137_v37 = vmul.f32 %v9967_v34, %v10076_v2 }
 0x226   : > { %v10146_v59 = vmul.f32 %v10142_v28, %v10076_v2  ;;  %v10149_v32 = vadd.f32 %v9341_v33, %v5624_v9  ;;  %v3719_v26 = vsel %vm2006_vm1, %v3716_v22, %v3718_v14  ;;  %v3043_v63 = vrot.slane %v10126_v46, 1  ;;  %v10167_v33 = vld [vmem:[%s13632_s1 + $0x8] ss:$0 sm:$0xff] }
 0x227   : > { %v6897_v58 = vpack.c.bf16 %v5854_v40, %v5853_v24  ;;  %v10151_v60 = vadd.f32 %v2530_v53, %v2395_v16  ;;  %v3721_v36 = vsel %vm2006_vm1, %v3718_v14, %v3720_v51  ;;  %v10171_v24 = vmul.f32 %v10167_v33, %v10076_v2 }
 0x228   : > { %v4008_v11 = vadd.f32 %v3719_v26, %v10016_v49  ;;  %v4653_v22 = vrot.slane %v10146_v59, 1  ;;  %v13803_v19 = vmov %v13802_v5  ;;  %v1150_v14 = vmul.f32 %v9859_v35, %v565_v1  ;;  %v10189_v49 = vld [vmem:[%s13632_s1 + $0x6] ss:$0 sm:$0xff] }
 0x229   : > { %7089 = vst [vmem:[%s7696_s15 + $0xa8] sm:$0xff] %v6897_v58   ;;  %v2109_v6 = vsel %vm2006_vm1, %v2106_v17, %v13803_v19  ;;  %v2766_v56 = vmul.f32 %v9945_v52, %v565_v1  ;;  %v10184_v5 = vmul.f32 %v9867_v62, %v565_v1  ;;  %v4143_v21 = vmul.f32 %v10189_v49, %v565_v1 }
 0x22a   : > { %v4380_v23 = vmul.f32 %v10142_v28, %v565_v1  ;;  %v5063_v7 = vmul.f32 %v10167_v33, %v565_v1  ;;  %v2394_v15 = vadd.f32 %v2109_v6, %v10014_v45  ;;  %v1430_v9 = vrot.slane %v1150_v14, 1 }
 0x22b   : > { %v2529_v25 = vmul.f32 %v9906_v4, %v565_v1  ;;  %v3041_v16 = vrot.slane %v2766_v56, 1  ;;  %v4255_v40 = vadd.f32 %v4143_v21, %v4008_v11  ;;  %v4009_v26 = vadd.f32 %v3721_v36, %v3326_v48 }
 0x22c   : > { %v4651_v53 = vrot.slane %v4380_v23, 1  ;;  %v5334_v58 = vrot.slane %v5063_v7, 2  ;;  %v4144_v19 = vmul.f32 %v10189_v49, %v10076_v2  ;;  %v5336_v3 = vrot.slane %v10171_v24, 2  ;;  %v580_v2 = vpop.permute.xlu1 %579 }
 0x22d   : > { %v1431_v29 = vsel %vm1322_vm0, %v1428_v0, %v1430_v9  ;;  %v13668_v17 = vrot.slane %v10184_v5, 2  ;;  %v10205_v45 = vmul.f32 %v9967_v34, %v565_v1  ;;  %v1433_v47 = vsel %vm1322_vm0, %v1430_v9, %v1432_v61  ;;  %v10247_v9 = vld [vmem:[%s13633_s2] ss:$0 sm:$0xff] }
 0x22e   : > { %v4652_v11 = vsel %vm1322_vm0, %v4649_v42, %v4651_v53  ;;  %v4654_v48 = vsel %vm1322_vm0, %v4651_v53, %v4653_v22  ;;  %v2641_v36 = vadd.f32 %v2529_v25, %v2394_v15  ;;  %v3042_v14 = vsel %vm1322_vm0, %v3039_v39, %v3041_v16 }
 0x22f   : > { %v4942_v0 = vadd.f32 %v4652_v11, %v10078_v44  ;;  %v4943_v6 = vadd.f32 %v4654_v48, %v4255_v40  ;;  %v3044_v57 = vsel %vm1322_vm0, %v3041_v16, %v3043_v63  ;;  %v5335_v42 = vsel %vm2006_vm1, %v5332_v30, %v5334_v58  ;;  %v575_v48 = vpop.permute.xlu0 %574 }
 0x230   : > { %v1713_v56 = vadd.f32 %v1431_v29, %v10019_v20  ;;  %v5337_v21 = vsel %vm2006_vm1, %v5334_v58, %v5336_v3  ;;  %v10231_v23 = vmul.f32 %v9859_v35, %v580_v2  ;;  %v10234_v55 = vmul.f32 %v9867_v62, %v580_v2 }
 0x231   : > { %v5625_v44 = vadd.f32 %v5335_v42, %v4942_v0  ;;  %v5855_v39 = vmax.f32 %v10149_v32, 0.0  ;;  %v913_v7 = vmul.f32 %v9875_v54, %v565_v1  ;;  %v5626_v41 = vadd.f32 %v5337_v21, %v4943_v6 }
 0x232   : > { %v13804_v20 = vrot.slane %v9999_v27, 2  ;;  %v4256_v29 = vadd.f32 %v4144_v19, %v4009_v26  ;;  %v3724_v15 = vrot.slane %v10205_v45, 2  ;;  %v10252_v1 = vadd.f32 %v3044_v57, %v2641_v36 }
 0x233   : > { %v5744_v25 = vadd.f32 %v10247_v9, %v5625_v44  ;;  %v10250_v16 = vadd.f32 %v1433_v47, %v913_v7  ;;  %v10255_v40 = vmul.f32 %v9875_v54, %v580_v2  ;;  %v3328_v53 = vadd.f32 %v3042_v14, %v10037_v8 }
 0x234   : > { %v2115_v30 = vsel %vm2006_vm1, %v13804_v20, %v13668_v17  ;;  %v1436_v26 = vrot.slane %v10231_v23, 1  ;;  %v2532_v11 = vmul.f32 %v9906_v4, %v580_v2  ;;  %v10262_v0 = vadd.f32 %v10247_v9, %v5626_v41 }
 0x235   : > { %v2397_v32 = vadd.f32 %v2115_v30, %v1713_v56  ;;  %v5856_v58 = vmax.f32 %v5744_v25, 0.0  ;;  %v10265_v47 = vmul.f32 %v9945_v52, %v580_v2  ;;  %v10268_v36 = vmul.f32 %v9967_v34, %v580_v2 }
 0x236   : > { %v10271_v8 = vmul.f32 %v10142_v28, %v580_v2  ;;  %v13805_v57 = vrot.slane %v10012_v13, 2  ;;  %v10286_v7 = vmul.f32 %v10167_v33, %v580_v2  ;;  %v1152_v41 = vmul.f32 %v9859_v35, %v575_v48 }
 0x237   : > { %v6902_v6 = vpack.c.bf16 %v5856_v58, %v5855_v39  ;;  %v10273_v14 = vadd.f32 %v2532_v11, %v2397_v32  ;;  %v13807_v30 = vrot.slane %v9999_v27, 2  ;;  %v13808_v25 = vrot.slane %v10052_v50, 2 }
 0x238   : > { %v3725_v42 = vsel %vm2006_vm1, %v13805_v57, %v3724_v15  ;;  %v13806_v56 = vmov %v13805_v57  ;;  %v4657_v20 = vrot.slane %v10271_v8, 1  ;;  %v10298_v18 = vmul.f32 %v9867_v62, %v575_v48 }
 0x239   : > { %v3723_v21 = vsel %vm2006_vm1, %v3720_v51, %v13806_v56  ;;  %v4011_v44 = vadd.f32 %v3725_v42, %v3328_v53  ;;  %7090 = vst [vmem:[%s7696_s15 + $0xb0] sm:$0xff] %v6902_v6   ;;  %v2113_v13 = vsel %vm2006_vm1, %v13808_v25, %v13807_v30  ;;  %v2768_v51 = vmul.f32 %v9945_v52, %v575_v48 }
 0x23a   : > { %v4010_v39 = vadd.f32 %v3723_v21, %v10128_v12  ;;  %v1434_v32 = vrot.slane %v1152_v41, 1  ;;  %v4145_v53 = vmul.f32 %v10189_v49, %v575_v48  ;;  %v4382_v12 = vmul.f32 %v10142_v28, %v575_v48 }
 0x23b   : > { %v5065_v58 = vmul.f32 %v10167_v33, %v575_v48  ;;  %v3047_v11 = vrot.slane %v10265_v47, 1  ;;  %v4146_v27 = vmul.f32 %v10189_v49, %v580_v2  ;;  %v2396_v50 = vadd.f32 %v2113_v13, %v10117_v31 }
 0x23c   : > { %v2531_v6 = vmul.f32 %v9906_v4, %v575_v48  ;;  %v5857_v57 = vmax.f32 %v10262_v0, 0.0  ;;  %v3045_v42 = vrot.slane %v2768_v51, 1  ;;  %v4257_v56 = vadd.f32 %v4145_v53, %v4010_v39  ;;  %v590_v39 = vpop.permute.xlu1 %589 }
 0x23d   : > { %v4655_v21 = vrot.slane %v4382_v12, 1  ;;  %v5340_v30 = vrot.slane %v10286_v7, 2  ;;  %v1435_v25 = vsel %vm1322_vm0, %v1432_v61, %v1434_v32  ;;  %v5338_v19 = vrot.slane %v5065_v58, 2 }
 0x23e   : > { %v10314_v17 = vadd.f32 %v4146_v27, %v4011_v44  ;;  %v13669_v31 = vrot.slane %v10298_v18, 2  ;;  %v2643_v13 = vadd.f32 %v2531_v6, %v2396_v50  ;;  %v10324_v51 = vmul.f32 %v9967_v34, %v575_v48 }
 0x23f   : > { %v4656_v2 = vsel %vm1322_vm0, %v4653_v22, %v4655_v21  ;;  %v4658_v0 = vsel %vm1322_vm0, %v4655_v21, %v4657_v20  ;;  %v1437_v44 = vsel %vm1322_vm0, %v1434_v32, %v1436_v26  ;;  %v3048_v59 = vsel %vm1322_vm0, %v3045_v42, %v3047_v11 }
 0x240   : > { %v4944_v10 = vadd.f32 %v4656_v2, %v4256_v29  ;;  %v4945_v61 = vadd.f32 %v4658_v0, %v4257_v56  ;;  %v5339_v22 = vsel %vm2006_vm1, %v5336_v3, %v5338_v19  ;;  %v1715_v53 = vadd.f32 %v1435_v25, %v10122_v38 }
 0x241   : > { %v5341_v12 = vsel %vm2006_vm1, %v5338_v19, %v5340_v30  ;;  %v10340_v58 = vmul.f32 %v9859_v35, %v590_v39  ;;  %v10343_v32 = vmul.f32 %v9867_v62, %v590_v39  ;;  %v915_v27 = vmul.f32 %v9875_v54, %v575_v48 }
 0x242   : > { %v5627_v29 = vadd.f32 %v5339_v22, %v4944_v10  ;;  %v5628_v50 = vadd.f32 %v5341_v12, %v4945_v61  ;;  %v13809_v3 = vrot.slane %v10106_v43, 2  ;;  %v10352_v24 = vmul.f32 %v9945_v52, %v590_v39  ;;  %v585_v61 = vpop.permute.xlu0 %584 }
 0x243   : > { %v3046_v19 = vsel %vm1322_vm0, %v3043_v63, %v3045_v42  ;;  %v13670_v6 = vrot.slane %v10324_v51, 2  ;;  %v10359_v48 = vadd.f32 %v1437_v44, %v915_v27  ;;  %v10361_v25 = vadd.f32 %v3048_v59, %v2643_v13 }
 0x244   : > { %v2119_v38 = vsel %vm2006_vm1, %v13809_v3, %v13669_v31  ;;  %v5746_v56 = vadd.f32 %v10247_v9, %v5627_v29  ;;  %v10364_v2 = vmul.f32 %v9875_v54, %v590_v39  ;;  %v10367_v0 = vmul.f32 %v10142_v28, %v590_v39 }
 0x245   : > { %v2399_v21 = vadd.f32 %v2119_v38, %v1715_v53  ;;  %v1440_v46 = vrot.slane %v10340_v58, 1  ;;  %v2534_v42 = vmul.f32 %v9906_v4, %v590_v39  ;;  %v10373_v44 = vadd.f32 %v10247_v9, %v5628_v50 }
 0x246   : > { %v5858_v10 = vmax.f32 %v5746_v56, 0.0  ;;  %v3051_v13 = vrot.slane %v10352_v24, 1  ;;  %v3330_v59 = vadd.f32 %v3046_v19, %v10151_v60  ;;  %v13810_v22 = vrot.slane %v10137_v37, 2 }
 0x247   : > { %v10382_v29 = vadd.f32 %v2534_v42, %v2399_v21  ;;  %v10385_v27 = vmul.f32 %v9967_v34, %v590_v39  ;;  %v4148_v38 = vmul.f32 %v10189_v49, %v590_v39  ;;  %v4661_v45 = vrot.slane %v10367_v0, 1 }
 0x248   : > { %v3727_v53 = vsel %vm2006_vm1, %v3724_v15, %v13810_v22  ;;  %v6907_v12 = vpack.c.bf16 %v5858_v10, %v5857_v57  ;;  %v13811_v50 = vmov %v13810_v22  ;;  %v1154_v15 = vmul.f32 %v9859_v35, %v585_v61 }
 0x249   : > { %v4012_v3 = vadd.f32 %v3727_v53, %v10252_v1  ;;  %v3729_v60 = vsel %vm2006_vm1, %v13811_v50, %v13670_v6  ;;  %v10398_v57 = vmul.f32 %v10167_v33, %v590_v39  ;;  %v13812_v19 = vrot.slane %v10106_v43, 2 }
 0x24a   : > { %7091 = vst [vmem:[%s7696_s15 + $0xb8] sm:$0xff] %v6907_v12   ;;  %v13813_v1 = vrot.slane %v10184_v5, 2  ;;  %v2770_v37 = vmul.f32 %v9945_v52, %v585_v61  ;;  %v4147_v21 = vmul.f32 %v10189_v49, %v585_v61  ;;  %v1438_v10 = vrot.slane %v1154_v15, 1 }
 0x24b   : > { %v10408_v42 = vmul.f32 %v9867_v62, %v585_v61  ;;  %v4384_v22 = vmul.f32 %v10142_v28, %v585_v61  ;;  %v5067_v53 = vmul.f32 %v10167_v33, %v585_v61  ;;  %v5859_v39 = vmax.f32 %v10373_v44, 0.0 }
 0x24c   : > { %v2117_v56 = vsel %vm2006_vm1, %v13813_v1, %v13812_v19  ;;  %v2533_v5 = vmul.f32 %v9906_v4, %v585_v61  ;;  %v4259_v12 = vadd.f32 %v4147_v21, %v4012_v3  ;;  %v3734_v50 = vrot.slane %v10385_v27, 2 }
 0x24d   : > { %v2398_v43 = vadd.f32 %v2117_v56, %v10250_v16  ;;  %v3049_v19 = vrot.slane %v2770_v37, 1  ;;  %v4659_v1 = vrot.slane %v4384_v22, 1  ;;  %v5342_v63 = vrot.slane %v5067_v53, 2 }
 0x24e   : > { %v4013_v15 = vadd.f32 %v3729_v60, %v3330_v59  ;;  %v5344_v31 = vrot.slane %v10398_v57, 2  ;;  %v917_v6 = vmul.f32 %v9875_v54, %v585_v61  ;;  %v1439_v41 = vsel %vm1322_vm0, %v1436_v26, %v1438_v10  ;;  %v600_v60 = vpop.permute.xlu1 %599 }
 0x24f   : > { %v13671_v44 = vrot.slane %v10408_v42, 2  ;;  %v10423_v16 = vmul.f32 %v9967_v34, %v585_v61  ;;  %v4660_v3 = vsel %vm1322_vm0, %v4657_v20, %v4659_v1  ;;  %v4662_v59 = vsel %vm1322_vm0, %v4659_v1, %v4661_v45 }
 0x250   : > { %v1441_v23 = vsel %vm1322_vm0, %v1438_v10, %v1440_v46  ;;  %v2645_v56 = vadd.f32 %v2533_v5, %v2398_v43  ;;  %v4946_v26 = vadd.f32 %v4660_v3, %v10314_v17  ;;  %v4947_v37 = vadd.f32 %v4662_v59, %v4259_v12 }
 0x251   : > { %v3050_v61 = vsel %vm1322_vm0, %v3047_v11, %v3049_v19  ;;  %v3052_v8 = vsel %vm1322_vm0, %v3049_v19, %v3051_v13  ;;  %v5343_v20 = vsel %vm2006_vm1, %v5340_v30, %v5342_v63  ;;  %v1717_v21 = vadd.f32 %v1439_v41, %v10255_v40 }
 0x252   : > { %v5345_v10 = vsel %vm2006_vm1, %v5342_v63, %v5344_v31  ;;  %v5629_v17 = vadd.f32 %v5343_v20, %v4946_v26  ;;  %v10449_v22 = vmul.f32 %v9859_v35, %v600_v60  ;;  %v10452_v47 = vmul.f32 %v9867_v62, %v600_v60 }
 0x253   : > { %v13672_v11 = vrot.slane %v10423_v16, 2  ;;  %v5630_v53 = vadd.f32 %v5345_v10, %v4947_v37  ;;  %v13814_v7 = vrot.slane %v10234_v55, 2  ;;  %v10461_v41 = vmul.f32 %v9945_v52, %v600_v60  ;;  %v595_v37 = vpop.permute.xlu0 %594 }
 0x254   : > { %v4260_v30 = vadd.f32 %v4148_v38, %v4013_v15  ;;  %v5748_v63 = vadd.f32 %v10247_v9, %v5629_v17  ;;  %v10465_v5 = vmul.f32 %v9967_v34, %v600_v60  ;;  %v10467_v12 = vadd.f32 %v1441_v23, %v917_v6 }
 0x255   : > { %v2123_v40 = vsel %vm2006_vm1, %v13814_v7, %v13671_v44  ;;  %v10469_v19 = vadd.f32 %v3052_v8, %v2645_v56  ;;  %v10472_v1 = vmul.f32 %v9875_v54, %v600_v60  ;;  %v3332_v3 = vadd.f32 %v3050_v61, %v10273_v14 }
 0x256   : > { %v2401_v43 = vadd.f32 %v2123_v40, %v1717_v21  ;;  %v5860_v59 = vmax.f32 %v5748_v63, 0.0  ;;  %v1444_v26 = vrot.slane %v10449_v22, 1  ;;  %v2536_v15 = vmul.f32 %v9906_v4, %v600_v60 }
 0x257   : > { %v10479_v20 = vadd.f32 %v10247_v9, %v5630_v53  ;;  %v3055_v6 = vrot.slane %v10461_v41, 1  ;;  %v13815_v23 = vrot.slane %v10268_v36, 2  ;;  %v10488_v56 = vmul.f32 %v10142_v28, %v600_v60 }
 0x258   : > { %v6912_v61 = vpack.c.bf16 %v5860_v59, %v5859_v39  ;;  %v10490_v8 = vadd.f32 %v2536_v15, %v2401_v43  ;;  %v13817_v17 = vrot.slane %v10324_v51, 2  ;;  %v10499_v40 = vmul.f32 %v10167_v33, %v600_v60 }
 0x259   : > { %v3733_v14 = vsel %vm2006_vm1, %v13815_v23, %v13672_v11  ;;  %v13816_v10 = vmov %v13815_v23  ;;  %v1156_v23 = vmul.f32 %v9859_v35, %v595_v37  ;;  %v10505_v39 = vmul.f32 %v9867_v62, %v595_v37 }
 0x25a   : > { %v3731_v53 = vsel %vm2006_vm1, %v13817_v17, %v13816_v10  ;;  %v4015_v7 = vadd.f32 %v3733_v14, %v3332_v3  ;;  %7092 = vst [vmem:[%s7696_s15 + $0xc0] sm:$0xff] %v6912_v61   ;;  %v2772_v43 = vmul.f32 %v9945_v52, %v595_v37  ;;  %v4149_v36 = vmul.f32 %v10189_v49, %v595_v37 }
 0x25b   : > { %v4014_v63 = vadd.f32 %v3731_v53, %v10361_v25  ;;  %v4386_v51 = vmul.f32 %v10142_v28, %v595_v37  ;;  %v4150_v59 = vmul.f32 %v10189_v49, %v600_v60  ;;  %v4665_v3 = vrot.slane %v10488_v56, 1 }
 0x25c   : > { %v1442_v15 = vrot.slane %v1156_v23, 1  ;;  %v5069_v14 = vmul.f32 %v10167_v33, %v595_v37  ;;  %v5861_v25 = vmax.f32 %v10479_v20, 0.0  ;;  %v13818_v61 = vrot.slane %v10234_v55, 2 }
 0x25d   : > { %v13819_v10 = vrot.slane %v10298_v18, 2  ;;  %v4261_v53 = vadd.f32 %v4149_v36, %v4014_v63  ;;  %v4663_v21 = vrot.slane %v4386_v51, 1  ;;  %v2535_v23 = vmul.f32 %v9906_v4, %v595_v37  ;;  %v610_v63 = vpop.permute.xlu1 %609 }
 0x25e   : > { %v1443_v60 = vsel %vm1322_vm0, %v1440_v46, %v1442_v15  ;;  %v5346_v44 = vrot.slane %v5069_v14, 2  ;;  %v5348_v11 = vrot.slane %v10499_v40, 2  ;;  %v13673_v20 = vrot.slane %v10505_v39, 2 }
 0x25f   : > { %v2121_v17 = vsel %vm2006_vm1, %v13819_v10, %v13818_v61  ;;  %v3053_v55 = vrot.slane %v2772_v43, 1  ;;  %v4664_v18 = vsel %vm1322_vm0, %v4661_v45, %v4663_v21  ;;  %v10529_v36 = vadd.f32 %v4150_v59, %v4015_v7 }
 0x260   : > { %v2400_v38 = vadd.f32 %v2121_v17, %v10359_v48  ;;  %v919_v48 = vmul.f32 %v9875_v54, %v595_v37  ;;  %v4666_v58 = vsel %vm1322_vm0, %v4663_v21, %v4665_v3  ;;  %v4948_v46 = vadd.f32 %v4664_v18, %v4260_v30 }
 0x261   : > { %v10536_v51 = vmul.f32 %v9967_v34, %v595_v37  ;;  %v4949_v14 = vadd.f32 %v4666_v58, %v4261_v53  ;;  %v5347_v0 = vsel %vm2006_vm1, %v5344_v31, %v5346_v44  ;;  %v1719_v45 = vadd.f32 %v1443_v60, %v10364_v2 }
 0x262   : > { %v1445_v7 = vsel %vm1322_vm0, %v1442_v15, %v1444_v26  ;;  %v2647_v43 = vadd.f32 %v2535_v23, %v2400_v38  ;;  %v5631_v59 = vadd.f32 %v5347_v0, %v4948_v46  ;;  %v10546_v61 = vmul.f32 %v9859_v35, %v610_v63 }
 0x263   : > { %v3056_v30 = vsel %vm1322_vm0, %v3053_v55, %v3055_v6  ;;  %v5349_v57 = vsel %vm2006_vm1, %v5346_v44, %v5348_v11  ;;  %v10555_v31 = vmul.f32 %v9867_v62, %v610_v63  ;;  %v13820_v2 = vrot.slane %v10343_v32, 2 }
 0x264   : > { %v3054_v37 = vsel %vm1322_vm0, %v3051_v13, %v3053_v55  ;;  %v5632_v21 = vadd.f32 %v5349_v57, %v4949_v14  ;;  %v5750_v15 = vadd.f32 %v10247_v9, %v5631_v59  ;;  %v10566_v17 = vadd.f32 %v1445_v7, %v919_v48  ;;  %v605_v14 = vpop.permute.xlu0 %604 }
 0x265   : > { %v2127_v38 = vsel %vm2006_vm1, %v13820_v2, %v13673_v20  ;;  %v13674_v44 = vrot.slane %v10536_v51, 2  ;;  %v10570_v53 = vmul.f32 %v9875_v54, %v610_v63  ;;  %v10573_v60 = vmul.f32 %v9945_v52, %v610_v63 }
 0x266   : > { %v2403_v10 = vadd.f32 %v2127_v38, %v1719_v45  ;;  %v10575_v23 = vadd.f32 %v3056_v30, %v2647_v43  ;;  %v5862_v18 = vmax.f32 %v5750_v15, 0.0  ;;  %v1448_v24 = vrot.slane %v10546_v61, 1 }
 0x267   : > { %v2538_v13 = vmul.f32 %v9906_v4, %v610_v63  ;;  %v3334_v48 = vadd.f32 %v3054_v37, %v10382_v29  ;;  %v10582_v58 = vmul.f32 %v9967_v34, %v610_v63  ;;  %v10585_v46 = vmul.f32 %v10142_v28, %v610_v63 }
 0x268   : > { %v10588_v0 = vadd.f32 %v10247_v9, %v5632_v21  ;;  %v6917_v45 = vpack.c.bf16 %v5862_v18, %v5861_v25  ;;  %v13821_v43 = vrot.slane %v10423_v16, 2  ;;  %v3059_v29 = vrot.slane %v10573_v60, 1 }
 0x269   : > { %v10590_v7 = vadd.f32 %v2538_v13, %v2403_v10  ;;  %v3737_v30 = vsel %vm2006_vm1, %v3734_v50, %v13674_v44  ;;  %v10604_v57 = vmul.f32 %v10167_v33, %v610_v63  ;;  %v4669_v2 = vrot.slane %v10585_v46, 1 }
 0x26a   : > { %v3735_v59 = vsel %vm2006_vm1, %v13821_v43, %v3734_v50  ;;  %7093 = vst [vmem:[%s7696_s15 + $0xc8] sm:$0xff] %v6917_v45   ;;  %v13822_v16 = vrot.slane %v10343_v32, 2  ;;  %v13823_v38 = vrot.slane %v10408_v42, 2  ;;  %v1158_v21 = vmul.f32 %v9859_v35, %v605_v14 }
 0x26b   : > { %v4016_v25 = vadd.f32 %v3735_v59, %v10469_v19  ;;  %v2774_v27 = vmul.f32 %v9945_v52, %v605_v14  ;;  %v10617_v50 = vmul.f32 %v9867_v62, %v605_v14  ;;  %v4151_v15 = vmul.f32 %v10189_v49, %v605_v14 }
 0x26c   : > { %v2125_v37 = vsel %vm2006_vm1, %v13823_v38, %v13822_v16  ;;  %v4388_v19 = vmul.f32 %v10142_v28, %v605_v14  ;;  %v5071_v10 = vmul.f32 %v10167_v33, %v605_v14  ;;  %v1446_v42 = vrot.slane %v1158_v21, 1 }
 0x26d   : > { %v2402_v32 = vadd.f32 %v2125_v37, %v10467_v12  ;;  %v2537_v13 = vmul.f32 %v9906_v4, %v605_v14  ;;  %v3057_v45 = vrot.slane %v2774_v27, 1  ;;  %v4263_v43 = vadd.f32 %v4151_v15, %v4016_v25 }
 0x26e   : > { %v4667_v59 = vrot.slane %v4388_v19, 1  ;;  %v5350_v16 = vrot.slane %v5071_v10, 2  ;;  %v4017_v38 = vadd.f32 %v3737_v30, %v3334_v48  ;;  %v4152_v55 = vmul.f32 %v10189_v49, %v610_v63  ;;  %v620_v63 = vpop.permute.xlu1 %619 }
 0x26f   : > { %v5352_v20 = vrot.slane %v10604_v57, 2  ;;  %v1447_v44 = vsel %vm1322_vm0, %v1444_v26, %v1446_v42  ;;  %v2130_v18 = vrot.slane %v10617_v50, 2  ;;  %v10632_v12 = vmul.f32 %v9967_v34, %v605_v14  ;;  %v10772_v57 = vld [vmem:[%s13632_s1 + $0x2] ss:$0 sm:$0xff] }
 0x270   : > { %v4668_v25 = vsel %vm1322_vm0, %v4665_v3, %v4667_v59  ;;  %v4670_v48 = vsel %vm1322_vm0, %v4667_v59, %v4669_v2  ;;  %v1449_v22 = vsel %vm1322_vm0, %v1446_v42, %v1448_v24  ;;  %v2649_v30 = vadd.f32 %v2537_v13, %v2402_v32 }
 0x271   : > { %v4950_v26 = vadd.f32 %v4668_v25, %v10529_v36  ;;  %v4951_v37 = vadd.f32 %v4670_v48, %v4263_v43  ;;  %v3058_v21 = vsel %vm1322_vm0, %v3055_v6, %v3057_v45  ;;  %v3060_v56 = vsel %vm1322_vm0, %v3057_v45, %v3059_v29  ;;  %v615_v25 = vpop.permute.xlu0 %614 }
 0x272   : > { %v5351_v3 = vsel %vm2006_vm1, %v5348_v11, %v5350_v16  ;;  %v1721_v27 = vadd.f32 %v1447_v44, %v10472_v1  ;;  %v5353_v15 = vsel %vm2006_vm1, %v5350_v16, %v5352_v20  ;;  %v10658_v19 = vmul.f32 %v9859_v35, %v620_v63 }
 0x273   : > { %v5633_v36 = vadd.f32 %v5351_v3, %v4950_v26  ;;  %v10661_v41 = vmul.f32 %v9867_v62, %v620_v63  ;;  %v5863_v6 = vmax.f32 %v10588_v0, 0.0  ;;  %v921_v10 = vmul.f32 %v9875_v54, %v605_v14 }
 0x274   : > { %v5634_v40 = vadd.f32 %v5353_v15, %v4951_v37  ;;  %v13824_v11 = vrot.slane %v10452_v47, 2  ;;  %v4264_v44 = vadd.f32 %v4152_v55, %v4017_v38  ;;  %v3740_v32 = vrot.slane %v10632_v12, 2 }
 0x275   : > { %v5752_v42 = vadd.f32 %v10247_v9, %v5633_v36  ;;  %v10672_v45 = vadd.f32 %v1449_v22, %v921_v10  ;;  %v10674_v43 = vadd.f32 %v3060_v56, %v2649_v30  ;;  %v10677_v0 = vmul.f32 %v9875_v54, %v620_v63 }
 0x276   : > { %v2131_v1 = vsel %vm2006_vm1, %v13824_v11, %v2130_v18  ;;  %v3336_v14 = vadd.f32 %v3058_v21, %v10490_v8  ;;  %v1452_v16 = vrot.slane %v10658_v19, 1  ;;  %v2136_v55 = vrot.slane %v10661_v41, 2 }
 0x277   : > { %v2405_v13 = vadd.f32 %v2131_v1, %v1721_v27  ;;  %v5864_v59 = vmax.f32 %v5752_v42, 0.0  ;;  %v2540_v38 = vmul.f32 %v9906_v4, %v620_v63  ;;  %v10684_v48 = vadd.f32 %v10247_v9, %v5634_v40 }
 0x278   : > { %v10687_v22 = vmul.f32 %v9945_v52, %v620_v63  ;;  %v10690_v54 = vmul.f32 %v9967_v34, %v620_v63  ;;  %v10693_v8 = vmul.f32 %v10142_v28, %v620_v63  ;;  %v13825_v37 = vrot.slane %v10465_v5, 2 }
 0x279   : > { %v6922_v30 = vpack.c.bf16 %v5864_v59, %v5863_v6  ;;  %v10695_v26 = vadd.f32 %v2540_v38, %v2405_v13  ;;  %v13827_v3 = vrot.slane %v10536_v51, 2  ;;  %v10708_v36 = vmul.f32 %v10167_v33, %v620_v63 }
 0x27a   : > { %v3741_v21 = vsel %vm2006_vm1, %v13825_v37, %v3740_v32  ;;  %v13826_v56 = vmov %v13825_v37  ;;  %v1160_v10 = vmul.f32 %v9859_v35, %v615_v25  ;;  %v4673_v40 = vrot.slane %v10693_v8, 1 }
 0x27b   : > { %v3739_v27 = vsel %vm2006_vm1, %v13827_v3, %v13826_v56  ;;  %v4019_v15 = vadd.f32 %v3741_v21, %v3336_v14  ;;  %7094 = vst [vmem:[%s7696_s15 + $0xd0] sm:$0xff] %v6922_v30   ;;  %v13828_v1 = vrot.slane %v10505_v39, 2  ;;  %v10720_v51 = vmul.f32 %v9867_v62, %v615_v25 }
 0x27c   : > { %v4018_v6 = vadd.f32 %v3739_v27, %v10575_v23  ;;  %v2776_v42 = vmul.f32 %v9945_v52, %v615_v25  ;;  %v1450_v13 = vrot.slane %v1160_v10, 1  ;;  %v4153_v14 = vmul.f32 %v10189_v49, %v615_v25 }
 0x27d   : > { %v2129_v5 = vsel %vm2006_vm1, %v13828_v1, %v13824_v11  ;;  %v4390_v23 = vmul.f32 %v10142_v28, %v615_v25  ;;  %v5073_v35 = vmul.f32 %v10167_v33, %v615_v25  ;;  %v3063_v59 = vrot.slane %v10687_v22, 1 }
 0x27e   : > { %v4154_v47 = vmul.f32 %v10189_v49, %v620_v63  ;;  %v2404_v39 = vadd.f32 %v2129_v5, %v10566_v17  ;;  %v2539_v38 = vmul.f32 %v9906_v4, %v615_v25  ;;  %v5865_v62 = vmax.f32 %v10684_v48, 0.0  ;;  %v630_v48 = vpop.permute.xlu1 %629 }
 0x27f   : > { %v3061_v30 = vrot.slane %v2776_v42, 1  ;;  %v4265_v37 = vadd.f32 %v4153_v14, %v4018_v6  ;;  %v4671_v21 = vrot.slane %v4390_v23, 1  ;;  %v5356_v3 = vrot.slane %v10708_v36, 2  ;;  %v10764_v14 = vld [vmem:[%s13632_s1 + $0x1] ss:$0 sm:$0xff] }
 0x280   : > { %v1451_v27 = vsel %vm1322_vm0, %v1448_v24, %v1450_v13  ;;  %v5354_v10 = vrot.slane %v5073_v35, 2  ;;  %v10736_v11 = vadd.f32 %v4154_v47, %v4019_v15  ;;  %v13675_v17 = vrot.slane %v10720_v51, 2 }
 0x281   : > { %v4672_v4 = vsel %vm1322_vm0, %v4669_v2, %v4671_v21  ;;  %v4674_v63 = vsel %vm1322_vm0, %v4671_v21, %v4673_v40  ;;  %v2651_v6 = vadd.f32 %v2539_v38, %v2404_v39  ;;  %v10746_v1 = vmul.f32 %v9967_v34, %v615_v25 }
 0x282   : > { %v4952_v61 = vadd.f32 %v4672_v4, %v4264_v44  ;;  %v4953_v24 = vadd.f32 %v4674_v63, %v4265_v37  ;;  %v1453_v15 = vsel %vm1322_vm0, %v1450_v13, %v1452_v16  ;;  %v3064_v46 = vsel %vm1322_vm0, %v3061_v30, %v3063_v59 }
 0x283   : > { %v5355_v2 = vsel %vm2006_vm1, %v5352_v20, %v5354_v10  ;;  %v1723_v5 = vadd.f32 %v1451_v27, %v10570_v53  ;;  %v5357_v42 = vsel %vm2006_vm1, %v5354_v10, %v5356_v3  ;;  %v10767_v13 = vmul.f32 %v10764_v14, %v630_v48  ;;  %v10780_v53 = vld [vmem:[%s13632_s1] ss:$0 sm:$0xff] }
 0x284   : > { %v5635_v44 = vadd.f32 %v5355_v2, %v4952_v61  ;;  %v10775_v20 = vmul.f32 %v10772_v57, %v630_v48  ;;  %v923_v23 = vmul.f32 %v10780_v53, %v615_v25  ;;  %v5636_v35 = vadd.f32 %v5357_v42, %v4953_v24  ;;  %v625_v24 = vpop.permute.xlu0 %624 }
 0x285   : > { %v13829_v47 = vrot.slane %v10555_v31, 2  ;;  %v10789_v38 = vmul.f32 %v9945_v52, %v630_v48  ;;  %v3062_v37 = vsel %vm1322_vm0, %v3059_v29, %v3061_v30  ;;  %v13676_v21 = vrot.slane %v10746_v1, 2  ;;  %v10811_v30 = vld [vmem:[%s13632_s1 + $0x3] ss:$0 sm:$0xff] }
 0x286   : > { %v5754_v27 = vadd.f32 %v10247_v9, %v5635_v44  ;;  %v10796_v25 = vadd.f32 %v1453_v15, %v923_v23  ;;  %v10798_v4 = vadd.f32 %v3064_v46, %v2651_v6  ;;  %v10801_v63 = vmul.f32 %v10780_v53, %v630_v48 }
 0x287   : > { %v2135_v39 = vsel %vm2006_vm1, %v13829_v47, %v13675_v17  ;;  %v10804_v61 = vmul.f32 %v10142_v28, %v630_v48  ;;  %v1456_v60 = vrot.slane %v10767_v13, 1  ;;  %v2542_v6 = vmul.f32 %v10811_v30, %v630_v48 }
 0x288   : > { %v2407_v10 = vadd.f32 %v2135_v39, %v1723_v5  ;;  %v5866_v52 = vmax.f32 %v5754_v27, 0.0  ;;  %v10815_v15 = vadd.f32 %v10247_v9, %v5636_v35  ;;  %v3067_v46 = vrot.slane %v10789_v38, 1 }
 0x289   : > { %v3338_v2 = vadd.f32 %v3062_v37, %v10590_v7  ;;  %v13830_v5 = vrot.slane %v10582_v58, 2  ;;  %v10827_v47 = vmul.f32 %v9967_v34, %v630_v48  ;;  %v4156_v37 = vmul.f32 %v10189_v49, %v630_v48  ;;  %v10850_v58 = vld [vmem:[%s13632_s1 + $0x4] ss:$0 sm:$0xff] }
 0x28a   : > { %v6927_v44 = vpack.c.bf16 %v5866_v52, %v5865_v62  ;;  %v10824_v23 = vadd.f32 %v2542_v6, %v2407_v10  ;;  %v4677_v12 = vrot.slane %v10804_v61, 1  ;;  %v10840_v62 = vmul.f32 %v10167_v33, %v630_v48 }
 0x28b   : > { %v3743_v42 = vsel %vm2006_vm1, %v3740_v32, %v13830_v5  ;;  %v13831_v35 = vmov %v13830_v5  ;;  %v1162_v32 = vmul.f32 %v10764_v14, %v625_v24  ;;  %v13832_v34 = vrot.slane %v10555_v31, 2 }
 0x28c   : > { %v4020_v39 = vadd.f32 %v3743_v42, %v10674_v43  ;;  %v3745_v7 = vsel %vm2006_vm1, %v13831_v35, %v13676_v21  ;;  %7095 = vst [vmem:[%s7696_s15 + $0xd8] sm:$0xff] %v6927_v44   ;;  %v2778_v27 = vmul.f32 %v10850_v58, %v625_v24  ;;  %v4155_v10 = vmul.f32 %v10189_v49, %v625_v24 }
 0x28d   : > { %v2133_v43 = vsel %vm2006_vm1, %v2130_v18, %v13832_v34  ;;  %v1454_v52 = vrot.slane %v1162_v32, 1  ;;  %v10855_v6 = vmul.f32 %v10772_v57, %v625_v24  ;;  %v4392_v48 = vmul.f32 %v10142_v28, %v625_v24 }
 0x28e   : > { %v5075_v31 = vmul.f32 %v10167_v33, %v625_v24  ;;  %v5867_v50 = vmax.f32 %v10815_v15, 0.0  ;;  %v2406_v18 = vadd.f32 %v2133_v43, %v10672_v45  ;;  %v2541_v5 = vmul.f32 %v10811_v30, %v625_v24  ;;  %v10872_v45 = vld [vmem:[%s13632_s1 + $0x5] ss:$0 sm:$0xff] }
 0x28f   : > { %v4267_v42 = vadd.f32 %v4155_v10, %v4020_v39  ;;  %v3750_v44 = vrot.slane %v10827_v47, 2  ;;  %v3065_v35 = vrot.slane %v2778_v27, 1  ;;  %v4675_v34 = vrot.slane %v4392_v48, 1 }
 0x290   : > { %v5358_v29 = vrot.slane %v5075_v31, 2  ;;  %v4021_v32 = vadd.f32 %v3745_v7, %v3338_v2  ;;  %v5360_v17 = vrot.slane %v10840_v62, 2  ;;  %v925_v21 = vmul.f32 %v10780_v53, %v625_v24  ;;  %v640_v7 = vpop.permute.xlu1 %639 }
 0x291   : > { %v1455_v56 = vsel %vm1322_vm0, %v1452_v16, %v1454_v52  ;;  %v2138_v15 = vrot.slane %v10855_v6, 2  ;;  %v10875_v39 = vmul.f32 %v10872_v45, %v625_v24  ;;  %v4676_v2 = vsel %vm1322_vm0, %v4673_v40, %v4675_v34 }
 0x292   : > { %v4678_v19 = vsel %vm1322_vm0, %v4675_v34, %v4677_v12  ;;  %v1457_v16 = vsel %vm1322_vm0, %v1454_v52, %v1456_v60  ;;  %v2653_v43 = vadd.f32 %v2541_v5, %v2406_v18  ;;  %v4954_v27 = vadd.f32 %v4676_v2, %v10736_v11 }
 0x293   : > { %v4955_v10 = vadd.f32 %v4678_v19, %v4267_v42  ;;  %v3066_v24 = vsel %vm1322_vm0, %v3063_v59, %v3065_v35  ;;  %v3068_v8 = vsel %vm1322_vm0, %v3065_v35, %v3067_v46  ;;  %v5359_v40 = vsel %vm2006_vm1, %v5356_v3, %v5358_v29 }
 0x294   : > { %v1725_v48 = vadd.f32 %v1455_v56, %v10677_v0  ;;  %v5361_v52 = vsel %vm2006_vm1, %v5358_v29, %v5360_v17  ;;  %v5637_v11 = vadd.f32 %v5359_v40, %v4954_v27  ;;  %v10901_v31 = vmul.f32 %v10764_v14, %v640_v7 }
 0x295   : > { %v10904_v22 = vmul.f32 %v10772_v57, %v640_v7  ;;  %v3748_v59 = vrot.slane %v10875_v39, 2  ;;  %v5638_v18 = vadd.f32 %v5361_v52, %v4955_v10  ;;  %v2139_v0 = vsel %vm2006_vm1, %v2136_v55, %v2138_v15  ;;  %v635_v10 = vpop.permute.xlu0 %634 }
 0x296   : > { %v10913_v36 = vmul.f32 %v10850_v58, %v640_v7  ;;  %v4268_v56 = vadd.f32 %v4156_v37, %v4021_v32  ;;  %v5756_v3 = vadd.f32 %v10247_v9, %v5637_v11  ;;  %v2409_v29 = vadd.f32 %v2139_v0, %v1725_v48 }
 0x297   : > { %v10917_v5 = vmul.f32 %v10872_v45, %v640_v7  ;;  %v10919_v42 = vadd.f32 %v1457_v16, %v925_v21  ;;  %v10921_v35 = vadd.f32 %v3068_v8, %v2653_v43  ;;  %v10924_v34 = vmul.f32 %v10780_v53, %v640_v7 }
 0x298   : > { %v3340_v2 = vadd.f32 %v3066_v24, %v10695_v26  ;;  %v5868_v19 = vmax.f32 %v5756_v3, 0.0  ;;  %v1460_v27 = vrot.slane %v10901_v31, 1  ;;  %v2544_v32 = vmul.f32 %v10811_v30, %v640_v7 }
 0x299   : > { %v10931_v40 = vadd.f32 %v10247_v9, %v5638_v18  ;;  %v3071_v21 = vrot.slane %v10913_v36, 1  ;;  %v13833_v16 = vrot.slane %v10690_v54, 2  ;;  %v10940_v43 = vmul.f32 %v10142_v28, %v640_v7 }
 0x29a   : > { %v6932_v24 = vpack.c.bf16 %v5868_v19, %v5867_v50  ;;  %v10942_v8 = vadd.f32 %v2544_v32, %v2409_v29  ;;  %v13835_v11 = vrot.slane %v10746_v1, 2  ;;  %v10951_v3 = vmul.f32 %v10167_v33, %v640_v7 }
 0x29b   : > { %v3749_v26 = vsel %vm2006_vm1, %v13833_v16, %v3748_v59  ;;  %v13834_v52 = vmov %v13833_v16  ;;  %v1164_v37 = vmul.f32 %v10764_v14, %v635_v10  ;;  %v10957_v50 = vmul.f32 %v10772_v57, %v635_v10 }
 0x29c   : > { %v3747_v18 = vsel %vm2006_vm1, %v13835_v11, %v13834_v52  ;;  %v4023_v0 = vadd.f32 %v3749_v26, %v3340_v2  ;;  %7096 = vst [vmem:[%s7696_s15 + $0xe0] sm:$0xff] %v6932_v24   ;;  %v2780_v29 = vmul.f32 %v10850_v58, %v635_v10  ;;  %v4157_v54 = vmul.f32 %v10189_v49, %v635_v10 }
 0x29d   : > { %v4022_v16 = vadd.f32 %v3747_v18, %v10798_v4  ;;  %v4394_v1 = vmul.f32 %v10142_v28, %v635_v10  ;;  %v4158_v19 = vmul.f32 %v10189_v49, %v640_v7  ;;  %v4681_v2 = vrot.slane %v10940_v43, 1 }
 0x29e   : > { %v1458_v32 = vrot.slane %v1164_v37, 1  ;;  %v5077_v26 = vmul.f32 %v10167_v33, %v635_v10  ;;  %v5869_v4 = vmax.f32 %v10931_v40, 0.0  ;;  %v13836_v24 = vrot.slane %v10720_v51, 2  ;;  %v10981_v51 = vpop.permute.xlu1 %649 }
 0x29f   : > { %v4269_v11 = vadd.f32 %v4157_v54, %v4022_v16  ;;  %v4679_v18 = vrot.slane %v4394_v1, 1  ;;  %v2543_v49 = vmul.f32 %v10811_v30, %v635_v10  ;;  %v5364_v33 = vrot.slane %v10951_v3, 2 }
 0x2a0   : > { %v2137_v52 = vsel %vm2006_vm1, %v13836_v24, %v2136_v55  ;;  %v1459_v28 = vsel %vm1322_vm0, %v1456_v60, %v1458_v32  ;;  %v5362_v7 = vrot.slane %v5077_v26, 2  ;;  %v13677_v37 = vrot.slane %v10957_v50, 2 }
 0x2a1   : > { %v2408_v48 = vadd.f32 %v2137_v52, %v10796_v25  ;;  %v3069_v41 = vrot.slane %v2780_v29, 1  ;;  %v4680_v55 = vsel %vm1322_vm0, %v4677_v12, %v4679_v18  ;;  %v10983_v40 = vadd.f32 %v4158_v19, %v4023_v0 }
 0x2a2   : > { %v927_v13 = vmul.f32 %v10780_v53, %v635_v10  ;;  %v4682_v25 = vsel %vm1322_vm0, %v4679_v18, %v4681_v2  ;;  %v4956_v60 = vadd.f32 %v4680_v55, %v4268_v56  ;;  %v10990_v16 = vmul.f32 %v10872_v45, %v635_v10 }
 0x2a3   : > { %v4957_v54 = vadd.f32 %v4682_v25, %v4269_v11  ;;  %v5363_v61 = vsel %vm2006_vm1, %v5360_v17, %v5362_v7  ;;  %v1727_v12 = vadd.f32 %v1459_v28, %v10801_v63  ;;  %v1461_v0 = vsel %vm1322_vm0, %v1458_v32, %v1460_v27  ;;  %v11047_v25 = vld [vmem:[%s13632_s1 + $0x7] ss:$0 sm:$0xff] }
 0x2a4   : > { %v2655_v29 = vadd.f32 %v2543_v49, %v2408_v48  ;;  %v5639_v1 = vadd.f32 %v5363_v61, %v4956_v60  ;;  %v11001_v19 = vmul.f32 %v10764_v14, %v10981_v51  ;;  %v3072_v56 = vsel %vm1322_vm0, %v3069_v41, %v3071_v21 }
 0x2a5   : > { %v5365_v17 = vsel %vm2006_vm1, %v5362_v7, %v5364_v33  ;;  %v11011_v63 = vmul.f32 %v10772_v57, %v10981_v51  ;;  %v13837_v62 = vrot.slane %v10775_v20, 2  ;;  %v3070_v48 = vsel %vm1322_vm0, %v3067_v46, %v3069_v41 }
 0x2a6   : > { %v5640_v32 = vadd.f32 %v5365_v17, %v4957_v54  ;;  %v5758_v26 = vadd.f32 %v10247_v9, %v5639_v1  ;;  %v11022_v52 = vadd.f32 %v1461_v0, %v927_v13  ;;  %v3752_v11 = vrot.slane %v10990_v16, 2  ;;  %v645_v54 = vpop.permute.xlu0 %644 }
 0x2a7   : > { %v2143_v10 = vsel %vm2006_vm1, %v13837_v62, %v13677_v37  ;;  %v11027_v18 = vmul.f32 %v10780_v53, %v10981_v51  ;;  %v11031_v28 = vmul.f32 %v10850_v58, %v10981_v51  ;;  %v11033_v49 = vadd.f32 %v3072_v56, %v2655_v29 }
 0x2a8   : > { %v2411_v24 = vadd.f32 %v2143_v10, %v1727_v12  ;;  %v5870_v38 = vmax.f32 %v5758_v26, 0.0  ;;  %v1464_v46 = vrot.slane %v11001_v19, 1  ;;  %v2546_v7 = vmul.f32 %v10811_v30, %v10981_v51 }
 0x2a9   : > { %v3342_v55 = vadd.f32 %v3070_v48, %v10824_v23  ;;  %v11042_v13 = vmul.f32 %v10872_v45, %v10981_v51  ;;  %v11051_v60 = vmul.f32 %v11047_v25, %v10981_v51  ;;  %v11054_v61 = vadd.f32 %v10247_v9, %v5640_v32  ;;  %v11072_v9 = vld [vmem:[%s13632_s1 + $0x8] ss:$0 sm:$0xff] }
 0x2aa   : > { %v6937_v12 = vpack.c.bf16 %v5870_v38, %v5869_v4  ;;  %v11056_v0 = vadd.f32 %v2546_v7, %v2411_v24  ;;  %v3751_v23 = vsel %vm2006_vm1, %v3748_v59, %v3750_v44  ;;  %v3075_v29 = vrot.slane %v11031_v28, 1 }
 0x2ab   : > { %v3753_v1 = vsel %vm2006_vm1, %v3750_v44, %v3752_v11  ;;  %v11076_v4 = vmul.f32 %v11072_v9, %v10981_v51  ;;  %v4024_v39 = vadd.f32 %v3751_v23, %v10921_v35  ;;  %v4685_v59 = vrot.slane %v11051_v60, 1  ;;  %v11094_v35 = vld [vmem:[%s13632_s1 + $0x6] ss:$0 sm:$0xff] }
 0x2ac   : > { %7097 = vst [vmem:[%s7696_s15 + $0xe8] sm:$0xff] %v6937_v12   ;;  %v13838_v56 = vmov %v13837_v62  ;;  %v1166_v44 = vmul.f32 %v10764_v14, %v645_v54  ;;  %v2782_v17 = vmul.f32 %v10850_v58, %v645_v54  ;;  %v11089_v62 = vmul.f32 %v10772_v57, %v645_v54 }
 0x2ad   : > { %v2141_v47 = vsel %vm2006_vm1, %v2138_v15, %v13838_v56  ;;  %v4159_v10 = vmul.f32 %v11094_v35, %v645_v54  ;;  %v4396_v20 = vmul.f32 %v11047_v25, %v645_v54  ;;  %v5079_v6 = vmul.f32 %v11072_v9, %v645_v54 }
 0x2ae   : > { %v2410_v48 = vadd.f32 %v2141_v47, %v10919_v42  ;;  %v1462_v32 = vrot.slane %v1166_v44, 1  ;;  %v2545_v26 = vmul.f32 %v10811_v30, %v645_v54  ;;  %v3073_v24 = vrot.slane %v2782_v17, 1 }
 0x2af   : > { %v4271_v38 = vadd.f32 %v4159_v10, %v4024_v39  ;;  %v4683_v7 = vrot.slane %v4396_v20, 1  ;;  %v5366_v12 = vrot.slane %v5079_v6, 2  ;;  %v4025_v23 = vadd.f32 %v3753_v1, %v3342_v55 }
 0x2b0   : > { %v4160_v56 = vmul.f32 %v11094_v35, %v10981_v51  ;;  %v5368_v41 = vrot.slane %v11076_v4, 2  ;;  %v1463_v37 = vsel %vm1322_vm0, %v1460_v27, %v1462_v32  ;;  %v13678_v15 = vrot.slane %v11089_v62, 2  ;;  %v660_v51 = vpop.permute.xlu1 %659 }
 0x2b1   : > { %v11110_v42 = vmul.f32 %v10872_v45, %v645_v54  ;;  %v4684_v39 = vsel %vm1322_vm0, %v4681_v2, %v4683_v7  ;;  %v4686_v55 = vsel %vm1322_vm0, %v4683_v7, %v4685_v59  ;;  %v1465_v31 = vsel %vm1322_vm0, %v1462_v32, %v1464_v46  ;;  %v11152_v32 = vld [vmem:[%s13633_s2] ss:$0 sm:$0xff] }
 0x2b2   : > { %v2657_v1 = vadd.f32 %v2545_v26, %v2410_v48  ;;  %v4958_v27 = vadd.f32 %v4684_v39, %v10983_v40  ;;  %v4959_v47 = vadd.f32 %v4686_v55, %v4271_v38  ;;  %v3074_v44 = vsel %vm1322_vm0, %v3071_v21, %v3073_v24  ;;  %v655_v55 = vpop.permute.xlu0 %654 }
 0x2b3   : > { %v3076_v43 = vsel %vm1322_vm0, %v3073_v24, %v3075_v29  ;;  %v5367_v2 = vsel %vm2006_vm1, %v5364_v33, %v5366_v12  ;;  %v1729_v17 = vadd.f32 %v1463_v37, %v10924_v34  ;;  %v5369_v10 = vsel %vm2006_vm1, %v5366_v12, %v5368_v41 }
 0x2b4   : > { %v5641_v40 = vadd.f32 %v5367_v2, %v4958_v27  ;;  %v11136_v20 = vmul.f32 %v10764_v14, %v660_v51  ;;  %v11139_v36 = vmul.f32 %v10772_v57, %v660_v51  ;;  %v5871_v21 = vmax.f32 %v11054_v61, 0.0 }
 0x2b5   : > { %v929_v6 = vmul.f32 %v10780_v53, %v645_v54  ;;  %v5642_v3 = vadd.f32 %v5369_v10, %v4959_v47  ;;  %v13839_v34 = vrot.slane %v10904_v22, 2  ;;  %v4272_v37 = vadd.f32 %v4160_v56, %v4025_v23 }
 0x2b6   : > { %v3756_v48 = vrot.slane %v11110_v42, 2  ;;  %v5760_v26 = vadd.f32 %v11152_v32, %v5641_v40  ;;  %v11157_v54 = vadd.f32 %v3076_v43, %v2657_v1  ;;  %v11160_v38 = vmul.f32 %v10780_v53, %v660_v51 }
 0x2b7   : > { %v2147_v33 = vsel %vm2006_vm1, %v13839_v34, %v13678_v15  ;;  %v11155_v24 = vadd.f32 %v1465_v31, %v929_v6  ;;  %v3344_v7 = vadd.f32 %v3074_v44, %v10942_v8  ;;  %v1468_v23 = vrot.slane %v11136_v20, 1 }
 0x2b8   : > { %v2413_v61 = vadd.f32 %v2147_v33, %v1729_v17  ;;  %v5872_v12 = vmax.f32 %v5760_v26, 0.0  ;;  %v2548_v39 = vmul.f32 %v10811_v30, %v660_v51  ;;  %v11167_v27 = vadd.f32 %v11152_v32, %v5642_v3 }
 0x2b9   : > { %v11170_v31 = vmul.f32 %v10850_v58, %v660_v51  ;;  %v11173_v1 = vmul.f32 %v10872_v45, %v660_v51  ;;  %v11176_v8 = vmul.f32 %v11047_v25, %v660_v51  ;;  %v13840_v43 = vrot.slane %v10917_v5, 2 }
 0x2ba   : > { %v6942_v47 = vpack.c.bf16 %v5872_v12, %v5871_v21  ;;  %v11178_v44 = vadd.f32 %v2548_v39, %v2413_v61  ;;  %v11191_v6 = vmul.f32 %v11072_v9, %v660_v51  ;;  %v1168_v3 = vmul.f32 %v10764_v14, %v655_v55 }
 0x2bb   : > { %v3757_v2 = vsel %vm2006_vm1, %v13840_v43, %v3756_v48  ;;  %v13841_v17 = vmov %v13840_v43  ;;  %v4689_v34 = vrot.slane %v11176_v8, 1  ;;  %v13842_v33 = vrot.slane %v10904_v22, 2 }
 0x2bc   : > { %v3755_v10 = vsel %vm2006_vm1, %v3752_v11, %v13841_v17  ;;  %v4027_v40 = vadd.f32 %v3757_v2, %v3344_v7  ;;  %7098 = vst [vmem:[%s7696_s15 + $0xf0] sm:$0xff] %v6942_v47   ;;  %v13843_v26 = vrot.slane %v10957_v50, 2  ;;  %v11203_v16 = vmul.f32 %v10772_v57, %v655_v55 }
 0x2bd   : > { %v4026_v21 = vadd.f32 %v3755_v10, %v11033_v49  ;;  %v2784_v11 = vmul.f32 %v10850_v58, %v655_v55  ;;  %v1466_v61 = vrot.slane %v1168_v3, 1  ;;  %v4161_v7 = vmul.f32 %v11094_v35, %v655_v55 }
 0x2be   : > { %v2145_v5 = vsel %vm2006_vm1, %v13843_v26, %v13842_v33  ;;  %v4398_v49 = vmul.f32 %v11047_v25, %v655_v55  ;;  %v5081_v12 = vmul.f32 %v11072_v9, %v655_v55  ;;  %v3079_v39 = vrot.slane %v11170_v31, 1 }
 0x2bf   : > { %v4162_v22 = vmul.f32 %v11094_v35, %v660_v51  ;;  %v2412_v50 = vadd.f32 %v2145_v5, %v11022_v52  ;;  %v2547_v47 = vmul.f32 %v10811_v30, %v655_v55  ;;  %v5873_v43 = vmax.f32 %v11167_v27, 0.0 }
 0x2c0   : > { %v3077_v2 = vrot.slane %v2784_v11, 1  ;;  %v4273_v17 = vadd.f32 %v4161_v7, %v4026_v21  ;;  %v4687_v10 = vrot.slane %v4398_v49, 1  ;;  %v5372_v33 = vrot.slane %v11191_v6, 2  ;;  %v670_v21 = vpop.permute.xlu1 %669 }
 0x2c1   : > { %v1467_v26 = vsel %vm1322_vm0, %v1464_v46, %v1466_v61  ;;  %v5370_v56 = vrot.slane %v5081_v12, 2  ;;  %v11219_v15 = vadd.f32 %v4162_v22, %v4027_v40  ;;  %v13679_v52 = vrot.slane %v11203_v16, 2 }
 0x2c2   : > { %v4688_v51 = vsel %vm1322_vm0, %v4685_v59, %v4687_v10  ;;  %v4690_v27 = vsel %vm1322_vm0, %v4687_v10, %v4689_v34  ;;  %v2659_v5 = vadd.f32 %v2547_v47, %v2412_v50  ;;  %v11229_v11 = vmul.f32 %v10872_v45, %v655_v55 }
 0x2c3   : > { %v4960_v19 = vadd.f32 %v4688_v51, %v4272_v37  ;;  %v4961_v46 = vadd.f32 %v4690_v27, %v4273_v17  ;;  %v1469_v40 = vsel %vm1322_vm0, %v1466_v61, %v1468_v23  ;;  %v3080_v60 = vsel %vm1322_vm0, %v3077_v2, %v3079_v39 }
 0x2c4   : > { %v5371_v59 = vsel %vm2006_vm1, %v5368_v41, %v5370_v56  ;;  %v1731_v7 = vadd.f32 %v1467_v26, %v11027_v18  ;;  %v5373_v49 = vsel %vm2006_vm1, %v5370_v56, %v5372_v33  ;;  %v11245_v12 = vmul.f32 %v10764_v14, %v670_v21 }
 0x2c5   : > { %v5643_v37 = vadd.f32 %v5371_v59, %v4960_v19  ;;  %v11248_v61 = vmul.f32 %v10772_v57, %v670_v21  ;;  %v931_v22 = vmul.f32 %v10780_v53, %v655_v55  ;;  %v5644_v50 = vadd.f32 %v5373_v49, %v4961_v46  ;;  %v665_v46 = vpop.permute.xlu0 %664 }
 0x2c6   : > { %v13844_v41 = vrot.slane %v11011_v63, 2  ;;  %v11257_v4 = vmul.f32 %v10850_v58, %v670_v21  ;;  %v3078_v56 = vsel %vm1322_vm0, %v3075_v29, %v3077_v2  ;;  %v13680_v47 = vrot.slane %v11229_v11, 2 }
 0x2c7   : > { %v5762_v17 = vadd.f32 %v11152_v32, %v5643_v37  ;;  %v11264_v55 = vadd.f32 %v1469_v40, %v931_v22  ;;  %v11266_v26 = vadd.f32 %v3080_v60, %v2659_v5  ;;  %v11269_v51 = vmul.f32 %v10780_v53, %v670_v21 }
 0x2c8   : > { %v2151_v18 = vsel %vm2006_vm1, %v13844_v41, %v13679_v52  ;;  %v11272_v27 = vmul.f32 %v11047_v25, %v670_v21  ;;  %v1472_v28 = vrot.slane %v11245_v12, 1  ;;  %v2550_v2 = vmul.f32 %v10811_v30, %v670_v21 }
 0x2c9   : > { %v2415_v10 = vadd.f32 %v2151_v18, %v1731_v7  ;;  %v5874_v19 = vmax.f32 %v5762_v17, 0.0  ;;  %v11278_v40 = vadd.f32 %v11152_v32, %v5644_v50  ;;  %v3083_v5 = vrot.slane %v11257_v4, 1 }
 0x2ca   : > { %v3346_v60 = vadd.f32 %v3078_v56, %v11056_v0  ;;  %v13845_v59 = vrot.slane %v11042_v13, 2  ;;  %v11290_v22 = vmul.f32 %v10872_v45, %v670_v21  ;;  %v4164_v18 = vmul.f32 %v11094_v35, %v670_v21 }
 0x2cb   : > { %v6947_v49 = vpack.c.bf16 %v5874_v19, %v5873_v43  ;;  %v11287_v37 = vadd.f32 %v2550_v2, %v2415_v10  ;;  %v4693_v42 = vrot.slane %v11272_v27, 1  ;;  %v11303_v43 = vmul.f32 %v11072_v9, %v670_v21 }
 0x2cc   : > { %v3759_v7 = vsel %vm2006_vm1, %v3756_v48, %v13845_v59  ;;  %v13846_v50 = vmov %v13845_v59  ;;  %v1170_v48 = vmul.f32 %v10764_v14, %v665_v46  ;;  %v13847_v56 = vrot.slane %v11011_v63, 2 }
 0x2cd   : > { %v4028_v41 = vadd.f32 %v3759_v7, %v11157_v54  ;;  %v3761_v0 = vsel %vm2006_vm1, %v13846_v50, %v13680_v47  ;;  %7099 = vst [vmem:[%s7696_s15 + $0xf8] sm:$0xff] %v6947_v49   ;;  %v13848_v54 = vrot.slane %v11089_v62, 2  ;;  %v2786_v13 = vmul.f32 %v10850_v58, %v665_v46 }
 0x2ce   : > { %v4163_v10 = vmul.f32 %v11094_v35, %v665_v46  ;;  %v1470_v19 = vrot.slane %v1170_v48, 1  ;;  %v11313_v2 = vmul.f32 %v10772_v57, %v665_v46  ;;  %v4400_v59 = vmul.f32 %v11047_v25, %v665_v46 }
 0x2cf   : > { %v2149_v17 = vsel %vm2006_vm1, %v13848_v54, %v13847_v56  ;;  %v5083_v7 = vmul.f32 %v11072_v9, %v665_v46  ;;  %v5875_v21 = vmax.f32 %v11278_v40, 0.0  ;;  %v2549_v62 = vmul.f32 %v10811_v30, %v665_v46 }
 0x2d0   : > { %v2414_v63 = vadd.f32 %v2149_v17, %v11155_v24  ;;  %v4275_v49 = vadd.f32 %v4163_v10, %v4028_v41  ;;  %v3766_v50 = vrot.slane %v11290_v22, 2  ;;  %v3081_v56 = vrot.slane %v2786_v13, 1 }
 0x2d1   : > { %v4691_v54 = vrot.slane %v4400_v59, 1  ;;  %v5374_v29 = vrot.slane %v5083_v7, 2  ;;  %v4029_v48 = vadd.f32 %v3761_v0, %v3346_v60  ;;  %v5376_v52 = vrot.slane %v11303_v43, 2  ;;  %v680_v0 = vpop.permute.xlu1 %679 }
 0x2d2   : > { %v933_v47 = vmul.f32 %v10780_v53, %v665_v46  ;;  %v1471_v3 = vsel %vm1322_vm0, %v1468_v23, %v1470_v19  ;;  %v13681_v40 = vrot.slane %v11313_v2, 2  ;;  %v11328_v24 = vmul.f32 %v10872_v45, %v665_v46 }
 0x2d3   : > { %v4692_v41 = vsel %vm1322_vm0, %v4689_v34, %v4691_v54  ;;  %v4694_v60 = vsel %vm1322_vm0, %v4691_v54, %v4693_v42  ;;  %v1473_v20 = vsel %vm1322_vm0, %v1470_v19, %v1472_v28  ;;  %v2661_v17 = vadd.f32 %v2549_v62, %v2414_v63 }
 0x2d4   : > { %v4962_v23 = vadd.f32 %v4692_v41, %v11219_v15  ;;  %v4963_v13 = vadd.f32 %v4694_v60, %v4275_v49  ;;  %v3082_v46 = vsel %vm1322_vm0, %v3079_v39, %v3081_v56  ;;  %v3084_v8 = vsel %vm1322_vm0, %v3081_v56, %v3083_v5 }
 0x2d5   : > { %v5375_v34 = vsel %vm2006_vm1, %v5372_v33, %v5374_v29  ;;  %v1733_v10 = vadd.f32 %v1471_v3, %v11160_v38  ;;  %v5377_v19 = vsel %vm2006_vm1, %v5374_v29, %v5376_v52  ;;  %v11354_v59 = vmul.f32 %v10764_v14, %v680_v0 }
 0x2d6   : > { %v5645_v15 = vadd.f32 %v5375_v34, %v4962_v23  ;;  %v11357_v31 = vmul.f32 %v10772_v57, %v680_v0  ;;  %v13682_v39 = vrot.slane %v11328_v24, 2  ;;  %v5646_v7 = vadd.f32 %v5377_v19, %v4963_v13  ;;  %v675_v13 = vpop.permute.xlu0 %674 }
 0x2d7   : > { %v13849_v6 = vrot.slane %v11139_v36, 2  ;;  %v11366_v3 = vmul.f32 %v10850_v58, %v680_v0  ;;  %v4276_v33 = vadd.f32 %v4164_v18, %v4029_v48  ;;  %v11370_v62 = vmul.f32 %v10872_v45, %v680_v0 }
 0x2d8   : > { %v5764_v29 = vadd.f32 %v11152_v32, %v5645_v15  ;;  %v11372_v49 = vadd.f32 %v1473_v20, %v933_v47  ;;  %v11374_v56 = vadd.f32 %v3084_v8, %v2661_v17  ;;  %v11377_v54 = vmul.f32 %v10780_v53, %v680_v0 }
 0x2d9   : > { %v2155_v38 = vsel %vm2006_vm1, %v13849_v6, %v13681_v40  ;;  %v3348_v41 = vadd.f32 %v3082_v46, %v11178_v44  ;;  %v1476_v23 = vrot.slane %v11354_v59, 1  ;;  %v2552_v48 = vmul.f32 %v10811_v30, %v680_v0 }
 0x2da   : > { %v2417_v63 = vadd.f32 %v2155_v38, %v1733_v10  ;;  %v5876_v60 = vmax.f32 %v5764_v29, 0.0  ;;  %v11384_v34 = vadd.f32 %v11152_v32, %v5646_v7  ;;  %v3087_v47 = vrot.slane %v11366_v3, 1 }
 0x2db   : > { %v13850_v20 = vrot.slane %v11173_v1, 2  ;;  %v11393_v17 = vmul.f32 %v11047_v25, %v680_v0  ;;  %v13852_v15 = vrot.slane %v11229_v11, 2  ;;  %v11404_v38 = vmul.f32 %v11072_v9, %v680_v0 }
 0x2dc   : > { %v6952_v46 = vpack.c.bf16 %v5876_v60, %v5875_v21  ;;  %v11395_v8 = vadd.f32 %v2552_v48, %v2417_v63  ;;  %v11410_v21 = vmul.f32 %v10772_v57, %v675_v13  ;;  %v2788_v63 = vmul.f32 %v10850_v58, %v675_v13 }
 0x2dd   : > { %v3765_v44 = vsel %vm2006_vm1, %v13850_v20, %v13682_v39  ;;  %v13851_v19 = vmov %v13850_v20  ;;  %v1172_v20 = vmul.f32 %v10764_v14, %v675_v13  ;;  %v4165_v1 = vmul.f32 %v11094_v35, %v675_v13 }
 0x2de   : > { %v3763_v7 = vsel %vm2006_vm1, %v13852_v15, %v13851_v19  ;;  %v4031_v6 = vadd.f32 %v3765_v44, %v3348_v41  ;;  %7100 = vst [vmem:[%s7696_s15 + $0x100] sm:$0xff] %v6952_v46   ;;  %v4402_v11 = vmul.f32 %v11047_v25, %v675_v13  ;;  %v4166_v60 = vmul.f32 %v11094_v35, %v680_v0 }
 0x2df   : > { %v4030_v29 = vadd.f32 %v3763_v7, %v11266_v26  ;;  %v4697_v41 = vrot.slane %v11393_v17, 1  ;;  %v1474_v48 = vrot.slane %v1172_v20, 1  ;;  %v5085_v44 = vmul.f32 %v11072_v9, %v675_v13 }
 0x2e0   : > { %v5877_v26 = vmax.f32 %v11384_v34, 0.0  ;;  %v13853_v46 = vrot.slane %v11139_v36, 2  ;;  %v13854_v19 = vrot.slane %v11203_v16, 2  ;;  %v4695_v10 = vrot.slane %v4402_v11, 1 }
 0x2e1   : > { %v4277_v7 = vadd.f32 %v4165_v1, %v4030_v29  ;;  %v1475_v0 = vsel %vm1322_vm0, %v1472_v28, %v1474_v48  ;;  %v2551_v20 = vmul.f32 %v10811_v30, %v675_v13  ;;  %v5378_v40 = vrot.slane %v5085_v44, 2  ;;  %v690_v29 = vpop.permute.xlu1 %689 }
 0x2e2   : > { %v2153_v15 = vsel %vm2006_vm1, %v13854_v19, %v13853_v46  ;;  %v5380_v39 = vrot.slane %v11404_v38, 2  ;;  %v13683_v34 = vrot.slane %v11410_v21, 2  ;;  %v3085_v36 = vrot.slane %v2788_v63, 1 }
 0x2e3   : > { %v2416_v18 = vadd.f32 %v2153_v15, %v11264_v55  ;;  %v4696_v16 = vsel %vm1322_vm0, %v4693_v42, %v4695_v10  ;;  %v11434_v1 = vadd.f32 %v4166_v60, %v4031_v6  ;;  %v935_v55 = vmul.f32 %v10780_v53, %v675_v13 }
 0x2e4   : > { %v4698_v12 = vsel %vm1322_vm0, %v4695_v10, %v4697_v41  ;;  %v4964_v28 = vadd.f32 %v4696_v16, %v4276_v33  ;;  %v11441_v11 = vmul.f32 %v10872_v45, %v675_v13  ;;  %v5379_v27 = vsel %vm2006_vm1, %v5376_v52, %v5378_v40 }
 0x2e5   : > { %v4965_v44 = vadd.f32 %v4698_v12, %v4277_v7  ;;  %v1735_v42 = vadd.f32 %v1475_v0, %v11269_v51  ;;  %v1477_v6 = vsel %vm1322_vm0, %v1474_v48, %v1476_v23  ;;  %v2663_v63 = vadd.f32 %v2551_v20, %v2416_v18 }
 0x2e6   : > { %v5647_v60 = vadd.f32 %v5379_v27, %v4964_v28  ;;  %v11451_v46 = vmul.f32 %v10764_v14, %v690_v29  ;;  %v3088_v33 = vsel %vm1322_vm0, %v3085_v36, %v3087_v47  ;;  %v5381_v43 = vsel %vm2006_vm1, %v5378_v40, %v5380_v39 }
 0x2e7   : > { %v11460_v52 = vmul.f32 %v10772_v57, %v690_v29  ;;  %v13855_v51 = vrot.slane %v11248_v61, 2  ;;  %v3086_v13 = vsel %vm1322_vm0, %v3083_v5, %v3085_v36  ;;  %v5648_v10 = vadd.f32 %v5381_v43, %v4965_v44  ;;  %v685_v44 = vpop.permute.xlu0 %684 }
 0x2e8   : > { %v5766_v48 = vadd.f32 %v11152_v32, %v5647_v60  ;;  %v11471_v15 = vadd.f32 %v1477_v6, %v935_v55  ;;  %v13684_v40 = vrot.slane %v11441_v11, 2  ;;  %v11475_v7 = vmul.f32 %v10780_v53, %v690_v29 }
 0x2e9   : > { %v2159_v18 = vsel %vm2006_vm1, %v13855_v51, %v13683_v34  ;;  %v11478_v0 = vmul.f32 %v10850_v58, %v690_v29  ;;  %v11480_v20 = vadd.f32 %v3088_v33, %v2663_v63  ;;  %v1480_v4 = vrot.slane %v11451_v46, 1 }
 0x2ea   : > { %v2419_v19 = vadd.f32 %v2159_v18, %v1735_v42  ;;  %v5878_v16 = vmax.f32 %v5766_v48, 0.0  ;;  %v2554_v5 = vmul.f32 %v10811_v30, %v690_v29  ;;  %v3350_v55 = vadd.f32 %v3086_v13, %v11287_v37 }
 0x2eb   : > { %v11487_v12 = vmul.f32 %v10872_v45, %v690_v29  ;;  %v11490_v28 = vmul.f32 %v11047_v25, %v690_v29  ;;  %v11493_v27 = vadd.f32 %v11152_v32, %v5648_v10  ;;  %v13856_v63 = vrot.slane %v11328_v24, 2 }
 0x2ec   : > { %v6957_v42 = vpack.c.bf16 %v5878_v16, %v5877_v26  ;;  %v11495_v6 = vadd.f32 %v2554_v5, %v2419_v19  ;;  %v3091_v37 = vrot.slane %v11478_v0, 1  ;;  %v3769_v33 = vsel %vm2006_vm1, %v3766_v50, %v13684_v40 }
 0x2ed   : > { %v3767_v60 = vsel %vm2006_vm1, %v13856_v63, %v3766_v50  ;;  %v11509_v43 = vmul.f32 %v11072_v9, %v690_v29  ;;  %v4701_v51 = vrot.slane %v11490_v28, 1  ;;  %v13857_v24 = vrot.slane %v11248_v61, 2 }
 0x2ee   : > { %v4032_v26 = vadd.f32 %v3767_v60, %v11374_v56  ;;  %7101 = vst [vmem:[%s7696_s15 + $0x108] sm:$0xff] %v6957_v42   ;;  %v13858_v18 = vrot.slane %v11313_v2, 2  ;;  %v1174_v10 = vmul.f32 %v10764_v14, %v685_v44  ;;  %v2790_v22 = vmul.f32 %v10850_v58, %v685_v44 }
 0x2ef   : > { %v11522_v50 = vmul.f32 %v10772_v57, %v685_v44  ;;  %v4167_v48 = vmul.f32 %v11094_v35, %v685_v44  ;;  %v4404_v56 = vmul.f32 %v11047_v25, %v685_v44  ;;  %v5087_v19 = vmul.f32 %v11072_v9, %v685_v44 }
 0x2f0   : > { %v2157_v13 = vsel %vm2006_vm1, %v13858_v18, %v13857_v24  ;;  %v1478_v2 = vrot.slane %v1174_v10, 1  ;;  %v2553_v5 = vmul.f32 %v10811_v30, %v685_v44  ;;  %v3089_v42 = vrot.slane %v2790_v22, 1 }
 0x2f1   : > { %v2418_v61 = vadd.f32 %v2157_v13, %v11372_v49  ;;  %v4279_v63 = vadd.f32 %v4167_v48, %v4032_v26  ;;  %v4699_v60 = vrot.slane %v4404_v56, 1  ;;  %v5382_v24 = vrot.slane %v5087_v19, 2 }
 0x2f2   : > { %v4033_v18 = vadd.f32 %v3769_v33, %v3350_v55  ;;  %v4168_v36 = vmul.f32 %v11094_v35, %v690_v29  ;;  %v5384_v34 = vrot.slane %v11509_v43, 2  ;;  %v1479_v40 = vsel %vm1322_vm0, %v1476_v23, %v1478_v2  ;;  %v700_v29 = vpop.permute.xlu1 %699  ;;  %v11677_v43 = vld [vmem:[%s13632_s1 + $0x2] ss:$0 sm:$0xff] }
 0x2f3   : > { %v2162_v16 = vrot.slane %v11522_v50, 2  ;;  %v11537_v49 = vmul.f32 %v10872_v45, %v685_v44  ;;  %v4700_v26 = vsel %vm1322_vm0, %v4697_v41, %v4699_v60  ;;  %v4702_v55 = vsel %vm1322_vm0, %v4699_v60, %v4701_v51 }
 0x2f4   : > { %v1481_v59 = vsel %vm1322_vm0, %v1478_v2, %v1480_v4  ;;  %v2665_v33 = vadd.f32 %v2553_v5, %v2418_v61  ;;  %v4966_v23 = vadd.f32 %v4700_v26, %v11434_v1  ;;  %v4967_v13 = vadd.f32 %v4702_v55, %v4279_v63  ;;  %v695_v26 = vpop.permute.xlu0 %694 }
 0x2f5   : > { %v3090_v10 = vsel %vm1322_vm0, %v3087_v47, %v3089_v42  ;;  %v3092_v17 = vsel %vm1322_vm0, %v3089_v42, %v3091_v37  ;;  %v5383_v41 = vsel %vm2006_vm1, %v5380_v39, %v5382_v24  ;;  %v1737_v22 = vadd.f32 %v1479_v40, %v11377_v54 }
 0x2f6   : > { %v5385_v48 = vsel %vm2006_vm1, %v5382_v24, %v5384_v34  ;;  %v5649_v1 = vadd.f32 %v5383_v41, %v4966_v23  ;;  %v11563_v56 = vmul.f32 %v10764_v14, %v700_v29  ;;  %v11566_v3 = vmul.f32 %v10772_v57, %v700_v29 }
 0x2f7   : > { %v5879_v47 = vmax.f32 %v11493_v27, 0.0  ;;  %v937_v19 = vmul.f32 %v10780_v53, %v685_v44  ;;  %v5650_v38 = vadd.f32 %v5385_v48, %v4967_v13  ;;  %v13859_v39 = vrot.slane %v11357_v31, 2 }
 0x2f8   : > { %v4280_v40 = vadd.f32 %v4168_v36, %v4033_v18  ;;  %v3772_v61 = vrot.slane %v11537_v49, 2  ;;  %v5768_v2 = vadd.f32 %v11152_v32, %v5649_v1  ;;  %v11579_v63 = vadd.f32 %v3092_v17, %v2665_v33 }
 0x2f9   : > { %v2163_v54 = vsel %vm2006_vm1, %v13859_v39, %v2162_v16  ;;  %v11577_v42 = vadd.f32 %v1481_v59, %v937_v19  ;;  %v11582_v27 = vmul.f32 %v10780_v53, %v700_v29  ;;  %v3352_v44 = vadd.f32 %v3090_v10, %v11395_v8 }
 0x2fa   : > { %v2421_v5 = vadd.f32 %v2163_v54, %v1737_v22  ;;  %v5880_v60 = vmax.f32 %v5768_v2, 0.0  ;;  %v1484_v24 = vrot.slane %v11563_v56, 1  ;;  %v2168_v36 = vrot.slane %v11566_v3, 2 }
 0x2fb   : > { %v2556_v18 = vmul.f32 %v10811_v30, %v700_v29  ;;  %v11589_v55 = vadd.f32 %v11152_v32, %v5650_v38  ;;  %v11592_v59 = vmul.f32 %v10850_v58, %v700_v29  ;;  %v11595_v53 = vmul.f32 %v10872_v45, %v700_v29 }
 0x2fc   : > { %v11598_v8 = vmul.f32 %v11047_v25, %v700_v29  ;;  %v6962_v33 = vpack.c.bf16 %v5880_v60, %v5879_v47  ;;  %v13860_v13 = vrot.slane %v11370_v62, 2  ;;  %v13862_v41 = vrot.slane %v11441_v11, 2 }
 0x2fd   : > { %v11600_v23 = vadd.f32 %v2556_v18, %v2421_v5  ;;  %v11613_v1 = vmul.f32 %v11072_v9, %v700_v29  ;;  %v1176_v19 = vmul.f32 %v10764_v14, %v695_v26  ;;  %v13863_v54 = vrot.slane %v11410_v21, 2 }
 0x2fe   : > { %v3773_v10 = vsel %vm2006_vm1, %v13860_v13, %v3772_v61  ;;  %v13861_v17 = vmov %v13860_v13  ;;  %7102 = vst [vmem:[%s7696_s15 + $0x110] sm:$0xff] %v6962_v33   ;;  %v4705_v38 = vrot.slane %v11598_v8, 1  ;;  %v11625_v11 = vmul.f32 %v10772_v57, %v695_v26 }
 0x2ff   : > { %v3771_v22 = vsel %vm2006_vm1, %v13862_v41, %v13861_v17  ;;  %v4035_v48 = vadd.f32 %v3773_v10, %v3352_v44  ;;  %v2161_v62 = vsel %vm2006_vm1, %v13863_v54, %v13859_v39  ;;  %v2792_v2 = vmul.f32 %v10850_v58, %v695_v26 }
 0x300   : > { %v4034_v47 = vadd.f32 %v3771_v22, %v11480_v20  ;;  %v1482_v5 = vrot.slane %v1176_v19, 1  ;;  %v4169_v44 = vmul.f32 %v11094_v35, %v695_v26  ;;  %v4406_v20 = vmul.f32 %v11047_v25, %v695_v26 }
 0x301   : > { %v5089_v14 = vmul.f32 %v11072_v9, %v695_v26  ;;  %v3095_v60 = vrot.slane %v11592_v59, 1  ;;  %v4170_v31 = vmul.f32 %v11094_v35, %v700_v29  ;;  %v2420_v21 = vadd.f32 %v2161_v62, %v11471_v15 }
 0x302   : > { %v2555_v18 = vmul.f32 %v10811_v30, %v695_v26  ;;  %v5881_v57 = vmax.f32 %v11589_v55, 0.0  ;;  %v3093_v33 = vrot.slane %v2792_v2, 1  ;;  %v4281_v13 = vadd.f32 %v4169_v44, %v4034_v47  ;;  %v710_v55 = vpop.permute.xlu1 %709  ;;  %v11669_v44 = vld [vmem:[%s13632_s1 + $0x1] ss:$0 sm:$0xff] }
 0x303   : > { %v4703_v10 = vrot.slane %v4406_v20, 1  ;;  %v5388_v41 = vrot.slane %v11613_v1, 2  ;;  %v1483_v22 = vsel %vm1322_vm0, %v1480_v4, %v1482_v5  ;;  %v5386_v19 = vrot.slane %v5089_v14, 2 }
 0x304   : > { %v11641_v39 = vadd.f32 %v4170_v31, %v4035_v48  ;;  %v13685_v15 = vrot.slane %v11625_v11, 2  ;;  %v2667_v47 = vadd.f32 %v2555_v18, %v2420_v21  ;;  %v11651_v54 = vmul.f32 %v10872_v45, %v695_v26 }
 0x305   : > { %v4704_v30 = vsel %vm1322_vm0, %v4701_v51, %v4703_v10  ;;  %v4706_v29 = vsel %vm1322_vm0, %v4703_v10, %v4705_v38  ;;  %v1485_v48 = vsel %vm1322_vm0, %v1482_v5, %v1484_v24  ;;  %v3096_v28 = vsel %vm1322_vm0, %v3093_v33, %v3095_v60 }
 0x306   : > { %v4968_v46 = vadd.f32 %v4704_v30, %v4280_v40  ;;  %v4969_v4 = vadd.f32 %v4706_v29, %v4281_v13  ;;  %v5387_v51 = vsel %vm2006_vm1, %v5384_v34, %v5386_v19  ;;  %v1739_v62 = vadd.f32 %v1483_v22, %v11475_v7  ;;  %v11685_v7 = vld [vmem:[%s13632_s1] ss:$0 sm:$0xff] }
 0x307   : > { %v5389_v2 = vsel %vm2006_vm1, %v5386_v19, %v5388_v41  ;;  %v11672_v5 = vmul.f32 %v11669_v44, %v710_v55  ;;  %v11680_v34 = vmul.f32 %v11677_v43, %v710_v55  ;;  %v939_v20 = vmul.f32 %v11685_v7, %v695_v26 }
 0x308   : > { %v5651_v40 = vadd.f32 %v5387_v51, %v4968_v46  ;;  %v5652_v14 = vadd.f32 %v5389_v2, %v4969_v4  ;;  %v13864_v31 = vrot.slane %v11460_v52, 2  ;;  %v11694_v18 = vmul.f32 %v10850_v58, %v710_v55  ;;  %v705_v4 = vpop.permute.xlu0 %704 }
 0x309   : > { %v3094_v13 = vsel %vm1322_vm0, %v3091_v37, %v3093_v33  ;;  %v13686_v10 = vrot.slane %v11651_v54, 2  ;;  %v11701_v26 = vadd.f32 %v1485_v48, %v939_v20  ;;  %v11703_v30 = vadd.f32 %v3096_v28, %v2667_v47  ;;  %v11716_v33 = vld [vmem:[%s13632_s1 + $0x3] ss:$0 sm:$0xff] }
 0x30a   : > { %v2167_v21 = vsel %vm2006_vm1, %v13864_v31, %v13685_v15  ;;  %v5770_v22 = vadd.f32 %v11152_v32, %v5651_v40  ;;  %v11706_v29 = vmul.f32 %v11685_v7, %v710_v55  ;;  %v11709_v46 = vmul.f32 %v11047_v25, %v710_v55 }
 0x30b   : > { %v2423_v19 = vadd.f32 %v2167_v21, %v1739_v62  ;;  %v1488_v0 = vrot.slane %v11672_v5, 1  ;;  %v2558_v47 = vmul.f32 %v11716_v33, %v710_v55  ;;  %v11720_v48 = vadd.f32 %v11152_v32, %v5652_v14 }
 0x30c   : > { %v5882_v58 = vmax.f32 %v5770_v22, 0.0  ;;  %v3099_v28 = vrot.slane %v11694_v18, 1  ;;  %v3354_v51 = vadd.f32 %v3094_v13, %v11495_v6  ;;  %v13865_v62 = vrot.slane %v11487_v12, 2  ;;  %v11755_v12 = vld [vmem:[%s13632_s1 + $0x4] ss:$0 sm:$0xff] }
 0x30d   : > { %v11729_v20 = vadd.f32 %v2558_v47, %v2423_v19  ;;  %v11732_v31 = vmul.f32 %v10872_v45, %v710_v55  ;;  %v4172_v13 = vmul.f32 %v11094_v35, %v710_v55  ;;  %v4709_v49 = vrot.slane %v11709_v46, 1 }
 0x30e   : > { %v3775_v2 = vsel %vm2006_vm1, %v3772_v61, %v13865_v62  ;;  %v6967_v40 = vpack.c.bf16 %v5882_v58, %v5881_v57  ;;  %v13866_v14 = vmov %v13865_v62  ;;  %v1178_v61 = vmul.f32 %v11669_v44, %v705_v4 }
 0x30f   : > { %v4036_v21 = vadd.f32 %v3775_v2, %v11579_v63  ;;  %v3777_v6 = vsel %vm2006_vm1, %v13866_v14, %v13686_v10  ;;  %v11745_v57 = vmul.f32 %v11072_v9, %v710_v55  ;;  %v13867_v45 = vrot.slane %v11460_v52, 2 }
 0x310   : > { %7103 = vst [vmem:[%s7696_s15 + $0x118] sm:$0xff] %v6967_v40   ;;  %v2794_v22 = vmul.f32 %v11755_v12, %v705_v4  ;;  %v4171_v19 = vmul.f32 %v11094_v35, %v705_v4  ;;  %v1486_v58 = vrot.slane %v1178_v61, 1  ;;  %v11760_v47 = vmul.f32 %v11677_v43, %v705_v4 }
 0x311   : > { %v2165_v63 = vsel %vm2006_vm1, %v2162_v16, %v13867_v45  ;;  %v4408_v55 = vmul.f32 %v11047_v25, %v705_v4  ;;  %v5091_v52 = vmul.f32 %v11072_v9, %v705_v4  ;;  %v5883_v50 = vmax.f32 %v11720_v48, 0.0 }
 0x312   : > { %v2422_v16 = vadd.f32 %v2165_v63, %v11577_v42  ;;  %v2557_v62 = vmul.f32 %v11716_v33, %v705_v4  ;;  %v4283_v2 = vadd.f32 %v4171_v19, %v4036_v21  ;;  %v3782_v40 = vrot.slane %v11732_v31, 2  ;;  %v11777_v42 = vld [vmem:[%s13632_s1 + $0x5] ss:$0 sm:$0xff] }
 0x313   : > { %v3097_v14 = vrot.slane %v2794_v22, 1  ;;  %v4707_v45 = vrot.slane %v4408_v55, 1  ;;  %v5390_v37 = vrot.slane %v5091_v52, 2  ;;  %v4037_v61 = vadd.f32 %v3777_v6, %v3354_v51  ;;  %v720_v6 = vpop.permute.xlu1 %719 }
 0x314   : > { %v5392_v15 = vrot.slane %v11745_v57, 2  ;;  %v941_v10 = vmul.f32 %v11685_v7, %v705_v4  ;;  %v1487_v17 = vsel %vm1322_vm0, %v1484_v24, %v1486_v58  ;;  %v2170_v48 = vrot.slane %v11760_v47, 2 }
 0x315   : > { %v11780_v21 = vmul.f32 %v11777_v42, %v705_v4  ;;  %v4708_v51 = vsel %vm1322_vm0, %v4705_v38, %v4707_v45  ;;  %v4710_v56 = vsel %vm1322_vm0, %v4707_v45, %v4709_v49  ;;  %v1489_v24 = vsel %vm1322_vm0, %v1486_v58, %v1488_v0 }
 0x316   : > { %v2669_v63 = vadd.f32 %v2557_v62, %v2422_v16  ;;  %v4970_v22 = vadd.f32 %v4708_v51, %v11641_v39  ;;  %v4971_v19 = vadd.f32 %v4710_v56, %v4283_v2  ;;  %v3098_v4 = vsel %vm1322_vm0, %v3095_v60, %v3097_v14 }
 0x317   : > { %v3100_v8 = vsel %vm1322_vm0, %v3097_v14, %v3099_v28  ;;  %v5391_v38 = vsel %vm2006_vm1, %v5388_v41, %v5390_v37  ;;  %v1741_v55 = vadd.f32 %v1487_v17, %v11582_v27  ;;  %v5393_v58 = vsel %vm2006_vm1, %v5390_v37, %v5392_v15 }
 0x318   : > { %v5653_v39 = vadd.f32 %v5391_v38, %v4970_v22  ;;  %v11806_v52 = vmul.f32 %v11669_v44, %v720_v6  ;;  %v11809_v59 = vmul.f32 %v11677_v43, %v720_v6  ;;  %v3780_v60 = vrot.slane %v11780_v21, 2 }
 0x319   : > { %v5654_v16 = vadd.f32 %v5393_v58, %v4971_v19  ;;  %v2171_v27 = vsel %vm2006_vm1, %v2168_v36, %v2170_v48  ;;  %v11818_v1 = vmul.f32 %v11755_v12, %v720_v6  ;;  %v4284_v17 = vadd.f32 %v4172_v13, %v4037_v61  ;;  %v715_v19 = vpop.permute.xlu0 %714 }
 0x31a   : > { %v5772_v41 = vadd.f32 %v11152_v32, %v5653_v39  ;;  %v2425_v37 = vadd.f32 %v2171_v27, %v1741_v55  ;;  %v11822_v62 = vmul.f32 %v11777_v42, %v720_v6  ;;  %v11824_v2 = vadd.f32 %v1489_v24, %v941_v10 }
 0x31b   : > { %v11826_v14 = vadd.f32 %v3100_v8, %v2669_v63  ;;  %v11829_v45 = vmul.f32 %v11685_v7, %v720_v6  ;;  %v3356_v51 = vadd.f32 %v3098_v4, %v11600_v23  ;;  %v1492_v22 = vrot.slane %v11806_v52, 1 }
 0x31c   : > { %v5884_v56 = vmax.f32 %v5772_v41, 0.0  ;;  %v2560_v61 = vmul.f32 %v11716_v33, %v720_v6  ;;  %v11836_v38 = vadd.f32 %v11152_v32, %v5654_v16  ;;  %v3103_v10 = vrot.slane %v11818_v1, 1 }
 0x31d   : > { %v13868_v24 = vrot.slane %v11595_v53, 2  ;;  %v11845_v63 = vmul.f32 %v11047_v25, %v720_v6  ;;  %v13870_v39 = vrot.slane %v11651_v54, 2  ;;  %v11856_v41 = vmul.f32 %v11072_v9, %v720_v6 }
 0x31e   : > { %v6972_v4 = vpack.c.bf16 %v5884_v56, %v5883_v50  ;;  %v11847_v8 = vadd.f32 %v2560_v61, %v2425_v37  ;;  %v1180_v13 = vmul.f32 %v11669_v44, %v715_v19  ;;  %v11862_v50 = vmul.f32 %v11677_v43, %v715_v19 }
 0x31f   : > { %v3781_v23 = vsel %vm2006_vm1, %v13868_v24, %v3780_v60  ;;  %v13869_v58 = vmov %v13868_v24  ;;  %v2796_v37 = vmul.f32 %v11755_v12, %v715_v19  ;;  %v4173_v53 = vmul.f32 %v11094_v35, %v715_v19 }
 0x320   : > { %v3779_v16 = vsel %vm2006_vm1, %v13870_v39, %v13869_v58  ;;  %v4039_v27 = vadd.f32 %v3781_v23, %v3356_v51  ;;  %7104 = vst [vmem:[%s7696_s15 + $0x120] sm:$0xff] %v6972_v4   ;;  %v4410_v54 = vmul.f32 %v11047_v25, %v715_v19  ;;  %v4174_v56 = vmul.f32 %v11094_v35, %v720_v6 }
 0x321   : > { %v4038_v24 = vadd.f32 %v3779_v16, %v11703_v30  ;;  %v4713_v51 = vrot.slane %v11845_v63, 1  ;;  %v1490_v61 = vrot.slane %v1180_v13, 1  ;;  %v5093_v23 = vmul.f32 %v11072_v9, %v715_v19 }
 0x322   : > { %v5885_v30 = vmax.f32 %v11836_v38, 0.0  ;;  %v13871_v4 = vrot.slane %v11625_v11, 2  ;;  %v4711_v16 = vrot.slane %v4410_v54, 1  ;;  %v2559_v35 = vmul.f32 %v11716_v33, %v715_v19  ;;  %v11886_v11 = vpop.permute.xlu1 %729 }
 0x323   : > { %v4285_v39 = vadd.f32 %v4173_v53, %v4038_v24  ;;  %v1491_v25 = vsel %vm1322_vm0, %v1488_v0, %v1490_v61  ;;  %v5394_v6 = vrot.slane %v5093_v23, 2  ;;  %v5396_v9 = vrot.slane %v11856_v41, 2 }
 0x324   : > { %v2169_v58 = vsel %vm2006_vm1, %v13871_v4, %v2168_v36  ;;  %v13687_v13 = vrot.slane %v11862_v50, 2  ;;  %v3101_v3 = vrot.slane %v2796_v37, 1  ;;  %v4712_v36 = vsel %vm1322_vm0, %v4709_v49, %v4711_v16 }
 0x325   : > { %v2424_v55 = vadd.f32 %v2169_v58, %v11701_v26  ;;  %v11888_v38 = vadd.f32 %v4174_v56, %v4039_v27  ;;  %v943_v5 = vmul.f32 %v11685_v7, %v715_v19  ;;  %v4714_v26 = vsel %vm1322_vm0, %v4711_v16, %v4713_v51 }
 0x326   : > { %v4972_v0 = vadd.f32 %v4712_v36, %v4284_v17  ;;  %v11895_v24 = vmul.f32 %v11777_v42, %v715_v19  ;;  %v4973_v53 = vadd.f32 %v4714_v26, %v4285_v39  ;;  %v5395_v46 = vsel %vm2006_vm1, %v5392_v15, %v5394_v6  ;;  %v11952_v26 = vld [vmem:[%s13632_s1 + $0x7] ss:$0 sm:$0xff] }
 0x327   : > { %v1743_v49 = vadd.f32 %v1491_v25, %v11706_v29  ;;  %v1493_v27 = vsel %vm1322_vm0, %v1490_v61, %v1492_v22  ;;  %v2671_v37 = vadd.f32 %v2559_v35, %v2424_v55  ;;  %v11906_v56 = vmul.f32 %v11669_v44, %v11886_v11 }
 0x328   : > { %v5655_v54 = vadd.f32 %v5395_v46, %v4972_v0  ;;  %v3104_v17 = vsel %vm1322_vm0, %v3101_v3, %v3103_v10  ;;  %v5397_v15 = vsel %vm2006_vm1, %v5394_v6, %v5396_v9  ;;  %v11916_v29 = vmul.f32 %v11677_v43, %v11886_v11 }
 0x329   : > { %v13872_v57 = vrot.slane %v11680_v34, 2  ;;  %v3102_v55 = vsel %vm1322_vm0, %v3099_v28, %v3101_v3  ;;  %v5656_v61 = vadd.f32 %v5397_v15, %v4973_v53  ;;  %v11927_v58 = vadd.f32 %v1493_v27, %v943_v5  ;;  %v725_v53 = vpop.permute.xlu0 %724 }
 0x32a   : > { %v5774_v23 = vadd.f32 %v11152_v32, %v5655_v54  ;;  %v3784_v39 = vrot.slane %v11895_v24, 2  ;;  %v11932_v16 = vmul.f32 %v11685_v7, %v11886_v11  ;;  %v11936_v25 = vmul.f32 %v11755_v12, %v11886_v11 }
 0x32b   : > { %v2175_v19 = vsel %vm2006_vm1, %v13872_v57, %v13687_v13  ;;  %v11938_v35 = vadd.f32 %v3104_v17, %v2671_v37  ;;  %v1496_v28 = vrot.slane %v11906_v56, 1  ;;  %v2562_v6 = vmul.f32 %v11716_v33, %v11886_v11 }
 0x32c   : > { %v2427_v4 = vadd.f32 %v2175_v19, %v1743_v49  ;;  %v5886_v18 = vmax.f32 %v5774_v23, 0.0  ;;  %v3358_v36 = vadd.f32 %v3102_v55, %v11729_v20  ;;  %v11947_v5 = vmul.f32 %v11777_v42, %v11886_v11 }
 0x32d   : > { %v11956_v0 = vmul.f32 %v11952_v26, %v11886_v11  ;;  %v11959_v46 = vadd.f32 %v11152_v32, %v5656_v61  ;;  %v3783_v20 = vsel %vm2006_vm1, %v3780_v60, %v3782_v40  ;;  %v3107_v37 = vrot.slane %v11936_v25, 1  ;;  %v11977_v32 = vld [vmem:[%s13632_s1 + $0x8] ss:$0 sm:$0xff] }
 0x32e   : > { %v6977_v49 = vpack.c.bf16 %v5886_v18, %v5885_v30  ;;  %v11961_v27 = vadd.f32 %v2562_v6, %v2427_v4  ;;  %v3785_v54 = vsel %vm2006_vm1, %v3782_v40, %v3784_v39  ;;  %v11981_v30 = vmul.f32 %v11977_v32, %v11886_v11 }
 0x32f   : > { %v4040_v21 = vadd.f32 %v3783_v20, %v11826_v14  ;;  %v4717_v60 = vrot.slane %v11956_v0, 1  ;;  %v13873_v17 = vmov %v13872_v57  ;;  %v1182_v40 = vmul.f32 %v11669_v44, %v725_v53  ;;  %v11999_v14 = vld [vmem:[%s13632_s1 + $0x6] ss:$0 sm:$0xff] }
 0x330   : > { %7105 = vst [vmem:[%s7696_s15 + $0x128] sm:$0xff] %v6977_v49   ;;  %v2173_v31 = vsel %vm2006_vm1, %v2170_v48, %v13873_v17  ;;  %v2798_v15 = vmul.f32 %v11755_v12, %v725_v53  ;;  %v11994_v57 = vmul.f32 %v11677_v43, %v725_v53  ;;  %v4175_v19 = vmul.f32 %v11999_v14, %v725_v53 }
 0x331   : > { %v4412_v34 = vmul.f32 %v11952_v26, %v725_v53  ;;  %v5095_v47 = vmul.f32 %v11977_v32, %v725_v53  ;;  %v2426_v55 = vadd.f32 %v2173_v31, %v11824_v2  ;;  %v1494_v61 = vrot.slane %v1182_v40, 1 }
 0x332   : > { %v2561_v23 = vmul.f32 %v11716_v33, %v725_v53  ;;  %v3105_v4 = vrot.slane %v2798_v15, 1  ;;  %v4287_v18 = vadd.f32 %v4175_v19, %v4040_v21  ;;  %v4041_v20 = vadd.f32 %v3785_v54, %v3358_v36 }
 0x333   : > { %v4715_v6 = vrot.slane %v4412_v34, 1  ;;  %v5398_v49 = vrot.slane %v5095_v47, 2  ;;  %v4176_v17 = vmul.f32 %v11999_v14, %v11886_v11  ;;  %v5400_v3 = vrot.slane %v11981_v30, 2  ;;  %v740_v11 = vpop.permute.xlu1 %739 }
 0x334   : > { %v1495_v13 = vsel %vm1322_vm0, %v1492_v22, %v1494_v61  ;;  %v13688_v48 = vrot.slane %v11994_v57, 2  ;;  %v12015_v2 = vmul.f32 %v11777_v42, %v725_v53  ;;  %v1497_v52 = vsel %vm1322_vm0, %v1494_v61, %v1496_v28  ;;  %v12057_v61 = vld [vmem:[%s13633_s2] ss:$0 sm:$0xff] }
 0x335   : > { %v4716_v21 = vsel %vm1322_vm0, %v4713_v51, %v4715_v6  ;;  %v4718_v36 = vsel %vm1322_vm0, %v4715_v6, %v4717_v60  ;;  %v2673_v54 = vadd.f32 %v2561_v23, %v2426_v55  ;;  %v3106_v40 = vsel %vm1322_vm0, %v3103_v10, %v3105_v4 }
 0x336   : > { %v4974_v22 = vadd.f32 %v4716_v21, %v11888_v38  ;;  %v4975_v31 = vadd.f32 %v4718_v36, %v4287_v18  ;;  %v3108_v63 = vsel %vm1322_vm0, %v3105_v4, %v3107_v37  ;;  %v5399_v51 = vsel %vm2006_vm1, %v5396_v9, %v5398_v49  ;;  %v735_v36 = vpop.permute.xlu0 %734 }
 0x337   : > { %v1745_v15 = vadd.f32 %v1495_v13, %v11829_v45  ;;  %v5401_v19 = vsel %vm2006_vm1, %v5398_v49, %v5400_v3  ;;  %v12041_v34 = vmul.f32 %v11669_v44, %v740_v11  ;;  %v12044_v1 = vmul.f32 %v11677_v43, %v740_v11 }
 0x338   : > { %v5657_v38 = vadd.f32 %v5399_v51, %v4974_v22  ;;  %v5887_v10 = vmax.f32 %v11959_v46, 0.0  ;;  %v945_v47 = vmul.f32 %v11685_v7, %v725_v53  ;;  %v5658_v41 = vadd.f32 %v5401_v19, %v4975_v31 }
 0x339   : > { %v13874_v45 = vrot.slane %v11809_v59, 2  ;;  %v4288_v13 = vadd.f32 %v4176_v17, %v4041_v20  ;;  %v3788_v55 = vrot.slane %v12015_v2, 2  ;;  %v12062_v53 = vadd.f32 %v3108_v63, %v2673_v54 }
 0x33a   : > { %v5776_v23 = vadd.f32 %v12057_v61, %v5657_v38  ;;  %v12060_v4 = vadd.f32 %v1497_v52, %v945_v47  ;;  %v12065_v18 = vmul.f32 %v11685_v7, %v740_v11  ;;  %v3360_v6 = vadd.f32 %v3106_v40, %v11847_v8 }
 0x33b   : > { %v2179_v9 = vsel %vm2006_vm1, %v13874_v45, %v13688_v48  ;;  %v1500_v20 = vrot.slane %v12041_v34, 1  ;;  %v2564_v21 = vmul.f32 %v11716_v33, %v740_v11  ;;  %v12072_v22 = vadd.f32 %v12057_v61, %v5658_v41 }
 0x33c   : > { %v2429_v46 = vadd.f32 %v2179_v9, %v1745_v15  ;;  %v5888_v49 = vmax.f32 %v5776_v23, 0.0  ;;  %v12075_v52 = vmul.f32 %v11755_v12, %v740_v11  ;;  %v12078_v54 = vmul.f32 %v11777_v42, %v740_v11 }
 0x33d   : > { %v12081_v8 = vmul.f32 %v11952_v26, %v740_v11  ;;  %v13875_v63 = vrot.slane %v11822_v62, 2  ;;  %v12096_v47 = vmul.f32 %v11977_v32, %v740_v11  ;;  %v1184_v41 = vmul.f32 %v11669_v44, %v735_v36 }
 0x33e   : > { %v6982_v31 = vpack.c.bf16 %v5888_v49, %v5887_v10  ;;  %v12083_v40 = vadd.f32 %v2564_v21, %v2429_v46  ;;  %v13877_v9 = vrot.slane %v11809_v59, 2  ;;  %v13878_v23 = vrot.slane %v11862_v50, 2 }
 0x33f   : > { %v3789_v51 = vsel %vm2006_vm1, %v13875_v63, %v3788_v55  ;;  %v13876_v15 = vmov %v13875_v63  ;;  %v4721_v45 = vrot.slane %v12081_v8, 1  ;;  %v12108_v24 = vmul.f32 %v11677_v43, %v735_v36 }
 0x340   : > { %v3787_v19 = vsel %vm2006_vm1, %v3784_v39, %v13876_v15  ;;  %v4043_v38 = vadd.f32 %v3789_v51, %v3360_v6  ;;  %7106 = vst [vmem:[%s7696_s15 + $0x130] sm:$0xff] %v6982_v31   ;;  %v2177_v62 = vsel %vm2006_vm1, %v13878_v23, %v13877_v9  ;;  %v2800_v39 = vmul.f32 %v11755_v12, %v735_v36 }
 0x341   : > { %v4042_v10 = vadd.f32 %v3787_v19, %v11938_v35  ;;  %v1498_v46 = vrot.slane %v1184_v41, 1  ;;  %v4177_v6 = vmul.f32 %v11999_v14, %v735_v36  ;;  %v4414_v35 = vmul.f32 %v11952_v26, %v735_v36 }
 0x342   : > { %v5097_v49 = vmul.f32 %v11977_v32, %v735_v36  ;;  %v3111_v21 = vrot.slane %v12075_v52, 1  ;;  %v4178_v59 = vmul.f32 %v11999_v14, %v740_v11  ;;  %v2428_v50 = vadd.f32 %v2177_v62, %v11927_v58 }
 0x343   : > { %v2563_v31 = vmul.f32 %v11716_v33, %v735_v36  ;;  %v5889_v63 = vmax.f32 %v12072_v22, 0.0  ;;  %v3109_v51 = vrot.slane %v2800_v39, 1  ;;  %v4289_v15 = vadd.f32 %v4177_v6, %v4042_v10  ;;  %v750_v10 = vpop.permute.xlu1 %749 }
 0x344   : > { %v4719_v19 = vrot.slane %v4414_v35, 1  ;;  %v5404_v9 = vrot.slane %v12096_v47, 2  ;;  %v1499_v23 = vsel %vm1322_vm0, %v1496_v28, %v1498_v46  ;;  %v5402_v17 = vrot.slane %v5097_v49, 2 }
 0x345   : > { %v12124_v48 = vadd.f32 %v4178_v59, %v4043_v38  ;;  %v13689_v58 = vrot.slane %v12108_v24, 2  ;;  %v2675_v62 = vadd.f32 %v2563_v31, %v2428_v50  ;;  %v12134_v39 = vmul.f32 %v11777_v42, %v735_v36 }
 0x346   : > { %v4720_v11 = vsel %vm1322_vm0, %v4717_v60, %v4719_v19  ;;  %v4722_v22 = vsel %vm1322_vm0, %v4719_v19, %v4721_v45  ;;  %v1501_v38 = vsel %vm1322_vm0, %v1498_v46, %v1500_v20  ;;  %v3112_v0 = vsel %vm1322_vm0, %v3109_v51, %v3111_v21 }
 0x347   : > { %v4976_v56 = vadd.f32 %v4720_v11, %v4288_v13  ;;  %v4977_v28 = vadd.f32 %v4722_v22, %v4289_v15  ;;  %v5403_v60 = vsel %vm2006_vm1, %v5400_v3, %v5402_v17  ;;  %v1747_v6 = vadd.f32 %v1499_v23, %v11932_v16 }
 0x348   : > { %v5405_v35 = vsel %vm2006_vm1, %v5402_v17, %v5404_v9  ;;  %v12150_v49 = vmul.f32 %v11669_v44, %v750_v10  ;;  %v12153_v46 = vmul.f32 %v11677_v43, %v750_v10  ;;  %v947_v59 = vmul.f32 %v11685_v7, %v735_v36 }
 0x349   : > { %v5659_v13 = vadd.f32 %v5403_v60, %v4976_v56  ;;  %v5660_v50 = vadd.f32 %v5405_v35, %v4977_v28  ;;  %v13879_v3 = vrot.slane %v11916_v29, 2  ;;  %v12162_v30 = vmul.f32 %v11755_v12, %v750_v10  ;;  %v745_v28 = vpop.permute.xlu0 %744 }
 0x34a   : > { %v3110_v17 = vsel %vm1322_vm0, %v3107_v37, %v3109_v51  ;;  %v13690_v31 = vrot.slane %v12134_v39, 2  ;;  %v12169_v36 = vadd.f32 %v1501_v38, %v947_v59  ;;  %v12171_v23 = vadd.f32 %v3112_v0, %v2675_v62 }
 0x34b   : > { %v2183_v16 = vsel %vm2006_vm1, %v13879_v3, %v13689_v58  ;;  %v5778_v15 = vadd.f32 %v12057_v61, %v5659_v13  ;;  %v12174_v11 = vmul.f32 %v11685_v7, %v750_v10  ;;  %v12177_v22 = vmul.f32 %v11952_v26, %v750_v10 }
 0x34c   : > { %v2431_v19 = vadd.f32 %v2183_v16, %v1747_v6  ;;  %v1504_v25 = vrot.slane %v12150_v49, 1  ;;  %v2566_v51 = vmul.f32 %v11716_v33, %v750_v10  ;;  %v12183_v38 = vadd.f32 %v12057_v61, %v5660_v50 }
 0x34d   : > { %v5890_v56 = vmax.f32 %v5778_v15, 0.0  ;;  %v3115_v62 = vrot.slane %v12162_v30, 1  ;;  %v3362_v0 = vadd.f32 %v3110_v17, %v11961_v27  ;;  %v13880_v60 = vrot.slane %v11947_v5, 2 }
 0x34e   : > { %v12192_v13 = vadd.f32 %v2566_v51, %v2431_v19  ;;  %v12195_v59 = vmul.f32 %v11777_v42, %v750_v10  ;;  %v4180_v16 = vmul.f32 %v11999_v14, %v750_v10  ;;  %v4725_v2 = vrot.slane %v12177_v22, 1 }
 0x34f   : > { %v3791_v6 = vsel %vm2006_vm1, %v3788_v55, %v13880_v60  ;;  %v6987_v35 = vpack.c.bf16 %v5890_v56, %v5889_v63  ;;  %v13881_v50 = vmov %v13880_v60  ;;  %v1186_v55 = vmul.f32 %v11669_v44, %v745_v28 }
 0x350   : > { %v4044_v3 = vadd.f32 %v3791_v6, %v12062_v53  ;;  %v3793_v27 = vsel %vm2006_vm1, %v13881_v50, %v13690_v31  ;;  %v12208_v63 = vmul.f32 %v11977_v32, %v750_v10  ;;  %v13882_v17 = vrot.slane %v11916_v29, 2 }
 0x351   : > { %7107 = vst [vmem:[%s7696_s15 + $0x138] sm:$0xff] %v6987_v35   ;;  %v13883_v53 = vrot.slane %v11994_v57, 2  ;;  %v2802_v5 = vmul.f32 %v11755_v12, %v745_v28  ;;  %v4179_v19 = vmul.f32 %v11999_v14, %v745_v28  ;;  %v1502_v56 = vrot.slane %v1186_v55, 1 }
 0x352   : > { %v12218_v51 = vmul.f32 %v11677_v43, %v745_v28  ;;  %v4416_v60 = vmul.f32 %v11952_v26, %v745_v28  ;;  %v5099_v6 = vmul.f32 %v11977_v32, %v745_v28  ;;  %v5891_v10 = vmax.f32 %v12183_v38, 0.0 }
 0x353   : > { %v2181_v15 = vsel %vm2006_vm1, %v13883_v53, %v13882_v17  ;;  %v2565_v57 = vmul.f32 %v11716_v33, %v745_v28  ;;  %v4291_v35 = vadd.f32 %v4179_v19, %v4044_v3  ;;  %v3798_v50 = vrot.slane %v12195_v59, 2 }
 0x354   : > { %v2430_v29 = vadd.f32 %v2181_v15, %v12060_v4  ;;  %v3113_v17 = vrot.slane %v2802_v5, 1  ;;  %v4723_v53 = vrot.slane %v4416_v60, 1  ;;  %v5406_v37 = vrot.slane %v5099_v6, 2 }
 0x355   : > { %v4045_v55 = vadd.f32 %v3793_v27, %v3362_v0  ;;  %v5408_v58 = vrot.slane %v12208_v63, 2  ;;  %v949_v31 = vmul.f32 %v11685_v7, %v745_v28  ;;  %v1503_v41 = vsel %vm1322_vm0, %v1500_v20, %v1502_v56  ;;  %v760_v27 = vpop.permute.xlu1 %759 }
 0x356   : > { %v13691_v38 = vrot.slane %v12218_v51, 2  ;;  %v12233_v4 = vmul.f32 %v11777_v42, %v745_v28  ;;  %v4724_v3 = vsel %vm1322_vm0, %v4721_v45, %v4723_v53  ;;  %v4726_v0 = vsel %vm1322_vm0, %v4723_v53, %v4725_v2 }
 0x357   : > { %v1505_v34 = vsel %vm1322_vm0, %v1502_v56, %v1504_v25  ;;  %v2677_v15 = vadd.f32 %v2565_v57, %v2430_v29  ;;  %v4978_v20 = vadd.f32 %v4724_v3, %v12124_v48  ;;  %v4979_v5 = vadd.f32 %v4726_v0, %v4291_v35 }
 0x358   : > { %v3114_v28 = vsel %vm1322_vm0, %v3111_v21, %v3113_v17  ;;  %v3116_v8 = vsel %vm1322_vm0, %v3113_v17, %v3115_v62  ;;  %v5407_v45 = vsel %vm2006_vm1, %v5404_v9, %v5406_v37  ;;  %v1749_v19 = vadd.f32 %v1503_v41, %v12065_v18 }
 0x359   : > { %v5409_v56 = vsel %vm2006_vm1, %v5406_v37, %v5408_v58  ;;  %v5661_v48 = vadd.f32 %v5407_v45, %v4978_v20  ;;  %v12259_v60 = vmul.f32 %v11669_v44, %v760_v27  ;;  %v12262_v52 = vmul.f32 %v11677_v43, %v760_v27 }
 0x35a   : > { %v13692_v21 = vrot.slane %v12233_v4, 2  ;;  %v5662_v6 = vadd.f32 %v5409_v56, %v4979_v5  ;;  %v13884_v47 = vrot.slane %v12044_v1, 2  ;;  %v12271_v41 = vmul.f32 %v11755_v12, %v760_v27  ;;  %v755_v5 = vpop.permute.xlu0 %754 }
 0x35b   : > { %v4292_v9 = vadd.f32 %v4180_v16, %v4045_v55  ;;  %v5780_v37 = vadd.f32 %v12057_v61, %v5661_v48  ;;  %v12275_v57 = vmul.f32 %v11777_v42, %v760_v27  ;;  %v12277_v35 = vadd.f32 %v1505_v34, %v949_v31 }
 0x35c   : > { %v2187_v18 = vsel %vm2006_vm1, %v13884_v47, %v13691_v38  ;;  %v12279_v17 = vadd.f32 %v3116_v8, %v2677_v15  ;;  %v12282_v53 = vmul.f32 %v11685_v7, %v760_v27  ;;  %v3364_v3 = vadd.f32 %v3114_v28, %v12083_v40 }
 0x35d   : > { %v2433_v29 = vadd.f32 %v2187_v18, %v1749_v19  ;;  %v5892_v0 = vmax.f32 %v5780_v37, 0.0  ;;  %v1508_v20 = vrot.slane %v12259_v60, 1  ;;  %v2568_v55 = vmul.f32 %v11716_v33, %v760_v27 }
 0x35e   : > { %v12289_v45 = vadd.f32 %v12057_v61, %v5662_v6  ;;  %v3119_v31 = vrot.slane %v12271_v41, 1  ;;  %v13885_v34 = vrot.slane %v12078_v54, 2  ;;  %v12298_v15 = vmul.f32 %v11952_v26, %v760_v27 }
 0x35f   : > { %v6992_v28 = vpack.c.bf16 %v5892_v0, %v5891_v10  ;;  %v12300_v8 = vadd.f32 %v2568_v55, %v2433_v29  ;;  %v13887_v48 = vrot.slane %v12134_v39, 2  ;;  %v12309_v18 = vmul.f32 %v11977_v32, %v760_v27 }
 0x360   : > { %v3797_v40 = vsel %vm2006_vm1, %v13885_v34, %v13692_v21  ;;  %v13886_v56 = vmov %v13885_v34  ;;  %v1188_v34 = vmul.f32 %v11669_v44, %v755_v5  ;;  %v12315_v10 = vmul.f32 %v11677_v43, %v755_v5 }
 0x361   : > { %v3795_v6 = vsel %vm2006_vm1, %v13887_v48, %v13886_v56  ;;  %v4047_v47 = vadd.f32 %v3797_v40, %v3364_v3  ;;  %7108 = vst [vmem:[%s7696_s15 + $0x140] sm:$0xff] %v6992_v28   ;;  %v2804_v29 = vmul.f32 %v11755_v12, %v755_v5  ;;  %v4181_v54 = vmul.f32 %v11999_v14, %v755_v5 }
 0x362   : > { %v4046_v37 = vadd.f32 %v3795_v6, %v12171_v23  ;;  %v4418_v39 = vmul.f32 %v11952_v26, %v755_v5  ;;  %v4182_v0 = vmul.f32 %v11999_v14, %v760_v27  ;;  %v4729_v3 = vrot.slane %v12298_v15, 1 }
 0x363   : > { %v1506_v55 = vrot.slane %v1188_v34, 1  ;;  %v5101_v40 = vmul.f32 %v11977_v32, %v755_v5  ;;  %v5893_v23 = vmax.f32 %v12289_v45, 0.0  ;;  %v13888_v28 = vrot.slane %v12044_v1, 2 }
 0x364   : > { %v13889_v56 = vrot.slane %v12108_v24, 2  ;;  %v4293_v6 = vadd.f32 %v4181_v54, %v4046_v37  ;;  %v4727_v19 = vrot.slane %v4418_v39, 1  ;;  %v2567_v34 = vmul.f32 %v11716_v33, %v755_v5  ;;  %v770_v37 = vpop.permute.xlu1 %769 }
 0x365   : > { %v1507_v27 = vsel %vm1322_vm0, %v1504_v25, %v1506_v55  ;;  %v5410_v38 = vrot.slane %v5101_v40, 2  ;;  %v5412_v21 = vrot.slane %v12309_v18, 2  ;;  %v13693_v45 = vrot.slane %v12315_v10, 2 }
 0x366   : > { %v2185_v48 = vsel %vm2006_vm1, %v13889_v56, %v13888_v28  ;;  %v3117_v1 = vrot.slane %v2804_v29, 1  ;;  %v4728_v24 = vsel %vm1322_vm0, %v4725_v2, %v4727_v19  ;;  %v12339_v54 = vadd.f32 %v4182_v0, %v4047_v47 }
 0x367   : > { %v2432_v16 = vadd.f32 %v2185_v48, %v12169_v36  ;;  %v951_v36 = vmul.f32 %v11685_v7, %v755_v5  ;;  %v4730_v49 = vsel %vm1322_vm0, %v4727_v19, %v4729_v3  ;;  %v4980_v25 = vadd.f32 %v4728_v24, %v4292_v9 }
 0x368   : > { %v12346_v39 = vmul.f32 %v11777_v42, %v755_v5  ;;  %v4981_v40 = vadd.f32 %v4730_v49, %v4293_v6  ;;  %v5411_v22 = vsel %vm2006_vm1, %v5408_v58, %v5410_v38  ;;  %v1751_v2 = vadd.f32 %v1507_v27, %v12174_v11 }
 0x369   : > { %v1509_v47 = vsel %vm1322_vm0, %v1506_v55, %v1508_v20  ;;  %v2679_v29 = vadd.f32 %v2567_v34, %v2432_v16  ;;  %v5663_v0 = vadd.f32 %v5411_v22, %v4980_v25  ;;  %v12356_v28 = vmul.f32 %v11669_v44, %v770_v37 }
 0x36a   : > { %v3120_v9 = vsel %vm1322_vm0, %v3117_v1, %v3119_v31  ;;  %v5413_v63 = vsel %vm2006_vm1, %v5410_v38, %v5412_v21  ;;  %v12365_v58 = vmul.f32 %v11677_v43, %v770_v37  ;;  %v13890_v11 = vrot.slane %v12153_v46, 2 }
 0x36b   : > { %v3118_v5 = vsel %vm1322_vm0, %v3115_v62, %v3117_v1  ;;  %v5664_v19 = vadd.f32 %v5413_v63, %v4981_v40  ;;  %v5782_v55 = vadd.f32 %v12057_v61, %v5663_v0  ;;  %v12376_v48 = vadd.f32 %v1509_v47, %v951_v36  ;;  %v765_v40 = vpop.permute.xlu0 %764 }
 0x36c   : > { %v2191_v16 = vsel %vm2006_vm1, %v13890_v11, %v13693_v45  ;;  %v13694_v38 = vrot.slane %v12346_v39, 2  ;;  %v12380_v6 = vmul.f32 %v11685_v7, %v770_v37  ;;  %v12383_v27 = vmul.f32 %v11755_v12, %v770_v37 }
 0x36d   : > { %v2435_v56 = vadd.f32 %v2191_v16, %v1751_v2  ;;  %v12385_v34 = vadd.f32 %v3120_v9, %v2679_v29  ;;  %v5894_v24 = vmax.f32 %v5782_v55, 0.0  ;;  %v1512_v30 = vrot.slane %v12356_v28, 1 }
 0x36e   : > { %v2570_v62 = vmul.f32 %v11716_v33, %v770_v37  ;;  %v3366_v36 = vadd.f32 %v3118_v5, %v12192_v13  ;;  %v12392_v49 = vmul.f32 %v11777_v42, %v770_v37  ;;  %v12395_v25 = vmul.f32 %v11952_v26, %v770_v37 }
 0x36f   : > { %v12398_v22 = vadd.f32 %v12057_v61, %v5664_v19  ;;  %v6997_v2 = vpack.c.bf16 %v5894_v24, %v5893_v23  ;;  %v13891_v29 = vrot.slane %v12233_v4, 2  ;;  %v3123_v13 = vrot.slane %v12383_v27, 1 }
 0x370   : > { %v12400_v47 = vadd.f32 %v2570_v62, %v2435_v56  ;;  %v3801_v9 = vsel %vm2006_vm1, %v3798_v50, %v13694_v38  ;;  %v12414_v63 = vmul.f32 %v11977_v32, %v770_v37  ;;  %v4733_v11 = vrot.slane %v12395_v25, 1 }
 0x371   : > { %v3799_v0 = vsel %vm2006_vm1, %v13891_v29, %v3798_v50  ;;  %7109 = vst [vmem:[%s7696_s15 + $0x148] sm:$0xff] %v6997_v2   ;;  %v13892_v4 = vrot.slane %v12153_v46, 2  ;;  %v13893_v16 = vrot.slane %v12218_v51, 2  ;;  %v1190_v19 = vmul.f32 %v11669_v44, %v765_v40 }
 0x372   : > { %v4048_v23 = vadd.f32 %v3799_v0, %v12279_v17  ;;  %v2806_v59 = vmul.f32 %v11755_v12, %v765_v40  ;;  %v12427_v50 = vmul.f32 %v11677_v43, %v765_v40  ;;  %v4183_v55 = vmul.f32 %v11999_v14, %v765_v40 }
 0x373   : > { %v2189_v5 = vsel %vm2006_vm1, %v13893_v16, %v13892_v4  ;;  %v4420_v17 = vmul.f32 %v11952_v26, %v765_v40  ;;  %v5103_v56 = vmul.f32 %v11977_v32, %v765_v40  ;;  %v1510_v51 = vrot.slane %v1190_v19, 1 }
 0x374   : > { %v2434_v46 = vadd.f32 %v2189_v5, %v12277_v35  ;;  %v2569_v62 = vmul.f32 %v11716_v33, %v765_v40  ;;  %v3121_v2 = vrot.slane %v2806_v59, 1  ;;  %v4295_v29 = vadd.f32 %v4183_v55, %v4048_v23 }
 0x375   : > { %v4731_v0 = vrot.slane %v4420_v17, 1  ;;  %v5414_v4 = vrot.slane %v5103_v56, 2  ;;  %v4049_v16 = vadd.f32 %v3801_v9, %v3366_v36  ;;  %v4184_v1 = vmul.f32 %v11999_v14, %v770_v37  ;;  %v780_v37 = vpop.permute.xlu1 %779 }
 0x376   : > { %v5416_v45 = vrot.slane %v12414_v63, 2  ;;  %v1511_v38 = vsel %vm1322_vm0, %v1508_v20, %v1510_v51  ;;  %v2194_v24 = vrot.slane %v12427_v50, 2  ;;  %v12442_v35 = vmul.f32 %v11777_v42, %v765_v40  ;;  %v12582_v63 = vld [vmem:[%s13632_s1 + $0x2] ss:$0 sm:$0xff] }
 0x377   : > { %v4732_v23 = vsel %vm1322_vm0, %v4729_v3, %v4731_v0  ;;  %v4734_v36 = vsel %vm1322_vm0, %v4731_v0, %v4733_v11  ;;  %v1513_v60 = vsel %vm1322_vm0, %v1510_v51, %v1512_v30  ;;  %v2681_v9 = vadd.f32 %v2569_v62, %v2434_v46 }
 0x378   : > { %v4982_v20 = vadd.f32 %v4732_v23, %v12339_v54  ;;  %v4983_v5 = vadd.f32 %v4734_v36, %v4295_v29  ;;  %v3122_v19 = vsel %vm1322_vm0, %v3119_v31, %v3121_v2  ;;  %v3124_v15 = vsel %vm1322_vm0, %v3121_v2, %v3123_v13  ;;  %v775_v23 = vpop.permute.xlu0 %774 }
 0x379   : > { %v5415_v3 = vsel %vm2006_vm1, %v5412_v21, %v5414_v4  ;;  %v1753_v59 = vadd.f32 %v1511_v38, %v12282_v53  ;;  %v5417_v55 = vsel %vm2006_vm1, %v5414_v4, %v5416_v45  ;;  %v12468_v17 = vmul.f32 %v11669_v44, %v780_v37 }
 0x37a   : > { %v5665_v54 = vadd.f32 %v5415_v3, %v4982_v20  ;;  %v12471_v41 = vmul.f32 %v11677_v43, %v780_v37  ;;  %v5895_v31 = vmax.f32 %v12398_v22, 0.0  ;;  %v953_v56 = vmul.f32 %v11685_v7, %v765_v40 }
 0x37b   : > { %v5666_v18 = vadd.f32 %v5417_v55, %v4983_v5  ;;  %v13894_v21 = vrot.slane %v12262_v52, 2  ;;  %v4296_v38 = vadd.f32 %v4184_v1, %v4049_v16  ;;  %v3804_v46 = vrot.slane %v12442_v35, 2 }
 0x37c   : > { %v5784_v51 = vadd.f32 %v12057_v61, %v5665_v54  ;;  %v12482_v2 = vadd.f32 %v1513_v60, %v953_v56  ;;  %v12484_v29 = vadd.f32 %v3124_v15, %v2681_v9  ;;  %v12487_v22 = vmul.f32 %v11685_v7, %v780_v37 }
 0x37d   : > { %v2195_v53 = vsel %vm2006_vm1, %v13894_v21, %v2194_v24  ;;  %v3368_v40 = vadd.f32 %v3122_v19, %v12300_v8  ;;  %v1516_v4 = vrot.slane %v12468_v17, 1  ;;  %v2200_v1 = vrot.slane %v12471_v41, 2 }
 0x37e   : > { %v2437_v62 = vadd.f32 %v2195_v53, %v1753_v59  ;;  %v5896_v0 = vmax.f32 %v5784_v51, 0.0  ;;  %v2572_v16 = vmul.f32 %v11716_v33, %v780_v37  ;;  %v12494_v36 = vadd.f32 %v12057_v61, %v5666_v18 }
 0x37f   : > { %v12497_v60 = vmul.f32 %v11755_v12, %v780_v37  ;;  %v12500_v7 = vmul.f32 %v11777_v42, %v780_v37  ;;  %v12503_v8 = vmul.f32 %v11952_v26, %v780_v37  ;;  %v13895_v5 = vrot.slane %v12275_v57, 2 }
 0x380   : > { %v7002_v9 = vpack.c.bf16 %v5896_v0, %v5895_v31  ;;  %v12505_v20 = vadd.f32 %v2572_v16, %v2437_v62  ;;  %v13897_v3 = vrot.slane %v12346_v39, 2  ;;  %v12518_v54 = vmul.f32 %v11977_v32, %v780_v37 }
 0x381   : > { %v3805_v19 = vsel %vm2006_vm1, %v13895_v5, %v3804_v46  ;;  %v13896_v15 = vmov %v13895_v5  ;;  %v1192_v56 = vmul.f32 %v11669_v44, %v775_v23  ;;  %v4737_v18 = vrot.slane %v12503_v8, 1 }
 0x382   : > { %v3803_v59 = vsel %vm2006_vm1, %v13897_v3, %v13896_v15  ;;  %v4051_v55 = vadd.f32 %v3805_v19, %v3368_v40  ;;  %7110 = vst [vmem:[%s7696_s15 + $0x150] sm:$0xff] %v7002_v9   ;;  %v13898_v53 = vrot.slane %v12315_v10, 2  ;;  %v12530_v39 = vmul.f32 %v11677_v43, %v775_v23 }
 0x383   : > { %v4050_v31 = vadd.f32 %v3803_v59, %v12385_v34  ;;  %v2808_v51 = vmul.f32 %v11755_v12, %v775_v23  ;;  %v1514_v62 = vrot.slane %v1192_v56, 1  ;;  %v4185_v40 = vmul.f32 %v11999_v14, %v775_v23 }
 0x384   : > { %v2193_v57 = vsel %vm2006_vm1, %v13898_v53, %v13894_v21  ;;  %v4422_v34 = vmul.f32 %v11952_v26, %v775_v23  ;;  %v5105_v44 = vmul.f32 %v11977_v32, %v775_v23  ;;  %v3127_v0 = vrot.slane %v12497_v60, 1 }
 0x385   : > { %v4186_v52 = vmul.f32 %v11999_v14, %v780_v37  ;;  %v2436_v10 = vadd.f32 %v2193_v57, %v12376_v48  ;;  %v2571_v16 = vmul.f32 %v11716_v33, %v775_v23  ;;  %v5897_v43 = vmax.f32 %v12494_v36, 0.0  ;;  %v790_v36 = vpop.permute.xlu1 %789 }
 0x386   : > { %v3125_v9 = vrot.slane %v2808_v51, 1  ;;  %v4297_v5 = vadd.f32 %v4185_v40, %v4050_v31  ;;  %v4735_v19 = vrot.slane %v4422_v34, 1  ;;  %v5420_v3 = vrot.slane %v12518_v54, 2  ;;  %v12574_v40 = vld [vmem:[%s13632_s1 + $0x1] ss:$0 sm:$0xff] }
 0x387   : > { %v1515_v59 = vsel %vm1322_vm0, %v1512_v30, %v1514_v62  ;;  %v5418_v56 = vrot.slane %v5105_v44, 2  ;;  %v12546_v21 = vadd.f32 %v4186_v52, %v4051_v55  ;;  %v13695_v48 = vrot.slane %v12530_v39, 2 }
 0x388   : > { %v4736_v33 = vsel %vm1322_vm0, %v4733_v11, %v4735_v19  ;;  %v4738_v37 = vsel %vm1322_vm0, %v4735_v19, %v4737_v18  ;;  %v2683_v31 = vadd.f32 %v2571_v16, %v2436_v10  ;;  %v12556_v53 = vmul.f32 %v11777_v42, %v775_v23 }
 0x389   : > { %v4984_v28 = vadd.f32 %v4736_v33, %v4296_v38  ;;  %v4985_v30 = vadd.f32 %v4738_v37, %v4297_v5  ;;  %v1517_v55 = vsel %vm1322_vm0, %v1514_v62, %v1516_v4  ;;  %v3128_v25 = vsel %vm1322_vm0, %v3125_v9, %v3127_v0 }
 0x38a   : > { %v5419_v11 = vsel %vm2006_vm1, %v5416_v45, %v5418_v56  ;;  %v1755_v57 = vadd.f32 %v1515_v59, %v12380_v6  ;;  %v5421_v51 = vsel %vm2006_vm1, %v5418_v56, %v5420_v3  ;;  %v12577_v62 = vmul.f32 %v12574_v40, %v790_v36  ;;  %v12590_v6 = vld [vmem:[%s13632_s1] ss:$0 sm:$0xff] }
 0x38b   : > { %v5667_v38 = vadd.f32 %v5419_v11, %v4984_v28  ;;  %v12585_v45 = vmul.f32 %v12582_v63, %v790_v36  ;;  %v955_v34 = vmul.f32 %v12590_v6, %v775_v23  ;;  %v5668_v44 = vadd.f32 %v5421_v51, %v4985_v30  ;;  %v785_v30 = vpop.permute.xlu0 %784 }
 0x38c   : > { %v13899_v52 = vrot.slane %v12365_v58, 2  ;;  %v12599_v16 = vmul.f32 %v11755_v12, %v790_v36  ;;  %v3126_v5 = vsel %vm1322_vm0, %v3123_v13, %v3125_v9  ;;  %v13696_v19 = vrot.slane %v12556_v53, 2  ;;  %v12621_v9 = vld [vmem:[%s13632_s1 + $0x3] ss:$0 sm:$0xff] }
 0x38d   : > { %v5786_v59 = vadd.f32 %v12057_v61, %v5667_v38  ;;  %v12606_v23 = vadd.f32 %v1517_v55, %v955_v34  ;;  %v12608_v33 = vadd.f32 %v3128_v25, %v2683_v31  ;;  %v12611_v37 = vmul.f32 %v12590_v6, %v790_v36 }
 0x38e   : > { %v2199_v10 = vsel %vm2006_vm1, %v13899_v52, %v13695_v48  ;;  %v12614_v28 = vmul.f32 %v11952_v26, %v790_v36  ;;  %v1520_v27 = vrot.slane %v12577_v62, 1  ;;  %v2574_v31 = vmul.f32 %v12621_v9, %v790_v36 }
 0x38f   : > { %v2439_v56 = vadd.f32 %v2199_v10, %v1755_v57  ;;  %v5898_v12 = vmax.f32 %v5786_v59, 0.0  ;;  %v12625_v55 = vadd.f32 %v12057_v61, %v5668_v44  ;;  %v3131_v25 = vrot.slane %v12599_v16, 1 }
 0x390   : > { %v3370_v11 = vadd.f32 %v3126_v5, %v12400_v47  ;;  %v13900_v57 = vrot.slane %v12392_v49, 2  ;;  %v12637_v52 = vmul.f32 %v11777_v42, %v790_v36  ;;  %v4188_v5 = vmul.f32 %v11999_v14, %v790_v36  ;;  %v12660_v49 = vld [vmem:[%s13632_s1 + $0x4] ss:$0 sm:$0xff] }
 0x391   : > { %v7007_v38 = vpack.c.bf16 %v5898_v12, %v5897_v43  ;;  %v12634_v34 = vadd.f32 %v2574_v31, %v2439_v56  ;;  %v4741_v35 = vrot.slane %v12614_v28, 1  ;;  %v12650_v43 = vmul.f32 %v11977_v32, %v790_v36 }
 0x392   : > { %v3807_v51 = vsel %vm2006_vm1, %v3804_v46, %v13900_v57  ;;  %v13901_v44 = vmov %v13900_v57  ;;  %v1194_v46 = vmul.f32 %v12574_v40, %v785_v30  ;;  %v13902_v42 = vrot.slane %v12365_v58, 2 }
 0x393   : > { %v4052_v10 = vadd.f32 %v3807_v51, %v12484_v29  ;;  %v3809_v47 = vsel %vm2006_vm1, %v13901_v44, %v13696_v19  ;;  %7111 = vst [vmem:[%s7696_s15 + $0x158] sm:$0xff] %v7007_v38   ;;  %v2810_v59 = vmul.f32 %v12660_v49, %v785_v30  ;;  %v4187_v56 = vmul.f32 %v11999_v14, %v785_v30 }
 0x394   : > { %v2197_v29 = vsel %vm2006_vm1, %v2194_v24, %v13902_v42  ;;  %v1518_v12 = vrot.slane %v1194_v46, 1  ;;  %v12665_v31 = vmul.f32 %v12582_v63, %v785_v30  ;;  %v4424_v36 = vmul.f32 %v11952_v26, %v785_v30 }
 0x395   : > { %v5107_v58 = vmul.f32 %v11977_v32, %v785_v30  ;;  %v5899_v50 = vmax.f32 %v12625_v55, 0.0  ;;  %v2438_v24 = vadd.f32 %v2197_v29, %v12482_v2  ;;  %v2573_v57 = vmul.f32 %v12621_v9, %v785_v30  ;;  %v12682_v2 = vld [vmem:[%s13632_s1 + $0x5] ss:$0 sm:$0xff] }
 0x396   : > { %v4299_v51 = vadd.f32 %v4187_v56, %v4052_v10  ;;  %v3814_v38 = vrot.slane %v12637_v52, 2  ;;  %v3129_v44 = vrot.slane %v2810_v59, 1  ;;  %v4739_v42 = vrot.slane %v4424_v36, 1 }
 0x397   : > { %v5422_v13 = vrot.slane %v5107_v58, 2  ;;  %v4053_v46 = vadd.f32 %v3809_v47, %v3370_v11  ;;  %v5424_v48 = vrot.slane %v12650_v43, 2  ;;  %v957_v19 = vmul.f32 %v12590_v6, %v785_v30  ;;  %v800_v47 = vpop.permute.xlu1 %799 }
 0x398   : > { %v1519_v15 = vsel %vm1322_vm0, %v1516_v4, %v1518_v12  ;;  %v2202_v55 = vrot.slane %v12665_v31, 2  ;;  %v12685_v10 = vmul.f32 %v12682_v2, %v785_v30  ;;  %v4740_v11 = vsel %vm1322_vm0, %v4737_v18, %v4739_v42 }
 0x399   : > { %v4742_v17 = vsel %vm1322_vm0, %v4739_v42, %v4741_v35  ;;  %v1521_v4 = vsel %vm1322_vm0, %v1518_v12, %v1520_v27  ;;  %v2685_v29 = vadd.f32 %v2573_v57, %v2438_v24  ;;  %v4986_v59 = vadd.f32 %v4740_v11, %v12546_v21 }
 0x39a   : > { %v4987_v56 = vadd.f32 %v4742_v17, %v4299_v51  ;;  %v3130_v30 = vsel %vm1322_vm0, %v3127_v0, %v3129_v44  ;;  %v3132_v8 = vsel %vm1322_vm0, %v3129_v44, %v3131_v25  ;;  %v5423_v18 = vsel %vm2006_vm1, %v5420_v3, %v5422_v13 }
 0x39b   : > { %v1757_v36 = vadd.f32 %v1519_v15, %v12487_v22  ;;  %v5425_v12 = vsel %vm2006_vm1, %v5422_v13, %v5424_v48  ;;  %v5669_v21 = vadd.f32 %v5423_v18, %v4986_v59  ;;  %v12711_v58 = vmul.f32 %v12574_v40, %v800_v47 }
 0x39c   : > { %v12714_v60 = vmul.f32 %v12582_v63, %v800_v47  ;;  %v3812_v0 = vrot.slane %v12685_v10, 2  ;;  %v5670_v24 = vadd.f32 %v5425_v12, %v4987_v56  ;;  %v2203_v22 = vsel %vm2006_vm1, %v2200_v1, %v2202_v55  ;;  %v795_v56 = vpop.permute.xlu0 %794 }
 0x39d   : > { %v12723_v54 = vmul.f32 %v12660_v49, %v800_v47  ;;  %v4300_v15 = vadd.f32 %v4188_v5, %v4053_v46  ;;  %v5788_v3 = vadd.f32 %v12057_v61, %v5669_v21  ;;  %v2441_v13 = vadd.f32 %v2203_v22, %v1757_v36 }
 0x39e   : > { %v12727_v57 = vmul.f32 %v12682_v2, %v800_v47  ;;  %v12729_v51 = vadd.f32 %v1521_v4, %v957_v19  ;;  %v12731_v44 = vadd.f32 %v3132_v8, %v2685_v29  ;;  %v12734_v42 = vmul.f32 %v12590_v6, %v800_v47 }
 0x39f   : > { %v3372_v11 = vadd.f32 %v3130_v30, %v12505_v20  ;;  %v5900_v17 = vmax.f32 %v5788_v3, 0.0  ;;  %v1524_v59 = vrot.slane %v12711_v58, 1  ;;  %v2576_v46 = vmul.f32 %v12621_v9, %v800_v47 }
 0x3a0   : > { %v12741_v18 = vadd.f32 %v12057_v61, %v5670_v24  ;;  %v3135_v19 = vrot.slane %v12723_v54, 1  ;;  %v13903_v4 = vrot.slane %v12500_v7, 2  ;;  %v12750_v29 = vmul.f32 %v11952_v26, %v800_v47 }
 0x3a1   : > { %v7012_v30 = vpack.c.bf16 %v5900_v17, %v5899_v50  ;;  %v12752_v8 = vadd.f32 %v2576_v46, %v2441_v13  ;;  %v13905_v21 = vrot.slane %v12556_v53, 2  ;;  %v12761_v3 = vmul.f32 %v11977_v32, %v800_v47 }
 0x3a2   : > { %v3813_v20 = vsel %vm2006_vm1, %v13903_v4, %v3812_v0  ;;  %v13904_v12 = vmov %v13903_v4  ;;  %v1196_v5 = vmul.f32 %v12574_v40, %v795_v56  ;;  %v12767_v50 = vmul.f32 %v12582_v63, %v795_v56 }
 0x3a3   : > { %v3811_v24 = vsel %vm2006_vm1, %v13905_v21, %v13904_v12  ;;  %v4055_v22 = vadd.f32 %v3813_v20, %v3372_v11  ;;  %7112 = vst [vmem:[%s7696_s15 + $0x160] sm:$0xff] %v7012_v30   ;;  %v2812_v13 = vmul.f32 %v12660_v49, %v795_v56  ;;  %v4189_v7 = vmul.f32 %v11999_v14, %v795_v56 }
 0x3a4   : > { %v4054_v4 = vadd.f32 %v3811_v24, %v12608_v33  ;;  %v4426_v53 = vmul.f32 %v11952_v26, %v795_v56  ;;  %v4190_v17 = vmul.f32 %v11999_v14, %v800_v47  ;;  %v4745_v11 = vrot.slane %v12750_v29, 1 }
 0x3a5   : > { %v1522_v46 = vrot.slane %v1196_v5, 1  ;;  %v5109_v20 = vmul.f32 %v11977_v32, %v795_v56  ;;  %v5901_v33 = vmax.f32 %v12741_v18, 0.0  ;;  %v13906_v30 = vrot.slane %v12530_v39, 2  ;;  %v12791_v39 = vpop.permute.xlu1 %809 }
 0x3a6   : > { %v4301_v21 = vadd.f32 %v4189_v7, %v4054_v4  ;;  %v4743_v24 = vrot.slane %v4426_v53, 1  ;;  %v2575_v14 = vmul.f32 %v12621_v9, %v795_v56  ;;  %v5428_v32 = vrot.slane %v12761_v3, 2 }
 0x3a7   : > { %v2201_v12 = vsel %vm2006_vm1, %v13906_v30, %v2200_v1  ;;  %v1523_v26 = vsel %vm1322_vm0, %v1520_v27, %v1522_v46  ;;  %v5426_v47 = vrot.slane %v5109_v20, 2  ;;  %v13697_v5 = vrot.slane %v12767_v50, 2 }
 0x3a8   : > { %v2440_v36 = vadd.f32 %v2201_v12, %v12606_v23  ;;  %v3133_v41 = vrot.slane %v2812_v13, 1  ;;  %v4744_v1 = vsel %vm1322_vm0, %v4741_v35, %v4743_v24  ;;  %v12793_v18 = vadd.f32 %v4190_v17, %v4055_v22 }
 0x3a9   : > { %v959_v62 = vmul.f32 %v12590_v6, %v795_v56  ;;  %v4746_v23 = vsel %vm1322_vm0, %v4743_v24, %v4745_v11  ;;  %v4988_v27 = vadd.f32 %v4744_v1, %v4300_v15  ;;  %v12800_v4 = vmul.f32 %v12682_v2, %v795_v56 }
 0x3aa   : > { %v4989_v7 = vadd.f32 %v4746_v23, %v4301_v21  ;;  %v5427_v28 = vsel %vm2006_vm1, %v5424_v48, %v5426_v47  ;;  %v1759_v35 = vadd.f32 %v1523_v26, %v12611_v37  ;;  %v1525_v22 = vsel %vm1322_vm0, %v1522_v46, %v1524_v59  ;;  %v12857_v23 = vld [vmem:[%s13632_s1 + $0x7] ss:$0 sm:$0xff] }
 0x3ab   : > { %v2687_v13 = vadd.f32 %v2575_v14, %v2440_v36  ;;  %v5671_v53 = vadd.f32 %v5427_v28, %v4988_v27  ;;  %v12811_v17 = vmul.f32 %v12574_v40, %v12791_v39  ;;  %v3136_v15 = vsel %vm1322_vm0, %v3133_v41, %v3135_v19 }
 0x3ac   : > { %v5429_v48 = vsel %vm2006_vm1, %v5426_v47, %v5428_v32  ;;  %v12821_v37 = vmul.f32 %v12582_v63, %v12791_v39  ;;  %v13907_v43 = vrot.slane %v12585_v45, 2  ;;  %v3134_v36 = vsel %vm1322_vm0, %v3131_v25, %v3133_v41 }
 0x3ad   : > { %v5672_v46 = vadd.f32 %v5429_v48, %v4989_v7  ;;  %v5790_v20 = vadd.f32 %v12057_v61, %v5671_v53  ;;  %v12832_v12 = vadd.f32 %v1525_v22, %v959_v62  ;;  %v3816_v21 = vrot.slane %v12800_v4, 2  ;;  %v805_v7 = vpop.permute.xlu0 %804 }
 0x3ae   : > { %v2207_v56 = vsel %vm2006_vm1, %v13907_v43, %v13697_v5  ;;  %v12837_v24 = vmul.f32 %v12590_v6, %v12791_v39  ;;  %v12841_v26 = vmul.f32 %v12660_v49, %v12791_v39  ;;  %v12843_v14 = vadd.f32 %v3136_v15, %v2687_v13 }
 0x3af   : > { %v2443_v30 = vadd.f32 %v2207_v56, %v1759_v35  ;;  %v5902_v16 = vmax.f32 %v5790_v20, 0.0  ;;  %v1528_v25 = vrot.slane %v12811_v17, 1  ;;  %v2578_v47 = vmul.f32 %v12621_v9, %v12791_v39 }
 0x3b0   : > { %v3374_v1 = vadd.f32 %v3134_v36, %v12634_v34  ;;  %v12852_v62 = vmul.f32 %v12682_v2, %v12791_v39  ;;  %v12861_v27 = vmul.f32 %v12857_v23, %v12791_v39  ;;  %v12864_v28 = vadd.f32 %v12057_v61, %v5672_v46  ;;  %v12882_v61 = vld [vmem:[%s13632_s1 + $0x8] ss:$0 sm:$0xff] }
 0x3b1   : > { %v7017_v35 = vpack.c.bf16 %v5902_v16, %v5901_v33  ;;  %v12866_v22 = vadd.f32 %v2578_v47, %v2443_v30  ;;  %v3815_v34 = vsel %vm2006_vm1, %v3812_v0, %v3814_v38  ;;  %v3139_v13 = vrot.slane %v12841_v26, 1 }
 0x3b2   : > { %v3817_v53 = vsel %vm2006_vm1, %v3814_v38, %v3816_v21  ;;  %v12886_v33 = vmul.f32 %v12882_v61, %v12791_v39  ;;  %v4056_v10 = vadd.f32 %v3815_v34, %v12731_v44  ;;  %v4749_v0 = vrot.slane %v12861_v27, 1  ;;  %v12904_v44 = vld [vmem:[%s13632_s1 + $0x6] ss:$0 sm:$0xff] }
 0x3b3   : > { %7113 = vst [vmem:[%s7696_s15 + $0x168] sm:$0xff] %v7017_v35   ;;  %v13908_v15 = vmov %v13907_v43  ;;  %v1198_v38 = vmul.f32 %v12574_v40, %v805_v7  ;;  %v2814_v48 = vmul.f32 %v12660_v49, %v805_v7  ;;  %v12899_v43 = vmul.f32 %v12582_v63, %v805_v7 }
 0x3b4   : > { %v2205_v52 = vsel %vm2006_vm1, %v2202_v55, %v13908_v15  ;;  %v4191_v56 = vmul.f32 %v12904_v44, %v805_v7  ;;  %v4428_v45 = vmul.f32 %v12857_v23, %v805_v7  ;;  %v5111_v31 = vmul.f32 %v12882_v61, %v805_v7 }
 0x3b5   : > { %v2442_v36 = vadd.f32 %v2205_v52, %v12729_v51  ;;  %v1526_v46 = vrot.slane %v1198_v38, 1  ;;  %v2577_v20 = vmul.f32 %v12621_v9, %v805_v7  ;;  %v3137_v30 = vrot.slane %v2814_v48, 1 }
 0x3b6   : > { %v4303_v16 = vadd.f32 %v4191_v56, %v4056_v10  ;;  %v4747_v47 = vrot.slane %v4428_v45, 1  ;;  %v5430_v35 = vrot.slane %v5111_v31, 2  ;;  %v4057_v34 = vadd.f32 %v3817_v53, %v3374_v1  ;;  %v820_v53 = vpop.permute.xlu1 %819 }
 0x3b7   : > { %v4192_v15 = vmul.f32 %v12904_v44, %v12791_v39  ;;  %v5432_v41 = vrot.slane %v12886_v33, 2  ;;  %v1527_v5 = vsel %vm1322_vm0, %v1524_v59, %v1526_v46  ;;  %v5903_v55 = vmax.f32 %v12864_v28, 0.0 }
 0x3b8   : > { %v13698_v51 = vrot.slane %v12899_v43, 2  ;;  %v4748_v10 = vsel %vm1322_vm0, %v4745_v11, %v4747_v47  ;;  %v4750_v1 = vsel %vm1322_vm0, %v4747_v47, %v4749_v0  ;;  %v2689_v39 = vadd.f32 %v2577_v20, %v2442_v36 }
 0x3b9   : > { %v12927_v52 = vmul.f32 %v12682_v2, %v805_v7  ;;  %v4990_v58 = vadd.f32 %v4748_v10, %v12793_v18  ;;  %v4991_v59 = vadd.f32 %v4750_v1, %v4303_v16  ;;  %v1529_v28 = vsel %vm1322_vm0, %v1526_v46, %v1528_v25  ;;  %v815_v1 = vpop.permute.xlu0 %814 }
 0x3ba   : > { %v3140_v29 = vsel %vm1322_vm0, %v3137_v30, %v3139_v13  ;;  %v5431_v11 = vsel %vm2006_vm1, %v5428_v32, %v5430_v35  ;;  %v1761_v38 = vadd.f32 %v1527_v5, %v12734_v42  ;;  %v5433_v48 = vsel %vm2006_vm1, %v5430_v35, %v5432_v41  ;;  %v12961_v5 = vld [vmem:[%s13633_s2] ss:$0 sm:$0xff] }
 0x3bb   : > { %v5673_v18 = vadd.f32 %v5431_v11, %v4990_v58  ;;  %v12944_v56 = vmul.f32 %v12574_v40, %v820_v53  ;;  %v12947_v45 = vmul.f32 %v12582_v63, %v820_v53  ;;  %v4304_v31 = vadd.f32 %v4192_v15, %v4057_v34 }
 0x3bc   : > { %v961_v36 = vmul.f32 %v12590_v6, %v805_v7  ;;  %v5674_v46 = vadd.f32 %v5433_v48, %v4991_v59  ;;  %v13909_v3 = vrot.slane %v12714_v60, 2  ;;  %v3138_v32 = vsel %vm1322_vm0, %v3135_v19, %v3137_v30 }
 0x3bd   : > { %v5792_v20 = vadd.f32 %v12961_v5, %v5673_v18  ;;  %v12965_v7 = vmul.f32 %v12660_v49, %v820_v53  ;;  %v12969_v35 = vadd.f32 %v3140_v29, %v2689_v39  ;;  %v13699_v34 = vrot.slane %v12927_v52, 2 }
 0x3be   : > { %v2211_v42 = vsel %vm2006_vm1, %v13909_v3, %v13698_v51  ;;  %v12967_v47 = vadd.f32 %v1529_v28, %v961_v36  ;;  %v12973_v54 = vmul.f32 %v12590_v6, %v820_v53  ;;  %v1532_v30 = vrot.slane %v12944_v56, 1 }
 0x3bf   : > { %v2445_v16 = vadd.f32 %v2211_v42, %v1761_v38  ;;  %v5904_v19 = vmax.f32 %v5792_v20, 0.0  ;;  %v2580_v10 = vmul.f32 %v12621_v9, %v820_v53  ;;  %v12979_v58 = vadd.f32 %v12961_v5, %v5674_v46 }
 0x3c0   : > { %v3376_v39 = vadd.f32 %v3138_v32, %v12752_v8  ;;  %v12983_v59 = vmul.f32 %v12682_v2, %v820_v53  ;;  %v12986_v28 = vmul.f32 %v12857_v23, %v820_v53  ;;  %v3143_v38 = vrot.slane %v12965_v7, 1 }
 0x3c1   : > { %v7022_v29 = vpack.c.bf16 %v5904_v19, %v5903_v55  ;;  %v12988_v11 = vadd.f32 %v2580_v10, %v2445_v16  ;;  %v13910_v48 = vrot.slane %v12727_v57, 2  ;;  %v13002_v46 = vmul.f32 %v12882_v61, %v820_v53 }
 0x3c2   : > { %v1200_v3 = vmul.f32 %v12574_v40, %v815_v1  ;;  %v4753_v42 = vrot.slane %v12986_v28, 1  ;;  %v13912_v4 = vrot.slane %v12714_v60, 2  ;;  %v13014_v57 = vmul.f32 %v12582_v63, %v815_v1 }
 0x3c3   : > { %v3819_v18 = vsel %vm2006_vm1, %v3816_v21, %v13910_v48  ;;  %v13911_v8 = vmov %v13910_v48  ;;  %7114 = vst [vmem:[%s7696_s15 + $0x170] sm:$0xff] %v7022_v29   ;;  %v13913_v21 = vrot.slane %v12767_v50, 2  ;;  %v2816_v20 = vmul.f32 %v12660_v49, %v815_v1 }
 0x3c4   : > { %v3821_v36 = vsel %vm2006_vm1, %v13911_v8, %v13699_v34  ;;  %v4058_v55 = vadd.f32 %v3819_v18, %v12843_v14  ;;  %v1530_v16 = vrot.slane %v1200_v3, 1  ;;  %v4193_v19 = vmul.f32 %v12904_v44, %v815_v1 }
 0x3c5   : > { %v2209_v32 = vsel %vm2006_vm1, %v13913_v21, %v13912_v4  ;;  %v4430_v14 = vmul.f32 %v12857_v23, %v815_v1  ;;  %v5113_v10 = vmul.f32 %v12882_v61, %v815_v1  ;;  %v5905_v29 = vmax.f32 %v12979_v58, 0.0 }
 0x3c6   : > { %v4194_v60 = vmul.f32 %v12904_v44, %v820_v53  ;;  %v2444_v50 = vadd.f32 %v2209_v32, %v12832_v12  ;;  %v2579_v48 = vmul.f32 %v12621_v9, %v815_v1  ;;  %v3826_v18 = vrot.slane %v12983_v59, 2 }
 0x3c7   : > { %v3141_v8 = vrot.slane %v2816_v20, 1  ;;  %v4305_v4 = vadd.f32 %v4193_v19, %v4058_v55  ;;  %v4751_v21 = vrot.slane %v4430_v14, 1  ;;  %v4059_v3 = vadd.f32 %v3821_v36, %v3376_v39  ;;  %v830_v39 = vpop.permute.xlu1 %829 }
 0x3c8   : > { %v5436_v15 = vrot.slane %v13002_v46, 2  ;;  %v1531_v51 = vsel %vm1322_vm0, %v1528_v25, %v1530_v16  ;;  %v5434_v34 = vrot.slane %v5113_v10, 2  ;;  %v963_v58 = vmul.f32 %v12590_v6, %v815_v1 }
 0x3c9   : > { %v2214_v53 = vrot.slane %v13014_v57, 2  ;;  %v4752_v12 = vsel %vm1322_vm0, %v4749_v0, %v4751_v21  ;;  %v4754_v55 = vsel %vm1322_vm0, %v4751_v21, %v4753_v42  ;;  %v2691_v36 = vadd.f32 %v2579_v48, %v2444_v50 }
 0x3ca   : > { %v13038_v32 = vmul.f32 %v12682_v2, %v815_v1  ;;  %v4992_v17 = vadd.f32 %v4752_v12, %v4304_v31  ;;  %v4993_v25 = vadd.f32 %v4754_v55, %v4305_v4  ;;  %v1533_v20 = vsel %vm1322_vm0, %v1530_v16, %v1532_v30 }
 0x3cb   : > { %v3142_v27 = vsel %vm1322_vm0, %v3139_v13, %v3141_v8  ;;  %v5435_v0 = vsel %vm2006_vm1, %v5432_v41, %v5434_v34  ;;  %v1763_v19 = vadd.f32 %v1531_v51, %v12837_v24  ;;  %v3144_v1 = vsel %vm1322_vm0, %v3141_v8, %v3143_v38 }
 0x3cc   : > { %v5437_v31 = vsel %vm2006_vm1, %v5434_v34, %v5436_v15  ;;  %v5675_v14 = vadd.f32 %v5435_v0, %v4992_v17  ;;  %v13057_v16 = vmul.f32 %v12574_v40, %v830_v39  ;;  %v13060_v13 = vmul.f32 %v12582_v63, %v830_v39 }
 0x3cd   : > { %v5676_v26 = vadd.f32 %v5437_v31, %v4993_v25  ;;  %v13914_v24 = vrot.slane %v12821_v37, 2  ;;  %v13068_v33 = vmul.f32 %v12660_v49, %v830_v39  ;;  %v4306_v51 = vadd.f32 %v4194_v60, %v4059_v3  ;;  %v825_v25 = vpop.permute.xlu0 %824 }
 0x3ce   : > { %v3824_v34 = vrot.slane %v13038_v32, 2  ;;  %v5794_v10 = vadd.f32 %v12961_v5, %v5675_v14  ;;  %v13072_v48 = vadd.f32 %v1533_v20, %v963_v58  ;;  %v13074_v8 = vadd.f32 %v3144_v1, %v2691_v36 }
 0x3cf   : > { %v2215_v41 = vsel %vm2006_vm1, %v13914_v24, %v2214_v53  ;;  %v3378_v4 = vadd.f32 %v3142_v27, %v12866_v22  ;;  %v13078_v21 = vmul.f32 %v12857_v23, %v830_v39  ;;  %v13081_v55 = vmul.f32 %v12590_v6, %v830_v39 }
 0x3d0   : > { %v2447_v50 = vadd.f32 %v2215_v41, %v1763_v19  ;;  %v5906_v12 = vmax.f32 %v5794_v10, 0.0  ;;  %v2582_v3 = vmul.f32 %v12621_v9, %v830_v39  ;;  %v13086_v17 = vadd.f32 %v12961_v5, %v5676_v26 }
 0x3d1   : > { %v3147_v36 = vrot.slane %v13068_v33, 1  ;;  %v13091_v22 = vmul.f32 %v12682_v2, %v830_v39  ;;  %v13915_v0 = vrot.slane %v12852_v62, 2  ;;  %v13917_v31 = vrot.slane %v12927_v52, 2 }
 0x3d2   : > { %v7027_v20 = vpack.c.bf16 %v5906_v12, %v5905_v29  ;;  %v13093_v27 = vadd.f32 %v2582_v3, %v2447_v50  ;;  %v4757_v24 = vrot.slane %v13078_v21, 1  ;;  %v13107_v41 = vmul.f32 %v12882_v61, %v830_v39 }
 0x3d3   : > { %v3825_v19 = vsel %vm2006_vm1, %v13915_v0, %v3824_v34  ;;  %v13916_v1 = vmov %v13915_v0  ;;  %v13918_v10 = vrot.slane %v12821_v37, 2  ;;  %v13919_v50 = vrot.slane %v12899_v43, 2 }
 0x3d4   : > { %v3823_v14 = vsel %vm2006_vm1, %v13917_v31, %v13916_v1  ;;  %v4061_v26 = vadd.f32 %v3825_v19, %v3378_v4  ;;  %7115 = vst [vmem:[%s7696_s15 + $0x178] sm:$0xff] %v7027_v20   ;;  %v2818_v62 = vmul.f32 %v12660_v49, %v825_v25  ;;  %v13118_v52 = vmul.f32 %v12682_v2, %v825_v25 }
 0x3d5   : > { %v4060_v29 = vadd.f32 %v3823_v14, %v12969_v35  ;;  %v2213_v12 = vsel %vm2006_vm1, %v13919_v50, %v13918_v10  ;;  %v4195_v4 = vmul.f32 %v12904_v44, %v825_v25  ;;  %v2581_v0 = vmul.f32 %v12621_v9, %v825_v25 }
 0x3d6   : > { %v2446_v3 = vadd.f32 %v2213_v12, %v12967_v47  ;;  %v4432_v35 = vmul.f32 %v12857_v23, %v825_v25  ;;  %v5115_v20 = vmul.f32 %v12882_v61, %v825_v25  ;;  %v5907_v37 = vmax.f32 %v13086_v17, 0.0  ;;  %v13131_v47 = vpop.permute.xlu1 %839 }
 0x3d7   : > { %v3830_v43 = vrot.slane %v13091_v22, 2  ;;  %v4196_v19 = vmul.f32 %v12904_v44, %v830_v39  ;;  %v3145_v1 = vrot.slane %v2818_v62, 1  ;;  %v13129_v31 = vmul.f32 %v12574_v40, %v825_v25 }
 0x3d8   : > { %v4307_v14 = vadd.f32 %v4195_v4, %v4060_v29  ;;  %v4755_v10 = vrot.slane %v4432_v35, 1  ;;  %v5438_v50 = vrot.slane %v5115_v20, 2  ;;  %v13134_v58 = vmul.f32 %v12582_v63, %v825_v25 }
 0x3d9   : > { %v4308_v12 = vadd.f32 %v4196_v19, %v4061_v26  ;;  %v3146_v17 = vsel %vm1322_vm0, %v3143_v38, %v3145_v1  ;;  %v3828_v60 = vrot.slane %v13118_v52, 2  ;;  %v5440_v39 = vrot.slane %v13107_v41, 2 }
 0x3da   : > { %v2693_v62 = vadd.f32 %v2581_v0, %v2446_v3  ;;  %v4756_v29 = vsel %vm1322_vm0, %v4753_v42, %v4755_v10  ;;  %v4758_v26 = vsel %vm1322_vm0, %v4755_v10, %v4757_v24  ;;  %v13148_v4 = vmul.f32 %v12590_v6, %v825_v25  ;;  %v13162_v6 = vpop.permute.xlu0 %834  ;;  %v13196_v32 = vpop.permute.xlu1 %849 }
 0x3db   : > { %v3148_v7 = vsel %vm1322_vm0, %v3145_v1, %v3147_v36  ;;  %v4994_v38 = vadd.f32 %v4756_v29, %v4306_v51  ;;  %v13155_v41 = vmul.f32 %v12857_v23, %v13131_v47  ;;  %v1534_v28 = vrot.slane %v13129_v31, 1 }
 0x3dc   : > { %v4995_v52 = vadd.f32 %v4758_v26, %v4307_v14  ;;  %v5439_v42 = vsel %vm2006_vm1, %v5436_v15, %v5438_v50  ;;  %v3380_v3 = vadd.f32 %v3146_v17, %v12988_v11  ;;  %v2218_v25 = vrot.slane %v13134_v58, 2 }
 0x3dd   : > { %v5677_v0 = vadd.f32 %v5439_v42, %v4994_v38  ;;  %v3829_v51 = vsel %vm2006_vm1, %v3826_v18, %v3828_v60  ;;  %v4198_v35 = vmul.f32 %v12904_v44, %v13131_v47  ;;  %v3381_v20 = vadd.f32 %v3148_v7, %v2693_v62 }
 0x3de   : > { %v5441_v19 = vsel %vm2006_vm1, %v5438_v50, %v5440_v39  ;;  %v13173_v15 = vmul.f32 %v12882_v61, %v13131_v47  ;;  %v3827_v11 = vsel %vm2006_vm1, %v3824_v34, %v3826_v18  ;;  %v4761_v1 = vrot.slane %v13155_v41, 1 }
 0x3df   : > { %v5796_v46 = vadd.f32 %v12961_v5, %v5677_v0  ;;  %v4062_v14 = vadd.f32 %v3827_v11, %v13074_v8  ;;  %v13185_v10 = vmul.f32 %v12660_v49, %v13162_v6  ;;  %v5678_v50 = vadd.f32 %v5441_v19, %v4995_v52  ;;  %v13220_v0 = vpop.permute.xlu0 %844 }
 0x3e0   : > { %v4063_v17 = vadd.f32 %v3829_v51, %v3380_v3  ;;  %v13920_v62 = vrot.slane %v12947_v45, 2  ;;  %v13194_v18 = vmul.f32 %v12574_v40, %v13162_v6  ;;  %v13201_v29 = vmul.f32 %v12682_v2, %v13162_v6 }
 0x3e1   : > { %v5908_v34 = vmax.f32 %v5796_v46, 0.0  ;;  %v3149_v8 = vrot.slane %v13185_v10, 1  ;;  %v4197_v26 = vmul.f32 %v12904_v44, %v13162_v6  ;;  %v5444_v57 = vrot.slane %v13173_v15, 2 }
 0x3e2   : > { %v2217_v59 = vsel %vm2006_vm1, %v2214_v53, %v13920_v62  ;;  %v4434_v7 = vmul.f32 %v12857_v23, %v13162_v6  ;;  %v5117_v38 = vmul.f32 %v12882_v61, %v13162_v6  ;;  %v13218_v3 = vmul.f32 %v12857_v23, %v13196_v32 }
 0x3e3   : > { %v2448_v53 = vadd.f32 %v2217_v59, %v13072_v48  ;;  %v7032_v41 = vpack.c.bf16 %v5908_v34, %v5907_v37  ;;  %v3150_v52 = vsel %vm1322_vm0, %v3147_v36, %v3149_v8  ;;  %v4309_v42 = vadd.f32 %v4197_v26, %v4062_v14 }
 0x3e4   : > { %v13224_v48 = vmul.f32 %v12582_v63, %v13162_v6  ;;  %v2583_v37 = vmul.f32 %v12621_v9, %v13162_v6  ;;  %v4759_v51 = vrot.slane %v4434_v7, 1  ;;  %v5442_v19 = vrot.slane %v5117_v38, 2 }
 0x3e5   : > { %v5797_v33 = vadd.f32 %v12961_v5, %v5678_v50  ;;  %7116 = vst [vmem:[%s7696_s15 + $0x180] sm:$0xff] %v7032_v41   ;;  %v4310_v36 = vadd.f32 %v4198_v35, %v4063_v17  ;;  %v1538_v15 = vrot.slane %v13194_v18, 1  ;;  %v3832_v11 = vrot.slane %v13201_v29, 2 }
 0x3e6   : > { %v4760_v46 = vsel %vm1322_vm0, %v4757_v24, %v4759_v51  ;;  %v4762_v63 = vsel %vm1322_vm0, %v4759_v51, %v4761_v1  ;;  %v3382_v14 = vadd.f32 %v3150_v52, %v13093_v27  ;;  %v4199_v62 = vmul.f32 %v12904_v44, %v13220_v0 }
 0x3e7   : > { %v4996_v59 = vadd.f32 %v4760_v46, %v4308_v12  ;;  %v4997_v34 = vadd.f32 %v4762_v63, %v4309_v42  ;;  %v4765_v50 = vrot.slane %v13218_v3, 1  ;;  %v3831_v35 = vsel %vm2006_vm1, %v3828_v60, %v3830_v43 }
 0x3e8   : > { %v5443_v17 = vsel %vm2006_vm1, %v5440_v39, %v5442_v19  ;;  %v4064_v21 = vadd.f32 %v3831_v35, %v3381_v20  ;;  %v4436_v24 = vmul.f32 %v12857_v23, %v13220_v0  ;;  %v5119_v27 = vmul.f32 %v12882_v61, %v13220_v0 }
 0x3e9   : > { %v2695_v26 = vadd.f32 %v2583_v37, %v2448_v53  ;;  %v5445_v7 = vsel %vm2006_vm1, %v5442_v19, %v5444_v57  ;;  %v5679_v12 = vadd.f32 %v5443_v17, %v4996_v59  ;;  %v13251_v38 = vmul.f32 %v12882_v61, %v13196_v32 }
 0x3ea   : > { %v5680_v41 = vadd.f32 %v5445_v7, %v4997_v34  ;;  %v4311_v52 = vadd.f32 %v4199_v62, %v4064_v21  ;;  %v4763_v60 = vrot.slane %v4436_v24, 1  ;;  %v5446_v42 = vrot.slane %v5119_v27, 2 }
 0x3eb   : > { %v5909_v39 = vmax.f32 %v5797_v33, 0.0  ;;  %v5798_v20 = vadd.f32 %v12961_v5, %v5679_v12  ;;  %v3833_v53 = vsel %vm2006_vm1, %v3830_v43, %v3832_v11  ;;  %v1535_v37 = vsel %vm1322_vm0, %v1532_v30, %v1534_v28  ;;  %v2459_v12 = vpop.permute.xlu1 %2458 }
 0x3ec   : > { %v4065_v51 = vadd.f32 %v3833_v53, %v3382_v14  ;;  %v4764_v19 = vsel %vm1322_vm0, %v4761_v1, %v4763_v60  ;;  %v4766_v33 = vsel %vm1322_vm0, %v4763_v60, %v4765_v50  ;;  %v2821_v46 = vmul.f32 %v12660_v49, %v13131_v47 }
 0x3ed   : > { %v5910_v63 = vmax.f32 %v5798_v20, 0.0  ;;  %v5448_v22 = vrot.slane %v13251_v38, 2  ;;  %v4998_v43 = vadd.f32 %v4764_v19, %v4310_v36  ;;  %v3504_v56 = vmul.f32 %v12682_v2, %v13131_v47 }
 0x3ee   : > { %v5799_v30 = vadd.f32 %v12961_v5, %v5680_v41  ;;  %v4999_v14 = vadd.f32 %v4766_v33, %v4311_v52  ;;  %v5447_v1 = vsel %vm2006_vm1, %v5444_v57, %v5446_v42  ;;  %v1765_v62 = vadd.f32 %v1535_v37, %v12973_v54 }
 0x3ef   : > { %v7037_v59 = vpack.c.bf16 %v5910_v63, %v5909_v39  ;;  %v5681_v34 = vadd.f32 %v5447_v1, %v4998_v43  ;;  %v13921_v35 = vrot.slane %v12947_v45, 2  ;;  %v13283_v36 = vmul.f32 %v12660_v49, %v13220_v0 }
 0x3f0   : > { %v2584_v21 = vmul.f32 %v12621_v9, %v13131_v47  ;;  %v3151_v24 = vrot.slane %v2821_v46, 1  ;;  %v13289_v54 = vmul.f32 %v12682_v2, %v13220_v0  ;;  %v4200_v57 = vmul.f32 %v12904_v44, %v13196_v32 }
 0x3f1   : > { %v2219_v17 = vsel %vm2006_vm1, %v13921_v35, %v2218_v25  ;;  %7117 = vst [vmem:[%s7696_s15 + $0x188] sm:$0xff] %v7037_v59   ;;  %v5449_v45 = vsel %vm2006_vm1, %v5446_v42, %v5448_v22  ;;  %v5800_v7 = vadd.f32 %v12961_v5, %v5681_v34  ;;  %v3153_v41 = vrot.slane %v13283_v36, 1 }
 0x3f2   : > { %v2449_v27 = vadd.f32 %v2219_v17, %v1765_v62  ;;  %v5682_v52 = vadd.f32 %v5449_v45, %v4999_v14  ;;  %v3834_v60 = vrot.slane %v3504_v56, 2  ;;  %v3836_v20 = vrot.slane %v13289_v54, 2  ;;  %v13310_v56 = vpop.permute.xlu0 %1085 }
 0x3f3   : > { %v2222_v53 = vrot.slane %v13224_v48, 2  ;;  %v5911_v37 = vmax.f32 %v5799_v30, 0.0  ;;  %v5912_v19 = vmax.f32 %v5800_v7, 0.0  ;;  %v3154_v33 = vsel %vm1322_vm0, %v3151_v24, %v3153_v41 }
 0x3f4   : > { %v2696_v39 = vadd.f32 %v2584_v21, %v2449_v27  ;;  %v4312_v42 = vadd.f32 %v4200_v57, %v4065_v51  ;;  %v13305_v63 = vmul.f32 %v12857_v23, %v2459_v12  ;;  %v3152_v43 = vsel %vm1322_vm0, %v3149_v8, %v3151_v24 }
 0x3f5   : > { %v7042_v14 = vpack.c.bf16 %v5912_v19, %v5911_v37  ;;  %v13313_v30 = vmul.f32 %v12660_v49, %v2459_v12  ;;  %v13316_v1 = vmul.f32 %v12682_v2, %v2459_v12  ;;  %v3383_v62 = vadd.f32 %v3152_v43, %v2695_v26 }
 0x3f6   : > { %v3384_v46 = vadd.f32 %v3154_v33, %v2696_v39  ;;  %v5801_v51 = vadd.f32 %v12961_v5, %v5682_v52  ;;  %v3837_v59 = vsel %vm2006_vm1, %v3834_v60, %v3836_v20  ;;  %v13323_v10 = vmul.f32 %v12882_v61, %v2459_v12 }
 0x3f7   : > { %v3835_v8 = vsel %vm2006_vm1, %v3832_v11, %v3834_v60  ;;  %7118 = vst [vmem:[%s7696_s15 + $0x190] sm:$0xff] %v7042_v14   ;;  %v4201_v35 = vmul.f32 %v12904_v44, %v13310_v56  ;;  %v4438_v26 = vmul.f32 %v12857_v23, %v13310_v56  ;;  %v5121_v17 = vmul.f32 %v12882_v61, %v13310_v56  ;;  %v13361_v14 = vpop.permute.xlu1 %2468 }
 0x3f8   : > { %v4066_v34 = vadd.f32 %v3835_v8, %v3383_v62  ;;  %v13336_v21 = vmul.f32 %v12621_v9, %v2459_v12  ;;  %v4067_v24 = vadd.f32 %v3837_v59, %v3384_v46  ;;  %v4769_v27 = vrot.slane %v13305_v63, 1 }
 0x3f9   : > { %v13341_v29 = vmul.f32 %v12660_v49, %v13310_v56  ;;  %v4202_v11 = vmul.f32 %v12904_v44, %v2459_v12  ;;  %v13346_v57 = vmul.f32 %v12682_v2, %v13310_v56  ;;  %v4767_v45 = vrot.slane %v4438_v26, 1 }
 0x3fa   : > { %v5450_v7 = vrot.slane %v5121_v17, 2  ;;  %v3159_v52 = vrot.slane %v13313_v30, 1  ;;  %v3842_v60 = vrot.slane %v13316_v1, 2  ;;  %v5452_v39 = vrot.slane %v13323_v10, 2 }
 0x3fb   : > { %v13922_v37 = vrot.slane %v13057_v16, 1  ;;  %v5913_v33 = vmax.f32 %v5801_v51, 0.0  ;;  %v4313_v12 = vadd.f32 %v4201_v35, %v4066_v34  ;;  %v4768_v46 = vsel %vm1322_vm0, %v4765_v50, %v4767_v45 }
 0x3fc   : > { %v2823_v43 = vmul.f32 %v12660_v49, %v13196_v32  ;;  %v4314_v62 = vadd.f32 %v4202_v11, %v4067_v24  ;;  %v3157_v59 = vrot.slane %v13341_v29, 1  ;;  %v4770_v8 = vsel %vm1322_vm0, %v4767_v45, %v4769_v27 }
 0x3fd   : > { %v1539_v19 = vsel %vm1322_vm0, %v13922_v37, %v1538_v15  ;;  %v5000_v26 = vadd.f32 %v4768_v46, %v4312_v42  ;;  %v3840_v51 = vrot.slane %v13346_v57, 2  ;;  %v5451_v3 = vsel %vm2006_vm1, %v5448_v22, %v5450_v7 }
 0x3fe   : > { %v3506_v50 = vmul.f32 %v12682_v2, %v13196_v32  ;;  %v1767_v34 = vadd.f32 %v1539_v19, %v13081_v55  ;;  %v2586_v17 = vmul.f32 %v12621_v9, %v13196_v32  ;;  %v13923_v24 = vrot.slane %v13060_v13, 2 }
 0x3ff   : > { %v5683_v35 = vadd.f32 %v5451_v3, %v5000_v26  ;;  %v13383_v38 = vmul.f32 %v12660_v49, %v13361_v14  ;;  %v5001_v22 = vadd.f32 %v4770_v8, %v4313_v12  ;;  %v5453_v11 = vsel %vm2006_vm1, %v5450_v7, %v5452_v39 }
 0x400   : > { %v2223_v42 = vsel %vm2006_vm1, %v13923_v24, %v2222_v53  ;;  %v3155_v55 = vrot.slane %v2823_v43, 1  ;;  %v13924_v45 = vmov %v13922_v37  ;;  %v13396_v46 = vmul.f32 %v12857_v23, %v13361_v14  ;;  %v13410_v43 = vpop.permute.xlu0 %2463 }
 0x401   : > { %v1537_v37 = vsel %vm1322_vm0, %v1534_v28, %v13924_v45  ;;  %v5802_v19 = vadd.f32 %v12961_v5, %v5683_v35  ;;  %v2585_v12 = vmul.f32 %v12621_v9, %v13220_v0  ;;  %v3838_v8 = vrot.slane %v3506_v50, 2 }
 0x402   : > { %v1766_v26 = vadd.f32 %v1537_v37, %v13148_v4  ;;  %v2451_v7 = vadd.f32 %v2223_v42, %v1767_v34  ;;  %v13403_v16 = vmul.f32 %v12882_v61, %v13361_v14  ;;  %v13925_v31 = vmov %v13923_v24 }
 0x403   : > { %v2221_v28 = vsel %vm2006_vm1, %v2218_v25, %v13925_v31  ;;  %v5914_v3 = vmax.f32 %v5802_v19, 0.0  ;;  %v3163_v4 = vrot.slane %v13383_v38, 1  ;;  %v13415_v9 = vmul.f32 %v12904_v44, %v13361_v14  ;;  %v13455_v31 = vld [vmem:[%s13632_s1 + $0x2] ss:$0 sm:$0xff] }
 0x404   : > { %v2450_v50 = vadd.f32 %v2221_v28, %v1766_v26  ;;  %v5684_v34 = vadd.f32 %v5453_v11, %v5001_v22  ;;  %v3158_v13 = vsel %vm1322_vm0, %v3155_v55, %v3157_v59  ;;  %v3841_v58 = vsel %vm2006_vm1, %v3838_v8, %v3840_v51 }
 0x405   : > { %v3156_v25 = vsel %vm1322_vm0, %v3153_v41, %v3155_v55  ;;  %v7047_v35 = vpack.c.bf16 %v5914_v3, %v5913_v33  ;;  %v4773_v24 = vrot.slane %v13396_v46, 1  ;;  %v4440_v45 = vmul.f32 %v12857_v23, %v13410_v43 }
 0x406   : > { %v2697_v42 = vadd.f32 %v2585_v12, %v2450_v50  ;;  %v2698_v22 = vadd.f32 %v2586_v17, %v2451_v7  ;;  %v5456_v11 = vrot.slane %v13403_v16, 2  ;;  %v3839_v37 = vsel %vm2006_vm1, %v3836_v20, %v3838_v8 }
 0x407   : > { %v5123_v19 = vmul.f32 %v12882_v61, %v13410_v43  ;;  %7119 = vst [vmem:[%s7696_s15 + $0x198] sm:$0xff] %v7047_v35   ;;  %v4203_v41 = vmul.f32 %v12904_v44, %v13410_v43  ;;  %v4771_v33 = vrot.slane %v4440_v45, 1  ;;  %v1205_v55 = vmul.f32 %v12574_v40, %v13131_v47 }
 0x408   : > { %v3385_v36 = vadd.f32 %v3156_v25, %v2697_v42  ;;  %v3386_v26 = vadd.f32 %v3158_v13, %v2698_v22  ;;  %v5803_v17 = vadd.f32 %v12961_v5, %v5684_v34  ;;  %v13443_v54 = vmul.f32 %v12574_v40, %v13220_v0  ;;  %v13477_v42 = vld [vmem:[%s13632_s1] ss:$0 sm:$0xff] }
 0x409   : > { %v5454_v12 = vrot.slane %v5123_v19, 2  ;;  %v13447_v8 = vmul.f32 %v12660_v49, %v13410_v43  ;;  %v4772_v7 = vsel %vm1322_vm0, %v4769_v27, %v4771_v33  ;;  %v1889_v28 = vmul.f32 %v13455_v31, %v13131_v47  ;;  %v4077_v19 = vpop.permute.xlu1 %4076 }
 0x40a   : > { %v4068_v20 = vadd.f32 %v3839_v37, %v3385_v36  ;;  %v13461_v40 = vmul.f32 %v12682_v2, %v13410_v43  ;;  %v4774_v49 = vsel %vm1322_vm0, %v4771_v33, %v4773_v24  ;;  %v5002_v3 = vadd.f32 %v4772_v7, %v4314_v62 }
 0x40b   : > { %v1540_v63 = vrot.slane %v1205_v55, 1  ;;  %v5455_v27 = vsel %vm2006_vm1, %v5452_v39, %v5454_v12  ;;  %v1542_v34 = vrot.slane %v13443_v54, 1  ;;  %v13472_v13 = vmul.f32 %v13455_v31, %v13220_v0 }
 0x40c   : > { %v4315_v50 = vadd.f32 %v4203_v41, %v4068_v20  ;;  %v4069_v25 = vadd.f32 %v3841_v58, %v3386_v26  ;;  %v5915_v2 = vmax.f32 %v5803_v17, 0.0  ;;  %v5685_v35 = vadd.f32 %v5455_v27, %v5002_v3 }
 0x40d   : > { %v968_v62 = vmul.f32 %v13477_v42, %v13131_v47  ;;  %v2224_v45 = vrot.slane %v1889_v28, 2  ;;  %v1543_v39 = vsel %vm1322_vm0, %v1540_v63, %v1542_v34  ;;  %v2226_v22 = vrot.slane %v13472_v13, 2 }
 0x40e   : > { %v5003_v10 = vadd.f32 %v4774_v49, %v4315_v50  ;;  %v3161_v58 = vrot.slane %v13447_v8, 1  ;;  %v5804_v37 = vadd.f32 %v12961_v5, %v5685_v35  ;;  %v967_v41 = vmul.f32 %v13477_v42, %v13162_v6  ;;  %v2706_v6 = vpop.permute.xlu0 %2705  ;;  %v7199_v49 = vld [vmem:[%s13632_s1 + $0x3] ss:$0 sm:$0xff] }
 0x40f   : > { %v1769_v36 = vadd.f32 %v1543_v39, %v968_v62  ;;  %v3844_v33 = vrot.slane %v13461_v40, 2  ;;  %v5457_v47 = vsel %vm2006_vm1, %v5454_v12, %v5456_v11  ;;  %v2227_v55 = vsel %vm2006_vm1, %v2224_v45, %v2226_v22 }
 0x410   : > { %v1541_v26 = vsel %vm1322_vm0, %v1538_v15, %v1540_v63  ;;  %v5686_v17 = vadd.f32 %v5457_v47, %v5003_v10  ;;  %v5916_v20 = vmax.f32 %v5804_v37, 0.0  ;;  %v13503_v12 = vmul.f32 %v7199_v49, %v13410_v43  ;;  %v7201_v37 = vld [vmem:[%s13632_s1 + $0x5] ss:$0 sm:$0xff] }
 0x411   : > { %v2453_v7 = vadd.f32 %v2227_v55, %v1769_v36  ;;  %v1768_v28 = vadd.f32 %v1541_v26, %v967_v41  ;;  %v13506_v3 = vmul.f32 %v12857_v23, %v4077_v19  ;;  %v2225_v18 = vsel %vm2006_vm1, %v2222_v53, %v2224_v45  ;;  %v7200_v45 = vld [vmem:[%s13632_s1 + $0x4] ss:$0 sm:$0xff]  ;;  %v7202_v26 = vld [vmem:[%s13632_s1 + $0x1] ss:$0 sm:$0xff] }
 0x412   : > { %v2587_v15 = vmul.f32 %v7199_v49, %v13310_v56  ;;  %v4316_v63 = vadd.f32 %v13415_v9, %v4069_v25  ;;  %v7052_v50 = vpack.c.bf16 %v5916_v20, %v5915_v2  ;;  %v3162_v27 = vsel %vm1322_vm0, %v3159_v52, %v3161_v58  ;;  %v4082_v46 = vpop.permute.xlu0 %4081 }
 0x413   : > { %v2452_v43 = vadd.f32 %v2225_v18, %v1768_v28  ;;  %v2700_v35 = vadd.f32 %v13336_v21, %v2453_v7  ;;  %v13520_v62 = vmul.f32 %v12882_v61, %v4077_v19  ;;  %v3160_v48 = vsel %vm1322_vm0, %v3157_v59, %v3159_v52 }
 0x414   : > { %v4442_v53 = vmul.f32 %v12857_v23, %v2706_v6  ;;  %v5805_v9 = vadd.f32 %v12961_v5, %v5686_v17  ;;  %7120 = vst [vmem:[%s7696_s15 + $0x1a0] sm:$0xff] %v7052_v50   ;;  %v3845_v21 = vsel %vm2006_vm1, %v3842_v60, %v3844_v33  ;;  %v5125_v2 = vmul.f32 %v12882_v61, %v2706_v6 }
 0x415   : > { %v2699_v25 = vadd.f32 %v2587_v15, %v2452_v43  ;;  %v3388_v10 = vadd.f32 %v3162_v27, %v2700_v35  ;;  %v4206_v30 = vmul.f32 %v12904_v44, %v4077_v19  ;;  %v4777_v29 = vrot.slane %v13506_v3, 1 }
 0x416   : > { %v4775_v52 = vrot.slane %v4442_v53, 1  ;;  %v2828_v39 = vmul.f32 %v7200_v45, %v2706_v6  ;;  %v13544_v36 = vmul.f32 %v7201_v37, %v2706_v6  ;;  %v5458_v41 = vrot.slane %v5125_v2, 2  ;;  %v4087_v2 = vpop.permute.xlu1 %4086 }
 0x417   : > { %v3387_v59 = vadd.f32 %v3160_v48, %v2699_v25  ;;  %v5460_v47 = vrot.slane %v13520_v62, 2  ;;  %v3843_v19 = vsel %vm2006_vm1, %v3840_v51, %v3842_v60  ;;  %v1207_v17 = vmul.f32 %v7202_v26, %v13196_v32 }
 0x418   : > { %v4776_v55 = vsel %vm1322_vm0, %v4773_v24, %v4775_v52  ;;  %v5917_v20 = vmax.f32 %v5805_v9, 0.0  ;;  %v4205_v28 = vmul.f32 %v12904_v44, %v2706_v6  ;;  %v4071_v1 = vadd.f32 %v3845_v21, %v3388_v10 }
 0x419   : > { %v4070_v7 = vadd.f32 %v3843_v19, %v3387_v59  ;;  %v5004_v18 = vadd.f32 %v4776_v55, %v4316_v63  ;;  %v5459_v57 = vsel %vm2006_vm1, %v5456_v11, %v5458_v41  ;;  %v1891_v60 = vmul.f32 %v13455_v31, %v13196_v32 }
 0x41a   : > { %v1208_v51 = vmul.f32 %v7202_v26, %v13310_v56  ;;  %v3165_v24 = vrot.slane %v2828_v39, 1  ;;  %v3848_v15 = vrot.slane %v13544_v36, 2  ;;  %v1892_v27 = vmul.f32 %v13455_v31, %v13310_v56 }
 0x41b   : > { %v5687_v50 = vadd.f32 %v5459_v57, %v5004_v18  ;;  %v970_v6 = vmul.f32 %v13477_v42, %v13196_v32  ;;  %v1544_v63 = vrot.slane %v1207_v17, 1  ;;  %v3510_v16 = vmul.f32 %v7201_v37, %v13361_v14 }
 0x41c   : > { %v1546_v11 = vrot.slane %v1208_v51, 1  ;;  %v4317_v43 = vadd.f32 %v4205_v28, %v4070_v7  ;;  %v4778_v35 = vsel %vm1322_vm0, %v4775_v52, %v4777_v29  ;;  %v2230_v53 = vrot.slane %v1892_v27, 2 }
 0x41d   : > { %v5806_v48 = vadd.f32 %v12961_v5, %v5687_v50  ;;  %v4318_v9 = vadd.f32 %v4206_v30, %v4071_v1  ;;  %v2228_v21 = vrot.slane %v1891_v60, 2  ;;  %v2590_v25 = vmul.f32 %v7199_v49, %v13361_v14  ;;  %v4324_v30 = vpop.permute.xlu0 %4323 }
 0x41e   : > { %v1547_v56 = vsel %vm1322_vm0, %v1544_v63, %v1546_v11  ;;  %v5461_v32 = vsel %vm2006_vm1, %v5458_v41, %v5460_v47  ;;  %v969_v52 = vmul.f32 %v13477_v42, %v13220_v0  ;;  %v3846_v59 = vrot.slane %v3510_v16, 2 }
 0x41f   : > { %v5918_v31 = vmax.f32 %v5806_v48, 0.0  ;;  %v1771_v10 = vadd.f32 %v1547_v56, %v970_v6  ;;  %v2231_v45 = vsel %vm2006_vm1, %v2228_v21, %v2230_v53  ;;  %v3166_v14 = vsel %vm1322_vm0, %v3163_v4, %v3165_v24 }
 0x420   : > { %v1545_v49 = vsel %vm1322_vm0, %v1542_v34, %v1544_v63  ;;  %v5005_v39 = vadd.f32 %v4778_v35, %v4317_v43  ;;  %v4445_v19 = vmul.f32 %v12857_v23, %v4087_v2  ;;  %v2229_v0 = vsel %vm2006_vm1, %v2226_v22, %v2228_v21 }
 0x421   : > { %v7057_v37 = vpack.c.bf16 %v5918_v31, %v5917_v20  ;;  %v2455_v36 = vadd.f32 %v2231_v45, %v1771_v10  ;;  %v1770_v41 = vadd.f32 %v1545_v49, %v969_v52  ;;  %v4444_v42 = vmul.f32 %v12857_v23, %v4082_v46 }
 0x422   : > { %v5127_v55 = vmul.f32 %v12882_v61, %v4082_v46  ;;  %v4208_v54 = vmul.f32 %v12904_v44, %v4087_v2  ;;  %v4446_v17 = vmul.f32 %v12857_v23, %v4324_v30  ;;  %v3164_v20 = vsel %vm1322_vm0, %v3161_v58, %v3163_v4 }
 0x423   : > { %7121 = vst [vmem:[%s7696_s15 + $0x1a8] sm:$0xff] %v7057_v37   ;;  %v2702_v26 = vadd.f32 %v2590_v25, %v2455_v36  ;;  %v2454_v34 = vadd.f32 %v2229_v0, %v1770_v41  ;;  %v4779_v13 = vrot.slane %v4444_v42, 1  ;;  %v5129_v22 = vmul.f32 %v12882_v61, %v4324_v30 }
 0x424   : > { %v5462_v7 = vrot.slane %v5127_v55, 2  ;;  %v5688_v28 = vadd.f32 %v5461_v32, %v5005_v39  ;;  %v4783_v57 = vrot.slane %v4446_v17, 1  ;;  %v3849_v60 = vsel %vm2006_vm1, %v3846_v59, %v3848_v15 }
 0x425   : > { %v3390_v18 = vadd.f32 %v3166_v14, %v2702_v26  ;;  %v2701_v1 = vadd.f32 %v13503_v12, %v2454_v34  ;;  %v4781_v51 = vrot.slane %v4445_v19, 1  ;;  %v5128_v23 = vmul.f32 %v12882_v61, %v4087_v2 }
 0x426   : > { %v4780_v38 = vsel %vm1322_vm0, %v4777_v29, %v4779_v13  ;;  %v4207_v58 = vmul.f32 %v12904_v44, %v4082_v46  ;;  %v3847_v50 = vsel %vm2006_vm1, %v3844_v33, %v3846_v59  ;;  %v5463_v12 = vsel %vm2006_vm1, %v5460_v47, %v5462_v7 }
 0x427   : > { %v4073_v8 = vadd.f32 %v3849_v60, %v3390_v18  ;;  %v3389_v4 = vadd.f32 %v3164_v20, %v2701_v1  ;;  %v5006_v24 = vadd.f32 %v4780_v38, %v4318_v9  ;;  %v4784_v15 = vsel %vm1322_vm0, %v4781_v51, %v4783_v57 }
 0x428   : > { %v5466_v61 = vrot.slane %v5129_v22, 2  ;;  %v5807_v29 = vadd.f32 %v12961_v5, %v5688_v28  ;;  %v5464_v63 = vrot.slane %v5128_v23, 2  ;;  %v4782_v44 = vsel %vm1322_vm0, %v4779_v13, %v4781_v51 }
 0x429   : > { %v4320_v27 = vadd.f32 %v4208_v54, %v4073_v8  ;;  %v4072_v3 = vadd.f32 %v3847_v50, %v3389_v4  ;;  %v5689_v6 = vadd.f32 %v5463_v12, %v5006_v24 }
 0x42a   : > { %v5467_v62 = vsel %vm2006_vm1, %v5464_v63, %v5466_v61  ;;  %v5919_v47 = vmax.f32 %v5807_v29, 0.0  ;;  %v5465_v35 = vsel %vm2006_vm1, %v5462_v7, %v5464_v63 }
 0x42b   : > { %v4319_v46 = vadd.f32 %v4207_v58, %v4072_v3  ;;  %v5808_v40 = vadd.f32 %v12961_v5, %v5689_v6  ;;  %v5008_v33 = vadd.f32 %v4784_v15, %v4320_v27 }
 0x42d   : > { %v5007_v16 = vadd.f32 %v4782_v44, %v4319_v46  ;;  %v5920_v11 = vmax.f32 %v5808_v40, 0.0  ;;  %v5691_v43 = vadd.f32 %v5467_v62, %v5008_v33 }
 0x42f   : > { %v5690_v48 = vadd.f32 %v5465_v35, %v5007_v16  ;;  %v7062_v53 = vpack.c.bf16 %v5920_v11, %v5919_v47  ;;  %v5810_v9 = vadd.f32 %v12961_v5, %v5691_v43 }
 0x431   : > { %v5809_v21 = vadd.f32 %v12961_v5, %v5690_v48  ;;  %7122 = vst [vmem:[%s7696_s15 + $0x1b0] sm:$0xff] %v7062_v53   ;;  %v5922_v25 = vmax.f32 %v5810_v9, 0.0 }
 0x433   : > { %v5921_v56 = vmax.f32 %v5809_v21, 0.0 }
 0x435   : > { %v7067_v32 = vpack.c.bf16 %v5922_v25, %v5921_v56 }
 0x437   : > { %7123 = vst [vmem:[%s7696_s15 + $0x1b8] sm:$0xff] %v7067_v32  }
 0x438 PF: > { %s13_s12 = sadd.s32 1, %s7209_s12  }
 0x439   : > { %p10_p4 = scmp.ge.s32.totalorder %s13_s12, 6  }
 0x43b   :  { %12 = sbr.rel (!%p10_p4) target bundleno = 1 (0x1), region = 70 }

// kernel: siamese_forward.4
= control target key start
LH: loop header
LB: loop body
LE: loop exit
PB: predicated region body
PF: predicated region fallthrough
CT: control target
= control target key end

     0   :  { %s4901_s12 = smov 0   ;;  %s6067_s0 = inlined_call_operand.vmem [shape: bf16[4,264,128], index: 0, kind: input, shape index: {}]   ;;  %s6068_s1 = inlined_call_operand.vmem [shape: f32[9,128,128], index: 1, kind: input, shape index: {}]   ;;  %s6069_s2 = inlined_call_operand.vmem [shape: f32[1,128], index: 2, kind: input, shape index: {}]   ;;  %s6070_s3 = inlined_call_operand.vmem [shape: bf16[4,224,128], index: 3, kind: output, shape index: {}]  }
   0x1 LB: > { %s2917_s13 = sadd.s32 4294967295, %s4879_s12   ;;  %p2921_p0 = scmp.ge.s32.totalorder %s4879_s12, 1  ;;  %s4879_s12 = sphi %s4901_s12, %s13_s12  }
   0x2   : > { %p137_p1 = scmp.lt.s32.totalorder %s4879_s12, 5 }
   0x4   : > { %p138_p2 = pnand %p2921_p0, %p137_p1 }
   0x6   : > { %141 = sbr.rel (%p138_p2) target bundleno = 519 (0x207), region = 32 }
   0xd   : > { %v2924_v0 = vld [vmem:[%s6068_s1 + $0x80] sm:$0xff]  ;;  %v2925_v1 = vld [vmem:[%s6068_s1 + $0x88] sm:$0xff]  ;;  %p161_p3 = scmp.lt.s32.totalorder %s2917_s13, 3  ;;  %v2926_v5 = vld [vmem:[%s6068_s1 + $0x90] sm:$0xff]  ;;  %vm299_vm0 = vcmask 1046528   ;;  %vm812_vm1 = vcmask 1045504  }
   0xe   : > { %v2972_v2 = vld [vmem:[%s6068_s1 + $0x200] sm:$0xff]  ;;  %v4335_v3 = vpack.c.bf16 %v2925_v1, %v2924_v0  ;;  %v2973_v4 = vld [vmem:[%s6068_s1 + $0x208] sm:$0xff]  ;;  %v2927_v6 = vld [vmem:[%s6068_s1 + $0x98] sm:$0xff] }
   0xf   : > { %v4463_v7 = vpack.c.bf16 %v2973_v4, %v2972_v2  ;;  %v4339_v8 = vpack.c.bf16 %v2927_v6, %v2926_v5  ;;  %v2974_v9 = vld [vmem:[%s6068_s1 + $0x210] sm:$0xff]  ;;  %v2975_v10 = vld [vmem:[%s6068_s1 + $0x218] sm:$0xff]  ;;  %v2928_v11 = vld [vmem:[%s6068_s1 + $0xa0] sm:$0xff]  ;;  %s6177_s13 = smov (!%p161_p3, %s2917_s13), 3 }
  0x10   : > { %4336 = vmatprep.subr.bf16.mxu1 %v4335_v3  ;;  %v4467_v12 = vpack.c.bf16 %v2975_v10, %v2974_v9  ;;  %v2929_v13 = vld [vmem:[%s6068_s1 + $0xa8] sm:$0xff]  ;;  %v2976_v14 = vld [vmem:[%s6068_s1 + $0x220] sm:$0xff]  ;;  %s4863_s11 = smul.u32 132, %s6177_s13  ;;  %v2930_v18 = vld [vmem:[%s6068_s1 + $0xb0] sm:$0xff] }
  0x11   : > { %v2977_v15 = vld [vmem:[%s6068_s1 + $0x228] sm:$0xff]  ;;  %4464 = vmatprep.subr.bf16.mxu0 %v4463_v7  ;;  %4338 = vmatpush3.bf16.msra.mxu1 %v4335_v3  ;;  %v4343_v16 = vpack.c.bf16 %v2929_v13, %v2928_v11  ;;  %v2931_v19 = vld [vmem:[%s6068_s1 + $0xb8] sm:$0xff]  ;;  %v2978_v20 = vld [vmem:[%s6068_s1 + $0x230] sm:$0xff]  ;;  %s4864_s17 = smul.u32 112, %s6177_s13 }
  0x12   : > { %4466 = vmatpush3.bf16.msra.mxu0 %v4463_v7  ;;  %4340 = vmatprep.subr.bf16.mxu1 %v4339_v8  ;;  %v4471_v17 = vpack.c.bf16 %v2977_v15, %v2976_v14  ;;  %v2979_v21 = vld [vmem:[%s6068_s1 + $0x238] sm:$0xff]  ;;  %s4963_s24 = scalar_lea.vmem %s6067_s0, %s4863_s11  ;;  %v4347_v22 = vpack.c.bf16 %v2931_v19, %v2930_v18  ;;  %v2932_v24 = vld [vmem:[%s6068_s1 + $0xc0] sm:$0xff]  ;;  %v2933_v25 = vld [vmem:[%s6068_s1 + $0xc8] sm:$0xff] }
  0x13   : > { %4468 = vmatprep.subr.bf16.mxu0 %v4467_v12  ;;  %v4475_v23 = vpack.c.bf16 %v2979_v21, %v2978_v20  ;;  %v3112_v26 = vld [vmem:[%s4963_s24] sm:$0xff]   ;;  %v2981_v28 = vld [vmem:[%s6068_s1 + $0x248] sm:$0xff]  ;;  %v4351_v34 = vpack.c.bf16 %v2933_v25, %v2932_v24  ;;  %v2934_v38 = vld [vmem:[%s6068_s1 + $0xd0] sm:$0xff]  ;;  %s6003_s19 = scalar_lea.vmem %s6070_s3, %s4864_s17 }
  0x14   : > { %v2980_v27 = vld [vmem:[%s6068_s1 + $0x240] sm:$0xff]  ;;  %v4978_v29 = vunpack.c.l.bf16 %v3112_v26  ;;  %v4980_v30 = vunpack.c.h.bf16 %v3112_v26  ;;  %v3245_v31 = vld [vmem:[%s4963_s24 + $0x8] sm:$0xff]   ;;  %v2935_v39 = vld [vmem:[%s6068_s1 + $0xd8] sm:$0xff] }
  0x15   : > { %4342 = vmatpush3.bf16.msra.mxu1 %v4339_v8  ;;  %v4983_v32 = vunpack.c.l.bf16 %v3245_v31  ;;  %v4985_v33 = vunpack.c.h.bf16 %v3245_v31  ;;  %v4479_v37 = vpack.c.bf16 %v2981_v28, %v2980_v27  ;;  %v2982_v42 = vld [vmem:[%s6068_s1 + $0x250] sm:$0xff]  ;;  %v2983_v43 = vld [vmem:[%s6068_s1 + $0x258] sm:$0xff]  ;;  %v4355_v46 = vpack.c.bf16 %v2935_v39, %v2934_v38  ;;  %v2936_v48 = vld [vmem:[%s6068_s1 + $0xe0] sm:$0xff] }
  0x16   : > { %4470 = vmatpush3.bf16.msra.mxu0 %v4467_v12  ;;  %4344 = vmatprep.subr.bf16.mxu1 %v4343_v16  ;;  %v300_v35 = vrot.slane %v4978_v29, 1  ;;  %v301_v36 = vrot.slane %v4980_v30, 1  ;;  %v4483_v47 = vpack.c.bf16 %v2983_v43, %v2982_v42  ;;  %v2937_v49 = vld [vmem:[%s6068_s1 + $0xe8] sm:$0xff]  ;;  %v2984_v50 = vld [vmem:[%s6068_s1 + $0x260] sm:$0xff]  ;;  %v2938_v54 = vld [vmem:[%s6068_s1 + $0xf0] sm:$0xff] }
  0x17   : > { %4472 = vmatprep.subr.bf16.mxu0 %v4471_v17  ;;  %6109 = vst [vmem:[#allocation2_spill] sm:$0xff] %v4985_v33  ;;  %v303_v40 = vrot.slane %v4983_v32, 1  ;;  %v305_v41 = vrot.slane %v4985_v33, 1  ;;  %v2985_v51 = vld [vmem:[%s6068_s1 + $0x268] sm:$0xff]  ;;  %v4359_v52 = vpack.c.bf16 %v2937_v49, %v2936_v48  ;;  %v2939_v55 = vld [vmem:[%s6068_s1 + $0xf8] sm:$0xff]  ;;  %v3246_v56 = vld [vmem:[%s4963_s24 + $0x10] sm:$0xff]  }
  0x18   : > { %v302_v44 = vsel %vm299_vm0, %v300_v35, %v301_v36  ;;  %v4487_v53 = vpack.c.bf16 %v2985_v51, %v2984_v50  ;;  %v2986_v57 = vld [vmem:[%s6068_s1 + $0x270] sm:$0xff]  ;;  %v2987_v58 = vld [vmem:[%s6068_s1 + $0x278] sm:$0xff]  ;;  %v4363_v59 = vpack.c.bf16 %v2939_v55, %v2938_v54  ;;  %v5033_v60 = vunpack.c.l.bf16 %v3246_v56  ;;  %v237_v62 = vld [vmem:[%s6068_s1] sm:$0xff] }
  0x19   : > { %4346 = vmatpush3.bf16.msra.mxu1 %v4343_v16  ;;  %3701 = vmatprep.mubr.f32.mxu1 %v302_v44  ;;  %v5005_v45 = vsel %vm299_vm0, %v303_v40, %v305_v41  ;;  %v4491_v61 = vpack.c.bf16 %v2987_v58, %v2986_v57  ;;  %v238_v63 = vld [vmem:[%s6068_s1 + $0x8] sm:$0xff]  ;;  %v3247_v0 = vld [vmem:[%s4963_s24 + $0x18] sm:$0xff]   ;;  %v2988_v1 = vld [vmem:[%s6068_s1 + $0x280] sm:$0xff]  ;;  %v5048_v3 = vunpack.c.h.bf16 %v3246_v56  ;;  %v304_v13 = vsel %vm299_vm0, %v301_v36, %v303_v40 }
  0x1a   : > { %4474 = vmatpush3.bf16.msra.mxu0 %v4471_v17  ;;  %4348 = vmatprep.subr.bf16.mxu1 %v4347_v22  ;;  %v2989_v2 = vld [vmem:[%s6068_s1 + $0x288] sm:$0xff]  ;;  %v4367_v4 = vpack.c.bf16 %v238_v63, %v237_v62  ;;  %v307_v5 = vrot.slane %v5033_v60, 1  ;;  %v5051_v6 = vunpack.c.l.bf16 %v3247_v0  ;;  %v5053_v8 = vunpack.c.h.bf16 %v3247_v0  ;;  %v3248_v9 = vld [vmem:[%s4963_s24 + $0x20] sm:$0xff]   ;;  %v239_v11 = vld [vmem:[%s6068_s1 + $0x10] sm:$0xff] }
  0x1b   : > { %4476 = vmatprep.subr.bf16.mxu0 %v4475_v23  ;;  %3997 = vmatprep.mubr.f32.mxu0 %v5005_v45  ;;  %v4495_v7 = vpack.c.bf16 %v2989_v2, %v2988_v1  ;;  %v309_v10 = vrot.slane %v5048_v3, 1  ;;  %v240_v12 = vld [vmem:[%s6068_s1 + $0x18] sm:$0xff]  ;;  %v2990_v14 = vld [vmem:[%s6068_s1 + $0x290] sm:$0xff]  ;;  %v5072_v18 = vunpack.c.l.bf16 %v3248_v9  ;;  %v5075_v21 = vunpack.c.h.bf16 %v3248_v9  ;;  %v241_v25 = vld [vmem:[%s6068_s1 + $0x20] sm:$0xff] }
  0x1c   : > { %v2991_v15 = vld [vmem:[%s6068_s1 + $0x298] sm:$0xff]  ;;  %v308_v16 = vsel %vm299_vm0, %v305_v41, %v307_v5  ;;  %v311_v17 = vrot.slane %v5051_v6, 1  ;;  %v4371_v19 = vpack.c.bf16 %v240_v12, %v239_v11  ;;  %v313_v20 = vrot.slane %v5053_v8, 1  ;;  %v242_v26 = vld [vmem:[%s6068_s1 + $0x28] sm:$0xff]  ;;  %v2992_v27 = vld [vmem:[%s6068_s1 + $0x2a0] sm:$0xff] }
  0x1d   : > { %4350 = vmatpush3.bf16.msra.mxu1 %v4347_v22  ;;  %v3249_v22 = vld [vmem:[%s4963_s24 + $0x28] sm:$0xff]   ;;  %v4499_v24 = vpack.c.bf16 %v2991_v15, %v2990_v14  ;;  %v4375_v38 = vpack.c.bf16 %v242_v26, %v241_v25  ;;  %v3250_v40 = vld [vmem:[%s4963_s24 + $0x30] sm:$0xff]   ;;  %v244_v43 = vld [vmem:[%s6068_s1 + $0x38] sm:$0xff] }
  0x1e   : > { %4478 = vmatpush3.bf16.msra.mxu0 %v4475_v23  ;;  %4352 = vmatprep.subr.bf16.mxu1 %v4351_v34  ;;  %v5079_v23 = vsel %vm299_vm0, %v307_v5, %v309_v10  ;;  %v2993_v28 = vld [vmem:[%s6068_s1 + $0x2a8] sm:$0xff]  ;;  %v5095_v31 = vsel %vm299_vm0, %v309_v10, %v311_v17  ;;  %v5098_v35 = vunpack.c.l.bf16 %v3249_v22  ;;  %v5102_v36 = vsel %vm299_vm0, %v311_v17, %v313_v20  ;;  %v243_v42 = vld [vmem:[%s6068_s1 + $0x30] sm:$0xff]  ;;  %v245_v55 = vld [vmem:[%s6068_s1 + $0x40] sm:$0xff] }
  0x1f   : > { %4480 = vmatprep.subr.bf16.mxu0 %v4479_v37  ;;  %6110 = vst [vmem:[#allocation3_spill] sm:$0xff] %v5079_v23  ;;  %6111 = vst [vmem:[#allocation4_spill] sm:$0xff] %v5095_v31  ;;  %v5105_v39 = vunpack.c.h.bf16 %v3249_v22  ;;  %v4503_v41 = vpack.c.bf16 %v2993_v28, %v2992_v27  ;;  %v2994_v44 = vld [vmem:[%s6068_s1 + $0x2b0] sm:$0xff]  ;;  %v5127_v48 = vunpack.c.l.bf16 %v3250_v40  ;;  %v5133_v51 = vunpack.c.h.bf16 %v3250_v40  ;;  %v246_v56 = vld [vmem:[%s6068_s1 + $0x48] sm:$0xff] }
  0x20   : > { %6112 = vst [vmem:[#allocation5_spill] sm:$0xff] %v5102_v36  ;;  %v2996_v57 = vld [vmem:[%s6068_s1 + $0x2c0] sm:$0xff]  ;;  %v2997_v58 = vld [vmem:[%s6068_s1 + $0x2c8] sm:$0xff]  ;;  %v248_v9 = vld [vmem:[%s6068_s1 + $0x58] sm:$0xff] }
  0x21   : > { %4354 = vmatpush3.bf16.msra.mxu1 %v4351_v34  ;;  %v315_v34 = vrot.slane %v5072_v18, 1  ;;  %v321_v50 = vrot.slane %v5105_v39, 1  ;;  %v325_v0 = vrot.slane %v5133_v51, 1  ;;  %v3252_v2 = vld [vmem:[%s4963_s24 + $0x40] sm:$0xff]   ;;  %v4511_v5 = vpack.c.bf16 %v2997_v58, %v2996_v57  ;;  %v2998_v10 = vld [vmem:[%s6068_s1 + $0x2d0] sm:$0xff]  ;;  %v2999_v11 = vld [vmem:[%s6068_s1 + $0x2d8] sm:$0xff] }
  0x22   : > { %4482 = vmatpush3.bf16.msra.mxu0 %v4479_v37  ;;  %4356 = vmatprep.subr.bf16.mxu1 %v4355_v46  ;;  %v317_v37 = vrot.slane %v5075_v21, 1  ;;  %v5185_v14 = vunpack.c.l.bf16 %v3252_v2  ;;  %v5191_v17 = vunpack.c.h.bf16 %v3252_v2  ;;  %v4515_v22 = vpack.c.bf16 %v2999_v11, %v2998_v10  ;;  %v250_v25 = vld [vmem:[%s6068_s1 + $0x68] sm:$0xff]  ;;  %v3000_v26 = vld [vmem:[%s6068_s1 + $0x2e0] sm:$0xff] }
  0x23   : > { %4484 = vmatprep.subr.bf16.mxu0 %v4483_v47  ;;  %v3001_v27 = vld [vmem:[%s6068_s1 + $0x2e8] sm:$0xff] }
  0x24   : > { %v5130_v49 = vsel %vm299_vm0, %v315_v34, %v317_v37  ;;  %v333_v40 = vrot.slane %v5191_v17, 1 }
  0x25   : > { %4358 = vmatpush3.bf16.msra.mxu1 %v4355_v46  ;;  %v5124_v46 = vsel %vm299_vm0, %v313_v20, %v315_v34  ;;  %6114 = vst [vmem:[#allocation7_spill] sm:$0xff] %v5130_v49  ;;  %v331_v34 = vrot.slane %v5185_v14, 1 }
  0x26   : > { %4486 = vmatpush3.bf16.msra.mxu0 %v4483_v47  ;;  %4360 = vmatprep.subr.bf16.mxu1 %v4359_v52  ;;  %6113 = vst [vmem:[#allocation6_spill] sm:$0xff] %v5124_v46  ;;  %v319_v47 = vrot.slane %v5098_v35, 1 }
  0x27   : > { %4488 = vmatprep.subr.bf16.mxu0 %v4487_v53 }
  0x28   : > { %v5159_v63 = vsel %vm299_vm0, %v319_v47, %v321_v50 }
  0x29   : > { %4362 = vmatpush3.bf16.msra.mxu1 %v4359_v52  ;;  %v3251_v52 = vld [vmem:[%s4963_s24 + $0x38] sm:$0xff]   ;;  %6116 = vst [vmem:[#allocation9_spill] sm:$0xff] %v5159_v63 }
  0x2a   : > { %4490 = vmatpush3.bf16.msra.mxu0 %v4487_v53  ;;  %4364 = vmatprep.subr.bf16.mxu1 %v4363_v59  ;;  %v4379_v53 = vpack.c.bf16 %v244_v43, %v243_v42  ;;  %v5156_v62 = vunpack.c.l.bf16 %v3251_v52  ;;  %v5162_v1 = vunpack.c.h.bf16 %v3251_v52  ;;  %v3254_v42 = vld [vmem:[%s4963_s24 + $0x50] sm:$0xff]   ;;  %v3003_v52 = vld [vmem:[%s6068_s1 + $0x2f8] sm:$0xff] }
  0x2b   : > { %4492 = vmatprep.subr.bf16.mxu0 %v4491_v61  ;;  %v5249_v58 = vunpack.c.h.bf16 %v3254_v42 }
  0x2d   : > { %4366 = vmatpush3.bf16.msra.mxu1 %v4363_v59  ;;  %v5153_v59 = vsel %vm299_vm0, %v317_v37, %v319_v47  ;;  %v252_v47 = vld [vmem:[%s6068_s1 + $0x78] sm:$0xff] }
  0x2e   : > { %4494 = vmatpush3.bf16.msra.mxu0 %v4491_v61  ;;  %4368 = vmatprep.subr.bf16.mxu1 %v4367_v4  ;;  %6115 = vst [vmem:[#allocation8_spill] sm:$0xff] %v5153_v59  ;;  %v323_v61 = vrot.slane %v5127_v48, 1 }
  0x2f   : > { %4496 = vmatprep.subr.bf16.mxu0 %v4495_v7 }
  0x30   : > { %3702 = vmatmul.mubr.f32.vlgmr.msra.gmra.mrb[0].mxu1 %v304_v13  ;;  %v5182_v12 = vsel %vm299_vm0, %v321_v50, %v323_v61  ;;  %v327_v13 = vrot.slane %v5156_v62, 1  ;;  %v5188_v15 = vsel %vm299_vm0, %v323_v61, %v325_v0  ;;  %v3002_v50 = vld [vmem:[%s6068_s1 + $0x2f0] sm:$0xff]  ;;  %v3255_v61 = vld [vmem:[%s4963_s24 + $0x58] sm:$0xff]  }
  0x31   : > { %3998 = vmatmul.mubr.f32.vlgmr.msra.gmra.mrb[0].mxu0 %v308_v16  ;;  %4370 = vmatpush3.bf16.msra.mxu1 %v4367_v4  ;;  %v4383_v4 = vpack.c.bf16 %v246_v56, %v245_v55  ;;  %6117 = vst [vmem:[#allocation10_spill] sm:$0xff] %v5182_v12  ;;  %6118 = vst [vmem:[#allocation11_spill] sm:$0xff] %v5188_v15  ;;  %v5243_v55 = vunpack.c.l.bf16 %v3254_v42  ;;  %v5246_v56 = vsel %vm299_vm0, %v331_v34, %v333_v40 }
  0x32   : > { %4498 = vmatpush3.bf16.msra.mxu0 %v4495_v7  ;;  %3704 = vmatprep.mubr.f32.mxu1 %v5005_v45  ;;  %v2995_v45 = vld [vmem:[%s6068_s1 + $0x2b8] sm:$0xff]  ;;  %v247_v7 = vld [vmem:[%s6068_s1 + $0x50] sm:$0xff]  ;;  %v5211_v28 = vsel %vm299_vm0, %v325_v0, %v327_v13  ;;  %6122 = vst [vmem:[#allocation15_spill] sm:$0xff] %v5246_v56  ;;  %v4523_v2 = vpack.c.bf16 %v3003_v52, %v3002_v50 }
  0x33   : > { %4000 = vmatprep.mubr.f32.mxu0 %v5079_v23  ;;  %4372 = vmatprep.subr.bf16.mxu1 %v4371_v19  ;;  %v4507_v54 = vpack.c.bf16 %v2995_v45, %v2994_v44  ;;  %v4387_v20 = vpack.c.bf16 %v248_v9, %v247_v7  ;;  %6119 = vst [vmem:[#allocation12_spill] sm:$0xff] %v5211_v28  ;;  %v251_v45 = vld [vmem:[%s6068_s1 + $0x70] sm:$0xff]  ;;  %v3004_v7 = vld [vmem:[%s6068_s1 + $0x300] sm:$0xff]  ;;  %v3005_v9 = vld [vmem:[%s6068_s1 + $0x308] sm:$0xff]  ;;  %v339_v11 = vrot.slane %v5243_v55, 1 }
  0x34   : > { %3705 = vmatmul.mubr.f32.gmra.mrb[2].mxu1 %v308_v16  ;;  %4500 = vmatprep.subr.bf16.mxu0 %v4499_v24  ;;  %v329_v16 = vrot.slane %v5162_v1, 1  ;;  %v4519_v44 = vpack.c.bf16 %v3001_v27, %v3000_v26  ;;  %v4395_v0 = vpack.c.bf16 %v252_v47, %v251_v45 }
  0x35   : > { %4001 = vmatmul.mubr.f32.gmra.mrb[2].mxu0 %v5095_v31  ;;  %3707 = vmatprep.mubr.f32.mxu1 %v5079_v23 }
  0x36   : > { %4003 = vmatprep.mubr.f32.mxu0 %v5102_v36  ;;  %4374 = vmatpush3.bf16.msra.mxu1 %v4371_v19  ;;  %v3253_v19 = vld [vmem:[%s4963_s24 + $0x48] sm:$0xff]  }
  0x37   : > { %4502 = vmatpush3.bf16.msra.mxu0 %v4499_v24  ;;  %4376 = vmatprep.subr.bf16.mxu1 %v4375_v38  ;;  %v249_v24 = vld [vmem:[%s6068_s1 + $0x60] sm:$0xff]  ;;  %v5214_v37 = vunpack.c.l.bf16 %v3253_v19 }
  0x38   : > { %3708 = vmatmul.mubr.f32.gmra.mrb[4].mxu1 %v5095_v31  ;;  %4504 = vmatprep.subr.bf16.mxu0 %v4503_v41  ;;  %v4391_v43 = vpack.c.bf16 %v250_v25, %v249_v24  ;;  %v5284_v25 = vpack.c.bf16 %v3005_v9, %v3004_v7 }
  0x39   : > { %4004 = vmatmul.mubr.f32.gmra.mrb[4].mxu0 %v5124_v46  ;;  %3710 = vmatprep.mubr.f32.mxu1 %v5102_v36 }
  0x3a   : > { %4006 = vmatprep.mubr.f32.mxu0 %v5130_v49  ;;  %4378 = vmatpush3.bf16.msra.mxu1 %v4375_v38  ;;  %v5217_v38 = vsel %vm299_vm0, %v327_v13, %v329_v16  ;;  %v5272_v13 = vunpack.c.l.bf16 %v3255_v61 }
  0x3b   : > { %4506 = vmatpush3.bf16.msra.mxu0 %v4503_v41  ;;  %4380 = vmatprep.subr.bf16.mxu1 %v4379_v53  ;;  %6120 = vst [vmem:[#allocation13_spill] sm:$0xff] %v5217_v38  ;;  %v5220_v41 = vunpack.c.h.bf16 %v3253_v19  ;;  %v341_v19 = vrot.slane %v5249_v58, 1 }
  0x3c   : > { %3711 = vmatmul.mubr.f32.gmra.mrb[6].mxu1 %v5124_v46  ;;  %4508 = vmatprep.subr.bf16.mxu0 %v4507_v54  ;;  %v343_v27 = vrot.slane %v5272_v13, 1 }
  0x3d   : > { %4007 = vmatmul.mubr.f32.gmra.mrb[6].mxu0 %v5153_v59  ;;  %3713 = vmatprep.mubr.f32.mxu1 %v5130_v49  ;;  %v337_v57 = vrot.slane %v5220_v41, 1 }
  0x3e   : > { %4009 = vmatprep.mubr.f32.mxu0 %v5159_v63  ;;  %4382 = vmatpush3.bf16.msra.mxu1 %v4379_v53  ;;  %v5240_v53 = vsel %vm299_vm0, %v329_v16, %v331_v34  ;;  %v5309_v45 = vsel %vm299_vm0, %v341_v19, %v343_v27 }
  0x3f   : > { %4510 = vmatpush3.bf16.msra.mxu0 %v4507_v54  ;;  %4384 = vmatprep.subr.bf16.mxu1 %v4383_v4  ;;  %6121 = vst [vmem:[#allocation14_spill] sm:$0xff] %v5240_v53  ;;  %v335_v54 = vrot.slane %v5214_v37, 1  ;;  %v5290_v26 = vsel %vm299_vm0, %v337_v57, %v339_v11  ;;  %6127 = vst [vmem:[#allocation20_spill] sm:$0xff] %v5309_v45 }
  0x40   : > { %3714 = vmatmul.mubr.f32.gmra.mrb[8].mxu1 %v5153_v59  ;;  %4512 = vmatprep.subr.bf16.mxu0 %v4511_v5  ;;  %6125 = vst [vmem:[#allocation18_spill] sm:$0xff] %v5290_v26 }
  0x41   : > { %4010 = vmatmul.mubr.f32.gmra.mrb[8].mxu0 %v5182_v12  ;;  %3716 = vmatprep.mubr.f32.mxu1 %v5159_v63  ;;  %v5269_v10 = vsel %vm299_vm0, %v333_v40, %v335_v54  ;;  %v5275_v16 = vsel %vm299_vm0, %v335_v54, %v337_v57  ;;  %v5296_v40 = vsel %vm299_vm0, %v339_v11, %v341_v19  ;;  %v5338_v11 = vld [vmem:[%s4963_s24 + $0x78] sm:$0xff]  }
  0x42   : > { %4012 = vmatprep.mubr.f32.mxu0 %v5188_v15  ;;  %4386 = vmatpush3.bf16.msra.mxu1 %v4383_v4  ;;  %v2940_v4 = vld [vmem:[%s6068_s1 + $0x100] sm:$0xff]  ;;  %6123 = vst [vmem:[#allocation16_spill] sm:$0xff] %v5269_v10  ;;  %6124 = vst [vmem:[#allocation17_spill] sm:$0xff] %v5275_v16 }
  0x43   : > { %4514 = vmatpush3.bf16.msra.mxu0 %v4511_v5  ;;  %4388 = vmatprep.subr.bf16.mxu1 %v4387_v20  ;;  %v2941_v5 = vld [vmem:[%s6068_s1 + $0x108] sm:$0xff]  ;;  %6126 = vst [vmem:[#allocation19_spill] sm:$0xff] %v5296_v40  ;;  %6132 = vst [vmem:[#allocation25_spill] sm:$0xff] %v5338_v11 }
  0x44   : > { %3717 = vmatmul.mubr.f32.gmra.mrb[10].mxu1 %v5182_v12  ;;  %4516 = vmatprep.subr.bf16.mxu0 %v4515_v22  ;;  %v5281_v24 = vpack.c.bf16 %v2941_v5, %v2940_v4 }
  0x45   : > { %4013 = vmatmul.mubr.f32.gmra.mrb[10].mxu0 %v5211_v28  ;;  %3719 = vmatprep.mubr.f32.mxu1 %v5188_v15 }
  0x46   : > { %4015 = vmatprep.mubr.f32.mxu0 %v5217_v38  ;;  %4390 = vmatpush3.bf16.msra.mxu1 %v4387_v20  ;;  %v5278_v20 = vunpack.c.h.bf16 %v3255_v61  ;;  %v3258_v61 = vld [vmem:[%s4963_s24 + $0x70] sm:$0xff]  }
  0x47   : > { %4518 = vmatpush3.bf16.msra.mxu0 %v4515_v22  ;;  %4392 = vmatprep.subr.bf16.mxu1 %v4391_v43  ;;  %v3256_v22 = vld [vmem:[%s4963_s24 + $0x60] sm:$0xff]   ;;  %v5329_v4 = vunpack.c.l.bf16 %v3258_v61  ;;  %v5335_v9 = vunpack.c.h.bf16 %v3258_v61 }
  0x48   : > { %3720 = vmatmul.mubr.f32.gmra.mrb[12].mxu1 %v5211_v28  ;;  %4520 = vmatprep.subr.bf16.mxu0 %v4519_v44  ;;  %v5293_v34 = vunpack.c.l.bf16 %v3256_v22  ;;  %v345_v42 = vrot.slane %v5278_v20, 1 }
  0x49   : > { %4016 = vmatmul.mubr.f32.gmra.mrb[12].mxu0 %v5240_v53  ;;  %3722 = vmatprep.mubr.f32.mxu1 %v5217_v38  ;;  %6130 = vst [vmem:[#allocation23_spill] sm:$0xff] %v5329_v4 }
  0x4a   : > { %4018 = vmatprep.mubr.f32.mxu0 %v5246_v56  ;;  %4394 = vmatpush3.bf16.msra.mxu1 %v4391_v43  ;;  %v5299_v43 = vunpack.c.h.bf16 %v3256_v22  ;;  %v347_v47 = vrot.slane %v5293_v34, 1  ;;  %v5315_v52 = vsel %vm299_vm0, %v343_v27, %v345_v42  ;;  %v355_v22 = vrot.slane %v5329_v4, 1 }
  0x4b   : > { %4522 = vmatpush3.bf16.msra.mxu0 %v4519_v44  ;;  %4396 = vmatprep.subr.bf16.mxu1 %v4395_v0  ;;  %v3257_v44 = vld [vmem:[%s4963_s24 + $0x68] sm:$0xff]   ;;  %6128 = vst [vmem:[#allocation21_spill] sm:$0xff] %v5315_v52  ;;  %v5349_v27 = vunpack.c.l.bf16 %v5338_v11  ;;  %v813_v11 = vrot.slane %v4978_v29, 2 }
  0x4c   : > { %3723 = vmatmul.mubr.f32.gmra.mrb[14].mxu1 %v5240_v53  ;;  %4524 = vmatprep.subr.bf16.mxu0 %v4523_v2  ;;  %v5312_v50 = vunpack.c.l.bf16 %v3257_v44  ;;  %v349_v54 = vrot.slane %v5299_v43, 1  ;;  %v5318_v57 = vunpack.c.h.bf16 %v3257_v44  ;;  %v1400_v44 = vrot.slane %v5335_v9, 1 }
  0x4d   : > { %4019 = vmatmul.mubr.f32.gmra.mrb[14].mxu0 %v5269_v10  ;;  %3725 = vmatprep.mubr.f32.mxu1 %v5246_v56  ;;  %6134 = vst [vmem:[#allocation27_spill] sm:$0xff] %v5349_v27  ;;  %v834_v56 = vrot.slane %v5105_v39, 2 }
  0x4e   : > { %4021 = vmatprep.mubr.f32.mxu0 %v5275_v16  ;;  %4398 = vmatpush3.bf16.msra.mxu1 %v4395_v0  ;;  %v5326_v0 = vsel %vm299_vm0, %v345_v42, %v347_v47  ;;  %v5332_v5 = vsel %vm299_vm0, %v347_v47, %v349_v54  ;;  %v353_v7 = vrot.slane %v5318_v57, 1  ;;  %v5364_v61 = vsel %vm299_vm0, %v355_v22, %v1400_v44 }
  0x4f   : > { %4526 = vmatpush3.bf16.msra.mxu0 %v4523_v2  ;;  %4400 = vmatprep.subr.bf16.mxu1 %v5281_v24  ;;  %6129 = vst [vmem:[#allocation22_spill] sm:$0xff] %v5326_v0  ;;  %v351_v2 = vrot.slane %v5312_v50, 1  ;;  %6131 = vst [vmem:[#allocation24_spill] sm:$0xff] %v5332_v5 }
  0x50   : > { %3726 = vmatmul.mubr.f32.gmra.mrb[16].mxu1 %v5269_v10  ;;  %4528 = vmatprep.subr.bf16.mxu0 %v5284_v25  ;;  %v5360_v47 = vsel %vm299_vm0, %v353_v7, %v355_v22  ;;  %6137 = vst [vmem:[#allocation30_spill] sm:$0xff] %v5364_v61  ;;  %v820_v22 = vrot.slane %v5033_v60, 2  ;;  %v2947_v10 = vld [vmem:[%s6068_s1 + $0x138] sm:$0xff] }
  0x51   : > { %4022 = vmatmul.mubr.f32.gmra.mrb[16].mxu0 %v5290_v26  ;;  %3728 = vmatprep.mubr.f32.mxu1 %v5275_v16  ;;  %v5345_v19 = vsel %vm299_vm0, %v349_v54, %v351_v2  ;;  %v5352_v42 = vsel %vm299_vm0, %v351_v2, %v353_v7  ;;  %6136 = vst [vmem:[#allocation29_spill] sm:$0xff] %v5360_v47  ;;  %v6075_v54 = vrot.slane %v5349_v27, 1  ;;  %v6076_v2 = vrot.slane %v4983_v32, 2 }
  0x52   : > { %4024 = vmatprep.mubr.f32.mxu0 %v5296_v40  ;;  %6133 = vst [vmem:[#allocation26_spill] sm:$0xff] %v5345_v19  ;;  %6135 = vst [vmem:[#allocation28_spill] sm:$0xff] %v5352_v42 }
  0x53   : > { %v5375_v7 = vsel %vm299_vm0, %v1400_v44, %v6075_v54  ;;  %v2943_v44 = vld [vmem:[%s6068_s1 + $0x118] sm:$0xff]  ;;  %v3006_v54 = vld [vmem:[%s6068_s1 + $0x310] sm:$0xff] }
  0x54   : > { %3729 = vmatmul.mubr.f32.gmra.mrb[18].mxu1 %v5290_v26  ;;  %6138 = vst [vmem:[#allocation31_spill] sm:$0xff] %v5375_v7  ;;  %v2944_v26 = vld [vmem:[%s6068_s1 + $0x120] sm:$0xff] }
  0x55   : > { %4025 = vmatmul.mubr.f32.gmra.mrb[18].mxu0 %v5309_v45  ;;  %3731 = vmatprep.mubr.f32.mxu1 %v5296_v40 }
  0x56   : > { %4027 = vmatprep.mubr.f32.mxu0 %v5315_v52 }
  0x58   : > { %3732 = vmatmul.mubr.f32.gmra.mrb[20].mxu1 %v5309_v45 }
  0x59   : > { %4028 = vmatmul.mubr.f32.gmra.mrb[20].mxu0 %v5326_v0  ;;  %3734 = vmatprep.mubr.f32.mxu1 %v5315_v52  ;;  %v818_v52 = vrot.slane %v4985_v33, 2 }
  0x5a   : > { %4030 = vmatprep.mubr.f32.mxu0 %v5332_v5 }
  0x5c   : > { %3735 = vmatmul.mubr.f32.gmra.mrb[22].mxu1 %v5326_v0 }
  0x5d   : > { %4031 = vmatmul.mubr.f32.gmra.mrb[22].mxu0 %v5345_v19  ;;  %3737 = vmatprep.mubr.f32.mxu1 %v5332_v5  ;;  %v5381_v5 = vsel %vm812_vm1, %v6076_v2, %v818_v52  ;;  %v3007_v2 = vld [vmem:[%s6068_s1 + $0x318] sm:$0xff] }
  0x5e   : > { %4033 = vmatprep.mubr.f32.mxu0 %v5352_v42  ;;  %v4531_v40 = vpack.c.bf16 %v3007_v2, %v3006_v54  ;;  %v3009_v54 = vld [vmem:[%s6068_s1 + $0x328] sm:$0xff] }
  0x60   : > { %3738 = vmatmul.mubr.f32.gmra.mrb[24].mxu1 %v5345_v19  ;;  %v822_v19 = vrot.slane %v5048_v3, 2 }
  0x61   : > { %4034 = vmatmul.mubr.f32.gmra.mrb[24].mxu0 %v5360_v47  ;;  %3740 = vmatprep.mubr.f32.mxu1 %v5352_v42  ;;  %v824_v42 = vrot.slane %v5051_v6, 2 }
  0x62   : > { %4036 = vmatprep.mubr.f32.mxu0 %v5364_v61  ;;  %v2942_v61 = vld [vmem:[%s6068_s1 + $0x110] sm:$0xff]  ;;  %v5407_v45 = vsel %vm812_vm1, %v820_v22, %v822_v19 }
  0x63   : > { %v4403_v0 = vpack.c.bf16 %v2943_v44, %v2942_v61  ;;  %v3008_v61 = vld [vmem:[%s6068_s1 + $0x320] sm:$0xff]  ;;  %v5426_v2 = vsel %vm812_vm1, %v822_v19, %v824_v42  ;;  %v830_v44 = vrot.slane %v5075_v21, 2  ;;  %v2946_v19 = vld [vmem:[%s6068_s1 + $0x130] sm:$0xff] }
  0x64   : > { %3741 = vmatmul.mubr.f32.gmra.mrb[26].mxu1 %v5360_v47  ;;  %v5401_v47 = vsel %vm812_vm1, %v818_v52, %v820_v22  ;;  %v2945_v52 = vld [vmem:[%s6068_s1 + $0x128] sm:$0xff]  ;;  %v828_v22 = vrot.slane %v5072_v18, 2  ;;  %v4411_v53 = vpack.c.bf16 %v2947_v10, %v2946_v19  ;;  %v3012_v10 = vld [vmem:[%s6068_s1 + $0x340] sm:$0xff]  ;;  %v836_v19 = vrot.slane %v5127_v48, 2 }
  0x65   : > { %4037 = vmatmul.mubr.f32.gmra.mrb[26].mxu0 %v5375_v7  ;;  %3775 = vmatprep.mubr.f32.mxu1 %v4978_v29  ;;  %v826_v7 = vrot.slane %v5053_v8, 2  ;;  %v4407_v16 = vpack.c.bf16 %v2945_v52, %v2944_v26  ;;  %v3010_v26 = vld [vmem:[%s6068_s1 + $0x330] sm:$0xff] }
  0x66   : > { %4071 = vmatprep.mubr.f32.mxu0 %v5381_v5 }
  0x67   : > { %v5451_v52 = vsel %vm812_vm1, %v826_v7, %v828_v22 }
  0x68   : > { %3776 = vmatmul.mubr.f32.vlgmr.msra.gmra.mrb[0].mxu1 %v4980_v30 }
  0x69   : > { %4072 = vmatmul.mubr.f32.vlgmr.msra.gmra.mrb[0].mxu0 %v5401_v47  ;;  %4402 = vmatpush3.bf16.msra.mxu1 %v5281_v24  ;;  %v5431_v24 = vsel %vm812_vm1, %v824_v42, %v826_v7  ;;  %v3011_v42 = vld [vmem:[%s6068_s1 + $0x338] sm:$0xff]  ;;  %v2949_v7 = vld [vmem:[%s6068_s1 + $0x148] sm:$0xff] }
  0x6a   : > { %4530 = vmatpush3.bf16.msra.mxu0 %v5284_v25  ;;  %3778 = vmatprep.mubr.f32.mxu1 %v4983_v32  ;;  %v4535_v25 = vpack.c.bf16 %v3009_v54, %v3008_v61  ;;  %v832_v61 = vrot.slane %v5098_v35, 2  ;;  %v5455_v54 = vsel %vm812_vm1, %v828_v22, %v830_v44  ;;  %v4539_v38 = vpack.c.bf16 %v3011_v42, %v3010_v26 }
  0x6b   : > { %4074 = vmatprep.mubr.f32.mxu0 %v5407_v45  ;;  %4404 = vmatprep.subr.bf16.mxu1 %v4403_v0  ;;  %v838_v42 = vrot.slane %v5133_v51, 2 }
  0x6c   : > { %3779 = vmatmul.mubr.f32.gmra.mrb[2].mxu1 %v4985_v33  ;;  %4532 = vmatprep.subr.bf16.mxu0 %v4531_v40  ;;  %v5475_v22 = vsel %vm812_vm1, %v830_v44, %v832_v61  ;;  %v5479_v26 = vsel %vm812_vm1, %v832_v61, %v834_v56  ;;  %v2950_v44 = vld [vmem:[%s6068_s1 + $0x150] sm:$0xff]  ;;  %v3015_v61 = vld [vmem:[%s6068_s1 + $0x358] sm:$0xff] }
  0x6d   : > { %4075 = vmatmul.mubr.f32.gmra.mrb[2].mxu0 %v5426_v2  ;;  %3781 = vmatprep.mubr.f32.mxu1 %v5033_v60 }
  0x6e   : > { %4077 = vmatprep.mubr.f32.mxu0 %v5431_v24  ;;  %4406 = vmatpush3.bf16.msra.mxu1 %v4403_v0  ;;  %v2948_v0 = vld [vmem:[%s6068_s1 + $0x140] sm:$0xff] }
  0x6f   : > { %4534 = vmatpush3.bf16.msra.mxu0 %v4531_v40  ;;  %4408 = vmatprep.subr.bf16.mxu1 %v4407_v16  ;;  %v3013_v40 = vld [vmem:[%s6068_s1 + $0x348] sm:$0xff]  ;;  %v4415_v28 = vpack.c.bf16 %v2949_v7, %v2948_v0  ;;  %v5499_v0 = vsel %vm812_vm1, %v834_v56, %v836_v19  ;;  %v840_v7 = vrot.slane %v5156_v62, 2  ;;  %v2952_v56 = vld [vmem:[%s6068_s1 + $0x160] sm:$0xff] }
  0x70   : > { %3782 = vmatmul.mubr.f32.gmra.mrb[4].mxu1 %v5048_v3  ;;  %4536 = vmatprep.subr.bf16.mxu0 %v4535_v25  ;;  %v4543_v15 = vpack.c.bf16 %v3013_v40, %v3012_v10  ;;  %v5503_v10 = vsel %vm812_vm1, %v836_v19, %v838_v42  ;;  %v842_v40 = vrot.slane %v5162_v1, 2  ;;  %v3017_v19 = vld [vmem:[%s6068_s1 + $0x368] sm:$0xff] }
  0x71   : > { %4078 = vmatmul.mubr.f32.gmra.mrb[4].mxu0 %v5451_v52  ;;  %3784 = vmatprep.mubr.f32.mxu1 %v5051_v6 }
  0x72   : > { %4080 = vmatprep.mubr.f32.mxu0 %v5455_v54  ;;  %4410 = vmatpush3.bf16.msra.mxu1 %v4407_v16  ;;  %v2951_v16 = vld [vmem:[%s6068_s1 + $0x158] sm:$0xff] }
  0x73   : > { %4538 = vmatpush3.bf16.msra.mxu0 %v4535_v25  ;;  %4412 = vmatprep.subr.bf16.mxu1 %v4411_v53  ;;  %v3014_v25 = vld [vmem:[%s6068_s1 + $0x350] sm:$0xff]  ;;  %v4419_v12 = vpack.c.bf16 %v2951_v16, %v2950_v44  ;;  %v5523_v44 = vsel %vm812_vm1, %v838_v42, %v840_v7  ;;  %v844_v16 = vrot.slane %v5185_v14, 2 }
  0x74   : > { %3785 = vmatmul.mubr.f32.gmra.mrb[6].mxu1 %v5053_v8  ;;  %4540 = vmatprep.subr.bf16.mxu0 %v4539_v38  ;;  %v4547_v63 = vpack.c.bf16 %v3015_v61, %v3014_v25  ;;  %v5527_v25 = vsel %vm812_vm1, %v840_v7, %v842_v40  ;;  %v846_v61 = vrot.slane %v5191_v17, 2  ;;  %v2954_v42 = vld [vmem:[%s6068_s1 + $0x170] sm:$0xff]  ;;  %v3019_v7 = vld [vmem:[%s6068_s1 + $0x378] sm:$0xff] }
  0x75   : > { %4081 = vmatmul.mubr.f32.gmra.mrb[6].mxu0 %v5475_v22  ;;  %3787 = vmatprep.mubr.f32.mxu1 %v5072_v18 }
  0x76   : > { %4083 = vmatprep.mubr.f32.mxu0 %v5479_v26  ;;  %4414 = vmatpush3.bf16.msra.mxu1 %v4411_v53  ;;  %v2953_v53 = vld [vmem:[%s6068_s1 + $0x168] sm:$0xff] }
  0x77   : > { %4542 = vmatpush3.bf16.msra.mxu0 %v4539_v38  ;;  %4416 = vmatprep.subr.bf16.mxu1 %v4415_v28  ;;  %v3016_v38 = vld [vmem:[%s6068_s1 + $0x360] sm:$0xff]  ;;  %v4423_v59 = vpack.c.bf16 %v2953_v53, %v2952_v56  ;;  %v5547_v56 = vsel %vm812_vm1, %v842_v40, %v844_v16  ;;  %v848_v53 = vrot.slane %v5214_v37, 2 }
  0x78   : > { %3788 = vmatmul.mubr.f32.gmra.mrb[8].mxu1 %v5075_v21  ;;  %4544 = vmatprep.subr.bf16.mxu0 %v4543_v15  ;;  %v4551_v49 = vpack.c.bf16 %v3017_v19, %v3016_v38  ;;  %v5551_v38 = vsel %vm812_vm1, %v844_v16, %v846_v61  ;;  %v850_v19 = vrot.slane %v5220_v41, 2  ;;  %v2956_v40 = vld [vmem:[%s6068_s1 + $0x180] sm:$0xff]  ;;  %v3021_v16 = vld [vmem:[%s6068_s1 + $0x388] sm:$0xff] }
  0x79   : > { %4084 = vmatmul.mubr.f32.gmra.mrb[8].mxu0 %v5499_v0  ;;  %3790 = vmatprep.mubr.f32.mxu1 %v5098_v35 }
  0x7a   : > { %4086 = vmatprep.mubr.f32.mxu0 %v5503_v10  ;;  %4418 = vmatpush3.bf16.msra.mxu1 %v4415_v28  ;;  %v2955_v28 = vld [vmem:[%s6068_s1 + $0x178] sm:$0xff] }
  0x7b   : > { %4546 = vmatpush3.bf16.msra.mxu0 %v4543_v15  ;;  %4420 = vmatprep.subr.bf16.mxu1 %v4419_v12  ;;  %v3018_v15 = vld [vmem:[%s6068_s1 + $0x370] sm:$0xff]  ;;  %v4427_v46 = vpack.c.bf16 %v2955_v28, %v2954_v42  ;;  %v5571_v42 = vsel %vm812_vm1, %v846_v61, %v848_v53  ;;  %v852_v28 = vrot.slane %v5243_v55, 2  ;;  %v856_v61 = vrot.slane %v5272_v13, 2 }
  0x7c   : > { %3791 = vmatmul.mubr.f32.gmra.mrb[10].mxu1 %v5105_v39  ;;  %4548 = vmatprep.subr.bf16.mxu0 %v4547_v63  ;;  %v4555_v36 = vpack.c.bf16 %v3019_v7, %v3018_v15  ;;  %v5575_v15 = vsel %vm812_vm1, %v848_v53, %v850_v19  ;;  %v854_v7 = vrot.slane %v5249_v58, 2  ;;  %v858_v53 = vrot.slane %v5278_v20, 2 }
  0x7d   : > { %4087 = vmatmul.mubr.f32.gmra.mrb[10].mxu0 %v5523_v44  ;;  %3793 = vmatprep.mubr.f32.mxu1 %v5127_v48 }
  0x7e   : > { %4089 = vmatprep.mubr.f32.mxu0 %v5527_v25  ;;  %4422 = vmatpush3.bf16.msra.mxu1 %v4419_v12  ;;  %v2957_v12 = vld [vmem:[%s6068_s1 + $0x188] sm:$0xff] }
  0x7f   : > { %4550 = vmatpush3.bf16.msra.mxu0 %v4547_v63  ;;  %4424 = vmatprep.subr.bf16.mxu1 %v4423_v59  ;;  %v3020_v63 = vld [vmem:[%s6068_s1 + $0x380] sm:$0xff]  ;;  %v5578_v31 = vpack.c.bf16 %v2957_v12, %v2956_v40  ;;  %v5605_v40 = vsel %vm812_vm1, %v856_v61, %v858_v53 }
  0x80   : > { %3794 = vmatmul.mubr.f32.gmra.mrb[12].mxu1 %v5133_v51  ;;  %4552 = vmatprep.subr.bf16.mxu0 %v4551_v49  ;;  %v5581_v33 = vpack.c.bf16 %v3021_v16, %v3020_v63  ;;  %v864_v63 = vrot.slane %v5312_v50, 2 }
  0x81   : > { %4090 = vmatmul.mubr.f32.gmra.mrb[12].mxu0 %v5547_v56  ;;  %3796 = vmatprep.mubr.f32.mxu1 %v5156_v62 }
  0x82   : > { %4092 = vmatprep.mubr.f32.mxu0 %v5551_v38  ;;  %4426 = vmatpush3.bf16.msra.mxu1 %v4423_v59  ;;  %v5587_v59 = vsel %vm812_vm1, %v850_v19, %v852_v28  ;;  %v860_v19 = vrot.slane %v5293_v34, 2 }
  0x83   : > { %4554 = vmatpush3.bf16.msra.mxu0 %v4551_v49  ;;  %4428 = vmatprep.subr.bf16.mxu1 %v4427_v46  ;;  %v5591_v49 = vsel %vm812_vm1, %v852_v28, %v854_v7  ;;  %v866_v28 = vrot.slane %v5318_v57, 2 }
  0x84   : > { %3797 = vmatmul.mubr.f32.gmra.mrb[14].mxu1 %v5162_v1  ;;  %4556 = vmatprep.subr.bf16.mxu0 %v4555_v36  ;;  %v5613_v12 = vsel %vm812_vm1, %v858_v53, %v860_v19 }
  0x85   : > { %4093 = vmatmul.mubr.f32.gmra.mrb[14].mxu0 %v5571_v42  ;;  %3799 = vmatprep.mubr.f32.mxu1 %v5185_v14  ;;  %v5629_v53 = vsel %vm812_vm1, %v864_v63, %v866_v28 }
  0x86   : > { %4095 = vmatprep.mubr.f32.mxu0 %v5575_v15  ;;  %4430 = vmatpush3.bf16.msra.mxu1 %v4427_v46  ;;  %v5601_v46 = vsel %vm812_vm1, %v854_v7, %v856_v61  ;;  %v868_v61 = vrot.slane %v5329_v4, 2 }
  0x87   : > { %4558 = vmatpush3.bf16.msra.mxu0 %v4555_v36  ;;  %4432 = vmatprep.subr.bf16.mxu1 %v5578_v31  ;;  %v862_v36 = vrot.slane %v5299_v43, 2 }
  0x88   : > { %3800 = vmatmul.mubr.f32.gmra.mrb[16].mxu1 %v5191_v17  ;;  %4560 = vmatprep.subr.bf16.mxu0 %v5581_v33  ;;  %v5637_v23 = vsel %vm812_vm1, %v866_v28, %v868_v61 }
  0x89   : > { %4096 = vmatmul.mubr.f32.gmra.mrb[16].mxu0 %v5587_v59  ;;  %3802 = vmatprep.mubr.f32.mxu1 %v5214_v37  ;;  %v5617_v16 = vsel %vm812_vm1, %v860_v19, %v862_v36  ;;  %v5625_v7 = vsel %vm812_vm1, %v862_v36, %v864_v63  ;;  %v1656_v19 = vrot.slane %v5335_v9, 2  ;;  %6139 = vst [vmem:[#allocation32_spill] sm:$0xff] %v5637_v23  ;;  %v6104_v36 = vrot.slane %v5349_v27, 2 }
  0x8a   : > { %4098 = vmatprep.mubr.f32.mxu0 %v5591_v49  ;;  %v814_v63 = vrot.slane %v4980_v30, 2  ;;  %v2958_v30 = vld [vmem:[%s6068_s1 + $0x190] sm:$0xff] }
  0x8b   : > { %v5643_v4 = vsel %vm812_vm1, %v868_v61, %v1656_v19  ;;  %v5652_v28 = vsel %vm812_vm1, %v1656_v19, %v6104_v36  ;;  %v2959_v61 = vld [vmem:[%s6068_s1 + $0x198] sm:$0xff] }
  0x8c   : > { %3803 = vmatmul.mubr.f32.gmra.mrb[18].mxu1 %v5220_v41  ;;  %6140 = vst [vmem:[#allocation33_spill] sm:$0xff] %v5643_v4  ;;  %v815_v29 = vsel %vm812_vm1, %v813_v11, %v814_v63  ;;  %v3022_v11 = vld [vmem:[%s6068_s1 + $0x390] sm:$0xff]  ;;  %v3023_v36 = vld [vmem:[%s6068_s1 + $0x398] sm:$0xff] }
  0x8d   : > { %4099 = vmatmul.mubr.f32.gmra.mrb[18].mxu0 %v5601_v46  ;;  %3805 = vmatprep.mubr.f32.mxu1 %v5243_v55  ;;  %v4563_v27 = vpack.c.bf16 %v3023_v36, %v3022_v11  ;;  %v3025_v36 = vld [vmem:[%s6068_s1 + $0x3a8] sm:$0xff] }
  0x8e   : > { %4101 = vmatprep.mubr.f32.mxu0 %v5605_v40 }
  0x90   : > { %3806 = vmatmul.mubr.f32.gmra.mrb[20].mxu1 %v5249_v58 }
  0x91   : > { %4102 = vmatmul.mubr.f32.gmra.mrb[20].mxu0 %v5613_v12  ;;  %3808 = vmatprep.mubr.f32.mxu1 %v5272_v13 }
  0x92   : > { %4104 = vmatprep.mubr.f32.mxu0 %v5617_v16 }
  0x94   : > { %3809 = vmatmul.mubr.f32.gmra.mrb[22].mxu1 %v5278_v20 }
  0x95   : > { %4105 = vmatmul.mubr.f32.gmra.mrb[22].mxu0 %v5625_v7  ;;  %3811 = vmatprep.mubr.f32.mxu1 %v5293_v34 }
  0x96   : > { %4107 = vmatprep.mubr.f32.mxu0 %v5629_v53 }
  0x98   : > { %3812 = vmatmul.mubr.f32.gmra.mrb[24].mxu1 %v5299_v43 }
  0x99   : > { %4108 = vmatmul.mubr.f32.gmra.mrb[24].mxu0 %v5637_v23  ;;  %3814 = vmatprep.mubr.f32.mxu1 %v5312_v50  ;;  %v4435_v23 = vpack.c.bf16 %v2959_v61, %v2958_v30  ;;  %v2962_v61 = vld [vmem:[%s6068_s1 + $0x1b0] sm:$0xff] }
  0x9a   : > { %4110 = vmatprep.mubr.f32.mxu0 %v5643_v4  ;;  %v6141_v4 = vrot.slane %v4983_v32, 2 }
  0x9c   : > { %3815 = vmatmul.mubr.f32.gmra.mrb[26].mxu1 %v5318_v57  ;;  %v817_v19 = vsel %vm812_vm1, %v814_v63, %v6141_v4  ;;  %v2961_v4 = vld [vmem:[%s6068_s1 + $0x1a8] sm:$0xff]  ;;  %v3024_v63 = vld [vmem:[%s6068_s1 + $0x3a0] sm:$0xff] }
  0x9d   : > { %4111 = vmatmul.mubr.f32.gmra.mrb[26].mxu0 %v5652_v28  ;;  %3849 = vmatprep.mubr.f32.mxu1 %v815_v29  ;;  %v2960_v29 = vld [vmem:[%s6068_s1 + $0x1a0] sm:$0xff] }
  0x9e   : > { %4145 = vmatprep.mubr.f32.mxu0 %v5033_v60  ;;  %v4439_v30 = vpack.c.bf16 %v2961_v4, %v2960_v29  ;;  %v2964_v29 = vld [vmem:[%s6068_s1 + $0x1c0] sm:$0xff]  ;;  %v2965_v4 = vld [vmem:[%s6068_s1 + $0x1c8] sm:$0xff] }
  0xa0   : > { %3850 = vmatmul.mubr.f32.vlgmr.msra.gmra.mrb[0].mxu1 %v817_v19  ;;  %v2963_v19 = vld [vmem:[%s6068_s1 + $0x1b8] sm:$0xff] }
  0xa1   : > { %4146 = vmatmul.mubr.f32.vlgmr.msra.gmra.mrb[0].mxu0 %v5048_v3  ;;  %4434 = vmatpush3.bf16.msra.mxu1 %v5578_v31  ;;  %v4567_v31 = vpack.c.bf16 %v3025_v36, %v3024_v63  ;;  %v4447_v63 = vpack.c.bf16 %v2965_v4, %v2964_v29  ;;  %v2968_v29 = vld [vmem:[%s6068_s1 + $0x1e0] sm:$0xff]  ;;  %v2969_v4 = vld [vmem:[%s6068_s1 + $0x1e8] sm:$0xff] }
  0xa2   : > { %4562 = vmatpush3.bf16.msra.mxu0 %v5581_v33  ;;  %3852 = vmatprep.mubr.f32.mxu1 %v5381_v5  ;;  %v3026_v33 = vld [vmem:[%s6068_s1 + $0x3b0] sm:$0xff]  ;;  %v3027_v5 = vld [vmem:[%s6068_s1 + $0x3b8] sm:$0xff] }
  0xa3   : > { %4148 = vmatprep.mubr.f32.mxu0 %v5051_v6  ;;  %4436 = vmatprep.subr.bf16.mxu1 %v4435_v23  ;;  %v4571_v11 = vpack.c.bf16 %v3027_v5, %v3026_v33 }
  0xa4   : > { %3853 = vmatmul.mubr.f32.gmra.mrb[2].mxu1 %v5401_v47  ;;  %4564 = vmatprep.subr.bf16.mxu0 %v4563_v27  ;;  %v4443_v47 = vpack.c.bf16 %v2963_v19, %v2962_v61  ;;  %v2966_v61 = vld [vmem:[%s6068_s1 + $0x1d0] sm:$0xff]  ;;  %v2967_v19 = vld [vmem:[%s6068_s1 + $0x1d8] sm:$0xff] }
  0xa5   : > { %4149 = vmatmul.mubr.f32.gmra.mrb[2].mxu0 %v5053_v8  ;;  %3855 = vmatprep.mubr.f32.mxu1 %v5407_v45  ;;  %v4451_v33 = vpack.c.bf16 %v2967_v19, %v2966_v61  ;;  %v2970_v61 = vld [vmem:[%s6068_s1 + $0x1f0] sm:$0xff]  ;;  %v2971_v19 = vld [vmem:[%s6068_s1 + $0x1f8] sm:$0xff] }
  0xa6   : > { %4151 = vmatprep.mubr.f32.mxu0 %v5072_v18  ;;  %4438 = vmatpush3.bf16.msra.mxu1 %v4435_v23  ;;  %v3028_v23 = vld [vmem:[%s6068_s1 + $0x3c0] sm:$0xff] }
  0xa7   : > { %4566 = vmatpush3.bf16.msra.mxu0 %v4563_v27  ;;  %4440 = vmatprep.subr.bf16.mxu1 %v4439_v30  ;;  %v3029_v27 = vld [vmem:[%s6068_s1 + $0x3c8] sm:$0xff] }
  0xa8   : > { %3856 = vmatmul.mubr.f32.gmra.mrb[4].mxu1 %v5426_v2  ;;  %4568 = vmatprep.subr.bf16.mxu0 %v4567_v31  ;;  %v4575_v36 = vpack.c.bf16 %v3029_v27, %v3028_v23  ;;  %v4455_v23 = vpack.c.bf16 %v2969_v4, %v2968_v29  ;;  %v3036_v29 = vld [vmem:[%s6068_s1 + $0x400] sm:$0xff]  ;;  %v3037_v4 = vld [vmem:[%s6068_s1 + $0x408] sm:$0xff] }
  0xa9   : > { %4152 = vmatmul.mubr.f32.gmra.mrb[4].mxu0 %v5075_v21  ;;  %3858 = vmatprep.mubr.f32.mxu1 %v5431_v24 }
  0xaa   : > { %4154 = vmatprep.mubr.f32.mxu0 %v5098_v35  ;;  %4442 = vmatpush3.bf16.msra.mxu1 %v4439_v30  ;;  %v3030_v30 = vld [vmem:[%s6068_s1 + $0x3d0] sm:$0xff] }
  0xab   : > { %4570 = vmatpush3.bf16.msra.mxu0 %v4567_v31  ;;  %4444 = vmatprep.subr.bf16.mxu1 %v4443_v47  ;;  %v3031_v31 = vld [vmem:[%s6068_s1 + $0x3d8] sm:$0xff] }
  0xac   : > { %3859 = vmatmul.mubr.f32.gmra.mrb[6].mxu1 %v5451_v52  ;;  %4572 = vmatprep.subr.bf16.mxu0 %v4571_v11  ;;  %v4579_v5 = vpack.c.bf16 %v3031_v31, %v3030_v30  ;;  %v4459_v30 = vpack.c.bf16 %v2971_v19, %v2970_v61  ;;  %v3038_v61 = vld [vmem:[%s6068_s1 + $0x410] sm:$0xff]  ;;  %v3039_v19 = vld [vmem:[%s6068_s1 + $0x418] sm:$0xff] }
  0xad   : > { %4155 = vmatmul.mubr.f32.gmra.mrb[6].mxu0 %v5105_v39  ;;  %3861 = vmatprep.mubr.f32.mxu1 %v5455_v54 }
  0xae   : > { %4157 = vmatprep.mubr.f32.mxu0 %v5127_v48  ;;  %4446 = vmatpush3.bf16.msra.mxu1 %v4443_v47  ;;  %v3032_v47 = vld [vmem:[%s6068_s1 + $0x3e0] sm:$0xff] }
  0xaf   : > { %4574 = vmatpush3.bf16.msra.mxu0 %v4571_v11  ;;  %4448 = vmatprep.subr.bf16.mxu1 %v4447_v63  ;;  %v3033_v11 = vld [vmem:[%s6068_s1 + $0x3e8] sm:$0xff] }
  0xb0   : > { %3862 = vmatmul.mubr.f32.gmra.mrb[8].mxu1 %v5475_v22  ;;  %4576 = vmatprep.subr.bf16.mxu0 %v4575_v36  ;;  %v4583_v27 = vpack.c.bf16 %v3033_v11, %v3032_v47  ;;  %v6143_v47 = vld [vmem:[#allocation25_spill] sm:$0xff] }
  0xb1   : > { %4158 = vmatmul.mubr.f32.gmra.mrb[8].mxu0 %v5133_v51  ;;  %3864 = vmatprep.mubr.f32.mxu1 %v5479_v26  ;;  %v5804_v11 = vunpack.c.h.bf16 %v6143_v47 }
  0xb2   : > { %4160 = vmatprep.mubr.f32.mxu0 %v5156_v62  ;;  %4450 = vmatpush3.bf16.msra.mxu1 %v4447_v63  ;;  %v3034_v63 = vld [vmem:[%s6068_s1 + $0x3f0] sm:$0xff] }
  0xb3   : > { %4578 = vmatpush3.bf16.msra.mxu0 %v4575_v36  ;;  %4452 = vmatprep.subr.bf16.mxu1 %v4451_v33  ;;  %v3035_v36 = vld [vmem:[%s6068_s1 + $0x3f8] sm:$0xff] }
  0xb4   : > { %3865 = vmatmul.mubr.f32.gmra.mrb[10].mxu1 %v5499_v0  ;;  %4580 = vmatprep.subr.bf16.mxu0 %v4579_v5  ;;  %v4587_v31 = vpack.c.bf16 %v3035_v36, %v3034_v63  ;;  %v6146_v63 = vld [vmem:[#allocation3_spill] sm:$0xff]  ;;  %v4595_v36 = vpack.c.bf16 %v3039_v19, %v3038_v61  ;;  %v3042_v61 = vld [vmem:[%s6068_s1 + $0x430] sm:$0xff]  ;;  %v3043_v19 = vld [vmem:[%s6068_s1 + $0x438] sm:$0xff] }
  0xb5   : > { %4161 = vmatmul.mubr.f32.gmra.mrb[10].mxu0 %v5162_v1  ;;  %3867 = vmatprep.mubr.f32.mxu1 %v5503_v10 }
  0xb6   : > { %4163 = vmatprep.mubr.f32.mxu0 %v5185_v14  ;;  %4454 = vmatpush3.bf16.msra.mxu1 %v4451_v33  ;;  %v4591_v33 = vpack.c.bf16 %v3037_v4, %v3036_v29  ;;  %v3041_v29 = vld [vmem:[%s6068_s1 + $0x428] sm:$0xff]  ;;  %v6148_v4 = vld [vmem:[#allocation4_spill] sm:$0xff] }
  0xb7   : > { %4582 = vmatpush3.bf16.msra.mxu0 %v4579_v5  ;;  %4456 = vmatprep.subr.bf16.mxu1 %v4455_v23  ;;  %v6142_v5 = vld [vmem:[#allocation23_spill] sm:$0xff] }
  0xb8   : > { %3868 = vmatmul.mubr.f32.gmra.mrb[12].mxu1 %v5523_v44  ;;  %4584 = vmatprep.subr.bf16.mxu0 %v4583_v27 }
  0xb9   : > { %4164 = vmatmul.mubr.f32.gmra.mrb[12].mxu0 %v5191_v17  ;;  %3870 = vmatprep.mubr.f32.mxu1 %v5527_v25 }
  0xba   : > { %4166 = vmatprep.mubr.f32.mxu0 %v5214_v37  ;;  %4458 = vmatpush3.bf16.msra.mxu1 %v4455_v23  ;;  %v6144_v23 = vld [vmem:[#allocation27_spill] sm:$0xff] }
  0xbb   : > { %4586 = vmatpush3.bf16.msra.mxu0 %v4583_v27  ;;  %4460 = vmatprep.subr.bf16.mxu1 %v4459_v30  ;;  %v6145_v27 = vld [vmem:[#allocation32_spill] sm:$0xff] }
  0xbc   : > { %3871 = vmatmul.mubr.f32.gmra.mrb[14].mxu1 %v5547_v56  ;;  %4588 = vmatprep.subr.bf16.mxu0 %v4587_v31 }
  0xbd   : > { %4167 = vmatmul.mubr.f32.gmra.mrb[14].mxu0 %v5220_v41  ;;  %3873 = vmatprep.mubr.f32.mxu1 %v5551_v38 }
  0xbe   : > { %4169 = vmatprep.mubr.f32.mxu0 %v5243_v55  ;;  %4462 = vmatpush3.bf16.msra.mxu1 %v4459_v30  ;;  %v6147_v30 = vld [vmem:[#allocation2_spill] sm:$0xff] }
  0xbf   : > { %4590 = vmatpush3.bf16.msra.mxu0 %v4587_v31  ;;  %4623 = vmatprep.subr.bf16.mxu1 %v4591_v33  ;;  %v3040_v31 = vld [vmem:[%s6068_s1 + $0x420] sm:$0xff] }
  0xc0   : > { %3874 = vmatmul.mubr.f32.gmra.mrb[16].mxu1 %v5571_v42  ;;  %4592 = vmatprep.subr.bf16.mxu0 %v4591_v33  ;;  %v4599_v47 = vpack.c.bf16 %v3041_v29, %v3040_v31  ;;  %v6152_v31 = vld [vmem:[#allocation8_spill] sm:$0xff]  ;;  %v3047_v29 = vld [vmem:[%s6068_s1 + $0x458] sm:$0xff] }
  0xc1   : > { %4170 = vmatmul.mubr.f32.gmra.mrb[16].mxu0 %v5249_v58  ;;  %3876 = vmatprep.mubr.f32.mxu1 %v5575_v15 }
  0xc2   : > { %4172 = vmatprep.mubr.f32.mxu0 %v5272_v13 }
  0xc4   : > { %3877 = vmatmul.mubr.f32.gmra.mrb[18].mxu1 %v5587_v59 }
  0xc5   : > { %4173 = vmatmul.mubr.f32.gmra.mrb[18].mxu0 %v5278_v20  ;;  %3879 = vmatprep.mubr.f32.mxu1 %v5591_v49 }
  0xc6   : > { %4175 = vmatprep.mubr.f32.mxu0 %v5293_v34 }
  0xc8   : > { %3880 = vmatmul.mubr.f32.gmra.mrb[20].mxu1 %v5601_v46 }
  0xc9   : > { %4176 = vmatmul.mubr.f32.gmra.mrb[20].mxu0 %v5299_v43  ;;  %3882 = vmatprep.mubr.f32.mxu1 %v5605_v40 }
  0xca   : > { %4178 = vmatprep.mubr.f32.mxu0 %v5312_v50 }
  0xcc   : > { %3883 = vmatmul.mubr.f32.gmra.mrb[22].mxu1 %v5613_v12 }
  0xcd   : > { %4179 = vmatmul.mubr.f32.gmra.mrb[22].mxu0 %v5318_v57  ;;  %3885 = vmatprep.mubr.f32.mxu1 %v5617_v16 }
  0xce   : > { %4181 = vmatprep.mubr.f32.mxu0 %v6142_v5 }
  0xd0   : > { %3886 = vmatmul.mubr.f32.gmra.mrb[24].mxu1 %v5625_v7 }
  0xd1   : > { %4182 = vmatmul.mubr.f32.gmra.mrb[24].mxu0 %v5335_v9  ;;  %3888 = vmatprep.mubr.f32.mxu1 %v5629_v53 }
  0xd2   : > { %4184 = vmatprep.mubr.f32.mxu0 %v6144_v23 }
  0xd4   : > { %3889 = vmatmul.mubr.f32.gmra.mrb[26].mxu1 %v6145_v27 }
  0xd5   : > { %4185 = vmatmul.mubr.f32.gmra.mrb[26].mxu0 %v5804_v11  ;;  %3923 = vmatprep.mubr.f32.mxu1 %v4983_v32  ;;  %v6149_v32 = vld [vmem:[#allocation5_spill] sm:$0xff] }
  0xd6   : > { %4219 = vmatprep.mubr.f32.mxu0 %v6146_v63  ;;  %v6150_v63 = vld [vmem:[#allocation6_spill] sm:$0xff] }
  0xd8   : > { %3924 = vmatmul.mubr.f32.vlgmr.msra.gmra.mrb[0].mxu1 %v6147_v30  ;;  %v3045_v30 = vld [vmem:[%s6068_s1 + $0x448] sm:$0xff] }
  0xd9   : > { %4220 = vmatmul.mubr.f32.vlgmr.msra.gmra.mrb[0].mxu0 %v6148_v4  ;;  %4631 = vmatpush3.bf16.msra.mxu1 %v4591_v33  ;;  %v6154_v4 = vld [vmem:[#allocation10_spill] sm:$0xff] }
  0xda   : > { %4594 = vmatpush3.bf16.msra.mxu0 %v4591_v33  ;;  %3926 = vmatprep.mubr.f32.mxu1 %v5033_v60  ;;  %v6151_v60 = vld [vmem:[#allocation7_spill] sm:$0xff]  ;;  %v4603_v33 = vpack.c.bf16 %v3043_v19, %v3042_v61  ;;  %v6156_v61 = vld [vmem:[#allocation12_spill] sm:$0xff] }
  0xdb   : > { %4222 = vmatprep.mubr.f32.mxu0 %v6149_v32  ;;  %4596 = vmatprep.subr.bf16.mxu0 %v4595_v36 }
  0xdc   : > { %3927 = vmatmul.mubr.f32.gmra.mrb[2].mxu1 %v5048_v3  ;;  %4624 = vmatprep.subr.bf16.mxu1 %v4595_v36  ;;  %v3044_v3 = vld [vmem:[%s6068_s1 + $0x440] sm:$0xff] }
  0xdd   : > { %4223 = vmatmul.mubr.f32.gmra.mrb[2].mxu0 %v6150_v63  ;;  %3929 = vmatprep.mubr.f32.mxu1 %v5051_v6  ;;  %v6153_v6 = vld [vmem:[#allocation9_spill] sm:$0xff] }
  0xde   : > { %4225 = vmatprep.mubr.f32.mxu0 %v6151_v60  ;;  %4598 = vmatpush3.bf16.msra.mxu0 %v4595_v36  ;;  %v3051_v63 = vld [vmem:[%s6068_s1 + $0x478] sm:$0xff]  ;;  %v6158_v60 = vld [vmem:[#allocation14_spill] sm:$0xff] }
  0xdf   : > { %4632 = vmatpush3.bf16.msra.mxu1 %v4595_v36  ;;  %4600 = vmatprep.subr.bf16.mxu0 %v4599_v47  ;;  %v4607_v36 = vpack.c.bf16 %v3045_v30, %v3044_v3  ;;  %v6161_v3 = vld [vmem:[#allocation17_spill] sm:$0xff]  ;;  %v6163_v30 = vld [vmem:[#allocation19_spill] sm:$0xff] }
  0xe0   : > { %3930 = vmatmul.mubr.f32.gmra.mrb[4].mxu1 %v5053_v8  ;;  %4625 = vmatprep.subr.bf16.mxu1 %v4599_v47  ;;  %v3046_v8 = vld [vmem:[%s6068_s1 + $0x450] sm:$0xff] }
  0xe1   : > { %4226 = vmatmul.mubr.f32.gmra.mrb[4].mxu0 %v6152_v31  ;;  %3932 = vmatprep.mubr.f32.mxu1 %v5072_v18  ;;  %v6155_v18 = vld [vmem:[#allocation11_spill] sm:$0xff]  ;;  %v4611_v32 = vpack.c.bf16 %v3047_v29, %v3046_v8  ;;  %v6167_v31 = vld [vmem:[#allocation24_spill] sm:$0xff] }
  0xe2   : > { %4228 = vmatprep.mubr.f32.mxu0 %v6153_v6  ;;  %4602 = vmatpush3.bf16.msra.mxu0 %v4599_v47  ;;  %v6168_v6 = vld [vmem:[#allocation26_spill] sm:$0xff] }
  0xe3   : > { %4633 = vmatpush3.bf16.msra.mxu1 %v4599_v47  ;;  %4604 = vmatprep.subr.bf16.mxu0 %v4603_v33  ;;  %v3049_v47 = vld [vmem:[%s6068_s1 + $0x468] sm:$0xff] }
  0xe4   : > { %3933 = vmatmul.mubr.f32.gmra.mrb[6].mxu1 %v5075_v21  ;;  %4626 = vmatprep.subr.bf16.mxu1 %v4603_v33  ;;  %v3048_v21 = vld [vmem:[%s6068_s1 + $0x460] sm:$0xff] }
  0xe5   : > { %4229 = vmatmul.mubr.f32.gmra.mrb[6].mxu0 %v6154_v4  ;;  %3935 = vmatprep.mubr.f32.mxu1 %v5098_v35  ;;  %v6157_v35 = vld [vmem:[#allocation13_spill] sm:$0xff]  ;;  %v4615_v19 = vpack.c.bf16 %v3049_v47, %v3048_v21 }
  0xe6   : > { %4231 = vmatprep.mubr.f32.mxu0 %v6155_v18  ;;  %4606 = vmatpush3.bf16.msra.mxu0 %v4603_v33 }
  0xe7   : > { %4634 = vmatpush3.bf16.msra.mxu1 %v4603_v33  ;;  %4608 = vmatprep.subr.bf16.mxu0 %v4607_v36 }
  0xe8   : > { %3936 = vmatmul.mubr.f32.gmra.mrb[8].mxu1 %v5105_v39  ;;  %4627 = vmatprep.subr.bf16.mxu1 %v4607_v36  ;;  %v3050_v39 = vld [vmem:[%s6068_s1 + $0x470] sm:$0xff] }
  0xe9   : > { %4232 = vmatmul.mubr.f32.gmra.mrb[8].mxu0 %v6156_v61  ;;  %3938 = vmatprep.mubr.f32.mxu1 %v5127_v48  ;;  %v6159_v48 = vld [vmem:[#allocation15_spill] sm:$0xff]  ;;  %v4619_v33 = vpack.c.bf16 %v3051_v63, %v3050_v39 }
  0xea   : > { %4234 = vmatprep.mubr.f32.mxu0 %v6157_v35  ;;  %4610 = vmatpush3.bf16.msra.mxu0 %v4607_v36 }
  0xeb   : > { %4635 = vmatpush3.bf16.msra.mxu1 %v4607_v36  ;;  %4612 = vmatprep.subr.bf16.mxu0 %v4611_v32  ;;  %v2164_v36 = vrot.slane %v5804_v11, 1 }
  0xec   : > { %3939 = vmatmul.mubr.f32.gmra.mrb[10].mxu1 %v5133_v51  ;;  %4628 = vmatprep.subr.bf16.mxu1 %v4611_v32  ;;  %v6160_v51 = vld [vmem:[#allocation16_spill] sm:$0xff] }
  0xed   : > { %4235 = vmatmul.mubr.f32.gmra.mrb[10].mxu0 %v6158_v60  ;;  %3941 = vmatprep.mubr.f32.mxu1 %v5156_v62  ;;  %v6162_v62 = vld [vmem:[#allocation18_spill] sm:$0xff] }
  0xee   : > { %4237 = vmatprep.mubr.f32.mxu0 %v6159_v48  ;;  %4614 = vmatpush3.bf16.msra.mxu0 %v4611_v32 }
  0xef   : > { %4636 = vmatpush3.bf16.msra.mxu1 %v4611_v32  ;;  %4616 = vmatprep.subr.bf16.mxu0 %v4615_v19 }
  0xf0   : > { %3942 = vmatmul.mubr.f32.gmra.mrb[12].mxu1 %v5162_v1  ;;  %4629 = vmatprep.subr.bf16.mxu1 %v4615_v19  ;;  %v6164_v1 = vld [vmem:[#allocation20_spill] sm:$0xff] }
  0xf1   : > { %4238 = vmatmul.mubr.f32.gmra.mrb[12].mxu0 %v6160_v51  ;;  %3944 = vmatprep.mubr.f32.mxu1 %v5185_v14  ;;  %v6165_v14 = vld [vmem:[#allocation21_spill] sm:$0xff] }
  0xf2   : > { %4240 = vmatprep.mubr.f32.mxu0 %v6161_v3  ;;  %4618 = vmatpush3.bf16.msra.mxu0 %v4615_v19 }
  0xf3   : > { %4637 = vmatpush3.bf16.msra.mxu1 %v4615_v19  ;;  %4620 = vmatprep.subr.bf16.mxu0 %v4619_v33 }
  0xf4   : > { %3945 = vmatmul.mubr.f32.gmra.mrb[14].mxu1 %v5191_v17  ;;  %4630 = vmatprep.subr.bf16.mxu1 %v4619_v33  ;;  %v6166_v17 = vld [vmem:[#allocation22_spill] sm:$0xff] }
  0xf5   : > { %4241 = vmatmul.mubr.f32.gmra.mrb[14].mxu0 %v6162_v62  ;;  %3947 = vmatprep.mubr.f32.mxu1 %v5214_v37  ;;  %v203_v37 = vld [vmem:[%s4963_s24 + $0x80] sm:$0xf] }
  0xf6   : > { %4243 = vmatprep.mubr.f32.mxu0 %v6163_v30  ;;  %4622 = vmatpush3.bf16.msra.mxu0 %v4619_v33 }
  0xf7   : > { %4638 = vmatpush3.bf16.msra.mxu1 %v4619_v33 }
  0xf8   : > { %3948 = vmatmul.mubr.f32.gmra.mrb[16].mxu1 %v5220_v41  ;;  %v6169_v41 = vld [vmem:[#allocation28_spill] sm:$0xff] }
  0xf9   : > { %4244 = vmatmul.mubr.f32.gmra.mrb[16].mxu0 %v6164_v1  ;;  %3950 = vmatprep.mubr.f32.mxu1 %v5243_v55  ;;  %v236_v55 = vunpack.c.l.bf16 %v203_v37 }
  0xfa   : > { %4246 = vmatprep.mubr.f32.mxu0 %v6165_v14 }
  0xfb   : > { %v2166_v8 = vrot.slane %v236_v55, 1 }
  0xfc   : > { %3951 = vmatmul.mubr.f32.gmra.mrb[18].mxu1 %v5249_v58  ;;  %v6170_v58 = vld [vmem:[#allocation29_spill] sm:$0xff] }
  0xfd   : > { %4247 = vmatmul.mubr.f32.gmra.mrb[18].mxu0 %v6166_v17  ;;  %3953 = vmatprep.mubr.f32.mxu1 %v5272_v13  ;;  %v6171_v13 = vld [vmem:[#allocation30_spill] sm:$0xff] }
  0xfe   : > { %4249 = vmatprep.mubr.f32.mxu0 %v6167_v31 }
 0x100   : > { %3954 = vmatmul.mubr.f32.gmra.mrb[20].mxu1 %v5278_v20  ;;  %v6172_v20 = vrot.slane %v6144_v23, 1 }
 0x101   : > { %4250 = vmatmul.mubr.f32.gmra.mrb[20].mxu0 %v6168_v6  ;;  %3956 = vmatprep.mubr.f32.mxu1 %v5293_v34  ;;  %v6173_v34 = vld [vmem:[#allocation31_spill] sm:$0xff] }
 0x102   : > { %4252 = vmatprep.mubr.f32.mxu0 %v6169_v41  ;;  %v2165_v29 = vsel %vm299_vm0, %v6172_v20, %v2164_v36 }
 0x104   : > { %3957 = vmatmul.mubr.f32.gmra.mrb[22].mxu1 %v5299_v43  ;;  %v2167_v43 = vsel %vm299_vm0, %v2164_v36, %v2166_v8 }
 0x105   : > { %4253 = vmatmul.mubr.f32.gmra.mrb[22].mxu0 %v6170_v58  ;;  %3959 = vmatprep.mubr.f32.mxu1 %v5312_v50  ;;  %v6174_v50 = vld [vmem:[#allocation33_spill] sm:$0xff] }
 0x106   : > { %4255 = vmatprep.mubr.f32.mxu0 %v6171_v13 }
 0x108   : > { %3960 = vmatmul.mubr.f32.gmra.mrb[24].mxu1 %v5318_v57  ;;  %v2422_v57 = vrot.slane %v236_v55, 2 }
 0x109   : > { %4256 = vmatmul.mubr.f32.gmra.mrb[24].mxu0 %v6173_v34  ;;  %3962 = vmatprep.mubr.f32.mxu1 %v6142_v5  ;;  %v5991_v34 = vld [vmem:[%s6069_s2] ss:$0 sm:$0xff] }
 0x10a   : > { %4258 = vmatprep.mubr.f32.mxu0 %v2165_v29 }
 0x10c   : > { %3963 = vmatmul.mubr.f32.gmra.mrb[26].mxu1 %v5335_v9  ;;  %v6175_v9 = vrot.slane %v6144_v23, 2 }
 0x10d   : > { %4259 = vmatmul.mubr.f32.gmra.mrb[26].mxu0 %v2167_v43  ;;  %4314 = vmatprep.mubr.f32.mxu1 %v5575_v15 }
 0x10e   : > { %4293 = vmatprep.mubr.f32.mxu0 %v5407_v45  ;;  %v2420_v45 = vrot.slane %v5804_v11, 2 }
 0x110   : > { %4315 = vmatmul.mubr.f32.vlgmr.msra.gmra.mrb[28].mxu1 %v5587_v59 }
 0x111   : > { %4294 = vmatmul.mubr.f32.vlgmr.msra.gmra.mrb[0].mxu0 %v5426_v2  ;;  %4317 = vmatprep.mubr.f32.mxu1 %v5591_v49  ;;  %v2421_v2 = vsel %vm812_vm1, %v6175_v9, %v2420_v45 }
 0x112   : > { %4296 = vmatprep.mubr.f32.mxu0 %v5431_v24  ;;  %v2423_v24 = vsel %vm812_vm1, %v2420_v45, %v2422_v57 }
 0x114   : > { %4318 = vmatmul.mubr.f32.gmra.mrb[30].mxu1 %v5601_v46 }
 0x115   : > { %4297 = vmatmul.mubr.f32.gmra.mrb[2].mxu0 %v5451_v52  ;;  %4320 = vmatprep.mubr.f32.mxu1 %v5605_v40 }
 0x116   : > { %4299 = vmatprep.mubr.f32.mxu0 %v5455_v54 }
 0x118   : > { %4321 = vmatmul.mubr.f32.gmra.mrb[32].mxu1 %v5613_v12 }
 0x119   : > { %4300 = vmatmul.mubr.f32.gmra.mrb[4].mxu0 %v5475_v22  ;;  %4323 = vmatprep.mubr.f32.mxu1 %v5617_v16 }
 0x11a   : > { %4302 = vmatprep.mubr.f32.mxu0 %v5479_v26 }
 0x11c   : > { %4324 = vmatmul.mubr.f32.gmra.mrb[34].mxu1 %v5625_v7 }
 0x11d   : > { %4303 = vmatmul.mubr.f32.gmra.mrb[6].mxu0 %v5499_v0  ;;  %4326 = vmatprep.mubr.f32.mxu1 %v5629_v53 }
 0x11e   : > { %4305 = vmatprep.mubr.f32.mxu0 %v5503_v10 }
 0x120   : > { %4327 = vmatmul.mubr.f32.gmra.mrb[36].mxu1 %v6145_v27 }
 0x121   : > { %4306 = vmatmul.mubr.f32.gmra.mrb[8].mxu0 %v5523_v44  ;;  %4329 = vmatprep.mubr.f32.mxu1 %v6174_v50 }
 0x122   : > { %4308 = vmatprep.mubr.f32.mxu0 %v5527_v25 }
 0x124   : > { %4330 = vmatmul.mubr.f32.gmra.mrb[38].mxu1 %v5652_v28 }
 0x125   : > { %4309 = vmatmul.mubr.f32.gmra.mrb[10].mxu0 %v5547_v56  ;;  %4332 = vmatprep.mubr.f32.mxu1 %v2421_v2 }
 0x126   : > { %4311 = vmatprep.mubr.f32.mxu0 %v5551_v38 }
 0x128   : > { %4333 = vmatmul.mubr.f32.gmra.mrb[40].mxu1 %v2423_v24 }
 0x129   : > { %4312 = vmatmul.mubr.f32.gmra.mrb[12].mxu0 %v5571_v42 }
 0x1ab   : > { %v3925_v52 = vpop.f32.mrb[0].mxu1 }
 0x1ac   : > { %v5942_v54 = vpop.f32.mrb[1].mxu1 }
 0x1af   : > { %v5944_v22 = vpop.f32.mrb[2].mxu1 }
 0x1b0   : > { %v5946_v26 = vpop.f32.mrb[3].mxu1 }
 0x1b3   : > { %v5948_v0 = vpop.f32.mrb[4].mxu1 }
 0x1b4   : > { %v5950_v10 = vpop.f32.mrb[5].mxu1 }
 0x1b7   : > { %v5952_v44 = vpop.f32.mrb[6].mxu1 }
 0x1b8   : > { %v5954_v25 = vpop.f32.mrb[7].mxu1 }
 0x1bb   : > { %v5956_v56 = vpop.f32.mrb[8].mxu1 }
 0x1bc   : > { %v5958_v38 = vpop.f32.mrb[9].mxu1 }
 0x1bf   : > { %v5960_v42 = vpop.f32.mrb[10].mxu1 }
 0x1c0   : > { %v5962_v15 = vpop.f32.mrb[11].mxu1 }
 0x1c3   : > { %v5964_v59 = vpop.f32.mrb[12].mxu1 }
 0x1c4   : > { %v5966_v49 = vpop.f32.mrb[13].mxu1 }
 0x1c7   : > { %v3946_v46 = vpop.f32.mrb[14].mxu1 }
 0x1c8   : > { %v4242_v40 = vpop.f32.mrb[14].mxu0  ;;  %v1284_v12 = vpop.f32.mrb[15].mxu1 }
 0x1c9   : > { %v4653_v16 = vadd.f32 %v4242_v40, %v3946_v46  ;;  %v2306_v7 = vpop.f32.mrb[15].mxu0 }
 0x1ca   : > { %v4655_v53 = vadd.f32 %v2306_v7, %v1284_v12 }
 0x1cb   : > { %v3949_v28 = vpop.f32.mrb[16].mxu1 }
 0x1cc   : > { %v4245_v5 = vpop.f32.mrb[16].mxu0  ;;  %v1294_v11 = vpop.f32.mrb[17].mxu1 }
 0x1cd   : > { %v4657_v23 = vadd.f32 %v4245_v5, %v3949_v28  ;;  %v2316_v27 = vpop.f32.mrb[17].mxu0 }
 0x1ce   : > { %v4659_v4 = vadd.f32 %v2316_v27, %v1294_v11 }
 0x1cf   : > { %v3952_v18 = vpop.f32.mrb[18].mxu1 }
 0x1d0   : > { %v4248_v32 = vpop.f32.mrb[18].mxu0  ;;  %v1304_v21 = vpop.f32.mrb[19].mxu1 }
 0x1d1   : > { %v5968_v47 = vadd.f32 %v4248_v32, %v3952_v18  ;;  %v2326_v61 = vpop.f32.mrb[19].mxu0 }
 0x1d2   : > { %v5970_v35 = vadd.f32 %v2326_v61, %v1304_v21 }
 0x1d3   : > { %v3955_v19 = vpop.f32.mrb[20].mxu1 }
 0x1d4   : > { %v4251_v39 = vpop.f32.mrb[20].mxu0  ;;  %v1314_v63 = vpop.f32.mrb[21].mxu1 }
 0x1d5   : > { %v5972_v60 = vadd.f32 %v4251_v39, %v3955_v19  ;;  %v2336_v48 = vpop.f32.mrb[21].mxu0 }
 0x1d6   : > { %v5974_v33 = vadd.f32 %v2336_v48, %v1314_v63 }
 0x1d7   : > { %v3958_v51 = vpop.f32.mrb[22].mxu1 }
 0x1d8   : > { %v4254_v3 = vpop.f32.mrb[22].mxu0  ;;  %v1324_v62 = vpop.f32.mrb[23].mxu1 }
 0x1d9   : > { %v5976_v30 = vadd.f32 %v4254_v3, %v3958_v51  ;;  %v2346_v1 = vpop.f32.mrb[23].mxu0 }
 0x1da   : > { %v5978_v14 = vadd.f32 %v2346_v1, %v1324_v62 }
 0x1db   : > { %v3961_v17 = vpop.f32.mrb[24].mxu1 }
 0x1dc   : > { %v4257_v31 = vpop.f32.mrb[24].mxu0  ;;  %v1334_v37 = vpop.f32.mrb[25].mxu1 }
 0x1dd   : > { %v5980_v6 = vadd.f32 %v4257_v31, %v3961_v17  ;;  %v2356_v41 = vpop.f32.mrb[25].mxu0 }
 0x1de   : > { %v5982_v55 = vadd.f32 %v2356_v41, %v1334_v37 }
 0x1df   : > { %v3964_v36 = vpop.f32.mrb[26].mxu1 }
 0x1e0   : > { %v4260_v58 = vpop.f32.mrb[26].mxu0  ;;  %v1344_v13 = vpop.f32.mrb[27].mxu1 }
 0x1e1   : > { %v5984_v8 = vadd.f32 %v4260_v58, %v3964_v36  ;;  %v2366_v20 = vpop.f32.mrb[27].mxu0 }
 0x1e2   : > { %v5986_v29 = vadd.f32 %v2366_v20, %v1344_v13 }
 0x1e3   : > { %v4316_v43 = vpop.f32.mrb[28].mxu1 }
 0x1e4   : > { %v4295_v45 = vpop.f32.mrb[0].mxu0  ;;  %v4654_v50 = vadd.f32 %v4653_v16, %v4316_v43  ;;  %v2562_v57 = vpop.f32.mrb[29].mxu1 }
 0x1e5   : > { %v4639_v9 = vadd.f32 %v4295_v45, %v3925_v52  ;;  %v2492_v2 = vpop.f32.mrb[1].mxu0  ;;  %v4656_v24 = vadd.f32 %v4655_v53, %v2562_v57 }
 0x1e6   : > { %v2681_v46 = vadd.f32 %v4654_v50, %v5991_v34  ;;  %v4640_v40 = vadd.f32 %v2492_v2, %v5942_v54 }
 0x1e7   : > { %v2667_v12 = vadd.f32 %v4639_v9, %v5991_v34  ;;  %v2680_v7 = vadd.f32 %v4656_v24, %v5991_v34  ;;  %v4319_v28 = vpop.f32.mrb[30].mxu1 }
 0x1e8   : > { %v2709_v5 = vmax.f32 %v2681_v46, 0.0  ;;  %v2666_v11 = vadd.f32 %v4640_v40, %v5991_v34  ;;  %v4298_v27 = vpop.f32.mrb[2].mxu0  ;;  %v4658_v18 = vadd.f32 %v4657_v23, %v4319_v28  ;;  %v2572_v16 = vpop.f32.mrb[31].mxu1 }
 0x1e9   : > { %v2695_v32 = vmax.f32 %v2667_v12, 0.0  ;;  %v2708_v52 = vmax.f32 %v2680_v7, 0.0  ;;  %v4641_v53 = vadd.f32 %v4298_v27, %v5944_v22  ;;  %v2502_v21 = vpop.f32.mrb[3].mxu0  ;;  %v4660_v61 = vadd.f32 %v4659_v4, %v2572_v16 }
 0x1ea   : > { %v2694_v54 = vmax.f32 %v2666_v11, 0.0  ;;  %v2683_v19 = vadd.f32 %v4658_v18, %v5991_v34  ;;  %v4642_v39 = vadd.f32 %v2502_v21, %v5946_v26 }
 0x1eb   : > { %v3213_v63 = vpack.c.bf16 %v2709_v5, %v2708_v52  ;;  %v2669_v23 = vadd.f32 %v4641_v53, %v5991_v34  ;;  %v2682_v48 = vadd.f32 %v4660_v61, %v5991_v34  ;;  %v4322_v22 = vpop.f32.mrb[32].mxu1 }
 0x1ec   : > { %v3178_v51 = vpack.c.bf16 %v2695_v32, %v2694_v54  ;;  %v2711_v4 = vmax.f32 %v2683_v19, 0.0  ;;  %v2668_v3 = vadd.f32 %v4642_v39, %v5991_v34  ;;  %v4301_v62 = vpop.f32.mrb[4].mxu0  ;;  %v4662_v1 = vadd.f32 %v5968_v47, %v4322_v22  ;;  %v2582_v17 = vpop.f32.mrb[33].mxu1 }
 0x1ed   : > { %3266 = vst [vmem:[%s6003_s19 + $0x38] sm:$0xff] %v3213_v63   ;;  %v2697_v31 = vmax.f32 %v2669_v23, 0.0  ;;  %v2710_v37 = vmax.f32 %v2682_v48, 0.0  ;;  %v4643_v26 = vadd.f32 %v4301_v62, %v5948_v0  ;;  %v2512_v41 = vpop.f32.mrb[5].mxu0  ;;  %v4664_v36 = vadd.f32 %v5970_v35, %v2582_v17 }
 0x1ee   : > { %3179 = vst [vmem:[%s6003_s19] sm:$0xff] %v3178_v51   ;;  %v2696_v58 = vmax.f32 %v2668_v3, 0.0  ;;  %v2685_v13 = vadd.f32 %v4662_v1, %v5991_v34  ;;  %v4644_v20 = vadd.f32 %v2512_v41, %v5950_v10 }
 0x1ef   : > { %v3218_v43 = vpack.c.bf16 %v2711_v4, %v2710_v37  ;;  %v2671_v47 = vadd.f32 %v4643_v26, %v5991_v34  ;;  %v2684_v45 = vadd.f32 %v4664_v36, %v5991_v34  ;;  %v4325_v50 = vpop.f32.mrb[34].mxu1 }
 0x1f0   : > { %v3183_v57 = vpack.c.bf16 %v2697_v31, %v2696_v58  ;;  %v2713_v9 = vmax.f32 %v2685_v13, 0.0  ;;  %v2670_v0 = vadd.f32 %v4644_v20, %v5991_v34  ;;  %v4304_v2 = vpop.f32.mrb[6].mxu0  ;;  %v4666_v35 = vadd.f32 %v5972_v60, %v4325_v50  ;;  %v2592_v24 = vpop.f32.mrb[35].mxu1 }
 0x1f1   : > { %3267 = vst [vmem:[%s6003_s19 + $0x40] sm:$0xff] %v3218_v43   ;;  %v2699_v46 = vmax.f32 %v2671_v47, 0.0  ;;  %v2712_v40 = vmax.f32 %v2684_v45, 0.0  ;;  %v4645_v10 = vadd.f32 %v4304_v2, %v5952_v44  ;;  %v2522_v12 = vpop.f32.mrb[7].mxu0  ;;  %v4668_v7 = vadd.f32 %v5974_v33, %v2592_v24 }
 0x1f2   : > { %3260 = vst [vmem:[%s6003_s19 + $0x8] sm:$0xff] %v3183_v57   ;;  %v2698_v28 = vmax.f32 %v2670_v0, 0.0  ;;  %v2687_v5 = vadd.f32 %v4666_v35, %v5991_v34  ;;  %v4646_v11 = vadd.f32 %v2522_v12, %v5954_v25 }
 0x1f3   : > { %v3223_v27 = vpack.c.bf16 %v2713_v9, %v2712_v40  ;;  %v2673_v60 = vadd.f32 %v4645_v10, %v5991_v34  ;;  %v2686_v18 = vadd.f32 %v4668_v7, %v5991_v34  ;;  %v4328_v16 = vpop.f32.mrb[36].mxu1 }
 0x1f4   : > { %v3188_v32 = vpack.c.bf16 %v2699_v46, %v2698_v28  ;;  %v2715_v52 = vmax.f32 %v2687_v5, 0.0  ;;  %v2672_v44 = vadd.f32 %v4646_v11, %v5991_v34  ;;  %v4307_v53 = vpop.f32.mrb[8].mxu0  ;;  %v4670_v33 = vadd.f32 %v5976_v30, %v4328_v16  ;;  %v2602_v21 = vpop.f32.mrb[37].mxu1 }
 0x1f5   : > { %3268 = vst [vmem:[%s6003_s19 + $0x48] sm:$0xff] %v3223_v27   ;;  %v2701_v61 = vmax.f32 %v2673_v60, 0.0  ;;  %v2714_v54 = vmax.f32 %v2686_v18, 0.0  ;;  %v4647_v25 = vadd.f32 %v4307_v53, %v5956_v56  ;;  %v2532_v19 = vpop.f32.mrb[9].mxu0  ;;  %v4672_v39 = vadd.f32 %v5978_v14, %v2602_v21 }
 0x1f6   : > { %3261 = vst [vmem:[%s6003_s19 + $0x10] sm:$0xff] %v3188_v32   ;;  %v2700_v63 = vmax.f32 %v2672_v44, 0.0  ;;  %v2689_v23 = vadd.f32 %v4670_v33, %v5991_v34  ;;  %v4648_v48 = vadd.f32 %v2532_v19, %v5958_v38 }
 0x1f7   : > { %v3228_v22 = vpack.c.bf16 %v2715_v52, %v2714_v54  ;;  %v2675_v30 = vadd.f32 %v4647_v25, %v5991_v34  ;;  %v2688_v51 = vadd.f32 %v4672_v39, %v5991_v34  ;;  %v4331_v4 = vpop.f32.mrb[38].mxu1 }
 0x1f8   : > { %v3193_v3 = vpack.c.bf16 %v2701_v61, %v2700_v63  ;;  %v2717_v62 = vmax.f32 %v2689_v23, 0.0  ;;  %v2674_v56 = vadd.f32 %v4648_v48, %v5991_v34  ;;  %v4310_v1 = vpop.f32.mrb[10].mxu0  ;;  %v4674_v14 = vadd.f32 %v5980_v6, %v4331_v4  ;;  %v2612_v17 = vpop.f32.mrb[39].mxu1 }
 0x1f9   : > { %3269 = vst [vmem:[%s6003_s19 + $0x50] sm:$0xff] %v3228_v22   ;;  %v2703_v31 = vmax.f32 %v2675_v30, 0.0  ;;  %v2716_v37 = vmax.f32 %v2688_v51, 0.0  ;;  %v4649_v38 = vadd.f32 %v4310_v1, %v5960_v42  ;;  %v2542_v26 = vpop.f32.mrb[11].mxu0  ;;  %v4676_v41 = vadd.f32 %v5982_v55, %v2612_v17 }
 0x1fa   : > { %3262 = vst [vmem:[%s6003_s19 + $0x18] sm:$0xff] %v3193_v3   ;;  %v2702_v36 = vmax.f32 %v2674_v56, 0.0  ;;  %v2691_v58 = vadd.f32 %v4674_v14, %v5991_v34  ;;  %v4650_v13 = vadd.f32 %v2542_v26, %v5962_v15 }
 0x1fb   : > { %v3233_v20 = vpack.c.bf16 %v2717_v62, %v2716_v37  ;;  %v2677_v6 = vadd.f32 %v4649_v38, %v5991_v34  ;;  %v2690_v43 = vadd.f32 %v4676_v41, %v5991_v34  ;;  %v4334_v47 = vpop.f32.mrb[40].mxu1 }
 0x1fc   : > { %v3198_v45 = vpack.c.bf16 %v2703_v31, %v2702_v36  ;;  %v2719_v50 = vmax.f32 %v2691_v58, 0.0  ;;  %v2676_v42 = vadd.f32 %v4650_v13, %v5991_v34  ;;  %v4313_v57 = vpop.f32.mrb[12].mxu0  ;;  %v4678_v55 = vadd.f32 %v5984_v8, %v4334_v47  ;;  %v2622_v9 = vpop.f32.mrb[41].mxu1 }
 0x1fd   : > { %3270 = vst [vmem:[%s6003_s19 + $0x58] sm:$0xff] %v3233_v20   ;;  %v2705_v0 = vmax.f32 %v2677_v6, 0.0  ;;  %v2718_v2 = vmax.f32 %v2690_v43, 0.0  ;;  %v4651_v15 = vadd.f32 %v4313_v57, %v5964_v59  ;;  %v2552_v35 = vpop.f32.mrb[13].mxu0  ;;  %v4680_v24 = vadd.f32 %v5986_v29, %v2622_v9 }
 0x1fe   : > { %3263 = vst [vmem:[%s6003_s19 + $0x20] sm:$0xff] %v3198_v45   ;;  %v2704_v46 = vmax.f32 %v2676_v42, 0.0  ;;  %v2693_v40 = vadd.f32 %v4678_v55, %v5991_v34  ;;  %v4652_v10 = vadd.f32 %v2552_v35, %v5966_v49 }
 0x1ff   : > { %v3238_v8 = vpack.c.bf16 %v2719_v50, %v2718_v2  ;;  %v2679_v12 = vadd.f32 %v4651_v15, %v5991_v34  ;;  %v2692_v7 = vadd.f32 %v4680_v24, %v5991_v34 }
 0x200   : > { %v3203_v28 = vpack.c.bf16 %v2705_v0, %v2704_v46  ;;  %v2721_v5 = vmax.f32 %v2693_v40, 0.0  ;;  %v2678_v59 = vadd.f32 %v4652_v10, %v5991_v34 }
 0x201   : > { %3271 = vst [vmem:[%s6003_s19 + $0x60] sm:$0xff] %v3238_v8   ;;  %v2707_v11 = vmax.f32 %v2679_v12, 0.0  ;;  %v2720_v29 = vmax.f32 %v2692_v7, 0.0 }
 0x202   : > { %3264 = vst [vmem:[%s6003_s19 + $0x28] sm:$0xff] %v3203_v28   ;;  %v2706_v27 = vmax.f32 %v2678_v59, 0.0 }
 0x203   : > { %v3243_v60 = vpack.c.bf16 %v2721_v5, %v2720_v29 }
 0x204   : > { %v3208_v18 = vpack.c.bf16 %v2707_v11, %v2706_v27 }
 0x205   : > { %3272 = vst [vmem:[%s6003_s19 + $0x68] sm:$0xff] %v3243_v60  }
 0x206   : > { %3265 = vst [vmem:[%s6003_s19 + $0x30] sm:$0xff] %v3208_v18  }
 0x207 PF: > { %s13_s12 = sadd.s32 1, %s4879_s12  }
 0x208   : > { %p10_p4 = scmp.ge.s32.totalorder %s13_s12, 6  }
 0x20a   :  { %12 = sbr.rel (!%p10_p4) target bundleno = 1 (0x1), region = 70 }

// kernel: siamese_forward.5
= control target key start
LH: loop header
LB: loop body
LE: loop exit
PB: predicated region body
PF: predicated region fallthrough
CT: control target
= control target key end

     0   :  { %v6002_v21 = vmov 1983009808   ;;  %v842_v23 = vlaneseq  ;;  %vm6004_vm0 = vmmov 0   ;;  %vm4568_vm1 = vcmask 1041408   ;;  %s7339_s1 = inlined_call_operand.vmem [shape: bf16[6272,128], index: 1, kind: input, shape index: {}]   ;;  %s7340_s0 = inlined_call_operand.vmem [shape: bf16[4,6272], index: 0, kind: input, shape index: {}]   ;;  %s7341_s2 = inlined_call_operand.vmem [shape: f32[1,128], index: 2, kind: input, shape index: {}]   ;;  %s7342_s3 = inlined_call_operand.vmem [shape: bf16[128,128], index: 3, kind: input, shape index: {}]   ;;  %s7343_s4 = inlined_call_operand.vmem [shape: f32[1,128], index: 4, kind: input, shape index: {}]   ;;  %s7344_s5 = inlined_call_operand.vmem [shape: f32[2,1], index: 5, kind: output, shape index: {}]  }
   0x1   :  { %v5584_v0 = vld [vmem:[%s7339_s1 + $0x40] sm:$0xff]   ;;  %v5588_v4 = vld [vmem:[%s7339_s1 + $0x48] sm:$0xff]   ;;  %v5592_v8 = vld [vmem:[%s7339_s1 + $0x50] sm:$0xff]   ;;  %v840_v22 = vunpack.c.l.s4 %v6002_v21  ;;  %vm4585_vm4 = vcmask 1024  }
   0x2   :  { %v5585_v1 = vld [vmem:[%s7339_s1] sm:$0xff]   ;;  %4995 = vmatprep.subr.bf16.mxu0 %v5584_v0  ;;  %v5589_v5 = vld [vmem:[%s7339_s1 + $0x8] sm:$0xff]   ;;  %v5593_v9 = vld [vmem:[%s7339_s1 + $0x10] sm:$0xff]   ;;  %v843_v29 = vshrl.u32 %v842_v23, 7 }
   0x3   :  { %v5586_v2 = vld [vmem:[%s7339_s1 + $0xc0] sm:$0xff]   ;;  %4996 = vmatpush3.bf16.msra.mxu0 %v5585_v1  ;;  %v5590_v6 = vld [vmem:[%s7339_s1 + $0xc8] sm:$0xff]   ;;  %v5594_v10 = vld [vmem:[%s7339_s1 + $0xd0] sm:$0xff]   ;;  %v841_v28 = vunpack.c.0.s8 %v840_v22 }
   0x4   :  { %v5587_v3 = vld [vmem:[%s7339_s1 + $0x80] sm:$0xff]   ;;  %5017 = vmatprep.subr.bf16.mxu1 %v5586_v2  ;;  %4997 = vmatprep.subr.bf16.mxu0 %v5588_v4  ;;  %v5591_v7 = vld [vmem:[%s7339_s1 + $0x88] sm:$0xff]   ;;  %v5595_v11 = vld [vmem:[%s7339_s1 + $0x90] sm:$0xff]  }
   0x5   :  { %5018 = vmatpush3.bf16.msra.mxu1 %v5587_v3  ;;  %v5596_v12 = vld [vmem:[%s7339_s1 + $0x58] sm:$0xff]   ;;  %v5600_v16 = vld [vmem:[%s7339_s1 + $0x60] sm:$0xff]   ;;  %v5604_v20 = vld [vmem:[%s7339_s1 + $0x68] sm:$0xff]   ;;  %v6122_v34 = vsub.s32 %v841_v28, %v843_v29 }
   0x6   :  { %5019 = vmatprep.subr.bf16.mxu1 %v5590_v6  ;;  %v5597_v13 = vld [vmem:[%s7339_s1 + $0x18] sm:$0xff]   ;;  %v5601_v17 = vld [vmem:[%s7339_s1 + $0x20] sm:$0xff]   ;;  %v5605_v24 = vld [vmem:[%s7339_s1 + $0x28] sm:$0xff]  }
   0x7   :  { %4998 = vmatpush3.bf16.msra.mxu0 %v5589_v5  ;;  %v5598_v14 = vld [vmem:[%s7339_s1 + $0xd8] sm:$0xff]   ;;  %v5602_v18 = vld [vmem:[%s7339_s1 + $0xe0] sm:$0xff]   ;;  %v5606_v25 = vld [vmem:[%s7339_s1 + $0xe8] sm:$0xff]  }
   0x8   :  { %4999 = vmatprep.subr.bf16.mxu0 %v5592_v8  ;;  %v5599_v15 = vld [vmem:[%s7339_s1 + $0x98] sm:$0xff]   ;;  %v5603_v19 = vld [vmem:[%s7339_s1 + $0xa0] sm:$0xff]   ;;  %v5607_v26 = vld [vmem:[%s7339_s1 + $0xa8] sm:$0xff]  }
   0x9   :  { %5020 = vmatpush3.bf16.msra.mxu1 %v5591_v7  ;;  %v5608_v27 = vld [vmem:[%s7339_s1 + $0x70] sm:$0xff]   ;;  %v5612_v33 = vld [vmem:[%s7339_s1 + $0x78] sm:$0xff]   ;;  %v21_v37 = vld [vmem:[%s7340_s0] sm:$0xff] }
   0xa   :  { %5021 = vmatprep.subr.bf16.mxu1 %v5594_v10  ;;  %v5609_v30 = vld [vmem:[%s7339_s1 + $0x30] sm:$0xff]   ;;  %v5613_v35 = vld [vmem:[%s7339_s1 + $0x38] sm:$0xff]   ;;  %v845_v38 = vrot.slane %v21_v37, %v6122_v34  ;;  %v838_v40 = vcombine.high %v21_v37, %v21_v37  ;;  %v5616_v41 = vld [vmem:[%s7339_s1 + $0x140] sm:$0xff]  }
   0xb   :  { %5000 = vmatpush3.bf16.msra.mxu0 %v5593_v9  ;;  %v5610_v31 = vld [vmem:[%s7339_s1 + $0xf0] sm:$0xff]   ;;  %v5614_v36 = vld [vmem:[%s7339_s1 + $0xf8] sm:$0xff]   ;;  %v5618_v44 = vld [vmem:[%s7339_s1 + $0x100] sm:$0xff]  }
   0xc   :  { %5001 = vmatprep.subr.bf16.mxu0 %v5596_v12  ;;  %v5611_v32 = vld [vmem:[%s7339_s1 + $0xb0] sm:$0xff]   ;;  %v5615_v39 = vld [vmem:[%s7339_s1 + $0xb8] sm:$0xff]   ;;  %v853_v42 = vcombine.high %v845_v38, %v845_v38  ;;  %v852_v43 = vrot.slane %v838_v40, %v6122_v34  ;;  %v5619_v45 = vld [vmem:[%s7339_s1 + $0x1c0] sm:$0xff]  }
   0xd   :  { %5022 = vmatpush3.bf16.msra.mxu1 %v5595_v11  ;;  %v5620_v47 = vld [vmem:[%s7339_s1 + $0x180] sm:$0xff]   ;;  %v5621_v48 = vld [vmem:[%s7339_s1 + $0x148] sm:$0xff]   ;;  %v5625_v52 = vld [vmem:[%s7339_s1 + $0x150] sm:$0xff]  }
   0xe   :  { %5023 = vmatprep.subr.bf16.mxu1 %v5598_v14  ;;  %3482 = vmatprep.mubr.bf16.mxu0 %v853_v42  ;;  %v854_v46 = vcombine.high %v852_v43, %v852_v43  ;;  %v5622_v49 = vld [vmem:[%s7339_s1 + $0x108] sm:$0xff]   ;;  %v5626_v53 = vld [vmem:[%s7339_s1 + $0x110] sm:$0xff]   ;;  %v5629_v56 = vld [vmem:[%s7339_s1 + $0x158] sm:$0xff]  }
   0xf   :  { %5002 = vmatpush3.bf16.msra.mxu0 %v5597_v13  ;;  %v5623_v50 = vld [vmem:[%s7339_s1 + $0x1c8] sm:$0xff]   ;;  %v5627_v54 = vld [vmem:[%s7339_s1 + $0x1d0] sm:$0xff]   ;;  %v5630_v57 = vld [vmem:[%s7339_s1 + $0x118] sm:$0xff]  }
  0x10   :  { %5003 = vmatprep.subr.bf16.mxu0 %v5600_v16  ;;  %3522 = vmatprep.mubr.bf16.mxu1 %v854_v46  ;;  %v5624_v51 = vld [vmem:[%s7339_s1 + $0x188] sm:$0xff]   ;;  %v5628_v55 = vld [vmem:[%s7339_s1 + $0x190] sm:$0xff]   ;;  %v5631_v58 = vld [vmem:[%s7339_s1 + $0x1d8] sm:$0xff]  }
  0x11   :  { %5024 = vmatpush3.bf16.msra.mxu1 %v5599_v15  ;;  %v5632_v59 = vld [vmem:[%s7339_s1 + $0x198] sm:$0xff]   ;;  %v5633_v60 = vld [vmem:[%s7339_s1 + $0x160] sm:$0xff]   ;;  %v5637_v0 = vld [vmem:[%s7339_s1 + $0x168] sm:$0xff]  }
  0x12   :  { %5025 = vmatprep.subr.bf16.mxu1 %v5602_v18  ;;  %v5634_v61 = vld [vmem:[%s7339_s1 + $0x120] sm:$0xff]   ;;  %v5638_v1 = vld [vmem:[%s7339_s1 + $0x128] sm:$0xff]   ;;  %v5641_v4 = vld [vmem:[%s7339_s1 + $0x170] sm:$0xff]  }
  0x13   :  { %5004 = vmatpush3.bf16.msra.mxu0 %v5601_v17  ;;  %v5635_v62 = vld [vmem:[%s7339_s1 + $0x1e0] sm:$0xff]   ;;  %v5639_v2 = vld [vmem:[%s7339_s1 + $0x1e8] sm:$0xff]   ;;  %v5642_v5 = vld [vmem:[%s7339_s1 + $0x130] sm:$0xff]  }
  0x14   :  { %5005 = vmatprep.subr.bf16.mxu0 %v5604_v20  ;;  %v5636_v63 = vld [vmem:[%s7339_s1 + $0x1a0] sm:$0xff]   ;;  %v5640_v3 = vld [vmem:[%s7339_s1 + $0x1a8] sm:$0xff]   ;;  %v5643_v6 = vld [vmem:[%s7339_s1 + $0x1f0] sm:$0xff]  }
  0x15   :  { %5026 = vmatpush3.bf16.msra.mxu1 %v5603_v19  ;;  %v5644_v7 = vld [vmem:[%s7339_s1 + $0x1b0] sm:$0xff]   ;;  %v5645_v8 = vld [vmem:[%s7339_s1 + $0x178] sm:$0xff]   ;;  %v22_v11 = vld [vmem:[%s7340_s0 + $0x8] sm:$0xff] }
  0x16   :  { %5027 = vmatprep.subr.bf16.mxu1 %v5606_v25  ;;  %v5646_v9 = vld [vmem:[%s7339_s1 + $0x138] sm:$0xff]   ;;  %v862_v12 = vrot.slane %v22_v11, %v6122_v34  ;;  %v855_v14 = vcombine.high %v22_v11, %v22_v11  ;;  %v5649_v15 = vld [vmem:[%s7339_s1 + $0x240] sm:$0xff]   ;;  %v5654_v22 = vld [vmem:[%s7339_s1 + $0x248] sm:$0xff]  }
  0x17   :  { %5006 = vmatpush3.bf16.msra.mxu0 %v5605_v24  ;;  %v5647_v10 = vld [vmem:[%s7339_s1 + $0x1f8] sm:$0xff]   ;;  %v5651_v18 = vld [vmem:[%s7339_s1 + $0x200] sm:$0xff]   ;;  %v5655_v23 = vld [vmem:[%s7339_s1 + $0x208] sm:$0xff]  }
  0x18   :  { %5007 = vmatprep.subr.bf16.mxu0 %v5608_v27  ;;  %v5648_v13 = vld [vmem:[%s7339_s1 + $0x1b8] sm:$0xff]   ;;  %v870_v16 = vcombine.high %v862_v12, %v862_v12  ;;  %v869_v17 = vrot.slane %v855_v14, %v6122_v34  ;;  %v5652_v19 = vld [vmem:[%s7339_s1 + $0x2c0] sm:$0xff]   ;;  %v5656_v24 = vld [vmem:[%s7339_s1 + $0x2c8] sm:$0xff]  }
  0x19   :  { %5028 = vmatpush3.bf16.msra.mxu1 %v5607_v26  ;;  %v5653_v21 = vld [vmem:[%s7339_s1 + $0x280] sm:$0xff]   ;;  %v5657_v25 = vld [vmem:[%s7339_s1 + $0x288] sm:$0xff]   ;;  %v5658_v26 = vld [vmem:[%s7339_s1 + $0x250] sm:$0xff]  }
  0x1a   :  { %5029 = vmatprep.subr.bf16.mxu1 %v5610_v31  ;;  %v871_v20 = vcombine.high %v869_v17, %v869_v17  ;;  %v5659_v27 = vld [vmem:[%s7339_s1 + $0x210] sm:$0xff]   ;;  %v5663_v31 = vld [vmem:[%s7339_s1 + $0x218] sm:$0xff]   ;;  %v5668_v37 = vld [vmem:[%s7339_s1 + $0x2e0] sm:$0xff]  }
  0x1b   :  { %5008 = vmatpush3.bf16.msra.mxu0 %v5609_v30  ;;  %v5660_v28 = vld [vmem:[%s7339_s1 + $0x2d0] sm:$0xff]   ;;  %v5662_v30 = vld [vmem:[%s7339_s1 + $0x258] sm:$0xff]   ;;  %v5671_v40 = vld [vmem:[%s7339_s1 + $0x228] sm:$0xff]  }
  0x1c   :  { %5009 = vmatprep.subr.bf16.mxu0 %v5612_v33  ;;  %v5661_v29 = vld [vmem:[%s7339_s1 + $0x290] sm:$0xff]   ;;  %v5665_v33 = vld [vmem:[%s7339_s1 + $0x298] sm:$0xff]   ;;  %v5673_v42 = vld [vmem:[%s7339_s1 + $0x2a8] sm:$0xff]  }
  0x1d   :  { %5030 = vmatpush3.bf16.msra.mxu1 %v5611_v32  ;;  %v5664_v32 = vld [vmem:[%s7339_s1 + $0x2d8] sm:$0xff]   ;;  %v5677_v46 = vld [vmem:[%s7339_s1 + $0x2b0] sm:$0xff]   ;;  %v5701_v11 = vld [vmem:[%s7339_s1 + $0x3e0] sm:$0xff]  }
  0x1e   :  { %5031 = vmatprep.subr.bf16.mxu1 %v5614_v36  ;;  %v5667_v36 = vld [vmem:[%s7339_s1 + $0x220] sm:$0xff]   ;;  %v5704_v14 = vld [vmem:[%s7339_s1 + $0x328] sm:$0xff]  }
  0x1f   :  { %5010 = vmatpush3.bf16.msra.mxu0 %v5613_v35  ;;  %v5666_v35 = vld [vmem:[%s7339_s1 + $0x260] sm:$0xff]  }
  0x20   :  { %5039 = vmatprep.subr.bf16.mxu0 %v5616_v41  ;;  %v5672_v41 = vld [vmem:[%s7339_s1 + $0x2e8] sm:$0xff]  }
  0x21   :  { %5032 = vmatpush3.bf16.msra.mxu1 %v5615_v39  ;;  %v5670_v39 = vld [vmem:[%s7339_s1 + $0x268] sm:$0xff]  }
  0x22   :  { %3483 = vmatmul.mubr.bf16.vlgmr.msra.gmra.mrb[0].mxu0 %v845_v38  ;;  %5061 = vmatprep.subr.bf16.mxu1 %v5619_v45  ;;  %v5669_v38 = vld [vmem:[%s7339_s1 + $0x2a0] sm:$0xff]   ;;  %v5676_v45 = vld [vmem:[%s7339_s1 + $0x2f0] sm:$0xff]  }
  0x23   :  { %5040 = vmatpush3.bf16.msra.mxu0 %v5618_v44  ;;  %3562 = vmatprep.mubr.bf16.mxu0 %v870_v16  ;;  %v5675_v44 = vld [vmem:[%s7339_s1 + $0x230] sm:$0xff]   ;;  %v5706_v16 = vld [vmem:[%s7339_s1 + $0x3a8] sm:$0xff]  }
  0x24   :  { %3523 = vmatmul.mubr.bf16.vlgmr.msra.gmra.mrb[0].mxu1 %v852_v43  ;;  %5041 = vmatprep.subr.bf16.mxu0 %v5621_v48  ;;  %v5674_v43 = vld [vmem:[%s7339_s1 + $0x270] sm:$0xff]   ;;  %v5679_v48 = vld [vmem:[%s7339_s1 + $0x238] sm:$0xff]  }
  0x25   :  { %5062 = vmatpush3.bf16.msra.mxu1 %v5620_v47  ;;  %3602 = vmatprep.mubr.bf16.mxu1 %v871_v20  ;;  %v5678_v47 = vld [vmem:[%s7339_s1 + $0x278] sm:$0xff]   ;;  %v5710_v20 = vld [vmem:[%s7339_s1 + $0x3b0] sm:$0xff]  }
  0x26   :  { %5063 = vmatprep.subr.bf16.mxu1 %v5623_v50  ;;  %v23_v50 = vld [vmem:[%s7340_s0 + $0x10] sm:$0xff] }
  0x27   :  { %5042 = vmatpush3.bf16.msra.mxu0 %v5622_v49  ;;  %v5680_v49 = vld [vmem:[%s7339_s1 + $0x2f8] sm:$0xff]  }
  0x28   :  { %5043 = vmatprep.subr.bf16.mxu0 %v5625_v52  ;;  %v5681_v52 = vld [vmem:[%s7339_s1 + $0x2b8] sm:$0xff]  }
  0x29   :  { %5064 = vmatpush3.bf16.msra.mxu1 %v5624_v51  ;;  %v879_v51 = vrot.slane %v23_v50, %v6122_v34 }
  0x2a   :  { %5065 = vmatprep.subr.bf16.mxu1 %v5627_v54  ;;  %v5682_v54 = vld [vmem:[%s7339_s1 + $0x340] sm:$0xff]  }
  0x2b   :  { %5044 = vmatpush3.bf16.msra.mxu0 %v5626_v53  ;;  %v872_v53 = vcombine.high %v23_v50, %v23_v50  ;;  %v5734_v50 = vld [vmem:[%s7339_s1 + $0x4e0] sm:$0xff]  }
  0x2c   :  { %5045 = vmatprep.subr.bf16.mxu0 %v5629_v56 }
  0x2d   :  { %5066 = vmatpush3.bf16.msra.mxu1 %v5628_v55  ;;  %v887_v55 = vcombine.high %v879_v51, %v879_v51  ;;  %v886_v56 = vrot.slane %v872_v53, %v6122_v34  ;;  %v5737_v53 = vld [vmem:[%s7339_s1 + $0x428] sm:$0xff]  }
  0x2e   :  { %5067 = vmatprep.subr.bf16.mxu1 %v5631_v58  ;;  %v5685_v58 = vld [vmem:[%s7339_s1 + $0x3c0] sm:$0xff]  }
  0x2f   :  { %5046 = vmatpush3.bf16.msra.mxu0 %v5630_v57  ;;  %v5684_v57 = vld [vmem:[%s7339_s1 + $0x300] sm:$0xff]  }
  0x30   :  { %5047 = vmatprep.subr.bf16.mxu0 %v5633_v60  ;;  %v5686_v60 = vld [vmem:[%s7339_s1 + $0x380] sm:$0xff]  }
  0x31   :  { %5068 = vmatpush3.bf16.msra.mxu1 %v5632_v59  ;;  %v888_v59 = vcombine.high %v886_v56, %v886_v56 }
  0x32   :  { %5069 = vmatprep.subr.bf16.mxu1 %v5635_v62  ;;  %v5688_v62 = vld [vmem:[%s7339_s1 + $0x308] sm:$0xff]  }
  0x33   :  { %5048 = vmatpush3.bf16.msra.mxu0 %v5634_v61  ;;  %v5687_v61 = vld [vmem:[%s7339_s1 + $0x348] sm:$0xff]  }
  0x34   :  { %5049 = vmatprep.subr.bf16.mxu0 %v5637_v0  ;;  %v5690_v0 = vld [vmem:[%s7339_s1 + $0x388] sm:$0xff]  }
  0x35   :  { %5070 = vmatpush3.bf16.msra.mxu1 %v5636_v63  ;;  %v5689_v63 = vld [vmem:[%s7339_s1 + $0x3c8] sm:$0xff]  }
  0x36   :  { %5071 = vmatprep.subr.bf16.mxu1 %v5639_v2  ;;  %v5692_v2 = vld [vmem:[%s7339_s1 + $0x310] sm:$0xff]  }
  0x37   :  { %5050 = vmatpush3.bf16.msra.mxu0 %v5638_v1  ;;  %v5691_v1 = vld [vmem:[%s7339_s1 + $0x350] sm:$0xff]  }
  0x38   :  { %5051 = vmatprep.subr.bf16.mxu0 %v5641_v4  ;;  %v5694_v4 = vld [vmem:[%s7339_s1 + $0x390] sm:$0xff]  }
  0x39   :  { %5072 = vmatpush3.bf16.msra.mxu1 %v5640_v3  ;;  %v5693_v3 = vld [vmem:[%s7339_s1 + $0x3d0] sm:$0xff]  }
  0x3a   :  { %5073 = vmatprep.subr.bf16.mxu1 %v5643_v6  ;;  %v5696_v6 = vld [vmem:[%s7339_s1 + $0x318] sm:$0xff]  }
  0x3b   :  { %5052 = vmatpush3.bf16.msra.mxu0 %v5642_v5  ;;  %v5695_v5 = vld [vmem:[%s7339_s1 + $0x358] sm:$0xff]  }
  0x3c   :  { %5053 = vmatprep.subr.bf16.mxu0 %v5645_v8  ;;  %v5698_v8 = vld [vmem:[%s7339_s1 + $0x398] sm:$0xff]  }
  0x3d   :  { %5074 = vmatpush3.bf16.msra.mxu1 %v5644_v7  ;;  %v5697_v7 = vld [vmem:[%s7339_s1 + $0x3d8] sm:$0xff]  }
  0x3e   :  { %5075 = vmatprep.subr.bf16.mxu1 %v5647_v10  ;;  %v5700_v10 = vld [vmem:[%s7339_s1 + $0x320] sm:$0xff]  }
  0x3f   :  { %5054 = vmatpush3.bf16.msra.mxu0 %v5646_v9  ;;  %v5699_v9 = vld [vmem:[%s7339_s1 + $0x360] sm:$0xff]  }
  0x40   :  { %5083 = vmatprep.subr.bf16.mxu0 %v5649_v15  ;;  %v5705_v15 = vld [vmem:[%s7339_s1 + $0x3e8] sm:$0xff]  }
  0x41   :  { %5076 = vmatpush3.bf16.msra.mxu1 %v5648_v13  ;;  %v5703_v13 = vld [vmem:[%s7339_s1 + $0x368] sm:$0xff]  }
  0x42   :  { %3563 = vmatmul.mubr.bf16.vlgmr.msra.gmra.mrb[4].mxu0 %v862_v12  ;;  %5105 = vmatprep.subr.bf16.mxu1 %v5652_v19  ;;  %v5702_v12 = vld [vmem:[%s7339_s1 + $0x3a0] sm:$0xff]   ;;  %v5709_v19 = vld [vmem:[%s7339_s1 + $0x3f0] sm:$0xff]  }
  0x43   :  { %5084 = vmatpush3.bf16.msra.mxu0 %v5651_v18  ;;  %3642 = vmatprep.mubr.bf16.mxu0 %v887_v55  ;;  %v5708_v18 = vld [vmem:[%s7339_s1 + $0x330] sm:$0xff]   ;;  %v5739_v55 = vld [vmem:[%s7339_s1 + $0x4a8] sm:$0xff]  }
  0x44   :  { %3603 = vmatmul.mubr.bf16.vlgmr.msra.gmra.mrb[4].mxu1 %v869_v17  ;;  %5085 = vmatprep.subr.bf16.mxu0 %v5654_v22  ;;  %v5707_v17 = vld [vmem:[%s7339_s1 + $0x370] sm:$0xff]   ;;  %v5712_v22 = vld [vmem:[%s7339_s1 + $0x338] sm:$0xff]  }
  0x45   :  { %5106 = vmatpush3.bf16.msra.mxu1 %v5653_v21  ;;  %3682 = vmatprep.mubr.bf16.mxu1 %v888_v59  ;;  %v5711_v21 = vld [vmem:[%s7339_s1 + $0x378] sm:$0xff]   ;;  %v5743_v59 = vld [vmem:[%s7339_s1 + $0x4b0] sm:$0xff]  }
  0x46   :  { %5107 = vmatprep.subr.bf16.mxu1 %v5656_v24  ;;  %v24_v24 = vld [vmem:[%s7340_s0 + $0x18] sm:$0xff] }
  0x47   :  { %5086 = vmatpush3.bf16.msra.mxu0 %v5655_v23  ;;  %v5713_v23 = vld [vmem:[%s7339_s1 + $0x3f8] sm:$0xff]  }
  0x48   :  { %5087 = vmatprep.subr.bf16.mxu0 %v5658_v26  ;;  %v5714_v26 = vld [vmem:[%s7339_s1 + $0x3b8] sm:$0xff]  }
  0x49   :  { %5108 = vmatpush3.bf16.msra.mxu1 %v5657_v25  ;;  %v896_v25 = vrot.slane %v24_v24, %v6122_v34 }
  0x4a   :  { %5109 = vmatprep.subr.bf16.mxu1 %v5660_v28  ;;  %v5715_v28 = vld [vmem:[%s7339_s1 + $0x440] sm:$0xff]  }
  0x4b   :  { %5088 = vmatpush3.bf16.msra.mxu0 %v5659_v27  ;;  %v889_v27 = vcombine.high %v24_v24, %v24_v24  ;;  %v5767_v24 = vld [vmem:[%s7339_s1 + $0x5e0] sm:$0xff]  }
  0x4c   :  { %5089 = vmatprep.subr.bf16.mxu0 %v5662_v30 }
  0x4d   :  { %5110 = vmatpush3.bf16.msra.mxu1 %v5661_v29  ;;  %v904_v29 = vcombine.high %v896_v25, %v896_v25  ;;  %v903_v30 = vrot.slane %v889_v27, %v6122_v34  ;;  %v5770_v27 = vld [vmem:[%s7339_s1 + $0x528] sm:$0xff]  }
  0x4e   :  { %5111 = vmatprep.subr.bf16.mxu1 %v5664_v32  ;;  %v5718_v32 = vld [vmem:[%s7339_s1 + $0x4c0] sm:$0xff]  }
  0x4f   :  { %5090 = vmatpush3.bf16.msra.mxu0 %v5663_v31  ;;  %v5717_v31 = vld [vmem:[%s7339_s1 + $0x400] sm:$0xff]  }
  0x50   :  { %5091 = vmatprep.subr.bf16.mxu0 %v5666_v35  ;;  %v5719_v35 = vld [vmem:[%s7339_s1 + $0x480] sm:$0xff]  }
  0x51   :  { %5112 = vmatpush3.bf16.msra.mxu1 %v5665_v33  ;;  %v905_v33 = vcombine.high %v903_v30, %v903_v30 }
  0x52   :  { %5113 = vmatprep.subr.bf16.mxu1 %v5668_v37  ;;  %v5721_v37 = vld [vmem:[%s7339_s1 + $0x408] sm:$0xff]  }
  0x53   :  { %5092 = vmatpush3.bf16.msra.mxu0 %v5667_v36  ;;  %v5720_v36 = vld [vmem:[%s7339_s1 + $0x448] sm:$0xff]  }
  0x54   :  { %5093 = vmatprep.subr.bf16.mxu0 %v5670_v39  ;;  %v5723_v39 = vld [vmem:[%s7339_s1 + $0x488] sm:$0xff]  }
  0x55   :  { %5114 = vmatpush3.bf16.msra.mxu1 %v5669_v38  ;;  %v5722_v38 = vld [vmem:[%s7339_s1 + $0x4c8] sm:$0xff]  }
  0x56   :  { %5115 = vmatprep.subr.bf16.mxu1 %v5672_v41  ;;  %v5725_v41 = vld [vmem:[%s7339_s1 + $0x410] sm:$0xff]  }
  0x57   :  { %5094 = vmatpush3.bf16.msra.mxu0 %v5671_v40  ;;  %v5724_v40 = vld [vmem:[%s7339_s1 + $0x450] sm:$0xff]  }
  0x58   :  { %5095 = vmatprep.subr.bf16.mxu0 %v5674_v43  ;;  %v5727_v43 = vld [vmem:[%s7339_s1 + $0x490] sm:$0xff]  }
  0x59   :  { %5116 = vmatpush3.bf16.msra.mxu1 %v5673_v42  ;;  %v5726_v42 = vld [vmem:[%s7339_s1 + $0x4d0] sm:$0xff]  }
  0x5a   :  { %5117 = vmatprep.subr.bf16.mxu1 %v5676_v45  ;;  %v5729_v45 = vld [vmem:[%s7339_s1 + $0x418] sm:$0xff]  }
  0x5b   :  { %5096 = vmatpush3.bf16.msra.mxu0 %v5675_v44  ;;  %v5728_v44 = vld [vmem:[%s7339_s1 + $0x458] sm:$0xff]  }
  0x5c   :  { %5097 = vmatprep.subr.bf16.mxu0 %v5678_v47  ;;  %v5731_v47 = vld [vmem:[%s7339_s1 + $0x498] sm:$0xff]  }
  0x5d   :  { %5118 = vmatpush3.bf16.msra.mxu1 %v5677_v46  ;;  %v5730_v46 = vld [vmem:[%s7339_s1 + $0x4d8] sm:$0xff]  }
  0x5e   :  { %5119 = vmatprep.subr.bf16.mxu1 %v5680_v49  ;;  %v5733_v49 = vld [vmem:[%s7339_s1 + $0x420] sm:$0xff]  }
  0x5f   :  { %5098 = vmatpush3.bf16.msra.mxu0 %v5679_v48  ;;  %v5732_v48 = vld [vmem:[%s7339_s1 + $0x460] sm:$0xff]  }
  0x60   :  { %5127 = vmatprep.subr.bf16.mxu0 %v5682_v54  ;;  %v5738_v54 = vld [vmem:[%s7339_s1 + $0x4e8] sm:$0xff]  }
  0x61   :  { %5120 = vmatpush3.bf16.msra.mxu1 %v5681_v52  ;;  %v5736_v52 = vld [vmem:[%s7339_s1 + $0x468] sm:$0xff]  }
  0x62   :  { %3643 = vmatmul.mubr.bf16.vlgmr.msra.gmra.mrb[8].mxu0 %v879_v51  ;;  %5149 = vmatprep.subr.bf16.mxu1 %v5685_v58  ;;  %v5735_v51 = vld [vmem:[%s7339_s1 + $0x4a0] sm:$0xff]   ;;  %v5742_v58 = vld [vmem:[%s7339_s1 + $0x4f0] sm:$0xff]  }
  0x63   :  { %5128 = vmatpush3.bf16.msra.mxu0 %v5684_v57  ;;  %3722 = vmatprep.mubr.bf16.mxu0 %v904_v29  ;;  %v5741_v57 = vld [vmem:[%s7339_s1 + $0x430] sm:$0xff]   ;;  %v5772_v29 = vld [vmem:[%s7339_s1 + $0x5a8] sm:$0xff]  }
  0x64   :  { %3683 = vmatmul.mubr.bf16.vlgmr.msra.gmra.mrb[8].mxu1 %v886_v56  ;;  %5129 = vmatprep.subr.bf16.mxu0 %v5687_v61  ;;  %v5740_v56 = vld [vmem:[%s7339_s1 + $0x470] sm:$0xff]   ;;  %v5745_v61 = vld [vmem:[%s7339_s1 + $0x438] sm:$0xff]  }
  0x65   :  { %5150 = vmatpush3.bf16.msra.mxu1 %v5686_v60  ;;  %3762 = vmatprep.mubr.bf16.mxu1 %v905_v33  ;;  %v5744_v60 = vld [vmem:[%s7339_s1 + $0x478] sm:$0xff]   ;;  %v5776_v33 = vld [vmem:[%s7339_s1 + $0x5b0] sm:$0xff]  }
  0x66   :  { %5151 = vmatprep.subr.bf16.mxu1 %v5689_v63  ;;  %v25_v63 = vld [vmem:[%s7340_s0 + $0x20] sm:$0xff] }
  0x67   :  { %5130 = vmatpush3.bf16.msra.mxu0 %v5688_v62  ;;  %v5746_v62 = vld [vmem:[%s7339_s1 + $0x4f8] sm:$0xff]  }
  0x68   :  { %5131 = vmatprep.subr.bf16.mxu0 %v5691_v1  ;;  %v5747_v1 = vld [vmem:[%s7339_s1 + $0x4b8] sm:$0xff]  }
  0x69   :  { %5152 = vmatpush3.bf16.msra.mxu1 %v5690_v0  ;;  %v913_v0 = vrot.slane %v25_v63, %v6122_v34 }
  0x6a   :  { %5153 = vmatprep.subr.bf16.mxu1 %v5693_v3  ;;  %v5748_v3 = vld [vmem:[%s7339_s1 + $0x540] sm:$0xff]  }
  0x6b   :  { %5132 = vmatpush3.bf16.msra.mxu0 %v5692_v2  ;;  %v906_v2 = vcombine.high %v25_v63, %v25_v63  ;;  %v5800_v63 = vld [vmem:[%s7339_s1 + $0x6e0] sm:$0xff]  }
  0x6c   :  { %5133 = vmatprep.subr.bf16.mxu0 %v5695_v5 }
  0x6d   :  { %5154 = vmatpush3.bf16.msra.mxu1 %v5694_v4  ;;  %v921_v4 = vcombine.high %v913_v0, %v913_v0  ;;  %v920_v5 = vrot.slane %v906_v2, %v6122_v34  ;;  %v5803_v2 = vld [vmem:[%s7339_s1 + $0x628] sm:$0xff]  }
  0x6e   :  { %5155 = vmatprep.subr.bf16.mxu1 %v5697_v7  ;;  %v5751_v7 = vld [vmem:[%s7339_s1 + $0x5c0] sm:$0xff]  }
  0x6f   :  { %5134 = vmatpush3.bf16.msra.mxu0 %v5696_v6  ;;  %v5750_v6 = vld [vmem:[%s7339_s1 + $0x500] sm:$0xff]  }
  0x70   :  { %5135 = vmatprep.subr.bf16.mxu0 %v5699_v9  ;;  %v5752_v9 = vld [vmem:[%s7339_s1 + $0x580] sm:$0xff]  }
  0x71   :  { %5156 = vmatpush3.bf16.msra.mxu1 %v5698_v8  ;;  %v922_v8 = vcombine.high %v920_v5, %v920_v5 }
  0x72   :  { %5157 = vmatprep.subr.bf16.mxu1 %v5701_v11  ;;  %v5754_v11 = vld [vmem:[%s7339_s1 + $0x508] sm:$0xff]  }
  0x73   :  { %5136 = vmatpush3.bf16.msra.mxu0 %v5700_v10  ;;  %v5753_v10 = vld [vmem:[%s7339_s1 + $0x548] sm:$0xff]  }
  0x74   :  { %5137 = vmatprep.subr.bf16.mxu0 %v5703_v13  ;;  %v5756_v13 = vld [vmem:[%s7339_s1 + $0x588] sm:$0xff]  }
  0x75   :  { %5158 = vmatpush3.bf16.msra.mxu1 %v5702_v12  ;;  %v5755_v12 = vld [vmem:[%s7339_s1 + $0x5c8] sm:$0xff]  }
  0x76   :  { %5159 = vmatprep.subr.bf16.mxu1 %v5705_v15  ;;  %v5758_v15 = vld [vmem:[%s7339_s1 + $0x510] sm:$0xff]  }
  0x77   :  { %5138 = vmatpush3.bf16.msra.mxu0 %v5704_v14  ;;  %v5757_v14 = vld [vmem:[%s7339_s1 + $0x550] sm:$0xff]  }
  0x78   :  { %5139 = vmatprep.subr.bf16.mxu0 %v5707_v17  ;;  %v5760_v17 = vld [vmem:[%s7339_s1 + $0x590] sm:$0xff]  }
  0x79   :  { %5160 = vmatpush3.bf16.msra.mxu1 %v5706_v16  ;;  %v5759_v16 = vld [vmem:[%s7339_s1 + $0x5d0] sm:$0xff]  }
  0x7a   :  { %5161 = vmatprep.subr.bf16.mxu1 %v5709_v19  ;;  %v5762_v19 = vld [vmem:[%s7339_s1 + $0x518] sm:$0xff]  }
  0x7b   :  { %5140 = vmatpush3.bf16.msra.mxu0 %v5708_v18  ;;  %v5761_v18 = vld [vmem:[%s7339_s1 + $0x558] sm:$0xff]  }
  0x7c   :  { %5141 = vmatprep.subr.bf16.mxu0 %v5711_v21  ;;  %v5764_v21 = vld [vmem:[%s7339_s1 + $0x598] sm:$0xff]  }
  0x7d   :  { %5162 = vmatpush3.bf16.msra.mxu1 %v5710_v20  ;;  %v5763_v20 = vld [vmem:[%s7339_s1 + $0x5d8] sm:$0xff]  }
  0x7e   :  { %5163 = vmatprep.subr.bf16.mxu1 %v5713_v23  ;;  %v5766_v23 = vld [vmem:[%s7339_s1 + $0x520] sm:$0xff]  }
  0x7f   :  { %5142 = vmatpush3.bf16.msra.mxu0 %v5712_v22  ;;  %v5765_v22 = vld [vmem:[%s7339_s1 + $0x560] sm:$0xff]  }
  0x80   :  { %5171 = vmatprep.subr.bf16.mxu0 %v5715_v28  ;;  %v5771_v28 = vld [vmem:[%s7339_s1 + $0x5e8] sm:$0xff]  }
  0x81   :  { %5164 = vmatpush3.bf16.msra.mxu1 %v5714_v26  ;;  %v5769_v26 = vld [vmem:[%s7339_s1 + $0x568] sm:$0xff]  }
  0x82   :  { %3723 = vmatmul.mubr.bf16.vlgmr.msra.gmra.mrb[12].mxu0 %v896_v25  ;;  %5193 = vmatprep.subr.bf16.mxu1 %v5718_v32  ;;  %v5768_v25 = vld [vmem:[%s7339_s1 + $0x5a0] sm:$0xff]   ;;  %v5775_v32 = vld [vmem:[%s7339_s1 + $0x5f0] sm:$0xff]  }
  0x83   :  { %5172 = vmatpush3.bf16.msra.mxu0 %v5717_v31  ;;  %3802 = vmatprep.mubr.bf16.mxu0 %v921_v4  ;;  %v5774_v31 = vld [vmem:[%s7339_s1 + $0x530] sm:$0xff]   ;;  %v5805_v4 = vld [vmem:[%s7339_s1 + $0x6a8] sm:$0xff]  }
  0x84   :  { %3763 = vmatmul.mubr.bf16.vlgmr.msra.gmra.mrb[12].mxu1 %v903_v30  ;;  %5173 = vmatprep.subr.bf16.mxu0 %v5720_v36  ;;  %v5773_v30 = vld [vmem:[%s7339_s1 + $0x570] sm:$0xff]   ;;  %v5778_v36 = vld [vmem:[%s7339_s1 + $0x538] sm:$0xff]  }
  0x85   :  { %5194 = vmatpush3.bf16.msra.mxu1 %v5719_v35  ;;  %3842 = vmatprep.mubr.bf16.mxu1 %v922_v8  ;;  %v5777_v35 = vld [vmem:[%s7339_s1 + $0x578] sm:$0xff]   ;;  %v5809_v8 = vld [vmem:[%s7339_s1 + $0x6b0] sm:$0xff]  }
  0x86   :  { %5195 = vmatprep.subr.bf16.mxu1 %v5722_v38  ;;  %v26_v38 = vld [vmem:[%s7340_s0 + $0x28] sm:$0xff] }
  0x87   :  { %5174 = vmatpush3.bf16.msra.mxu0 %v5721_v37  ;;  %v5779_v37 = vld [vmem:[%s7339_s1 + $0x5f8] sm:$0xff]  }
  0x88   :  { %5175 = vmatprep.subr.bf16.mxu0 %v5724_v40  ;;  %v5780_v40 = vld [vmem:[%s7339_s1 + $0x5b8] sm:$0xff]  }
  0x89   :  { %5196 = vmatpush3.bf16.msra.mxu1 %v5723_v39  ;;  %v930_v39 = vrot.slane %v26_v38, %v6122_v34 }
  0x8a   :  { %5197 = vmatprep.subr.bf16.mxu1 %v5726_v42  ;;  %v5781_v42 = vld [vmem:[%s7339_s1 + $0x640] sm:$0xff]  }
  0x8b   :  { %5176 = vmatpush3.bf16.msra.mxu0 %v5725_v41  ;;  %v923_v41 = vcombine.high %v26_v38, %v26_v38  ;;  %v5833_v38 = vld [vmem:[%s7339_s1 + $0x7e0] sm:$0xff]  }
  0x8c   :  { %5177 = vmatprep.subr.bf16.mxu0 %v5728_v44 }
  0x8d   :  { %5198 = vmatpush3.bf16.msra.mxu1 %v5727_v43  ;;  %v938_v43 = vcombine.high %v930_v39, %v930_v39  ;;  %v937_v44 = vrot.slane %v923_v41, %v6122_v34  ;;  %v5835_v41 = vld [vmem:[%s7339_s1 + $0x768] sm:$0xff]  }
  0x8e   :  { %5199 = vmatprep.subr.bf16.mxu1 %v5730_v46  ;;  %v5784_v46 = vld [vmem:[%s7339_s1 + $0x6c0] sm:$0xff]  }
  0x8f   :  { %5178 = vmatpush3.bf16.msra.mxu0 %v5729_v45  ;;  %v5783_v45 = vld [vmem:[%s7339_s1 + $0x600] sm:$0xff]  }
  0x90   :  { %5179 = vmatprep.subr.bf16.mxu0 %v5732_v48  ;;  %v5785_v48 = vld [vmem:[%s7339_s1 + $0x680] sm:$0xff]  }
  0x91   :  { %5200 = vmatpush3.bf16.msra.mxu1 %v5731_v47  ;;  %v939_v47 = vcombine.high %v937_v44, %v937_v44 }
  0x92   :  { %5201 = vmatprep.subr.bf16.mxu1 %v5734_v50  ;;  %v5787_v50 = vld [vmem:[%s7339_s1 + $0x608] sm:$0xff]  }
  0x93   :  { %5180 = vmatpush3.bf16.msra.mxu0 %v5733_v49  ;;  %v5786_v49 = vld [vmem:[%s7339_s1 + $0x648] sm:$0xff]  }
  0x94   :  { %5181 = vmatprep.subr.bf16.mxu0 %v5736_v52  ;;  %v5789_v52 = vld [vmem:[%s7339_s1 + $0x688] sm:$0xff]  }
  0x95   :  { %5202 = vmatpush3.bf16.msra.mxu1 %v5735_v51  ;;  %v5788_v51 = vld [vmem:[%s7339_s1 + $0x6c8] sm:$0xff]  }
  0x96   :  { %5203 = vmatprep.subr.bf16.mxu1 %v5738_v54  ;;  %v5791_v54 = vld [vmem:[%s7339_s1 + $0x610] sm:$0xff]  }
  0x97   :  { %5182 = vmatpush3.bf16.msra.mxu0 %v5737_v53  ;;  %v5790_v53 = vld [vmem:[%s7339_s1 + $0x650] sm:$0xff]  }
  0x98   :  { %5183 = vmatprep.subr.bf16.mxu0 %v5740_v56  ;;  %v5793_v56 = vld [vmem:[%s7339_s1 + $0x690] sm:$0xff]  }
  0x99   :  { %5204 = vmatpush3.bf16.msra.mxu1 %v5739_v55  ;;  %v5792_v55 = vld [vmem:[%s7339_s1 + $0x6d0] sm:$0xff]  }
  0x9a   :  { %5205 = vmatprep.subr.bf16.mxu1 %v5742_v58  ;;  %v5795_v58 = vld [vmem:[%s7339_s1 + $0x618] sm:$0xff]  }
  0x9b   :  { %5184 = vmatpush3.bf16.msra.mxu0 %v5741_v57  ;;  %v5794_v57 = vld [vmem:[%s7339_s1 + $0x658] sm:$0xff]  }
  0x9c   :  { %5185 = vmatprep.subr.bf16.mxu0 %v5744_v60  ;;  %v5797_v60 = vld [vmem:[%s7339_s1 + $0x698] sm:$0xff]  }
  0x9d   :  { %5206 = vmatpush3.bf16.msra.mxu1 %v5743_v59  ;;  %v5796_v59 = vld [vmem:[%s7339_s1 + $0x6d8] sm:$0xff]  }
  0x9e   :  { %5207 = vmatprep.subr.bf16.mxu1 %v5746_v62  ;;  %v5799_v62 = vld [vmem:[%s7339_s1 + $0x620] sm:$0xff]  }
  0x9f   :  { %5186 = vmatpush3.bf16.msra.mxu0 %v5745_v61  ;;  %v5798_v61 = vld [vmem:[%s7339_s1 + $0x660] sm:$0xff]  }
  0xa0   :  { %5215 = vmatprep.subr.bf16.mxu0 %v5748_v3  ;;  %v5804_v3 = vld [vmem:[%s7339_s1 + $0x6e8] sm:$0xff]  }
  0xa1   :  { %5208 = vmatpush3.bf16.msra.mxu1 %v5747_v1  ;;  %v5802_v1 = vld [vmem:[%s7339_s1 + $0x668] sm:$0xff]  }
  0xa2   :  { %3803 = vmatmul.mubr.bf16.vlgmr.msra.gmra.mrb[16].mxu0 %v913_v0  ;;  %5237 = vmatprep.subr.bf16.mxu1 %v5751_v7  ;;  %v5801_v0 = vld [vmem:[%s7339_s1 + $0x6a0] sm:$0xff]   ;;  %v5808_v7 = vld [vmem:[%s7339_s1 + $0x6f0] sm:$0xff]  }
  0xa3   :  { %5216 = vmatpush3.bf16.msra.mxu0 %v5750_v6  ;;  %3882 = vmatprep.mubr.bf16.mxu0 %v938_v43  ;;  %v5807_v6 = vld [vmem:[%s7339_s1 + $0x630] sm:$0xff]   ;;  %v5836_v43 = vld [vmem:[%s7339_s1 + $0x728] sm:$0xff]  }
  0xa4   :  { %3843 = vmatmul.mubr.bf16.vlgmr.msra.gmra.mrb[16].mxu1 %v920_v5  ;;  %5217 = vmatprep.subr.bf16.mxu0 %v5753_v10  ;;  %v5806_v5 = vld [vmem:[%s7339_s1 + $0x670] sm:$0xff]   ;;  %v5811_v10 = vld [vmem:[%s7339_s1 + $0x638] sm:$0xff]  }
  0xa5   :  { %5238 = vmatpush3.bf16.msra.mxu1 %v5752_v9  ;;  %3922 = vmatprep.mubr.bf16.mxu1 %v939_v47  ;;  %v5810_v9 = vld [vmem:[%s7339_s1 + $0x678] sm:$0xff]  }
  0xa6   :  { %5239 = vmatprep.subr.bf16.mxu1 %v5755_v12  ;;  %v27_v12 = vld [vmem:[%s7340_s0 + $0x30] sm:$0xff] }
  0xa7   :  { %5218 = vmatpush3.bf16.msra.mxu0 %v5754_v11  ;;  %v5812_v11 = vld [vmem:[%s7339_s1 + $0x6f8] sm:$0xff]  }
  0xa8   :  { %5219 = vmatprep.subr.bf16.mxu0 %v5757_v14  ;;  %v5813_v14 = vld [vmem:[%s7339_s1 + $0x6b8] sm:$0xff]  }
  0xa9   :  { %5240 = vmatpush3.bf16.msra.mxu1 %v5756_v13  ;;  %v947_v13 = vrot.slane %v27_v12, %v6122_v34 }
  0xaa   :  { %5241 = vmatprep.subr.bf16.mxu1 %v5759_v16  ;;  %v5814_v16 = vld [vmem:[%s7339_s1 + $0x740] sm:$0xff]  }
  0xab   :  { %5220 = vmatpush3.bf16.msra.mxu0 %v5758_v15  ;;  %v940_v15 = vcombine.high %v27_v12, %v27_v12  ;;  %v5853_v12 = vld [vmem:[%s7339_s1 + $0x808] sm:$0xff]  }
  0xac   :  { %5221 = vmatprep.subr.bf16.mxu0 %v5761_v18 }
  0xad   :  { %5242 = vmatpush3.bf16.msra.mxu1 %v5760_v17  ;;  %v955_v17 = vcombine.high %v947_v13, %v947_v13  ;;  %v954_v18 = vrot.slane %v940_v15, %v6122_v34  ;;  %v5856_v15 = vld [vmem:[%s7339_s1 + $0x850] sm:$0xff]  }
  0xae   :  { %5243 = vmatprep.subr.bf16.mxu1 %v5763_v20  ;;  %v5817_v20 = vld [vmem:[%s7339_s1 + $0x7c0] sm:$0xff]  }
  0xaf   :  { %5222 = vmatpush3.bf16.msra.mxu0 %v5762_v19  ;;  %v5816_v19 = vld [vmem:[%s7339_s1 + $0x700] sm:$0xff]  }
  0xb0   :  { %5223 = vmatprep.subr.bf16.mxu0 %v5765_v22  ;;  %v5818_v22 = vld [vmem:[%s7339_s1 + $0x780] sm:$0xff]  }
  0xb1   :  { %5244 = vmatpush3.bf16.msra.mxu1 %v5764_v21  ;;  %v956_v21 = vcombine.high %v954_v18, %v954_v18 }
  0xb2   :  { %5245 = vmatprep.subr.bf16.mxu1 %v5767_v24  ;;  %v5820_v24 = vld [vmem:[%s7339_s1 + $0x708] sm:$0xff]  }
  0xb3   :  { %5224 = vmatpush3.bf16.msra.mxu0 %v5766_v23  ;;  %v5819_v23 = vld [vmem:[%s7339_s1 + $0x748] sm:$0xff]  }
  0xb4   :  { %5225 = vmatprep.subr.bf16.mxu0 %v5769_v26  ;;  %v5822_v26 = vld [vmem:[%s7339_s1 + $0x788] sm:$0xff]  }
  0xb5   :  { %5246 = vmatpush3.bf16.msra.mxu1 %v5768_v25  ;;  %v5821_v25 = vld [vmem:[%s7339_s1 + $0x7c8] sm:$0xff]  }
  0xb6   :  { %5247 = vmatprep.subr.bf16.mxu1 %v5771_v28  ;;  %v5824_v28 = vld [vmem:[%s7339_s1 + $0x710] sm:$0xff]  }
  0xb7   :  { %5226 = vmatpush3.bf16.msra.mxu0 %v5770_v27  ;;  %v5823_v27 = vld [vmem:[%s7339_s1 + $0x750] sm:$0xff]  }
  0xb8   :  { %5227 = vmatprep.subr.bf16.mxu0 %v5773_v30  ;;  %v5826_v30 = vld [vmem:[%s7339_s1 + $0x790] sm:$0xff]  }
  0xb9   :  { %5248 = vmatpush3.bf16.msra.mxu1 %v5772_v29  ;;  %v5825_v29 = vld [vmem:[%s7339_s1 + $0x7d0] sm:$0xff]  }
  0xba   :  { %5249 = vmatprep.subr.bf16.mxu1 %v5775_v32  ;;  %v5828_v32 = vld [vmem:[%s7339_s1 + $0x718] sm:$0xff]  }
  0xbb   :  { %5228 = vmatpush3.bf16.msra.mxu0 %v5774_v31  ;;  %v5827_v31 = vld [vmem:[%s7339_s1 + $0x758] sm:$0xff]  }
  0xbc   :  { %5229 = vmatprep.subr.bf16.mxu0 %v5777_v35  ;;  %v5830_v35 = vld [vmem:[%s7339_s1 + $0x798] sm:$0xff]  }
  0xbd   :  { %5250 = vmatpush3.bf16.msra.mxu1 %v5776_v33  ;;  %v5829_v33 = vld [vmem:[%s7339_s1 + $0x7d8] sm:$0xff]  }
  0xbe   :  { %5251 = vmatprep.subr.bf16.mxu1 %v5779_v37  ;;  %v5832_v37 = vld [vmem:[%s7339_s1 + $0x720] sm:$0xff]  }
  0xbf   :  { %5230 = vmatpush3.bf16.msra.mxu0 %v5778_v36  ;;  %v5831_v36 = vld [vmem:[%s7339_s1 + $0x760] sm:$0xff]  }
  0xc0   :  { %5259 = vmatprep.subr.bf16.mxu0 %v5781_v42 }
  0xc1   :  { %5252 = vmatpush3.bf16.msra.mxu1 %v5780_v40  ;;  %v4591_v40 = vld [vmem:[%s7341_s2] ss:$0 sm:$0xff] }
  0xc2   :  { %3883 = vmatmul.mubr.bf16.vlgmr.msra.gmra.mrb[20].mxu0 %v930_v39  ;;  %5281 = vmatprep.subr.bf16.mxu1 %v5784_v46  ;;  %v5834_v39 = vld [vmem:[%s7339_s1 + $0x7a0] sm:$0xff]  }
  0xc3   :  { %5260 = vmatpush3.bf16.msra.mxu0 %v5783_v45  ;;  %3962 = vmatprep.mubr.bf16.mxu0 %v955_v17  ;;  %v5837_v45 = vld [vmem:[%s7339_s1 + $0x7e8] sm:$0xff]   ;;  %v5858_v17 = vld [vmem:[%s7339_s1 + $0x8d0] sm:$0xff]  }
  0xc4   :  { %3923 = vmatmul.mubr.bf16.vlgmr.msra.gmra.mrb[20].mxu1 %v937_v44  ;;  %5261 = vmatprep.subr.bf16.mxu0 %v5786_v49  ;;  %v5838_v49 = vld [vmem:[%s7339_s1 + $0x7a8] sm:$0xff]  }
  0xc5   :  { %5282 = vmatpush3.bf16.msra.mxu1 %v5785_v48  ;;  %4002 = vmatprep.mubr.bf16.mxu1 %v956_v21  ;;  %v5862_v21 = vld [vmem:[%s7339_s1 + $0x8d8] sm:$0xff]  }
  0xc6   :  { %5283 = vmatprep.subr.bf16.mxu1 %v5788_v51 }
  0xc7   :  { %5262 = vmatpush3.bf16.msra.mxu0 %v5787_v50  ;;  %v5839_v50 = vld [vmem:[%s7339_s1 + $0x770] sm:$0xff]  }
  0xc8   :  { %5263 = vmatprep.subr.bf16.mxu0 %v5790_v53 }
  0xc9   :  { %5284 = vmatpush3.bf16.msra.mxu1 %v5789_v52 }
  0xca   :  { %5285 = vmatprep.subr.bf16.mxu1 %v5792_v55  ;;  %v5840_v55 = vld [vmem:[%s7339_s1 + $0x730] sm:$0xff]  }
  0xcb   :  { %5264 = vmatpush3.bf16.msra.mxu0 %v5791_v54 }
  0xcc   :  { %5265 = vmatprep.subr.bf16.mxu0 %v5794_v57  ;;  %v5841_v57 = vld [vmem:[%s7339_s1 + $0x7f0] sm:$0xff]  }
  0xcd   :  { %5286 = vmatpush3.bf16.msra.mxu1 %v5793_v56 }
  0xce   :  { %5287 = vmatprep.subr.bf16.mxu1 %v5796_v59 }
  0xcf   :  { %5266 = vmatpush3.bf16.msra.mxu0 %v5795_v58 }
  0xd0   :  { %5267 = vmatprep.subr.bf16.mxu0 %v5798_v61  ;;  %v5843_v61 = vld [vmem:[%s7339_s1 + $0x778] sm:$0xff]  }
  0xd1   :  { %5288 = vmatpush3.bf16.msra.mxu1 %v5797_v60  ;;  %v5842_v60 = vld [vmem:[%s7339_s1 + $0x7b0] sm:$0xff]  }
  0xd2   :  { %5289 = vmatprep.subr.bf16.mxu1 %v5800_v63  ;;  %v5845_v63 = vld [vmem:[%s7339_s1 + $0x7f8] sm:$0xff]  }
  0xd3   :  { %5268 = vmatpush3.bf16.msra.mxu0 %v5799_v62  ;;  %v5844_v62 = vld [vmem:[%s7339_s1 + $0x738] sm:$0xff]  }
  0xd4   :  { %5269 = vmatprep.subr.bf16.mxu0 %v5802_v1 }
  0xd5   :  { %5290 = vmatpush3.bf16.msra.mxu1 %v5801_v0  ;;  %v28_v0 = vld [vmem:[%s7340_s0 + $0x38] sm:$0xff] }
  0xd6   :  { %5291 = vmatprep.subr.bf16.mxu1 %v5804_v3  ;;  %v964_v1 = vrot.slane %v28_v0, %v6122_v34  ;;  %v957_v3 = vcombine.high %v28_v0, %v28_v0  ;;  %v5887_v0 = vld [vmem:[%s7339_s1 + $0x9c8] sm:$0xff]  }
  0xd7   :  { %5270 = vmatpush3.bf16.msra.mxu0 %v5803_v2  ;;  %v5846_v2 = vld [vmem:[%s7339_s1 + $0x7b8] sm:$0xff]  }
  0xd8   :  { %5271 = vmatprep.subr.bf16.mxu0 %v5806_v5  ;;  %v972_v5 = vcombine.high %v964_v1, %v964_v1 }
  0xd9   :  { %5292 = vmatpush3.bf16.msra.mxu1 %v5805_v4  ;;  %v5847_v4 = vld [vmem:[%s7339_s1 + $0x840] sm:$0xff]  }
  0xda   :  { %5293 = vmatprep.subr.bf16.mxu1 %v5808_v7  ;;  %v5849_v7 = vld [vmem:[%s7339_s1 + $0x800] sm:$0xff]  }
  0xdb   :  { %5272 = vmatpush3.bf16.msra.mxu0 %v5807_v6  ;;  %v971_v6 = vrot.slane %v957_v3, %v6122_v34  ;;  %v5890_v3 = vld [vmem:[%s7339_s1 + $0x910] sm:$0xff]  }
  0xdc   :  { %5273 = vmatprep.subr.bf16.mxu0 %v5810_v9 }
  0xdd   :  { %5294 = vmatpush3.bf16.msra.mxu1 %v5809_v8  ;;  %v5850_v8 = vld [vmem:[%s7339_s1 + $0x8c0] sm:$0xff]   ;;  %v973_v9 = vcombine.high %v971_v6, %v971_v6 }
  0xde   :  { %5295 = vmatprep.subr.bf16.mxu1 %v5812_v11  ;;  %v5852_v11 = vld [vmem:[%s7339_s1 + $0x848] sm:$0xff]  }
  0xdf   :  { %5274 = vmatpush3.bf16.msra.mxu0 %v5811_v10  ;;  %v5851_v10 = vld [vmem:[%s7339_s1 + $0x880] sm:$0xff]  }
  0xe0   :  { %5303 = vmatprep.subr.bf16.mxu0 %v5814_v16  ;;  %v5857_v16 = vld [vmem:[%s7339_s1 + $0x810] sm:$0xff]  }
  0xe1   :  { %5296 = vmatpush3.bf16.msra.mxu1 %v5813_v14  ;;  %v5855_v14 = vld [vmem:[%s7339_s1 + $0x888] sm:$0xff]  }
  0xe2   :  { %3963 = vmatmul.mubr.bf16.vlgmr.msra.gmra.mrb[24].mxu0 %v947_v13  ;;  %5325 = vmatprep.subr.bf16.mxu1 %v5817_v20  ;;  %v5854_v13 = vld [vmem:[%s7339_s1 + $0x8c8] sm:$0xff]   ;;  %v5861_v20 = vld [vmem:[%s7339_s1 + $0x818] sm:$0xff]  }
  0xe3   :  { %5304 = vmatpush3.bf16.msra.mxu0 %v5816_v19  ;;  %4042 = vmatprep.mubr.bf16.mxu0 %v972_v5  ;;  %v5860_v19 = vld [vmem:[%s7339_s1 + $0x858] sm:$0xff]   ;;  %v5892_v5 = vld [vmem:[%s7339_s1 + $0x990] sm:$0xff]  }
  0xe4   :  { %4003 = vmatmul.mubr.bf16.vlgmr.msra.gmra.mrb[24].mxu1 %v954_v18  ;;  %5305 = vmatprep.subr.bf16.mxu0 %v5819_v23  ;;  %v5859_v18 = vld [vmem:[%s7339_s1 + $0x890] sm:$0xff]   ;;  %v5864_v23 = vld [vmem:[%s7339_s1 + $0x860] sm:$0xff]  }
  0xe5   :  { %5326 = vmatpush3.bf16.msra.mxu1 %v5818_v22  ;;  %4082 = vmatprep.mubr.bf16.mxu1 %v973_v9  ;;  %v5863_v22 = vld [vmem:[%s7339_s1 + $0x898] sm:$0xff]  }
  0xe6   :  { %5327 = vmatprep.subr.bf16.mxu1 %v5821_v25  ;;  %v5866_v25 = vld [vmem:[%s7339_s1 + $0x8e0] sm:$0xff]   ;;  %v5896_v9 = vld [vmem:[%s7339_s1 + $0x998] sm:$0xff]  }
  0xe7   :  { %5306 = vmatpush3.bf16.msra.mxu0 %v5820_v24  ;;  %v5865_v24 = vld [vmem:[%s7339_s1 + $0x820] sm:$0xff]  }
  0xe8   :  { %5307 = vmatprep.subr.bf16.mxu0 %v5823_v27 }
  0xe9   :  { %5328 = vmatpush3.bf16.msra.mxu1 %v5822_v26  ;;  %v5867_v26 = vld [vmem:[%s7339_s1 + $0x8a0] sm:$0xff]  }
  0xea   :  { %5329 = vmatprep.subr.bf16.mxu1 %v5825_v29 }
  0xeb   :  { %5308 = vmatpush3.bf16.msra.mxu0 %v5824_v28  ;;  %v5868_v28 = vld [vmem:[%s7339_s1 + $0x868] sm:$0xff]  }
  0xec   :  { %5309 = vmatprep.subr.bf16.mxu0 %v5827_v31 }
  0xed   :  { %5330 = vmatpush3.bf16.msra.mxu1 %v5826_v30  ;;  %v5869_v30 = vld [vmem:[%s7339_s1 + $0x828] sm:$0xff]  }
  0xee   :  { %5331 = vmatprep.subr.bf16.mxu1 %v5829_v33 }
  0xef   :  { %5310 = vmatpush3.bf16.msra.mxu0 %v5828_v32 }
  0xf0   :  { %5311 = vmatprep.subr.bf16.mxu0 %v5831_v36  ;;  %v5871_v36 = vld [vmem:[%s7339_s1 + $0x8a8] sm:$0xff]  }
  0xf1   :  { %5332 = vmatpush3.bf16.msra.mxu1 %v5830_v35  ;;  %v5870_v35 = vld [vmem:[%s7339_s1 + $0x8e8] sm:$0xff]  }
  0xf2   :  { %5333 = vmatprep.subr.bf16.mxu1 %v5833_v38 }
  0xf3   :  { %5312 = vmatpush3.bf16.msra.mxu0 %v5832_v37 }
  0xf4   :  { %5313 = vmatprep.subr.bf16.mxu0 %v5835_v41  ;;  %v5872_v41 = vld [vmem:[%s7339_s1 + $0x870] sm:$0xff]  }
  0xf5   :  { %v5011_v42 = vpop.f32.mrb[0].mxu0  ;;  %5334 = vmatpush3.bf16.msra.mxu1 %v5834_v39 }
  0xf6   :  { %v5012_v44 = vpop.f32.mrb[1].mxu0  ;;  %5335 = vmatprep.subr.bf16.mxu1 %v5837_v45 }
  0xf7   :  { %v5013_v46 = vadd.f32 %v5012_v44, %v5011_v42  ;;  %v5014_v47 = vpop.f32.mrb[2].mxu0  ;;  %v5033_v48 = vpop.f32.mrb[0].mxu1  ;;  %5314 = vmatpush3.bf16.msra.mxu0 %v5836_v43  ;;  %v5873_v43 = vld [vmem:[%s7339_s1 + $0x830] sm:$0xff]  }
  0xf8   :  { %v5015_v51 = vpop.f32.mrb[3].mxu0  ;;  %v5034_v52 = vpop.f32.mrb[1].mxu1  ;;  %5315 = vmatprep.subr.bf16.mxu0 %v5839_v50  ;;  %v5875_v47 = vld [vmem:[%s7339_s1 + $0x8b0] sm:$0xff]   ;;  %v5878_v50 = vld [vmem:[%s7339_s1 + $0x8f8] sm:$0xff]  }
  0xf9   :  { %v3485_v53 = vadd.f32 %v5013_v46, %v4591_v40  ;;  %v5035_v54 = vadd.f32 %v5034_v52, %v5033_v48  ;;  %v5036_v56 = vpop.f32.mrb[2].mxu1  ;;  %5336 = vmatpush3.bf16.msra.mxu1 %v5838_v49  ;;  %v5874_v46 = vld [vmem:[%s7339_s1 + $0x8f0] sm:$0xff]   ;;  %v5876_v48 = vld [vmem:[%s7339_s1 + $0x878] sm:$0xff]   ;;  %v29_v51 = vld [vmem:[%s7340_s0 + $0x40] sm:$0xff] }
  0xfa   :  { %v5037_v58 = vpop.f32.mrb[3].mxu1  ;;  %5337 = vmatprep.subr.bf16.mxu1 %v5841_v57  ;;  %v5877_v49 = vld [vmem:[%s7339_s1 + $0x838] sm:$0xff]   ;;  %v981_v52 = vrot.slane %v29_v51, %v6122_v34 }
  0xfb   :  { %v6828_v59 = vadd.f32 %v5035_v54, %v3485_v53  ;;  %5316 = vmatpush3.bf16.msra.mxu0 %v5840_v55  ;;  %v5879_v53 = vld [vmem:[%s7339_s1 + $0x8b8] sm:$0xff]   ;;  %v974_v54 = vcombine.high %v29_v51, %v29_v51  ;;  %v5880_v55 = vld [vmem:[%s7339_s1 + $0x940] sm:$0xff]   ;;  %v5920_v51 = vld [vmem:[%s7339_s1 + $0xac8] sm:$0xff]  }
  0xfc   :  { %5317 = vmatprep.subr.bf16.mxu0 %v5843_v61  ;;  %v989_v56 = vcombine.high %v981_v52, %v981_v52  ;;  %v5882_v58 = vld [vmem:[%s7339_s1 + $0x900] sm:$0xff]  }
  0xfd   :  { %5338 = vmatpush3.bf16.msra.mxu1 %v5842_v60  ;;  %v988_v57 = vrot.slane %v974_v54, %v6122_v34  ;;  %v5884_v61 = vld [vmem:[%s7339_s1 + $0x980] sm:$0xff]   ;;  %v5923_v54 = vld [vmem:[%s7339_s1 + $0xa10] sm:$0xff]  }
  0xfe   :  { %5339 = vmatprep.subr.bf16.mxu1 %v5845_v63  ;;  %v5886_v63 = vld [vmem:[%s7339_s1 + $0x908] sm:$0xff]  }
  0xff   :  { %5318 = vmatpush3.bf16.msra.mxu0 %v5844_v62  ;;  %v990_v60 = vcombine.high %v988_v57, %v988_v57  ;;  %v5885_v62 = vld [vmem:[%s7339_s1 + $0x948] sm:$0xff]  }
 0x100   :  { %5347 = vmatprep.subr.bf16.mxu0 %v5847_v4  ;;  %v5891_v4 = vld [vmem:[%s7339_s1 + $0x9d0] sm:$0xff]  }
 0x101   :  { %5340 = vmatpush3.bf16.msra.mxu1 %v5846_v2  ;;  %v5889_v2 = vld [vmem:[%s7339_s1 + $0x950] sm:$0xff]  }
 0x102   :  { %4043 = vmatmul.mubr.bf16.vlgmr.msra.gmra.mrb[28].mxu0 %v964_v1  ;;  %5369 = vmatprep.subr.bf16.mxu1 %v5850_v8  ;;  %v5888_v1 = vld [vmem:[%s7339_s1 + $0x988] sm:$0xff]   ;;  %v5895_v8 = vld [vmem:[%s7339_s1 + $0x9d8] sm:$0xff]  }
 0x103   :  { %5348 = vmatpush3.bf16.msra.mxu0 %v5849_v7  ;;  %4122 = vmatprep.mubr.bf16.mxu0 %v989_v56  ;;  %v5894_v7 = vld [vmem:[%s7339_s1 + $0x918] sm:$0xff]   ;;  %v5925_v56 = vld [vmem:[%s7339_s1 + $0xa90] sm:$0xff]  }
 0x104   :  { %4083 = vmatmul.mubr.bf16.vlgmr.msra.gmra.mrb[28].mxu1 %v971_v6  ;;  %5349 = vmatprep.subr.bf16.mxu0 %v5852_v11  ;;  %v5893_v6 = vld [vmem:[%s7339_s1 + $0x958] sm:$0xff]   ;;  %v5898_v11 = vld [vmem:[%s7339_s1 + $0x920] sm:$0xff]  }
 0x105   :  { %5370 = vmatpush3.bf16.msra.mxu1 %v5851_v10  ;;  %4162 = vmatprep.mubr.bf16.mxu1 %v990_v60  ;;  %v5897_v10 = vld [vmem:[%s7339_s1 + $0x960] sm:$0xff]   ;;  %v5929_v60 = vld [vmem:[%s7339_s1 + $0xa98] sm:$0xff]  }
 0x106   :  { %5371 = vmatprep.subr.bf16.mxu1 %v5854_v13  ;;  %v5900_v13 = vld [vmem:[%s7339_s1 + $0x9a0] sm:$0xff]  }
 0x107   :  { %5350 = vmatpush3.bf16.msra.mxu0 %v5853_v12  ;;  %v5899_v12 = vld [vmem:[%s7339_s1 + $0x9e0] sm:$0xff]  }
 0x108   :  { %5351 = vmatprep.subr.bf16.mxu0 %v5856_v15  ;;  %v5901_v15 = vld [vmem:[%s7339_s1 + $0x968] sm:$0xff]  }
 0x109   :  { %5372 = vmatpush3.bf16.msra.mxu1 %v5855_v14 }
 0x10a   :  { %5373 = vmatprep.subr.bf16.mxu1 %v5858_v17  ;;  %v5902_v17 = vld [vmem:[%s7339_s1 + $0x928] sm:$0xff]  }
 0x10b   :  { %5352 = vmatpush3.bf16.msra.mxu0 %v5857_v16 }
 0x10c   :  { %5353 = vmatprep.subr.bf16.mxu0 %v5860_v19 }
 0x10d   :  { %5374 = vmatpush3.bf16.msra.mxu1 %v5859_v18 }
 0x10e   :  { %5375 = vmatprep.subr.bf16.mxu1 %v5862_v21 }
 0x10f   :  { %5354 = vmatpush3.bf16.msra.mxu0 %v5861_v20 }
 0x110   :  { %5355 = vmatprep.subr.bf16.mxu0 %v5864_v23  ;;  %v5903_v23 = vld [vmem:[%s7339_s1 + $0x9e8] sm:$0xff]  }
 0x111   :  { %5376 = vmatpush3.bf16.msra.mxu1 %v5863_v22 }
 0x112   :  { %5377 = vmatprep.subr.bf16.mxu1 %v5866_v25 }
 0x113   :  { %5356 = vmatpush3.bf16.msra.mxu0 %v5865_v24  ;;  %v5904_v24 = vld [vmem:[%s7339_s1 + $0x9a8] sm:$0xff]  }
 0x114   :  { %5357 = vmatprep.subr.bf16.mxu0 %v5868_v28 }
 0x115   :  { %v5055_v27 = vpop.f32.mrb[4].mxu0  ;;  %5378 = vmatpush3.bf16.msra.mxu1 %v5867_v26 }
 0x116   :  { %v5056_v29 = vpop.f32.mrb[5].mxu0  ;;  %5379 = vmatprep.subr.bf16.mxu1 %v5870_v35  ;;  %v5909_v35 = vld [vmem:[%s7339_s1 + $0x978] sm:$0xff]  }
 0x117   :  { %v5057_v31 = vadd.f32 %v5056_v29, %v5055_v27  ;;  %v5058_v32 = vpop.f32.mrb[6].mxu0  ;;  %v5077_v33 = vpop.f32.mrb[4].mxu1  ;;  %5358 = vmatpush3.bf16.msra.mxu0 %v5869_v30  ;;  %v5905_v27 = vld [vmem:[%s7339_s1 + $0x970] sm:$0xff]  }
 0x118   :  { %v5059_v37 = vpop.f32.mrb[7].mxu0  ;;  %v5078_v38 = vpop.f32.mrb[5].mxu1  ;;  %5359 = vmatprep.subr.bf16.mxu0 %v5872_v41  ;;  %v5906_v30 = vld [vmem:[%s7339_s1 + $0x930] sm:$0xff]  }
 0x119   :  { %v3565_v39 = vadd.f32 %v5057_v31, %v6828_v59  ;;  %v5079_v40 = vadd.f32 %v5078_v38, %v5077_v33  ;;  %v5080_v42 = vpop.f32.mrb[6].mxu1  ;;  %5380 = vmatpush3.bf16.msra.mxu1 %v5871_v36  ;;  %v5883_v59 = vld [vmem:[%s7339_s1 + $0x9c0] sm:$0xff]   ;;  %v5907_v32 = vld [vmem:[%s7339_s1 + $0x9f0] sm:$0xff]   ;;  %v5910_v36 = vld [vmem:[%s7339_s1 + $0x938] sm:$0xff]  }
 0x11a   :  { %v5081_v44 = vpop.f32.mrb[7].mxu1  ;;  %5381 = vmatprep.subr.bf16.mxu1 %v5874_v46  ;;  %v5908_v33 = vld [vmem:[%s7339_s1 + $0x9b0] sm:$0xff]   ;;  %v5911_v37 = vld [vmem:[%s7339_s1 + $0x9f8] sm:$0xff]   ;;  %v30_v38 = vld [vmem:[%s7340_s0 + $0x48] sm:$0xff] }
 0x11b   :  { %v6929_v45 = vadd.f32 %v5079_v40, %v3565_v39  ;;  %5360 = vmatpush3.bf16.msra.mxu0 %v5873_v43  ;;  %v998_v39 = vrot.slane %v30_v38, %v6122_v34  ;;  %v5912_v40 = vld [vmem:[%s7339_s1 + $0x9b8] sm:$0xff]   ;;  %v991_v41 = vcombine.high %v30_v38, %v30_v38  ;;  %v5913_v42 = vld [vmem:[%s7339_s1 + $0xa40] sm:$0xff]   ;;  %v5953_v38 = vld [vmem:[%s7339_s1 + $0xbc8] sm:$0xff]  }
 0x11c   :  { %5361 = vmatprep.subr.bf16.mxu0 %v5876_v48  ;;  %v5916_v46 = vld [vmem:[%s7339_s1 + $0xac0] sm:$0xff]  }
 0x11d   :  { %5382 = vmatpush3.bf16.msra.mxu1 %v5875_v47  ;;  %v1006_v43 = vcombine.high %v998_v39, %v998_v39  ;;  %v1005_v44 = vrot.slane %v991_v41, %v6122_v34  ;;  %v5917_v48 = vld [vmem:[%s7339_s1 + $0xa80] sm:$0xff]   ;;  %v5956_v41 = vld [vmem:[%s7339_s1 + $0xb10] sm:$0xff]  }
 0x11e   :  { %5383 = vmatprep.subr.bf16.mxu1 %v5878_v50  ;;  %v5919_v50 = vld [vmem:[%s7339_s1 + $0xa08] sm:$0xff]  }
 0x11f   :  { %5362 = vmatpush3.bf16.msra.mxu0 %v5877_v49  ;;  %v1007_v47 = vcombine.high %v1005_v44, %v1005_v44  ;;  %v5918_v49 = vld [vmem:[%s7339_s1 + $0xa48] sm:$0xff]  }
 0x120   :  { %5391 = vmatprep.subr.bf16.mxu0 %v5880_v55  ;;  %v5924_v55 = vld [vmem:[%s7339_s1 + $0xad0] sm:$0xff]  }
 0x121   :  { %5384 = vmatpush3.bf16.msra.mxu1 %v5879_v53  ;;  %v5922_v53 = vld [vmem:[%s7339_s1 + $0xa50] sm:$0xff]  }
 0x122   :  { %4123 = vmatmul.mubr.bf16.vlgmr.msra.gmra.mrb[32].mxu0 %v981_v52  ;;  %5413 = vmatprep.subr.bf16.mxu1 %v5883_v59  ;;  %v5921_v52 = vld [vmem:[%s7339_s1 + $0xa88] sm:$0xff]   ;;  %v5928_v59 = vld [vmem:[%s7339_s1 + $0xad8] sm:$0xff]  }
 0x123   :  { %5392 = vmatpush3.bf16.msra.mxu0 %v5882_v58  ;;  %4202 = vmatprep.mubr.bf16.mxu0 %v1006_v43  ;;  %v5927_v58 = vld [vmem:[%s7339_s1 + $0xa18] sm:$0xff]   ;;  %v5958_v43 = vld [vmem:[%s7339_s1 + $0xb90] sm:$0xff]  }
 0x124   :  { %4163 = vmatmul.mubr.bf16.vlgmr.msra.gmra.mrb[32].mxu1 %v988_v57  ;;  %5393 = vmatprep.subr.bf16.mxu0 %v5885_v62  ;;  %v5926_v57 = vld [vmem:[%s7339_s1 + $0xa58] sm:$0xff]   ;;  %v5931_v62 = vld [vmem:[%s7339_s1 + $0xa20] sm:$0xff]  }
 0x125   :  { %5414 = vmatpush3.bf16.msra.mxu1 %v5884_v61  ;;  %4242 = vmatprep.mubr.bf16.mxu1 %v1007_v47  ;;  %v5930_v61 = vld [vmem:[%s7339_s1 + $0xa60] sm:$0xff]   ;;  %v5962_v47 = vld [vmem:[%s7339_s1 + $0xb98] sm:$0xff]  }
 0x126   :  { %5415 = vmatprep.subr.bf16.mxu1 %v5887_v0  ;;  %v5933_v0 = vld [vmem:[%s7339_s1 + $0xaa0] sm:$0xff]  }
 0x127   :  { %5394 = vmatpush3.bf16.msra.mxu0 %v5886_v63  ;;  %v5932_v63 = vld [vmem:[%s7339_s1 + $0xae0] sm:$0xff]  }
 0x128   :  { %5395 = vmatprep.subr.bf16.mxu0 %v5889_v2  ;;  %v5934_v2 = vld [vmem:[%s7339_s1 + $0xa68] sm:$0xff]  }
 0x129   :  { %5416 = vmatpush3.bf16.msra.mxu1 %v5888_v1 }
 0x12a   :  { %5417 = vmatprep.subr.bf16.mxu1 %v5891_v4  ;;  %v5935_v4 = vld [vmem:[%s7339_s1 + $0xa28] sm:$0xff]  }
 0x12b   :  { %5396 = vmatpush3.bf16.msra.mxu0 %v5890_v3 }
 0x12c   :  { %5397 = vmatprep.subr.bf16.mxu0 %v5893_v6 }
 0x12d   :  { %5418 = vmatpush3.bf16.msra.mxu1 %v5892_v5 }
 0x12e   :  { %5419 = vmatprep.subr.bf16.mxu1 %v5895_v8  ;;  %v5936_v8 = vld [vmem:[%s7339_s1 + $0xae8] sm:$0xff]  }
 0x12f   :  { %5398 = vmatpush3.bf16.msra.mxu0 %v5894_v7 }
 0x130   :  { %5399 = vmatprep.subr.bf16.mxu0 %v5897_v10 }
 0x131   :  { %5420 = vmatpush3.bf16.msra.mxu1 %v5896_v9  ;;  %v5937_v9 = vld [vmem:[%s7339_s1 + $0xaa8] sm:$0xff]  }
 0x132   :  { %5421 = vmatprep.subr.bf16.mxu1 %v5899_v12 }
 0x133   :  { %5400 = vmatpush3.bf16.msra.mxu0 %v5898_v11 }
 0x134   :  { %5401 = vmatprep.subr.bf16.mxu0 %v5901_v15 }
 0x135   :  { %v5099_v14 = vpop.f32.mrb[8].mxu0  ;;  %5422 = vmatpush3.bf16.msra.mxu1 %v5900_v13 }
 0x136   :  { %v5100_v16 = vpop.f32.mrb[9].mxu0  ;;  %5423 = vmatprep.subr.bf16.mxu1 %v5903_v23  ;;  %v5944_v23 = vld [vmem:[%s7339_s1 + $0xaf8] sm:$0xff]  }
 0x137   :  { %v5101_v18 = vadd.f32 %v5100_v16, %v5099_v14  ;;  %v5102_v19 = vpop.f32.mrb[10].mxu0  ;;  %v5121_v20 = vpop.f32.mrb[8].mxu1  ;;  %5402 = vmatpush3.bf16.msra.mxu0 %v5902_v17  ;;  %v5938_v14 = vld [vmem:[%s7339_s1 + $0xa70] sm:$0xff]  }
 0x138   :  { %v5103_v21 = vpop.f32.mrb[11].mxu0  ;;  %v5122_v22 = vpop.f32.mrb[9].mxu1  ;;  %5403 = vmatprep.subr.bf16.mxu0 %v5905_v27  ;;  %v5939_v16 = vld [vmem:[%s7339_s1 + $0xa30] sm:$0xff]  }
 0x139   :  { %v3645_v25 = vadd.f32 %v5101_v18, %v6929_v45  ;;  %v5123_v26 = vadd.f32 %v5122_v22, %v5121_v20  ;;  %v5124_v28 = vpop.f32.mrb[10].mxu1  ;;  %5424 = vmatpush3.bf16.msra.mxu1 %v5904_v24  ;;  %v5915_v45 = vld [vmem:[%s7339_s1 + $0xa00] sm:$0xff]   ;;  %v5940_v19 = vld [vmem:[%s7339_s1 + $0xaf0] sm:$0xff]   ;;  %v5942_v21 = vld [vmem:[%s7339_s1 + $0xa78] sm:$0xff]  }
 0x13a   :  { %v5125_v31 = vpop.f32.mrb[11].mxu1  ;;  %5425 = vmatprep.subr.bf16.mxu1 %v5907_v32  ;;  %v5941_v20 = vld [vmem:[%s7339_s1 + $0xab0] sm:$0xff]   ;;  %v5943_v22 = vld [vmem:[%s7339_s1 + $0xa38] sm:$0xff]   ;;  %v5946_v28 = vld [vmem:[%s7339_s1 + $0xb40] sm:$0xff]  }
 0x13b   :  { %v7030_v29 = vadd.f32 %v5123_v26, %v3645_v25  ;;  %5404 = vmatpush3.bf16.msra.mxu0 %v5906_v30  ;;  %v31_v24 = vld [vmem:[%s7340_s0 + $0x50] sm:$0xff]  ;;  %v5945_v26 = vld [vmem:[%s7339_s1 + $0xab8] sm:$0xff]   ;;  %v5948_v31 = vld [vmem:[%s7339_s1 + $0xb00] sm:$0xff]  }
 0x13c   :  { %5405 = vmatprep.subr.bf16.mxu0 %v5909_v35  ;;  %v1015_v25 = vrot.slane %v31_v24, %v6122_v34  ;;  %v1008_v27 = vcombine.high %v31_v24, %v31_v24  ;;  %v5949_v32 = vld [vmem:[%s7339_s1 + $0xbc0] sm:$0xff]  }
 0x13d   :  { %5426 = vmatpush3.bf16.msra.mxu1 %v5908_v33  ;;  %v5950_v35 = vld [vmem:[%s7339_s1 + $0xb80] sm:$0xff]  }
 0x13e   :  { %5427 = vmatprep.subr.bf16.mxu1 %v5911_v37  ;;  %v1022_v30 = vrot.slane %v1008_v27, %v6122_v34  ;;  %v5952_v37 = vld [vmem:[%s7339_s1 + $0xb08] sm:$0xff]  }
 0x13f   :  { %5406 = vmatpush3.bf16.msra.mxu0 %v5910_v36  ;;  %v5951_v36 = vld [vmem:[%s7339_s1 + $0xb48] sm:$0xff]  }
 0x140   :  { %5435 = vmatprep.subr.bf16.mxu0 %v5913_v42  ;;  %v1024_v33 = vcombine.high %v1022_v30, %v1022_v30  ;;  %v5957_v42 = vld [vmem:[%s7339_s1 + $0xbd0] sm:$0xff]  }
 0x141   :  { %5428 = vmatpush3.bf16.msra.mxu1 %v5912_v40  ;;  %v5955_v40 = vld [vmem:[%s7339_s1 + $0xb50] sm:$0xff]  }
 0x142   :  { %4203 = vmatmul.mubr.bf16.vlgmr.msra.gmra.mrb[36].mxu0 %v998_v39  ;;  %5457 = vmatprep.subr.bf16.mxu1 %v5916_v46  ;;  %v5954_v39 = vld [vmem:[%s7339_s1 + $0xb88] sm:$0xff]   ;;  %v5961_v46 = vld [vmem:[%s7339_s1 + $0xbd8] sm:$0xff]  }
 0x143   :  { %5436 = vmatpush3.bf16.msra.mxu0 %v5915_v45  ;;  %v5960_v45 = vld [vmem:[%s7339_s1 + $0xb18] sm:$0xff]  }
 0x144   :  { %4243 = vmatmul.mubr.bf16.vlgmr.msra.gmra.mrb[36].mxu1 %v1005_v44  ;;  %5437 = vmatprep.subr.bf16.mxu0 %v5918_v49  ;;  %v5959_v44 = vld [vmem:[%s7339_s1 + $0xb58] sm:$0xff]   ;;  %v5964_v49 = vld [vmem:[%s7339_s1 + $0xb20] sm:$0xff]  }
 0x145   :  { %5458 = vmatpush3.bf16.msra.mxu1 %v5917_v48  ;;  %4322 = vmatprep.mubr.bf16.mxu1 %v1024_v33  ;;  %v5963_v48 = vld [vmem:[%s7339_s1 + $0xb60] sm:$0xff]  }
 0x146   :  { %5459 = vmatprep.subr.bf16.mxu1 %v5920_v51 }
 0x147   :  { %5438 = vmatpush3.bf16.msra.mxu0 %v5919_v50  ;;  %v5965_v50 = vld [vmem:[%s7339_s1 + $0xbe0] sm:$0xff]  }
 0x148   :  { %5439 = vmatprep.subr.bf16.mxu0 %v5922_v53 }
 0x149   :  { %5460 = vmatpush3.bf16.msra.mxu1 %v5921_v52  ;;  %v5966_v52 = vld [vmem:[%s7339_s1 + $0xba0] sm:$0xff]  }
 0x14a   :  { %5461 = vmatprep.subr.bf16.mxu1 %v5924_v55 }
 0x14b   :  { %5440 = vmatpush3.bf16.msra.mxu0 %v5923_v54  ;;  %v5967_v54 = vld [vmem:[%s7339_s1 + $0xb68] sm:$0xff]  }
 0x14c   :  { %5441 = vmatprep.subr.bf16.mxu0 %v5926_v57 }
 0x14d   :  { %5462 = vmatpush3.bf16.msra.mxu1 %v5925_v56 }
 0x14e   :  { %5463 = vmatprep.subr.bf16.mxu1 %v5928_v59  ;;  %v5969_v59 = vld [vmem:[%s7339_s1 + $0xbe8] sm:$0xff]  }
 0x14f   :  { %5442 = vmatpush3.bf16.msra.mxu0 %v5927_v58  ;;  %v5968_v58 = vld [vmem:[%s7339_s1 + $0xb28] sm:$0xff]  }
 0x150   :  { %5443 = vmatprep.subr.bf16.mxu0 %v5930_v61 }
 0x151   :  { %5464 = vmatpush3.bf16.msra.mxu1 %v5929_v60 }
 0x152   :  { %5465 = vmatprep.subr.bf16.mxu1 %v5932_v63 }
 0x153   :  { %5444 = vmatpush3.bf16.msra.mxu0 %v5931_v62 }
 0x154   :  { %5445 = vmatprep.subr.bf16.mxu0 %v5934_v2  ;;  %v5971_v2 = vld [vmem:[%s7339_s1 + $0xb70] sm:$0xff]  }
 0x155   :  { %v5143_v1 = vpop.f32.mrb[12].mxu0  ;;  %5466 = vmatpush3.bf16.msra.mxu1 %v5933_v0  ;;  %v5970_v0 = vld [vmem:[%s7339_s1 + $0xba8] sm:$0xff]  }
 0x156   :  { %v5144_v3 = vpop.f32.mrb[13].mxu0  ;;  %5467 = vmatprep.subr.bf16.mxu1 %v5936_v8  ;;  %v5975_v8 = vld [vmem:[%s7339_s1 + $0xb78] sm:$0xff]  }
 0x157   :  { %v5145_v5 = vadd.f32 %v5144_v3, %v5143_v1  ;;  %v5146_v6 = vpop.f32.mrb[14].mxu0  ;;  %v5165_v7 = vpop.f32.mrb[12].mxu1  ;;  %5446 = vmatpush3.bf16.msra.mxu0 %v5935_v4 }
 0x158   :  { %v5147_v10 = vpop.f32.mrb[15].mxu0  ;;  %v5166_v11 = vpop.f32.mrb[13].mxu1  ;;  %5447 = vmatprep.subr.bf16.mxu0 %v5938_v14  ;;  %v5973_v6 = vld [vmem:[%s7339_s1 + $0xbf0] sm:$0xff]  }
 0x159   :  { %v3725_v12 = vadd.f32 %v5145_v5, %v7030_v29  ;;  %v5167_v13 = vadd.f32 %v5166_v11, %v5165_v7  ;;  %v5168_v15 = vpop.f32.mrb[14].mxu1  ;;  %5468 = vmatpush3.bf16.msra.mxu1 %v5937_v9  ;;  %v1023_v29 = vcombine.high %v1015_v25, %v1015_v25  ;;  %v5972_v5 = vld [vmem:[%s7339_s1 + $0xb30] sm:$0xff]   ;;  %v5976_v9 = vld [vmem:[%s7339_s1 + $0xb38] sm:$0xff]  }
 0x15a   :  { %v5169_v17 = vpop.f32.mrb[15].mxu1  ;;  %5469 = vmatprep.subr.bf16.mxu1 %v5940_v19  ;;  %v5974_v7 = vld [vmem:[%s7339_s1 + $0xbb0] sm:$0xff]   ;;  %v5977_v10 = vld [vmem:[%s7339_s1 + $0xbf8] sm:$0xff]  }
 0x15b   :  { %v7137_v18 = vadd.f32 %v5167_v13, %v3725_v12  ;;  %5448 = vmatpush3.bf16.msra.mxu0 %v5939_v16  ;;  %4282 = vmatprep.mubr.bf16.mxu0 %v1023_v29  ;;  %v32_v11 = vld [vmem:[%s7340_s0 + $0x58] sm:$0xff]  ;;  %v5980_v17 = vld [vmem:[%s7339_s1 + $0xc00] sm:$0xff]  }
 0x15c   :  { %5449 = vmatprep.subr.bf16.mxu0 %v5942_v21  ;;  %v1032_v12 = vrot.slane %v32_v11, %v6122_v34  ;;  %v5978_v13 = vld [vmem:[%s7339_s1 + $0xbb8] sm:$0xff]   ;;  %v1025_v14 = vcombine.high %v32_v11, %v32_v11 }
 0x15d   :  { %5470 = vmatpush3.bf16.msra.mxu1 %v5941_v20  ;;  %v5981_v20 = vld [vmem:[%s7339_s1 + $0xc08] sm:$0xff]   ;;  %v5983_v21 = vld [vmem:[%s7339_s1 + $0xc18] sm:$0xff]  }
 0x15e   :  { %5471 = vmatprep.subr.bf16.mxu1 %v5944_v23  ;;  %v1040_v15 = vcombine.high %v1032_v12, %v1032_v12  ;;  %v1039_v16 = vrot.slane %v1025_v14, %v6122_v34  ;;  %v5982_v34 = vld [vmem:[%s7339_s1 + $0xc10] sm:$0xff]  }
 0x15f   :  { %5450 = vmatpush3.bf16.msra.mxu0 %v5943_v22  ;;  %v5984_v22 = vld [vmem:[%s7339_s1 + $0xc20] sm:$0xff]  }
 0x160   :  { %5479 = vmatprep.subr.bf16.mxu0 %v5946_v28  ;;  %v1041_v19 = vcombine.high %v1039_v16, %v1039_v16  ;;  %v5985_v28 = vld [vmem:[%s7339_s1 + $0xc28] sm:$0xff]  }
 0x161   :  { %5472 = vmatpush3.bf16.msra.mxu1 %v5945_v26 }
 0x162   :  { %4283 = vmatmul.mubr.bf16.vlgmr.msra.gmra.mrb[40].mxu0 %v1015_v25  ;;  %5501 = vmatprep.subr.bf16.mxu1 %v5949_v32 }
 0x163   :  { %5480 = vmatpush3.bf16.msra.mxu0 %v5948_v31  ;;  %4362 = vmatprep.mubr.bf16.mxu0 %v1040_v15 }
 0x164   :  { %4323 = vmatmul.mubr.bf16.vlgmr.msra.gmra.mrb[40].mxu1 %v1022_v30  ;;  %5481 = vmatprep.subr.bf16.mxu0 %v5951_v36 }
 0x165   :  { %5502 = vmatpush3.bf16.msra.mxu1 %v5950_v35  ;;  %4402 = vmatprep.mubr.bf16.mxu1 %v1041_v19 }
 0x166   :  { %5503 = vmatprep.subr.bf16.mxu1 %v5953_v38  ;;  %v5987_v38 = vld [vmem:[%s7339_s1 + $0xc38] sm:$0xff]  }
 0x167   :  { %5482 = vmatpush3.bf16.msra.mxu0 %v5952_v37  ;;  %v5986_v37 = vld [vmem:[%s7339_s1 + $0xc30] sm:$0xff]  }
 0x168   :  { %5483 = vmatprep.subr.bf16.mxu0 %v5955_v40 }
 0x169   :  { %5504 = vmatpush3.bf16.msra.mxu1 %v5954_v39  ;;  %v4592_v39 = vld.sshfl [vmem:[%s7340_s0 + $0x60] sm:$0x3 pattern:$0x76325410] }
 0x16a   :  { %5505 = vmatprep.subr.bf16.mxu1 %v5957_v42 }
 0x16b   :  { %5484 = vmatpush3.bf16.msra.mxu0 %v5956_v41 }
 0x16c   :  { %5485 = vmatprep.subr.bf16.mxu0 %v5959_v44 }
 0x16d   :  { %5506 = vmatpush3.bf16.msra.mxu1 %v5958_v43 }
 0x16e   :  { %5507 = vmatprep.subr.bf16.mxu1 %v5961_v46 }
 0x16f   :  { %5486 = vmatpush3.bf16.msra.mxu0 %v5960_v45 }
 0x170   :  { %5487 = vmatprep.subr.bf16.mxu0 %v5963_v48 }
 0x171   :  { %5508 = vmatpush3.bf16.msra.mxu1 %v5962_v47 }
 0x172   :  { %5509 = vmatprep.subr.bf16.mxu1 %v5965_v50 }
 0x173   :  { %5488 = vmatpush3.bf16.msra.mxu0 %v5964_v49 }
 0x174   :  { %5489 = vmatprep.subr.bf16.mxu0 %v5967_v54 }
 0x175   :  { %v5187_v51 = vpop.f32.mrb[16].mxu0  ;;  %5510 = vmatpush3.bf16.msra.mxu1 %v5966_v52 }
 0x176   :  { %v5188_v53 = vpop.f32.mrb[17].mxu0  ;;  %5511 = vmatprep.subr.bf16.mxu1 %v5969_v59 }
 0x177   :  { %v5189_v55 = vadd.f32 %v5188_v53, %v5187_v51  ;;  %v5190_v56 = vpop.f32.mrb[18].mxu0  ;;  %v5209_v57 = vpop.f32.mrb[16].mxu1  ;;  %5490 = vmatpush3.bf16.msra.mxu0 %v5968_v58 }
 0x178   :  { %v5191_v60 = vpop.f32.mrb[19].mxu0  ;;  %v5210_v61 = vpop.f32.mrb[17].mxu1  ;;  %5491 = vmatprep.subr.bf16.mxu0 %v5971_v2  ;;  %v5990_v2 = vld [vmem:[%s7342_s3 + $0x10] sm:$0xff]  }
 0x179   :  { %v3805_v62 = vadd.f32 %v5189_v55, %v7137_v18  ;;  %v5211_v63 = vadd.f32 %v5210_v61, %v5209_v57  ;;  %v5212_v1 = vpop.f32.mrb[18].mxu1  ;;  %5512 = vmatpush3.bf16.msra.mxu1 %v5970_v0  ;;  %v6003_v18 = vmov 0.0   ;;  %v5988_v0 = vld [vmem:[%s7342_s3] sm:$0xff]  }
 0x17a   :  { %v5213_v3 = vpop.f32.mrb[19].mxu1  ;;  %5513 = vmatprep.subr.bf16.mxu1 %v5973_v6  ;;  %v5989_v1 = vld [vmem:[%s7342_s3 + $0x8] sm:$0xff]  }
 0x17b   :  { %v3845_v4 = vadd.f32 %v5211_v63, %v3805_v62  ;;  %5492 = vmatpush3.bf16.msra.mxu0 %v5972_v5  ;;  %v5991_v3 = vld [vmem:[%s7342_s3 + $0x18] sm:$0xff]   ;;  %v5993_v5 = vld [vmem:[%s7342_s3 + $0x28] sm:$0xff]  }
 0x17c   :  { %5493 = vmatprep.subr.bf16.mxu0 %v5975_v8 }
 0x17d   :  { %5514 = vmatpush3.bf16.msra.mxu1 %v5974_v7  ;;  %v5994_v7 = vld [vmem:[%s7342_s3 + $0x30] sm:$0xff]  }
 0x17e   :  { %5515 = vmatprep.subr.bf16.mxu1 %v5977_v10 }
 0x17f   :  { %5494 = vmatpush3.bf16.msra.mxu0 %v5976_v9 }
 0x180   :  { %5541 = vmatprep.subr.bf16.mxu0 %v6003_v18 }
 0x181   :  { %5516 = vmatpush3.bf16.msra.mxu1 %v5978_v13 }
 0x182   :  { %4363 = vmatmul.mubr.bf16.vlgmr.msra.gmra.mrb[44].mxu0 %v1032_v12  ;;  %5561 = vmatprep.subr.bf16.mxu1 %v6003_v18 }
 0x183   :  { %5542 = vmatpush3.bf16.msra.mxu0 %v5980_v17  ;;  %5557 = vmatprep.mubr.msk.bf16.mxu0 %vm6004_vm0, %v6003_v18  ;;  %v5995_v17 = vld [vmem:[%s7342_s3 + $0x38] sm:$0xff]  }
 0x184   :  { %4403 = vmatmul.mubr.bf16.vlgmr.msra.gmra.mrb[44].mxu1 %v1039_v16  ;;  %5543 = vmatprep.subr.bf16.mxu0 %v6003_v18 }
 0x185   :  { %5577 = vmatprep.mubr.msk.bf16.mxu1 %vm6004_vm0, %v6003_v18  ;;  %5562 = vmatpush3.bf16.msra.mxu1 %v5988_v0 }
 0x186   :  { %5563 = vmatprep.subr.bf16.mxu1 %v6003_v18 }
 0x187   :  { %5544 = vmatpush3.bf16.msra.mxu0 %v5981_v20 }
 0x188   :  { %5545 = vmatprep.subr.bf16.mxu0 %v6003_v18 }
 0x189   :  { %5564 = vmatpush3.bf16.msra.mxu1 %v5989_v1 }
 0x18a   :  { %5565 = vmatprep.subr.bf16.mxu1 %v6003_v18 }
 0x18b   :  { %5546 = vmatpush3.bf16.msra.mxu0 %v5982_v34 }
 0x18c   :  { %5547 = vmatprep.subr.bf16.mxu0 %v6003_v18 }
 0x18d   :  { %5566 = vmatpush3.bf16.msra.mxu1 %v5990_v2 }
 0x18e   :  { %5567 = vmatprep.subr.bf16.mxu1 %v6003_v18 }
 0x18f   :  { %5548 = vmatpush3.bf16.msra.mxu0 %v5983_v21 }
 0x190   :  { %5549 = vmatprep.subr.bf16.mxu0 %v6003_v18 }
 0x191   :  { %5568 = vmatpush3.bf16.msra.mxu1 %v5991_v3 }
 0x192   :  { %5569 = vmatprep.subr.bf16.mxu1 %v6003_v18 }
 0x193   :  { %5550 = vmatpush3.bf16.msra.mxu0 %v5984_v22 }
 0x194   :  { %5551 = vmatprep.subr.bf16.mxu0 %v6003_v18 }
 0x195   :  { %v5231_v23 = vpop.f32.mrb[20].mxu0 }
 0x196   :  { %v5232_v24 = vpop.f32.mrb[21].mxu0 }
 0x197   :  { %v5233_v25 = vadd.f32 %v5232_v24, %v5231_v23  ;;  %v5234_v26 = vpop.f32.mrb[22].mxu0  ;;  %v5253_v27 = vpop.f32.mrb[20].mxu1  ;;  %5552 = vmatpush3.bf16.msra.mxu0 %v5985_v28 }
 0x198   :  { %v5235_v29 = vpop.f32.mrb[23].mxu0  ;;  %v5254_v30 = vpop.f32.mrb[21].mxu1  ;;  %5553 = vmatprep.subr.bf16.mxu0 %v6003_v18 }
 0x199   :  { %v3885_v31 = vadd.f32 %v5233_v25, %v3845_v4  ;;  %v5255_v32 = vadd.f32 %v5254_v30, %v5253_v27  ;;  %v5256_v33 = vpop.f32.mrb[22].mxu1  ;;  %v5992_v4 = vld [vmem:[%s7342_s3 + $0x20] sm:$0xff]  }
 0x19a   :  { %v5257_v35 = vpop.f32.mrb[23].mxu1  ;;  %5570 = vmatpush3.bf16.msra.mxu1 %v5992_v4 }
 0x19b   :  { %v3925_v36 = vadd.f32 %v5255_v32, %v3885_v31  ;;  %5554 = vmatpush3.bf16.msra.mxu0 %v5986_v37  ;;  %5571 = vmatprep.subr.bf16.mxu1 %v6003_v18 }
 0x19c   :  { %5555 = vmatprep.subr.bf16.mxu0 %v6003_v18 }
 0x19e   :  { %5572 = vmatpush3.bf16.msra.mxu1 %v5993_v5 }
 0x19f   :  { %5556 = vmatpush3.bf16.msra.mxu0 %v5987_v38  ;;  %5573 = vmatprep.subr.bf16.mxu1 %v6003_v18 }
 0x1a2   :  { %5558 = vmatmul.mubr.bf16.vlgmr.msra.gmra.mrb[48].mxu0 %v4592_v39  ;;  %5574 = vmatpush3.bf16.msra.mxu1 %v5994_v7 }
 0x1a3   :  { %5575 = vmatprep.subr.bf16.mxu1 %v6003_v18 }
 0x1a6   :  { %5576 = vmatpush3.bf16.msra.mxu1 %v5995_v17 }
 0x1b5   :  { %v5275_v40 = vpop.f32.mrb[24].mxu0 }
 0x1b6   :  { %v5276_v41 = vpop.f32.mrb[25].mxu0 }
 0x1b7   :  { %v5277_v42 = vadd.f32 %v5276_v41, %v5275_v40  ;;  %v5278_v43 = vpop.f32.mrb[26].mxu0  ;;  %v5297_v44 = vpop.f32.mrb[24].mxu1 }
 0x1b8   :  { %v5279_v45 = vpop.f32.mrb[27].mxu0  ;;  %v5298_v46 = vpop.f32.mrb[25].mxu1 }
 0x1b9   :  { %v3965_v47 = vadd.f32 %v5277_v42, %v3925_v36  ;;  %v5299_v48 = vadd.f32 %v5298_v46, %v5297_v44  ;;  %v5300_v49 = vpop.f32.mrb[26].mxu1 }
 0x1ba   :  { %v5301_v50 = vpop.f32.mrb[27].mxu1 }
 0x1bb   :  { %v4005_v51 = vadd.f32 %v5299_v48, %v3965_v47 }
 0x1d5   :  { %v5319_v52 = vpop.f32.mrb[28].mxu0 }
 0x1d6   :  { %v5320_v53 = vpop.f32.mrb[29].mxu0 }
 0x1d7   :  { %v5321_v54 = vadd.f32 %v5320_v53, %v5319_v52  ;;  %v5322_v55 = vpop.f32.mrb[30].mxu0  ;;  %v5341_v56 = vpop.f32.mrb[28].mxu1 }
 0x1d8   :  { %v5323_v57 = vpop.f32.mrb[31].mxu0  ;;  %v5342_v58 = vpop.f32.mrb[29].mxu1 }
 0x1d9   :  { %v4045_v59 = vadd.f32 %v5321_v54, %v4005_v51  ;;  %v5343_v60 = vadd.f32 %v5342_v58, %v5341_v56  ;;  %v5344_v61 = vpop.f32.mrb[30].mxu1 }
 0x1da   :  { %v5345_v62 = vpop.f32.mrb[31].mxu1 }
 0x1db   :  { %v4085_v63 = vadd.f32 %v5343_v60, %v4045_v59 }
 0x1f5   :  { %v5363_v6 = vpop.f32.mrb[32].mxu0 }
 0x1f6   :  { %v5364_v8 = vpop.f32.mrb[33].mxu0 }
 0x1f7   :  { %v5365_v9 = vadd.f32 %v5364_v8, %v5363_v6  ;;  %v5366_v10 = vpop.f32.mrb[34].mxu0  ;;  %v5385_v11 = vpop.f32.mrb[32].mxu1 }
 0x1f8   :  { %v5367_v12 = vpop.f32.mrb[35].mxu0  ;;  %v5386_v13 = vpop.f32.mrb[33].mxu1 }
 0x1f9   :  { %v4125_v14 = vadd.f32 %v5365_v9, %v4085_v63  ;;  %v5387_v15 = vadd.f32 %v5386_v13, %v5385_v11  ;;  %v5388_v16 = vpop.f32.mrb[34].mxu1  ;;  %v4985_v63 = vld [vmem:[%s7343_s4] ss:$0 sm:$0xff] }
 0x1fa   :  { %v5389_v19 = vpop.f32.mrb[35].mxu1 }
 0x1fb   :  { %v4165_v20 = vadd.f32 %v5387_v15, %v4125_v14 }
 0x215   :  { %v5407_v34 = vpop.f32.mrb[36].mxu0 }
 0x216   :  { %v5408_v21 = vpop.f32.mrb[37].mxu0 }
 0x217   :  { %v5409_v22 = vadd.f32 %v5408_v21, %v5407_v34  ;;  %v5410_v23 = vpop.f32.mrb[38].mxu0  ;;  %v5429_v24 = vpop.f32.mrb[36].mxu1 }
 0x218   :  { %v5411_v25 = vpop.f32.mrb[39].mxu0  ;;  %v5430_v26 = vpop.f32.mrb[37].mxu1 }
 0x219   :  { %v4205_v27 = vadd.f32 %v5409_v22, %v4165_v20  ;;  %v5431_v28 = vadd.f32 %v5430_v26, %v5429_v24  ;;  %v5432_v18 = vpop.f32.mrb[38].mxu1 }
 0x21a   :  { %v5433_v29 = vpop.f32.mrb[39].mxu1 }
 0x21b   :  { %v4245_v30 = vadd.f32 %v5431_v28, %v4205_v27 }
 0x235   :  { %v5451_v31 = vpop.f32.mrb[40].mxu0 }
 0x236   :  { %v5452_v32 = vpop.f32.mrb[41].mxu0 }
 0x237   :  { %v5453_v33 = vadd.f32 %v5452_v32, %v5451_v31  ;;  %v5454_v35 = vpop.f32.mrb[42].mxu0  ;;  %v5473_v36 = vpop.f32.mrb[40].mxu1 }
 0x238   :  { %v5455_v37 = vpop.f32.mrb[43].mxu0  ;;  %v5474_v38 = vpop.f32.mrb[41].mxu1 }
 0x239   :  { %v4285_v39 = vadd.f32 %v5453_v33, %v4245_v30  ;;  %v5475_v40 = vadd.f32 %v5474_v38, %v5473_v36  ;;  %v5476_v41 = vpop.f32.mrb[42].mxu1 }
 0x23a   :  { %v5477_v42 = vpop.f32.mrb[43].mxu1 }
 0x23b   :  { %v4325_v43 = vadd.f32 %v5475_v40, %v4285_v39 }
 0x255   :  { %v5495_v44 = vpop.f32.mrb[44].mxu0 }
 0x256   :  { %v5496_v45 = vpop.f32.mrb[45].mxu0 }
 0x257   :  { %v5497_v46 = vadd.f32 %v5496_v45, %v5495_v44  ;;  %v5498_v47 = vpop.f32.mrb[46].mxu0  ;;  %v5517_v48 = vpop.f32.mrb[44].mxu1 }
 0x258   :  { %v5499_v49 = vpop.f32.mrb[47].mxu0  ;;  %v5518_v50 = vpop.f32.mrb[45].mxu1 }
 0x259   :  { %v4365_v51 = vadd.f32 %v5497_v46, %v4325_v43  ;;  %v5519_v52 = vadd.f32 %v5518_v50, %v5517_v48  ;;  %v5520_v53 = vpop.f32.mrb[46].mxu1 }
 0x25a   :  { %v5521_v54 = vpop.f32.mrb[47].mxu1 }
 0x25b   :  { %v4405_v55 = vadd.f32 %v5519_v52, %v4365_v51 }
 0x275   :  { %v4444_v56 = vpop.f32.mrb[48].mxu0 }
 0x276   :  { %v4445_v57 = vadd.f32 %v4444_v56, %v4405_v55  ;;  %v5559_v58 = vpop.f32.mrb[49].mxu0 }
 0x277   :  { %v4447_v59 = vpop.f32.mrb[50].mxu0 }
 0x278   :  { %v4450_v60 = vmax.f32 %v4445_v57, 0.0  ;;  %v5560_v61 = vpop.f32.mrb[51].mxu0 }
 0x27a   :  { %v4451_v62 = vpack.c.bf16 %v4450_v60, %v4450_v60 }
 0x27c   :  { %5578 = vmatmul.mubr.bf16.vlgmr.msra.gmra.mrb[48].mxu1 %v4451_v62 }
 0x34f   :  { %v4557_v0 = vpop.f32.mrb[48].mxu1 }
 0x350   :  { %v4558_v1 = vadd.f32 %v4985_v63, %v4557_v0  ;;  %v5579_v2 = vpop.f32.mrb[49].mxu1 }
 0x351   :  { %v4560_v3 = vpop.f32.mrb[50].mxu1 }
 0x352   :  { %v4564_v4 = vrot.slane %v4558_v1, 2  ;;  %v5580_v5 = vpop.f32.mrb[51].mxu1 }
 0x354   :  { %v4566_v6 = vsub.f32 %v4558_v1, %v4564_v4 }
 0x356   :  { %v4567_v7 = vmul.f32 %v4566_v6, %v4566_v6 }
 0x358   :  { %v4569_v8 = vsel %vm4568_vm1, %v4567_v7, 0.0 }
 0x359   :  { %4570 = vadd.xlane.f32.xlu0 %v4569_v8 }
 0x3e6   :  { %v4571_v9 = vpop.xlane.xlu0 %4570 }
 0x3e7   :  { %5996 = vrsqrt.f32 %v4571_v9  ;;  %vm4574_vm2 = vcmp.eq.f32.partialorder %v4571_v9, inf  ;;  %v4577_v12 = vand.u32 2147483648, %v4571_v9  ;;  %vm4576_vm3 = vcmp.eq.f32.partialorder %v4571_v9, 0.0 }
 0x3f1   :  { %v5997_v10 = vpop.eup %5996 }
 0x3f2   :  { %v4573_v11 = vmul.f32 %v5997_v10, %v4571_v9 }
 0x3f4   :  { %v4575_v13 = vsel %vm4574_vm2, %v4571_v9, %v4573_v11 }
 0x3f5   :  { %v4578_v14 = vsel %vm4576_vm3, %v4577_v12, %v4575_v13 }
 0x3f6   :  { %v4994_v15 = vadd.f32 -1.0, %v4578_v14 }
 0x3f8   :  { %v4580_v16 = vmul.f32 1.442695, %v4994_v15 }
 0x3fa   :  { %5998 = vpow2.f32 %v4580_v16 }
 0x404   :  { %v5999_v17 = vpop.eup %5998 }
 0x405   :  { %v4582_v19 = vadd.f32 1.0, %v5999_v17 }
 0x407   :  { %6000 = vrcp.f32 %v4582_v19 }
 0x411   :  { %v6001_v20 = vpop.eup %6000 }
 0x412   :  { %4586 = vst.msk [vmem:[%s7344_s5] sm:$0x3] %vm4585_vm4, %v6001_v20 }

</bundles_post_ra>
